<compile_context>
chip_gen: v6e
topology: v6e:2x2x1
jax: 0.10.0
libtpu: 0.0.40
codegen_flags: <defaults>
</compile_context>

<pallas_src>
import functools

import numpy as np

import jax
import jax.numpy as jnp
from jax.experimental import pallas as pl
from jax.experimental.pallas import tpu as pltpu


def _round_up(n, m):
    return ((n + m - 1) // m) * m


# ----------------------------------------------------------------------------
# Host-side constants.
# Flattened per-image activation layouts (columns of each matmul):
#   a1 : (400,)  pool1 out,  col = co*25 + ph*5 + pw        (16, 5, 5)
#   a2 : ( 32,)  pool2 out,  col = co*4  + qh*2 + qw        ( 8, 2, 2)
#   a3 : (400,)  dec1  out,  col = co*25 + oh*5 + ow        (16, 5, 5)
#   a4 : (1800,) dec2  out,  col = co*225+ oh*15 + ow       ( 8,15,15)
#   y  : (784,)  dec3  out,  col = oh*28 + ow               ( 1,28,28)
# ----------------------------------------------------------------------------

def build_p1_indices():
    """im2col gather indices for enc1 fused with its max-pool.

    p1_idx[t2, m*9 + (i*3+j)] indexes the flattened zero-padded 30x30 input,
    where m = ph*5+pw is the pooled output position, t2 = di*2+dj the pool tap
    and (i, j) the conv1 tap; conv1 output position is (2*ph+di, 2*pw+dj).
    """
    idx = np.zeros((4, 225), np.int32)
    for di in range(2):
        for dj in range(2):
            t2 = di * 2 + dj
            for ph in range(5):
                for pw in range(5):
                    m = ph * 5 + pw
                    h1, w1 = 2 * ph + di, 2 * pw + dj          # conv1 out pos
                    for i in range(3):
                        for j in range(3):
                            idx[t2, m * 9 + i * 3 + j] = (3 * h1 + i) * 30 + (3 * w1 + j)
    return jnp.asarray(idx)


def pack_operators(params):
    """Fold weights + all spatial bookkeeping into dense per-stage operators."""
    w1, b1 = (np.asarray(a, np.float32) for a in params["enc1"])   # (16,1,3,3)
    w2, b2 = (np.asarray(a, np.float32) for a in params["enc2"])   # (8,16,3,3)
    w3, b3 = (np.asarray(a, np.float32) for a in params["dec1"])   # (8,16,3,3)  (Cin,Cout,kh,kw)
    w4, b4 = (np.asarray(a, np.float32) for a in params["dec2"])   # (16,8,5,5)
    w5, b5 = (np.asarray(a, np.float32) for a in params["dec3"])   # (8,1,2,2)

    # enc1: Conv2d(1,16,3,s=3,p=1)+ReLU+MaxPool(2,2), applied per pool tap.
    # input col = m*9 + (i*3+j)  ->  output col = co*25 + m
    W1e = np.zeros((225, 400), np.float32)
    for co in range(16):
        for m in range(25):
            for i in range(3):
                for j in range(3):
                    W1e[m * 9 + i * 3 + j, co * 25 + m] = w1[co, 0, i, j]
    b1row = np.repeat(b1, 25)[None, :].astype(np.float32)          # (1, 400)

    # enc2: Conv2d(16,8,3,s=2,p=1)+ReLU+MaxPool(2,1), pool taps folded into
    # the operator: output col = t2*32 + co*4 + q, q = qh*2+qw pooled pos,
    # t2 = di*2+dj pool tap; conv2 output position is (qh+di, qw+dj).
    W2e = np.zeros((400, 128), np.float32)
    b2row = np.zeros((1, 128), np.float32)
    for co in range(8):
        for qh in range(2):
            for qw in range(2):
                q = qh * 2 + qw
                for di in range(2):
                    for dj in range(2):
                        t2 = di * 2 + dj
                        col = t2 * 32 + co * 4 + q
                        b2row[0, col] = b2[co]
                        oh, ow = qh + di, qw + dj
                        for ci in range(16):
                            for i in range(3):
                                for j in range(3):
                                    r5, c5 = 2 * oh + i - 1, 2 * ow + j - 1
                                    if 0 <= r5 < 5 and 0 <= c5 < 5:
                                        W2e[ci * 25 + r5 * 5 + c5, col] += w2[co, ci, i, j]

    # dec1: ConvTranspose2d(8,16,3,s=2): (8,2,2) -> (16,5,5); oh=2*ih+i, ow=2*iw+j.
    W3e = np.zeros((32, 400), np.float32)
    for ci in range(8):
        for ih in range(2):
            for iw in range(2):
                for co in range(16):
                    for i in range(3):
                        for j in range(3):
                            oh, ow = 2 * ih + i, 2 * iw + j
                            W3e[ci * 4 + ih * 2 + iw, co * 25 + oh * 5 + ow] += w3[ci, co, i, j]
    b3row = np.repeat(b3, 25)[None, :].astype(np.float32)          # (1, 400)

    # dec2: ConvTranspose2d(16,8,5,s=3,p=1): (16,5,5) -> (8,15,15); oh=3*ih+i-1.
    W4e = np.zeros((400, 1800), np.float32)
    for ci in range(16):
        for ih in range(5):
            for iw in range(5):
                for co in range(8):
                    for i in range(5):
                        for j in range(5):
                            oh, ow = 3 * ih + i - 1, 3 * iw + j - 1
                            if 0 <= oh < 15 and 0 <= ow < 15:
                                W4e[ci * 25 + ih * 5 + iw, co * 225 + oh * 15 + ow] += w4[ci, co, i, j]
    b4row = np.repeat(b4, 225)[None, :].astype(np.float32)         # (1, 1800)

    # dec3: ConvTranspose2d(8,1,2,s=2,p=1): (8,15,15) -> (1,28,28); oh=2*ih+i-1.
    W5e = np.zeros((1800, 784), np.float32)
    for ci in range(8):
        for ih in range(15):
            for iw in range(15):
                for i in range(2):
                    for j in range(2):
                        oh, ow = 2 * ih + i - 1, 2 * iw + j - 1
                        if 0 <= oh < 28 and 0 <= ow < 28:
                            W5e[ci * 225 + ih * 15 + iw, oh * 28 + ow] += w5[ci, 0, i, j]
    b5row = np.full((1, 784), float(b5[0]), np.float32)

    bf = jnp.bfloat16
    return (jnp.asarray(W1e, bf), jnp.asarray(b1row),
            jnp.asarray(W2e, bf), jnp.asarray(b2row),
            jnp.asarray(W3e, bf), jnp.asarray(b3row),
            jnp.asarray(W4e, bf), jnp.asarray(b4row),
            jnp.asarray(W5e, bf), jnp.asarray(b5row))


# ----------------------------------------------------------------------------
# Fused Pallas kernel: whole autoencoder forward for one batch tile.
# ----------------------------------------------------------------------------

def _autoencoder_kernel(p1_ref, w1_ref, b1_ref, w2_ref, b2_ref,
                        w3_ref, b3_ref, w4_ref, b4_ref, w5_ref, b5_ref,
                        out_ref):
    dot = functools.partial(jnp.dot, preferred_element_type=jnp.float32)
    bf16 = jnp.bfloat16

    # Stage 1: Conv(1,16,3,s3,p1)+ReLU fused with MaxPool(2,2).
    # One (BT,225)@(225,400) matmul per pool tap, combined with max.
    a1 = None
    for t2 in range(4):
        z = jnp.maximum(dot(p1_ref[t2], w1_ref[...]) + b1_ref[...], 0.0)
        a1 = z if a1 is None else jnp.maximum(a1, z)

    # Stage 2: Conv(16,8,3,s2,p1)+ReLU fused with MaxPool(2,1).
    # One (BT,400)@(400,128) matmul; the 4 pool taps are contiguous
    # 32-column groups, combined by a group max.
    pre = jnp.maximum(dot(a1.astype(bf16), w2_ref[...]) + b2_ref[...], 0.0)
    a2 = jnp.maximum(jnp.maximum(pre[:, 0:32], pre[:, 32:64]),
                     jnp.maximum(pre[:, 64:96], pre[:, 96:128]))

    # Stage 3: ConvTranspose(8,16,3,s2) + ReLU   -> (BT,32)@(32,400)
    a3 = jnp.maximum(dot(a2.astype(bf16), w3_ref[...]) + b3_ref[...], 0.0)

    # Stage 4: ConvTranspose(16,8,5,s3,p1) + ReLU -> (BT,400)@(400,1800)
    a4 = jnp.maximum(dot(a3.astype(bf16), w4_ref[...]) + b4_ref[...], 0.0)

    # Stage 5: ConvTranspose(8,1,2,s2,p1) + Tanh  -> (BT,1800)@(1800,784)
    z = dot(a4.astype(bf16), w5_ref[...]) + b5_ref[...]
    out_ref[...] = jnp.tanh(z)


def _const_spec(shape):
    nd = len(shape)
    return pl.BlockSpec(shape, lambda b: (0,) * nd)


def _fused_forward(ops, p1_idx, x, *, block_batch=128):
    (W1e, b1r, W2e, b2r, W3e, b3r, W4e, b4r, W5e, b5r) = ops
    bsz = x.shape[0]
    bt = min(block_batch, _round_up(bsz, 8))   # batch tile (sublane-aligned)
    bp = _round_up(bsz, bt)                    # padded batch

    # Only host-side work: zero-pad + a tiny im2col gather for the first layer,
    # and one reshape of the output.  Everything else happens inside the kernel.
    xp = jnp.pad(x[:, 0], ((0, bp - bsz), (1, 1), (1, 1))).reshape(bp, 30 * 30)
    p1 = jnp.transpose(xp[:, p1_idx], (1, 0, 2)).astype(jnp.bfloat16)  # (4, bp, 225)

    const_args = (W1e, b1r, W2e, b2r, W3e, b3r, W4e, b4r, W5e, b5r)
    in_specs = [pl.BlockSpec((4, bt, 225), lambda b: (0, b, 0))]
    in_specs += [_const_spec(a.shape) for a in const_args]

    out = pl.pallas_call(
        _autoencoder_kernel,
        out_shape=jax.ShapeDtypeStruct((bp, 28 * 28), jnp.float32),
        grid=(bp // bt,),
        in_specs=in_specs,
        out_specs=pl.BlockSpec((bt, 28 * 28), lambda b: (b, 0)),
        compiler_params=pltpu.CompilerParams(
            dimension_semantics=("parallel",),
            vmem_limit_bytes=32 * 1024 * 1024),
    )(p1, *const_args)
    return out[:bsz].reshape(bsz, 1, 28, 28)


# ----------------------------------------------------------------------------
# Parameters (PyTorch-style init).
# ----------------------------------------------------------------------------

def init_params(key):
    def conv_init(k, cout, cin, ks):
        k1, k2 = jax.random.split(k)
        bound = 1.0 / (cin * ks * ks) ** 0.5
        w = jax.random.uniform(k1, (cout, cin, ks, ks), jnp.float32, -bound, bound)
        b = jax.random.uniform(k2, (cout,), jnp.float32, -bound, bound)
        return w, b

    def convT_init(k, cin, cout, ks):
        k1, k2 = jax.random.split(k)
        bound = 1.0 / (cout * ks * ks) ** 0.5
        w = jax.random.uniform(k1, (cin, cout, ks, ks), jnp.float32, -bound, bound)
        b = jax.random.uniform(k2, (cout,), jnp.float32, -bound, bound)
        return w, b

    ks = jax.random.split(key, 5)
    return {
        "enc1": conv_init(ks[0], 16, 1, 3),    # Conv2d(1, 16, 3, stride=3, padding=1)
        "enc2": conv_init(ks[1], 8, 16, 3),    # Conv2d(16, 8, 3, stride=2, padding=1)
        "dec1": convT_init(ks[2], 8, 16, 3),   # ConvTranspose2d(8, 16, 3, stride=2)
        "dec2": convT_init(ks[3], 16, 8, 5),   # ConvTranspose2d(16, 8, 5, stride=3, padding=1)
        "dec3": convT_init(ks[4], 8, 1, 2),    # ConvTranspose2d(8, 1, 2, stride=2, padding=1)
    }


# ----------------------------------------------------------------------------
# Pure-JAX reference (same PyTorch semantics) for a correctness check.
# ----------------------------------------------------------------------------

def reference_forward(params, x):
    dn = ("NCHW", "OIHW", "NCHW")
    hi = jax.lax.Precision.HIGHEST

    def conv(x, w, b, s, p):
        y = jax.lax.conv_general_dilated(x, w, (s, s), [(p, p), (p, p)],
                                         dimension_numbers=dn, precision=hi)
        return y + b.reshape(1, -1, 1, 1)

    def convT(x, w, b, s, p):
        k = w.shape[2]
        w_eq = jnp.flip(w, (2, 3)).transpose(1, 0, 2, 3)
        y = jax.lax.conv_general_dilated(x, w_eq, (1, 1),
                                         [(k - 1 - p, k - 1 - p)] * 2,
                                         lhs_dilation=(s, s),
                                         dimension_numbers=dn, precision=hi)
        return y + b.reshape(1, -1, 1, 1)

    def maxpool(x, k, s):
        return jax.lax.reduce_window(x, -jnp.inf, jax.lax.max,
                                     (1, 1, k, k), (1, 1, s, s), "VALID")

    w, b = params["enc1"]; x = jax.nn.relu(conv(x, w, b, 3, 1)); x = maxpool(x, 2, 2)
    w, b = params["enc2"]; x = jax.nn.relu(conv(x, w, b, 2, 1)); x = maxpool(x, 2, 1)
    w, b = params["dec1"]; x = jax.nn.relu(convT(x, w, b, 2, 0))
    w, b = params["dec2"]; x = jax.nn.relu(convT(x, w, b, 3, 1))
    w, b = params["dec3"]; x = jnp.tanh(convT(x, w, b, 2, 1))
    return x


# ----------------------------------------------------------------------------

if __name__ == "__main__":
    key = jax.random.PRNGKey(0)
    pkey, xkey = jax.random.split(key)
    params = init_params(pkey)
    x = jax.random.normal(xkey, (2, 1, 28, 28), jnp.float32)  # MNIST-shaped input

    ops = pack_operators(params)       # one-time weight -> dense-operator packing
    p1_idx = build_p1_indices()        # one-time im2col index constants

    fwd = jax.jit(_fused_forward)
    y = fwd(ops, p1_idx, x)
    jax.block_until_ready(y)

    assert y.shape == (2, 1, 28, 28), y.shape
    assert bool(jnp.all(jnp.isfinite(y)))
    assert bool(jnp.all(jnp.abs(y) <= 1.0 + 1e-6))            # tanh output range

    y_ref = reference_forward(params, x)
    assert bool(jnp.allclose(y, y_ref, atol=2e-2, rtol=2e-2)), (
        float(jnp.max(jnp.abs(y - y_ref))))

    print("KERNEL_OK")
</pallas_src>

<mosaic_0001>
module attributes {stable_mosaic.version = 11 : i64} {
  func.func @_autoencoder_kernel(%arg0: i32, %arg1: memref<4x8x225xbf16, #tpu.memory_space<vmem>>, %arg2: memref<225x400xbf16, #tpu.memory_space<vmem>>, %arg3: memref<1x400xf32, #tpu.memory_space<vmem>>, %arg4: memref<400x128xbf16, #tpu.memory_space<vmem>>, %arg5: memref<1x128xf32, #tpu.memory_space<vmem>>, %arg6: memref<32x400xbf16, #tpu.memory_space<vmem>>, %arg7: memref<1x400xf32, #tpu.memory_space<vmem>>, %arg8: memref<400x1800xbf16, #tpu.memory_space<vmem>>, %arg9: memref<1x1800xf32, #tpu.memory_space<vmem>>, %arg10: memref<1800x784xbf16, #tpu.memory_space<vmem>>, %arg11: memref<1x784xf32, #tpu.memory_space<vmem>>, %arg12: memref<8x784xf32, #tpu.memory_space<vmem>>) attributes {dimension_semantics = [#tpu.dimension_semantics<parallel>], iteration_bounds = array<i64: 1>, scalar_prefetch = 0 : i64, scratch_operands = 0 : i64, tpu.core_type = #tpu.core_type<tc>, window_params = [{transform_indices = @transform_0, window_bounds = array<i64: 4, 8, 225>}, {pipeline_mode = #tpu.pipeline_mode<synchronous>, transform_indices = @transform_1, window_bounds = array<i64: 225, 400>}, {pipeline_mode = #tpu.pipeline_mode<synchronous>, transform_indices = @transform_2, window_bounds = array<i64: 1, 400>}, {pipeline_mode = #tpu.pipeline_mode<synchronous>, transform_indices = @transform_3, window_bounds = array<i64: 400, 128>}, {pipeline_mode = #tpu.pipeline_mode<synchronous>, transform_indices = @transform_4, window_bounds = array<i64: 1, 128>}, {pipeline_mode = #tpu.pipeline_mode<synchronous>, transform_indices = @transform_5, window_bounds = array<i64: 32, 400>}, {pipeline_mode = #tpu.pipeline_mode<synchronous>, transform_indices = @transform_6, window_bounds = array<i64: 1, 400>}, {pipeline_mode = #tpu.pipeline_mode<synchronous>, transform_indices = @transform_7, window_bounds = array<i64: 400, 1800>}, {pipeline_mode = #tpu.pipeline_mode<synchronous>, transform_indices = @transform_8, window_bounds = array<i64: 1, 1800>}, {pipeline_mode = #tpu.pipeline_mode<synchronous>, transform_indices = @transform_9, window_bounds = array<i64: 1800, 784>}, {pipeline_mode = #tpu.pipeline_mode<synchronous>, transform_indices = @transform_10, window_bounds = array<i64: 1, 784>}, {transform_indices = @transform_11, window_bounds = array<i64: 8, 784>}]} {
    %c0 = arith.constant 0 : index
    %c0_0 = arith.constant 0 : index
    %c0_1 = arith.constant 0 : index
    %0 = vector.load %arg1[%c0, %c0_0, %c0_1] : memref<4x8x225xbf16, #tpu.memory_space<vmem>>, vector<1x8x225xbf16>
    %1 = vector.shape_cast %0 : vector<1x8x225xbf16> to vector<8x225xbf16>
    %c0_2 = arith.constant 0 : index
    %c0_3 = arith.constant 0 : index
    %2 = vector.load %arg2[%c0_2, %c0_3] : memref<225x400xbf16, #tpu.memory_space<vmem>>, vector<225x400xbf16>
    %cst = arith.constant dense<0.000000e+00> : vector<8x400xf32>
    %3 = tpu.matmul %1, %2, %cst {dimension_numbers = #tpu.dot_dimension_numbers<[1], [0], [0], [1], [0, 0, 1, 1], [], []>} : vector<8x225xbf16>, vector<225x400xbf16>, vector<8x400xf32> -> vector<8x400xf32>
    %c0_4 = arith.constant 0 : index
    %c0_5 = arith.constant 0 : index
    %4 = vector.load %arg3[%c0_4, %c0_5] : memref<1x400xf32, #tpu.memory_space<vmem>>, vector<1x400xf32>
    %5 = vector.broadcast %4 : vector<1x400xf32> to vector<8x400xf32>
    %6 = arith.addf %3, %5 : vector<8x400xf32>
    %cst_6 = arith.constant 0.000000e+00 : f32
    %7 = vector.broadcast %cst_6 : f32 to vector<8x400xf32>
    %8 = arith.maximumf %6, %7 : vector<8x400xf32>
    %c1 = arith.constant 1 : index
    %c0_7 = arith.constant 0 : index
    %c0_8 = arith.constant 0 : index
    %9 = vector.load %arg1[%c1, %c0_7, %c0_8] : memref<4x8x225xbf16, #tpu.memory_space<vmem>>, vector<1x8x225xbf16>
    %10 = vector.shape_cast %9 : vector<1x8x225xbf16> to vector<8x225xbf16>
    %c0_9 = arith.constant 0 : index
    %c0_10 = arith.constant 0 : index
    %11 = vector.load %arg2[%c0_9, %c0_10] : memref<225x400xbf16, #tpu.memory_space<vmem>>, vector<225x400xbf16>
    %cst_11 = arith.constant dense<0.000000e+00> : vector<8x400xf32>
    %12 = tpu.matmul %10, %11, %cst_11 {dimension_numbers = #tpu.dot_dimension_numbers<[1], [0], [0], [1], [0, 0, 1, 1], [], []>} : vector<8x225xbf16>, vector<225x400xbf16>, vector<8x400xf32> -> vector<8x400xf32>
    %c0_12 = arith.constant 0 : index
    %c0_13 = arith.constant 0 : index
    %13 = vector.load %arg3[%c0_12, %c0_13] : memref<1x400xf32, #tpu.memory_space<vmem>>, vector<1x400xf32>
    %14 = vector.broadcast %13 : vector<1x400xf32> to vector<8x400xf32>
    %15 = arith.addf %12, %14 : vector<8x400xf32>
    %cst_14 = arith.constant 0.000000e+00 : f32
    %16 = vector.broadcast %cst_14 : f32 to vector<8x400xf32>
    %17 = arith.maximumf %15, %16 : vector<8x400xf32>
    %18 = arith.maximumf %8, %17 : vector<8x400xf32>
    %c2 = arith.constant 2 : index
    %c0_15 = arith.constant 0 : index
    %c0_16 = arith.constant 0 : index
    %19 = vector.load %arg1[%c2, %c0_15, %c0_16] : memref<4x8x225xbf16, #tpu.memory_space<vmem>>, vector<1x8x225xbf16>
    %20 = vector.shape_cast %19 : vector<1x8x225xbf16> to vector<8x225xbf16>
    %c0_17 = arith.constant 0 : index
    %c0_18 = arith.constant 0 : index
    %21 = vector.load %arg2[%c0_17, %c0_18] : memref<225x400xbf16, #tpu.memory_space<vmem>>, vector<225x400xbf16>
    %cst_19 = arith.constant dense<0.000000e+00> : vector<8x400xf32>
    %22 = tpu.matmul %20, %21, %cst_19 {dimension_numbers = #tpu.dot_dimension_numbers<[1], [0], [0], [1], [0, 0, 1, 1], [], []>} : vector<8x225xbf16>, vector<225x400xbf16>, vector<8x400xf32> -> vector<8x400xf32>
    %c0_20 = arith.constant 0 : index
    %c0_21 = arith.constant 0 : index
    %23 = vector.load %arg3[%c0_20, %c0_21] : memref<1x400xf32, #tpu.memory_space<vmem>>, vector<1x400xf32>
    %24 = vector.broadcast %23 : vector<1x400xf32> to vector<8x400xf32>
    %25 = arith.addf %22, %24 : vector<8x400xf32>
    %cst_22 = arith.constant 0.000000e+00 : f32
    %26 = vector.broadcast %cst_22 : f32 to vector<8x400xf32>
    %27 = arith.maximumf %25, %26 : vector<8x400xf32>
    %28 = arith.maximumf %18, %27 : vector<8x400xf32>
    %c3 = arith.constant 3 : index
    %c0_23 = arith.constant 0 : index
    %c0_24 = arith.constant 0 : index
    %29 = vector.load %arg1[%c3, %c0_23, %c0_24] : memref<4x8x225xbf16, #tpu.memory_space<vmem>>, vector<1x8x225xbf16>
    %30 = vector.shape_cast %29 : vector<1x8x225xbf16> to vector<8x225xbf16>
    %c0_25 = arith.constant 0 : index
    %c0_26 = arith.constant 0 : index
    %31 = vector.load %arg2[%c0_25, %c0_26] : memref<225x400xbf16, #tpu.memory_space<vmem>>, vector<225x400xbf16>
    %cst_27 = arith.constant dense<0.000000e+00> : vector<8x400xf32>
    %32 = tpu.matmul %30, %31, %cst_27 {dimension_numbers = #tpu.dot_dimension_numbers<[1], [0], [0], [1], [0, 0, 1, 1], [], []>} : vector<8x225xbf16>, vector<225x400xbf16>, vector<8x400xf32> -> vector<8x400xf32>
    %c0_28 = arith.constant 0 : index
    %c0_29 = arith.constant 0 : index
    %33 = vector.load %arg3[%c0_28, %c0_29] : memref<1x400xf32, #tpu.memory_space<vmem>>, vector<1x400xf32>
    %34 = vector.broadcast %33 : vector<1x400xf32> to vector<8x400xf32>
    %35 = arith.addf %32, %34 : vector<8x400xf32>
    %cst_30 = arith.constant 0.000000e+00 : f32
    %36 = vector.broadcast %cst_30 : f32 to vector<8x400xf32>
    %37 = arith.maximumf %35, %36 : vector<8x400xf32>
    %38 = arith.maximumf %28, %37 : vector<8x400xf32>
    %39 = arith.truncf %38 : vector<8x400xf32> to vector<8x400xbf16>
    %c0_31 = arith.constant 0 : index
    %c0_32 = arith.constant 0 : index
    %40 = vector.load %arg4[%c0_31, %c0_32] : memref<400x128xbf16, #tpu.memory_space<vmem>>, vector<400x128xbf16>
    %cst_33 = arith.constant dense<0.000000e+00> : vector<8x128xf32>
    %41 = tpu.matmul %39, %40, %cst_33 {dimension_numbers = #tpu.dot_dimension_numbers<[1], [0], [0], [1], [0, 0, 1, 1], [], []>} : vector<8x400xbf16>, vector<400x128xbf16>, vector<8x128xf32> -> vector<8x128xf32>
    %c0_34 = arith.constant 0 : index
    %c0_35 = arith.constant 0 : index
    %42 = vector.load %arg5[%c0_34, %c0_35] : memref<1x128xf32, #tpu.memory_space<vmem>>, vector<1x128xf32>
    %43 = vector.broadcast %42 : vector<1x128xf32> to vector<8x128xf32>
    %44 = arith.addf %41, %43 : vector<8x128xf32>
    %cst_36 = arith.constant 0.000000e+00 : f32
    %45 = vector.broadcast %cst_36 : f32 to vector<8x128xf32>
    %46 = arith.maximumf %44, %45 : vector<8x128xf32>
    %47 = vector.extract_strided_slice %46 {offsets = [0, 0], sizes = [8, 32], strides = [1, 1]} : vector<8x128xf32> to vector<8x32xf32>
    %48 = vector.extract_strided_slice %46 {offsets = [0, 32], sizes = [8, 32], strides = [1, 1]} : vector<8x128xf32> to vector<8x32xf32>
    %49 = arith.maximumf %47, %48 : vector<8x32xf32>
    %50 = vector.extract_strided_slice %46 {offsets = [0, 64], sizes = [8, 32], strides = [1, 1]} : vector<8x128xf32> to vector<8x32xf32>
    %51 = vector.extract_strided_slice %46 {offsets = [0, 96], sizes = [8, 32], strides = [1, 1]} : vector<8x128xf32> to vector<8x32xf32>
    %52 = arith.maximumf %50, %51 : vector<8x32xf32>
    %53 = arith.maximumf %49, %52 : vector<8x32xf32>
    %54 = arith.truncf %53 : vector<8x32xf32> to vector<8x32xbf16>
    %c0_37 = arith.constant 0 : index
    %c0_38 = arith.constant 0 : index
    %55 = vector.load %arg6[%c0_37, %c0_38] : memref<32x400xbf16, #tpu.memory_space<vmem>>, vector<32x400xbf16>
    %cst_39 = arith.constant dense<0.000000e+00> : vector<8x400xf32>
    %56 = tpu.matmul %54, %55, %cst_39 {dimension_numbers = #tpu.dot_dimension_numbers<[1], [0], [0], [1], [0, 0, 1, 1], [], []>} : vector<8x32xbf16>, vector<32x400xbf16>, vector<8x400xf32> -> vector<8x400xf32>
    %c0_40 = arith.constant 0 : index
    %c0_41 = arith.constant 0 : index
    %57 = vector.load %arg7[%c0_40, %c0_41] : memref<1x400xf32, #tpu.memory_space<vmem>>, vector<1x400xf32>
    %58 = vector.broadcast %57 : vector<1x400xf32> to vector<8x400xf32>
    %59 = arith.addf %56, %58 : vector<8x400xf32>
    %cst_42 = arith.constant 0.000000e+00 : f32
    %60 = vector.broadcast %cst_42 : f32 to vector<8x400xf32>
    %61 = arith.maximumf %59, %60 : vector<8x400xf32>
    %62 = arith.truncf %61 : vector<8x400xf32> to vector<8x400xbf16>
    %c0_43 = arith.constant 0 : index
    %c0_44 = arith.constant 0 : index
    %63 = vector.load %arg8[%c0_43, %c0_44] : memref<400x1800xbf16, #tpu.memory_space<vmem>>, vector<400x1800xbf16>
    %cst_45 = arith.constant dense<0.000000e+00> : vector<8x1800xf32>
    %64 = tpu.matmul %62, %63, %cst_45 {dimension_numbers = #tpu.dot_dimension_numbers<[1], [0], [0], [1], [0, 0, 1, 1], [], []>} : vector<8x400xbf16>, vector<400x1800xbf16>, vector<8x1800xf32> -> vector<8x1800xf32>
    %c0_46 = arith.constant 0 : index
    %c0_47 = arith.constant 0 : index
    %65 = vector.load %arg9[%c0_46, %c0_47] : memref<1x1800xf32, #tpu.memory_space<vmem>>, vector<1x1800xf32>
    %66 = vector.broadcast %65 : vector<1x1800xf32> to vector<8x1800xf32>
    %67 = arith.addf %64, %66 : vector<8x1800xf32>
    %cst_48 = arith.constant 0.000000e+00 : f32
    %68 = vector.broadcast %cst_48 : f32 to vector<8x1800xf32>
    %69 = arith.maximumf %67, %68 : vector<8x1800xf32>
    %70 = arith.truncf %69 : vector<8x1800xf32> to vector<8x1800xbf16>
    %c0_49 = arith.constant 0 : index
    %c0_50 = arith.constant 0 : index
    %71 = vector.load %arg10[%c0_49, %c0_50] : memref<1800x784xbf16, #tpu.memory_space<vmem>>, vector<1800x784xbf16>
    %cst_51 = arith.constant dense<0.000000e+00> : vector<8x784xf32>
    %72 = tpu.matmul %70, %71, %cst_51 {dimension_numbers = #tpu.dot_dimension_numbers<[1], [0], [0], [1], [0, 0, 1, 1], [], []>} : vector<8x1800xbf16>, vector<1800x784xbf16>, vector<8x784xf32> -> vector<8x784xf32>
    %c0_52 = arith.constant 0 : index
    %c0_53 = arith.constant 0 : index
    %73 = vector.load %arg11[%c0_52, %c0_53] : memref<1x784xf32, #tpu.memory_space<vmem>>, vector<1x784xf32>
    %74 = vector.broadcast %73 : vector<1x784xf32> to vector<8x784xf32>
    %75 = arith.addf %72, %74 : vector<8x784xf32>
    %76 = math.tanh %75 : vector<8x784xf32>
    %c0_54 = arith.constant 0 : index
    %c0_55 = arith.constant 0 : index
    %77 = vector.load %arg12[%c0_54, %c0_55] : memref<8x784xf32, #tpu.memory_space<vmem>>, vector<8x784xf32>
    tpu.vector_store %arg12[%c0_54, %c0_55], %76 {strides = array<i32>} : memref<8x784xf32, #tpu.memory_space<vmem>>, vector<8x784xf32>,
    return
  }
  func.func @transform_0(%arg0: i32) -> (i32, i32, i32) {
    %c0_i32 = arith.constant 0 : i32
    %c0_i32_0 = arith.constant 0 : i32
    %c0_i32_1 = arith.constant 0 : i32
    return %c0_i32, %arg0, %c0_i32_0 : i32, i32, i32
  }
  func.func @transform_1(%arg0: i32) -> (i32, i32) {
    %c0_i32 = arith.constant 0 : i32
    %c0_i32_0 = arith.constant 0 : i32
    %c0_i32_1 = arith.constant 0 : i32
    return %c0_i32, %c0_i32_0 : i32, i32
  }
  func.func @transform_2(%arg0: i32) -> (i32, i32) {
    %c0_i32 = arith.constant 0 : i32
    %c0_i32_0 = arith.constant 0 : i32
    %c0_i32_1 = arith.constant 0 : i32
    return %c0_i32, %c0_i32_0 : i32, i32
  }
  func.func @transform_3(%arg0: i32) -> (i32, i32) {
    %c0_i32 = arith.constant 0 : i32
    %c0_i32_0 = arith.constant 0 : i32
    %c0_i32_1 = arith.constant 0 : i32
    return %c0_i32, %c0_i32_0 : i32, i32
  }
  func.func @transform_4(%arg0: i32) -> (i32, i32) {
    %c0_i32 = arith.constant 0 : i32
    %c0_i32_0 = arith.constant 0 : i32
    %c0_i32_1 = arith.constant 0 : i32
    return %c0_i32, %c0_i32_0 : i32, i32
  }
  func.func @transform_5(%arg0: i32) -> (i32, i32) {
    %c0_i32 = arith.constant 0 : i32
    %c0_i32_0 = arith.constant 0 : i32
    %c0_i32_1 = arith.constant 0 : i32
    return %c0_i32, %c0_i32_0 : i32, i32
  }
  func.func @transform_6(%arg0: i32) -> (i32, i32) {
    %c0_i32 = arith.constant 0 : i32
    %c0_i32_0 = arith.constant 0 : i32
    %c0_i32_1 = arith.constant 0 : i32
    return %c0_i32, %c0_i32_0 : i32, i32
  }
  func.func @transform_7(%arg0: i32) -> (i32, i32) {
    %c0_i32 = arith.constant 0 : i32
    %c0_i32_0 = arith.constant 0 : i32
    %c0_i32_1 = arith.constant 0 : i32
    return %c0_i32, %c0_i32_0 : i32, i32
  }
  func.func @transform_8(%arg0: i32) -> (i32, i32) {
    %c0_i32 = arith.constant 0 : i32
    %c0_i32_0 = arith.constant 0 : i32
    %c0_i32_1 = arith.constant 0 : i32
    return %c0_i32, %c0_i32_0 : i32, i32
  }
  func.func @transform_9(%arg0: i32) -> (i32, i32) {
    %c0_i32 = arith.constant 0 : i32
    %c0_i32_0 = arith.constant 0 : i32
    %c0_i32_1 = arith.constant 0 : i32
    return %c0_i32, %c0_i32_0 : i32, i32
  }
  func.func @transform_10(%arg0: i32) -> (i32, i32) {
    %c0_i32 = arith.constant 0 : i32
    %c0_i32_0 = arith.constant 0 : i32
    %c0_i32_1 = arith.constant 0 : i32
    return %c0_i32, %c0_i32_0 : i32, i32
  }
  func.func @transform_11(%arg0: i32) -> (i32, i32) {
    %c0_i32 = arith.constant 0 : i32
    %c0_i32_0 = arith.constant 0 : i32
    return %arg0, %c0_i32 : i32, i32
  }
}

</mosaic_0001>

<bundles_post_ra>
// kernel: _fused_forward.1
= control target key start
LH: loop header
LB: loop body
LE: loop exit
PB: predicated region body
PF: predicated region fallthrough
CT: control target
= control target key end

     0   :  { %vm420_vm0 = vcmask 1040384   ;;  %v18730_v34 = vmov 0   ;;  %vm416_vm1 = vcmask 793600   ;;  %vm1035_vm2 = vcmask 130048   ;;  %s14034_s12 = smov 64   ;;  %s18718_s1 = inlined_call_operand.vmem [shape: bf16[225,400], index: 1, kind: input, shape index: {}]   ;;  %s18719_s0 = inlined_call_operand.vmem [shape: bf16[4,8,225], index: 0, kind: input, shape index: {}]   ;;  %s18720_s3 = inlined_call_operand.vmem [shape: bf16[400,128], index: 3, kind: input, shape index: {}]   ;;  %s18721_s2 = inlined_call_operand.vmem [shape: f32[1,400], index: 2, kind: input, shape index: {}]   ;;  %s18722_s4 = inlined_call_operand.vmem [shape: f32[1,128], index: 4, kind: input, shape index: {}]   ;;  %s18723_s5 = inlined_call_operand.vmem [shape: bf16[32,400], index: 5, kind: input, shape index: {}]   ;;  %s18724_s7 = inlined_call_operand.vmem [shape: bf16[400,1800], index: 7, kind: input, shape index: {}]   ;;  %s18725_s6 = inlined_call_operand.vmem [shape: f32[1,400], index: 6, kind: input, shape index: {}]   ;;  %s18726_s8 = inlined_call_operand.vmem [shape: f32[1,1800], index: 8, kind: input, shape index: {}]   ;;  %s18727_s9 = inlined_call_operand.vmem [shape: bf16[1800,784], index: 9, kind: input, shape index: {}]   ;;  %s18728_s10 = inlined_call_operand.vmem [shape: f32[1,784], index: 10, kind: input, shape index: {}]   ;;  %s18729_s11 = inlined_call_operand.vmem [shape: f32[8,784], index: 11, kind: output, shape index: {}]  }
   0x1   :  { %v14100_v0 = vld [vmem:[%s18718_s1 + $0xe4] ss:$16 sps:$4 sm:$0xff]   ;;  %v14105_v1 = vld [vmem:[%s18718_s1 + $0xec] ss:$16 sps:$4 sm:$0xff]   ;;  %v14111_v2 = vld [vmem:[%s18718_s1 + $0xe0] ss:$16 sps:$4 sm:$0xff]  }
   0x2   :  { %435 = vmatprep.subr.bf16.mxu0 %v14100_v0  ;;  %v14116_v3 = vld [vmem:[%s18718_s1 + $0xe8] ss:$16 sps:$4 sm:$0xff]   ;;  %476 = vmatprep.subr.bf16.mxu1 %v14105_v1  ;;  %v14122_v4 = vld [vmem:[%s18718_s1 + $0xc4] ss:$16 sps:$4 sm:$0xff]   ;;  %v14129_v5 = vld [vmem:[%s18718_s1 + $0xcc] ss:$16 sps:$4 sm:$0xff]  }
   0x3   :  { %436 = vmatpush1.bf16.msra.mxu0 %v14111_v2  ;;  %477 = vmatpush1.bf16.msra.mxu1 %v14116_v3  ;;  %v14134_v6 = vld [vmem:[%s18718_s1 + $0xc0] ss:$16 sps:$4 sm:$0xff]   ;;  %v14140_v7 = vld [vmem:[%s18718_s1 + $0xc8] ss:$16 sps:$4 sm:$0xff]   ;;  %v14146_v8 = vld [vmem:[%s18718_s1 + $0xa4] ss:$16 sps:$4 sm:$0xff]  }
   0x4   :  { %437 = vmatprep.subr.bf16.mxu0 %v14122_v4  ;;  %478 = vmatprep.subr.bf16.mxu1 %v14129_v5  ;;  %v14151_v9 = vld [vmem:[%s18718_s1 + $0xac] ss:$16 sps:$4 sm:$0xff]   ;;  %v14156_v10 = vld [vmem:[%s18718_s1 + $0xa0] ss:$16 sps:$4 sm:$0xff]   ;;  %v14161_v11 = vld [vmem:[%s18718_s1 + $0xa8] ss:$16 sps:$4 sm:$0xff]  }
   0x5   :  { %v14168_v12 = vld [vmem:[%s18718_s1 + $0x84] ss:$16 sps:$4 sm:$0xff]   ;;  %v14175_v13 = vld [vmem:[%s18718_s1 + $0x8c] ss:$16 sps:$4 sm:$0xff]   ;;  %v14180_v14 = vld [vmem:[%s18718_s1 + $0x80] ss:$16 sps:$4 sm:$0xff]  }
   0x6   :  { %v14187_v15 = vld [vmem:[%s18718_s1 + $0x88] ss:$16 sps:$4 sm:$0xff]   ;;  %v14192_v16 = vld [vmem:[%s18718_s1 + $0x64] ss:$16 sps:$4 sm:$0xff]   ;;  %v14199_v17 = vld [vmem:[%s18718_s1 + $0x6c] ss:$16 sps:$4 sm:$0xff]  }
   0x7   :  { %438 = vmatpush1.bf16.msra.mxu0 %v14134_v6  ;;  %479 = vmatpush1.bf16.msra.mxu1 %v14140_v7  ;;  %v14204_v18 = vld [vmem:[%s18718_s1 + $0x60] ss:$16 sps:$4 sm:$0xff]   ;;  %v14209_v19 = vld [vmem:[%s18718_s1 + $0x68] ss:$16 sps:$4 sm:$0xff]   ;;  %v14216_v20 = vld [vmem:[%s18718_s1 + $0x44] ss:$16 sps:$4 sm:$0xff]  }
   0x8   :  { %439 = vmatprep.subr.bf16.mxu0 %v14146_v8  ;;  %480 = vmatprep.subr.bf16.mxu1 %v14151_v9  ;;  %v14223_v21 = vld [vmem:[%s18718_s1 + $0x4c] ss:$16 sps:$4 sm:$0xff]   ;;  %v14230_v22 = vld [vmem:[%s18718_s1 + $0x40] ss:$16 sps:$4 sm:$0xff]   ;;  %v14235_v23 = vld [vmem:[%s18718_s1 + $0x48] ss:$16 sps:$4 sm:$0xff]  }
   0x9   :  { %v14242_v24 = vld [vmem:[%s18718_s1 + $0x24] ss:$16 sps:$4 sm:$0xff]   ;;  %v14247_v25 = vld [vmem:[%s18718_s1 + $0x2c] ss:$16 sps:$4 sm:$0xff]   ;;  %v14258_v28 = vld [vmem:[%s18718_s1 + $0x20] ss:$16 sps:$4 sm:$0xff]  }
   0xa   :  { %v96_v26 = vld [vmem:[%s18718_s1 + $0x1c0] sm:$0x11]  ;;  %v97_v27 = vld [vmem:[%s18718_s1 + $0x1c8] sm:$0x11]  ;;  %v422_v35 = vsel %vm420_vm0, 65535, %v18730_v34  ;;  %vm1201_vm3 = vcmask 261120  }
   0xb   :  { %440 = vmatpush1.bf16.msra.mxu0 %v14156_v10  ;;  %481 = vmatpush1.bf16.msra.mxu1 %v14161_v11  ;;  %v14265_v29 = vld [vmem:[%s18718_s1 + $0x28] ss:$16 sps:$4 sm:$0xff]   ;;  %v14270_v30 = vld [vmem:[%s18718_s1 + $0x4] ss:$16 sps:$4 sm:$0xff]   ;;  %v14277_v31 = vld [vmem:[%s18718_s1 + $0xc] ss:$16 sps:$4 sm:$0xff]   ;;  %v10755_v32 = vcombine.high %v96_v26, %v96_v26  ;;  %v10757_v33 = vcombine.high %v97_v27, %v97_v27  ;;  %v10754_v38 = vcombine.low %v96_v26, %v96_v26 }
   0xc   :  { %441 = vmatprep.subr.bf16.mxu0 %v14168_v12  ;;  %482 = vmatprep.subr.bf16.mxu1 %v14175_v13  ;;  %v14283_v36 = vld [vmem:[%s18718_s1] ss:$16 sps:$4 sm:$0xff]   ;;  %v14290_v37 = vld [vmem:[%s18718_s1 + $0x8] ss:$16 sps:$4 sm:$0xff]   ;;  %v10756_v39 = vcombine.low %v97_v27, %v97_v27  ;;  %v14307_v44 = vld [vmem:[%s18718_s1 + $0x1a4] ss:$16 sps:$4 sm:$0xff]  }
   0xd   :  { %v14294_v40 = vand.u32 %v10755_v32, %v422_v35  ;;  %v14296_v41 = vand.u32 %v10757_v33, %v422_v35  ;;  %v14300_v42 = vand.u32 %v10754_v38, %v422_v35  ;;  %v14314_v45 = vld [vmem:[%s18718_s1 + $0x1ac] ss:$16 sps:$4 sm:$0xff]   ;;  %v14319_v46 = vld [vmem:[%s18718_s1 + $0x1a0] ss:$16 sps:$4 sm:$0xff]   ;;  %v14326_v47 = vld [vmem:[%s18718_s1 + $0x1a8] ss:$16 sps:$4 sm:$0xff]  }
   0xe   :  { %v14302_v43 = vand.u32 %v10756_v39, %v422_v35  ;;  %v14333_v48 = vld [vmem:[%s18718_s1 + $0x184] ss:$16 sps:$4 sm:$0xff]   ;;  %v14338_v49 = vld [vmem:[%s18718_s1 + $0x18c] ss:$16 sps:$4 sm:$0xff]   ;;  %v14348_v52 = vld [vmem:[%s18718_s1 + $0x180] ss:$16 sps:$4 sm:$0xff]  }
   0xf   :  { %442 = vmatpush1.bf16.msra.mxu0 %v14180_v14  ;;  %483 = vmatpush1.bf16.msra.mxu1 %v14187_v15  ;;  %v39_v50 = vld [vmem:[%s18719_s0] sm:$0xff]  ;;  %v14353_v53 = vld [vmem:[%s18718_s1 + $0x188] ss:$16 sps:$4 sm:$0xff]   ;;  %v14365_v55 = vld [vmem:[%s18718_s1 + $0x16c] ss:$16 sps:$4 sm:$0xff]   ;;  %vm9352_vm4 = vcmask 1043456  }
  0x10   :  { %443 = vmatprep.subr.bf16.mxu0 %v14192_v16  ;;  %484 = vmatprep.subr.bf16.mxu1 %v14199_v17  ;;  %v10697_v51 = vcombine.high %v39_v50, %v39_v50  ;;  %v14360_v54 = vld [vmem:[%s18718_s1 + $0x164] ss:$16 sps:$4 sm:$0xff]   ;;  %v14374_v56 = vld [vmem:[%s18718_s1 + $0x160] ss:$16 sps:$4 sm:$0xff]   ;;  %v14379_v57 = vld [vmem:[%s18718_s1 + $0x168] ss:$16 sps:$4 sm:$0xff]   ;;  %v10696_v39 = vcombine.low %v39_v50, %v39_v50 }
  0x11   :  { %v14386_v58 = vld [vmem:[%s18718_s1 + $0x144] ss:$16 sps:$4 sm:$0xff]   ;;  %v14391_v59 = vld [vmem:[%s18718_s1 + $0x14c] ss:$16 sps:$4 sm:$0xff]   ;;  %v14398_v60 = vld [vmem:[%s18718_s1 + $0x140] ss:$16 sps:$4 sm:$0xff]  }
  0x12   :  { %10758 = vmatprep.mubr.msk.bf16.mxu0 %vm416_vm1, %v10697_v51  ;;  %10759 = vmatprep.mubr.msk.bf16.mxu1 %vm416_vm1, %v10697_v51  ;;  %v14403_v61 = vld [vmem:[%s18718_s1 + $0x148] ss:$16 sps:$4 sm:$0xff]   ;;  %v14410_v62 = vld [vmem:[%s18718_s1 + $0x124] ss:$16 sps:$4 sm:$0xff]   ;;  %v14415_v63 = vld [vmem:[%s18718_s1 + $0x12c] ss:$16 sps:$4 sm:$0xff]  }
  0x13   :  { %444 = vmatpush1.bf16.msra.mxu0 %v14204_v18  ;;  %485 = vmatpush1.bf16.msra.mxu1 %v14209_v19  ;;  %v14422_v26 = vld [vmem:[%s18718_s1 + $0x120] ss:$16 sps:$4 sm:$0xff]   ;;  %v14427_v27 = vld [vmem:[%s18718_s1 + $0x128] ss:$16 sps:$4 sm:$0xff]   ;;  %v14434_v32 = vld [vmem:[%s18718_s1 + $0x104] ss:$16 sps:$4 sm:$0xff]  }
  0x14   :  { %445 = vmatprep.subr.bf16.mxu0 %v14216_v20  ;;  %486 = vmatprep.subr.bf16.mxu1 %v14223_v21  ;;  %v14439_v33 = vld [vmem:[%s18718_s1 + $0x10c] ss:$16 sps:$4 sm:$0xff]   ;;  %v14446_v35 = vld [vmem:[%s18718_s1 + $0x100] ss:$16 sps:$4 sm:$0xff]   ;;  %v14451_v38 = vld [vmem:[%s18718_s1 + $0x108] ss:$16 sps:$4 sm:$0xff]  }
  0x15   :  { %v14458_v51 = vld [vmem:[%s18719_s0 + $0x8] sm:$0xff]  ;;  %v14529_v50 = vld [vmem:[%s18719_s0 + $0x10] sm:$0xff]  ;;  %vm9348_vm5 = vcmask 64512   ;;  %vm14036_vm6 = vmmov 0  }
  0x16   :  { %v10762_v34 = vcombine.high %v14458_v51, %v14458_v51 }
  0x17   :  { %446 = vmatpush1.bf16.msra.mxu0 %v14230_v22  ;;  %487 = vmatpush1.bf16.msra.mxu1 %v14235_v23 }
  0x18   :  { %447 = vmatprep.subr.bf16.mxu0 %v14242_v24  ;;  %488 = vmatprep.subr.bf16.mxu1 %v14247_v25 }
  0x1b   :  { %448 = vmatpush1.bf16.msra.mxu0 %v14258_v28  ;;  %489 = vmatpush1.bf16.msra.mxu1 %v14265_v29 }
  0x1c   :  { %449 = vmatprep.subr.bf16.mxu0 %v14270_v30  ;;  %490 = vmatprep.subr.bf16.mxu1 %v14277_v31 }
  0x1f   :  { %450 = vmatpush1.bf16.msra.mxu0 %v14283_v36  ;;  %491 = vmatpush1.bf16.msra.mxu1 %v14290_v37 }
  0x20   :  { %453 = vmatprep.subr.bf16.mxu0 %v14294_v40  ;;  %494 = vmatprep.subr.bf16.mxu1 %v14296_v41 }
  0x23   :  { %454 = vmatpush2.bf16.msra.mxu0 %v14300_v42  ;;  %495 = vmatpush2.bf16.msra.mxu1 %v14302_v43 }
  0x24   :  { %455 = vmatprep.subr.bf16.mxu0 %v14307_v44  ;;  %496 = vmatprep.subr.bf16.mxu1 %v14314_v45 }
  0x27   :  { %456 = vmatpush2.bf16.msra.mxu0 %v14319_v46  ;;  %497 = vmatpush2.bf16.msra.mxu1 %v14326_v47 }
  0x28   :  { %457 = vmatprep.subr.bf16.mxu0 %v14333_v48  ;;  %498 = vmatprep.subr.bf16.mxu1 %v14338_v49 }
  0x2b   :  { %458 = vmatpush2.bf16.msra.mxu0 %v14348_v52  ;;  %499 = vmatpush2.bf16.msra.mxu1 %v14353_v53 }
  0x2c   :  { %459 = vmatprep.subr.bf16.mxu0 %v14360_v54  ;;  %500 = vmatprep.subr.bf16.mxu1 %v14365_v55 }
  0x2f   :  { %460 = vmatpush2.bf16.msra.mxu0 %v14374_v56  ;;  %501 = vmatpush2.bf16.msra.mxu1 %v14379_v57 }
  0x30   :  { %461 = vmatprep.subr.bf16.mxu0 %v14386_v58  ;;  %502 = vmatprep.subr.bf16.mxu1 %v14391_v59 }
  0x33   :  { %462 = vmatpush2.bf16.msra.mxu0 %v14398_v60  ;;  %503 = vmatpush2.bf16.msra.mxu1 %v14403_v61 }
  0x34   :  { %463 = vmatprep.subr.bf16.mxu0 %v14410_v62  ;;  %504 = vmatprep.subr.bf16.mxu1 %v14415_v63 }
  0x37   :  { %464 = vmatpush2.bf16.msra.mxu0 %v14422_v26  ;;  %505 = vmatpush2.bf16.msra.mxu1 %v14427_v27 }
  0x38   :  { %465 = vmatprep.subr.bf16.mxu0 %v14434_v32  ;;  %506 = vmatprep.subr.bf16.mxu1 %v14439_v33 }
  0x3b   :  { %466 = vmatpush2.bf16.msra.mxu0 %v14446_v35  ;;  %507 = vmatpush2.bf16.msra.mxu1 %v14451_v38 }
  0x3c   :  { %532 = vmatprep.subr.bf16.mxu0 %v14100_v0  ;;  %573 = vmatprep.subr.bf16.mxu1 %v14105_v1 }
  0x3e   :  { %468 = vmatmul.mubr.bf16.vlgmr.msra.gmra.mxu0 %v10696_v39  ;;  %509 = vmatmul.mubr.bf16.vlgmr.msra.gmra.mxu1 %v10696_v39  ;;  %v10767_v39 = vcombine.high %v14529_v50, %v14529_v50 }
  0x3f   :  { %533 = vmatpush1.bf16.msra.mxu0 %v14111_v2  ;;  %574 = vmatpush1.bf16.msra.mxu1 %v14116_v3 }
  0x40   :  { %534 = vmatprep.subr.bf16.mxu0 %v14122_v4  ;;  %575 = vmatprep.subr.bf16.mxu1 %v14129_v5 }
  0x41   :  { %10763 = vmatprep.mubr.msk.bf16.mxu0 %vm416_vm1, %v10762_v34  ;;  %10764 = vmatprep.mubr.msk.bf16.mxu1 %vm416_vm1, %v10762_v34  ;;  %v10761_v34 = vcombine.low %v14458_v51, %v14458_v51  ;;  %v10766_v51 = vcombine.low %v14529_v50, %v14529_v50 }
  0x43   :  { %535 = vmatpush1.bf16.msra.mxu0 %v14134_v6  ;;  %576 = vmatpush1.bf16.msra.mxu1 %v14140_v7 }
  0x44   :  { %536 = vmatprep.subr.bf16.mxu0 %v14146_v8  ;;  %577 = vmatprep.subr.bf16.mxu1 %v14151_v9 }
  0x47   :  { %537 = vmatpush1.bf16.msra.mxu0 %v14156_v10  ;;  %578 = vmatpush1.bf16.msra.mxu1 %v14161_v11 }
  0x48   :  { %538 = vmatprep.subr.bf16.mxu0 %v14168_v12  ;;  %579 = vmatprep.subr.bf16.mxu1 %v14175_v13 }
  0x4b   :  { %539 = vmatpush1.bf16.msra.mxu0 %v14180_v14  ;;  %580 = vmatpush1.bf16.msra.mxu1 %v14187_v15 }
  0x4c   :  { %540 = vmatprep.subr.bf16.mxu0 %v14192_v16  ;;  %581 = vmatprep.subr.bf16.mxu1 %v14199_v17 }
  0x4f   :  { %541 = vmatpush1.bf16.msra.mxu0 %v14204_v18  ;;  %582 = vmatpush1.bf16.msra.mxu1 %v14209_v19 }
  0x50   :  { %542 = vmatprep.subr.bf16.mxu0 %v14216_v20  ;;  %583 = vmatprep.subr.bf16.mxu1 %v14223_v21 }
  0x53   :  { %543 = vmatpush1.bf16.msra.mxu0 %v14230_v22  ;;  %584 = vmatpush1.bf16.msra.mxu1 %v14235_v23 }
  0x54   :  { %544 = vmatprep.subr.bf16.mxu0 %v14242_v24  ;;  %585 = vmatprep.subr.bf16.mxu1 %v14247_v25 }
  0x57   :  { %545 = vmatpush1.bf16.msra.mxu0 %v14258_v28  ;;  %586 = vmatpush1.bf16.msra.mxu1 %v14265_v29 }
  0x58   :  { %546 = vmatprep.subr.bf16.mxu0 %v14270_v30  ;;  %587 = vmatprep.subr.bf16.mxu1 %v14277_v31 }
  0x5b   :  { %547 = vmatpush1.bf16.msra.mxu0 %v14283_v36  ;;  %588 = vmatpush1.bf16.msra.mxu1 %v14290_v37 }
  0x5c   :  { %550 = vmatprep.subr.bf16.mxu0 %v14294_v40  ;;  %591 = vmatprep.subr.bf16.mxu1 %v14296_v41 }
  0x5f   :  { %551 = vmatpush2.bf16.msra.mxu0 %v14300_v42  ;;  %592 = vmatpush2.bf16.msra.mxu1 %v14302_v43 }
  0x60   :  { %552 = vmatprep.subr.bf16.mxu0 %v14307_v44  ;;  %593 = vmatprep.subr.bf16.mxu1 %v14314_v45 }
  0x63   :  { %553 = vmatpush2.bf16.msra.mxu0 %v14319_v46  ;;  %594 = vmatpush2.bf16.msra.mxu1 %v14326_v47 }
  0x64   :  { %554 = vmatprep.subr.bf16.mxu0 %v14333_v48  ;;  %595 = vmatprep.subr.bf16.mxu1 %v14338_v49 }
  0x67   :  { %555 = vmatpush2.bf16.msra.mxu0 %v14348_v52  ;;  %596 = vmatpush2.bf16.msra.mxu1 %v14353_v53 }
  0x68   :  { %556 = vmatprep.subr.bf16.mxu0 %v14360_v54  ;;  %597 = vmatprep.subr.bf16.mxu1 %v14365_v55 }
  0x6b   :  { %557 = vmatpush2.bf16.msra.mxu0 %v14374_v56  ;;  %598 = vmatpush2.bf16.msra.mxu1 %v14379_v57 }
  0x6c   :  { %558 = vmatprep.subr.bf16.mxu0 %v14386_v58  ;;  %599 = vmatprep.subr.bf16.mxu1 %v14391_v59 }
  0x6f   :  { %559 = vmatpush2.bf16.msra.mxu0 %v14398_v60  ;;  %600 = vmatpush2.bf16.msra.mxu1 %v14403_v61 }
  0x70   :  { %560 = vmatprep.subr.bf16.mxu0 %v14410_v62  ;;  %601 = vmatprep.subr.bf16.mxu1 %v14415_v63 }
  0x73   :  { %561 = vmatpush2.bf16.msra.mxu0 %v14422_v26  ;;  %602 = vmatpush2.bf16.msra.mxu1 %v14427_v27 }
  0x74   :  { %562 = vmatprep.subr.bf16.mxu0 %v14434_v32  ;;  %603 = vmatprep.subr.bf16.mxu1 %v14439_v33 }
  0x77   :  { %563 = vmatpush2.bf16.msra.mxu0 %v14446_v35  ;;  %604 = vmatpush2.bf16.msra.mxu1 %v14451_v38 }
  0x78   :  { %633 = vmatprep.subr.bf16.mxu0 %v14100_v0  ;;  %674 = vmatprep.subr.bf16.mxu1 %v14105_v1 }
  0x7a   :  { %565 = vmatmul.mubr.bf16.vlgmr.msra.gmra.mxu0 %v10761_v34  ;;  %606 = vmatmul.mubr.bf16.vlgmr.msra.gmra.mxu1 %v10761_v34  ;;  %v14600_v34 = vld [vmem:[%s18719_s0 + $0x18] sm:$0xff] }
  0x7b   :  { %634 = vmatpush1.bf16.msra.mxu0 %v14111_v2  ;;  %675 = vmatpush1.bf16.msra.mxu1 %v14116_v3 }
  0x7c   :  { %635 = vmatprep.subr.bf16.mxu0 %v14122_v4  ;;  %676 = vmatprep.subr.bf16.mxu1 %v14129_v5 }
  0x7d   :  { %10768 = vmatprep.mubr.msk.bf16.mxu0 %vm416_vm1, %v10767_v39  ;;  %10769 = vmatprep.mubr.msk.bf16.mxu1 %vm416_vm1, %v10767_v39  ;;  %v10772_v39 = vcombine.high %v14600_v34, %v14600_v34 }
  0x7f   :  { %636 = vmatpush1.bf16.msra.mxu0 %v14134_v6  ;;  %677 = vmatpush1.bf16.msra.mxu1 %v14140_v7 }
  0x80   :  { %637 = vmatprep.subr.bf16.mxu0 %v14146_v8  ;;  %678 = vmatprep.subr.bf16.mxu1 %v14151_v9 }
  0x83   :  { %638 = vmatpush1.bf16.msra.mxu0 %v14156_v10  ;;  %679 = vmatpush1.bf16.msra.mxu1 %v14161_v11 }
  0x84   :  { %639 = vmatprep.subr.bf16.mxu0 %v14168_v12  ;;  %680 = vmatprep.subr.bf16.mxu1 %v14175_v13 }
  0x87   :  { %640 = vmatpush1.bf16.msra.mxu0 %v14180_v14  ;;  %681 = vmatpush1.bf16.msra.mxu1 %v14187_v15 }
  0x88   :  { %641 = vmatprep.subr.bf16.mxu0 %v14192_v16  ;;  %682 = vmatprep.subr.bf16.mxu1 %v14199_v17 }
  0x8b   :  { %642 = vmatpush1.bf16.msra.mxu0 %v14204_v18  ;;  %683 = vmatpush1.bf16.msra.mxu1 %v14209_v19 }
  0x8c   :  { %643 = vmatprep.subr.bf16.mxu0 %v14216_v20  ;;  %684 = vmatprep.subr.bf16.mxu1 %v14223_v21 }
  0x8f   :  { %644 = vmatpush1.bf16.msra.mxu0 %v14230_v22  ;;  %685 = vmatpush1.bf16.msra.mxu1 %v14235_v23 }
  0x90   :  { %645 = vmatprep.subr.bf16.mxu0 %v14242_v24  ;;  %686 = vmatprep.subr.bf16.mxu1 %v14247_v25 }
  0x93   :  { %646 = vmatpush1.bf16.msra.mxu0 %v14258_v28  ;;  %687 = vmatpush1.bf16.msra.mxu1 %v14265_v29 }
  0x94   :  { %647 = vmatprep.subr.bf16.mxu0 %v14270_v30  ;;  %688 = vmatprep.subr.bf16.mxu1 %v14277_v31 }
  0x97   :  { %648 = vmatpush1.bf16.msra.mxu0 %v14283_v36  ;;  %689 = vmatpush1.bf16.msra.mxu1 %v14290_v37 }
  0x98   :  { %651 = vmatprep.subr.bf16.mxu0 %v14294_v40  ;;  %692 = vmatprep.subr.bf16.mxu1 %v14296_v41 }
  0x9b   :  { %652 = vmatpush2.bf16.msra.mxu0 %v14300_v42  ;;  %693 = vmatpush2.bf16.msra.mxu1 %v14302_v43 }
  0x9c   :  { %653 = vmatprep.subr.bf16.mxu0 %v14307_v44  ;;  %694 = vmatprep.subr.bf16.mxu1 %v14314_v45 }
  0x9f   :  { %654 = vmatpush2.bf16.msra.mxu0 %v14319_v46  ;;  %695 = vmatpush2.bf16.msra.mxu1 %v14326_v47 }
  0xa0   :  { %655 = vmatprep.subr.bf16.mxu0 %v14333_v48  ;;  %696 = vmatprep.subr.bf16.mxu1 %v14338_v49 }
  0xa3   :  { %656 = vmatpush2.bf16.msra.mxu0 %v14348_v52  ;;  %697 = vmatpush2.bf16.msra.mxu1 %v14353_v53 }
  0xa4   :  { %657 = vmatprep.subr.bf16.mxu0 %v14360_v54  ;;  %698 = vmatprep.subr.bf16.mxu1 %v14365_v55 }
  0xa7   :  { %658 = vmatpush2.bf16.msra.mxu0 %v14374_v56  ;;  %699 = vmatpush2.bf16.msra.mxu1 %v14379_v57 }
  0xa8   :  { %659 = vmatprep.subr.bf16.mxu0 %v14386_v58  ;;  %700 = vmatprep.subr.bf16.mxu1 %v14391_v59 }
  0xab   :  { %660 = vmatpush2.bf16.msra.mxu0 %v14398_v60  ;;  %701 = vmatpush2.bf16.msra.mxu1 %v14403_v61 }
  0xac   :  { %661 = vmatprep.subr.bf16.mxu0 %v14410_v62  ;;  %702 = vmatprep.subr.bf16.mxu1 %v14415_v63 }
  0xaf   :  { %662 = vmatpush2.bf16.msra.mxu0 %v14422_v26  ;;  %703 = vmatpush2.bf16.msra.mxu1 %v14427_v27 }
  0xb0   :  { %663 = vmatprep.subr.bf16.mxu0 %v14434_v32  ;;  %704 = vmatprep.subr.bf16.mxu1 %v14439_v33 }
  0xb3   :  { %664 = vmatpush2.bf16.msra.mxu0 %v14446_v35  ;;  %705 = vmatpush2.bf16.msra.mxu1 %v14451_v38 }
  0xb4   :  { %734 = vmatprep.subr.bf16.mxu0 %v14100_v0  ;;  %775 = vmatprep.subr.bf16.mxu1 %v14105_v1  ;;  %v10771_v0 = vcombine.low %v14600_v34, %v14600_v34  ;;  %v18732_v1 = vmov 0  }
  0xb6   :  { %666 = vmatmul.mubr.bf16.vlgmr.msra.gmra.mxu0 %v10766_v51  ;;  %707 = vmatmul.mubr.bf16.vlgmr.msra.gmra.mxu1 %v10766_v51 }
  0xb7   :  { %735 = vmatpush1.bf16.msra.mxu0 %v14111_v2  ;;  %776 = vmatpush1.bf16.msra.mxu1 %v14116_v3 }
  0xb8   :  { %736 = vmatprep.subr.bf16.mxu0 %v14122_v4  ;;  %777 = vmatprep.subr.bf16.mxu1 %v14129_v5  ;;  %v12300_v4 = vld [vmem:[%s18720_s3 + $0xb8] sm:$0xff]  }
  0xb9   :  { %10773 = vmatprep.mubr.msk.bf16.mxu0 %vm416_vm1, %v10772_v39  ;;  %10774 = vmatprep.mubr.msk.bf16.mxu1 %vm416_vm1, %v10772_v39  ;;  %v12301_v5 = vld [vmem:[%s18720_s3 + $0x78] sm:$0xff]  }
  0xbb   :  { %737 = vmatpush1.bf16.msra.mxu0 %v14134_v6  ;;  %778 = vmatpush1.bf16.msra.mxu1 %v14140_v7 }
  0xbc   :  { %738 = vmatprep.subr.bf16.mxu0 %v14146_v8  ;;  %779 = vmatprep.subr.bf16.mxu1 %v14151_v9  ;;  %v12302_v8 = vld [vmem:[%s18720_s3 + $0x38] sm:$0xff]  }
  0xbf   :  { %739 = vmatpush1.bf16.msra.mxu0 %v14156_v10  ;;  %780 = vmatpush1.bf16.msra.mxu1 %v14161_v11  ;;  %v12303_v11 = vld [vmem:[%s18720_s3 + $0xb0] sm:$0xff]  }
  0xc0   :  { %740 = vmatprep.subr.bf16.mxu0 %v14168_v12  ;;  %781 = vmatprep.subr.bf16.mxu1 %v14175_v13  ;;  %v12304_v12 = vld [vmem:[%s18720_s3 + $0x70] sm:$0xff]  }
  0xc1   :  { %v12305_v13 = vld [vmem:[%s18720_s3 + $0x30] sm:$0xff]  }
  0xc3   :  { %741 = vmatpush1.bf16.msra.mxu0 %v14180_v14  ;;  %782 = vmatpush1.bf16.msra.mxu1 %v14187_v15 }
  0xc4   :  { %742 = vmatprep.subr.bf16.mxu0 %v14192_v16  ;;  %783 = vmatprep.subr.bf16.mxu1 %v14199_v17  ;;  %v12306_v16 = vld [vmem:[%s18720_s3 + $0xa8] sm:$0xff]  }
  0xc5   :  { %v12307_v17 = vld [vmem:[%s18720_s3 + $0x68] sm:$0xff]  }
  0xc7   :  { %743 = vmatpush1.bf16.msra.mxu0 %v14204_v18  ;;  %784 = vmatpush1.bf16.msra.mxu1 %v14209_v19  ;;  %v12308_v18 = vld [vmem:[%s18720_s3 + $0x28] sm:$0xff]   ;;  %v12309_v19 = vld [vmem:[%s18720_s3 + $0xa0] sm:$0xff]  }
  0xc8   :  { %744 = vmatprep.subr.bf16.mxu0 %v14216_v20  ;;  %785 = vmatprep.subr.bf16.mxu1 %v14223_v21  ;;  %v12310_v20 = vld [vmem:[%s18720_s3 + $0x60] sm:$0xff]  }
  0xc9   :  { %v12311_v21 = vld [vmem:[%s18720_s3 + $0x20] sm:$0xff]  }
  0xcb   :  { %745 = vmatpush1.bf16.msra.mxu0 %v14230_v22  ;;  %786 = vmatpush1.bf16.msra.mxu1 %v14235_v23  ;;  %v12312_v22 = vld [vmem:[%s18720_s3 + $0x98] sm:$0xff]  }
  0xcc   :  { %746 = vmatprep.subr.bf16.mxu0 %v14242_v24  ;;  %787 = vmatprep.subr.bf16.mxu1 %v14247_v25  ;;  %v12313_v23 = vld [vmem:[%s18720_s3 + $0x58] sm:$0xff]   ;;  %v12315_v25 = vld [vmem:[%s18720_s3 + $0x90] sm:$0xff]  }
  0xcd   :  { %v12314_v24 = vld [vmem:[%s18720_s3 + $0x18] sm:$0xff]  }
  0xcf   :  { %747 = vmatpush1.bf16.msra.mxu0 %v14258_v28  ;;  %788 = vmatpush1.bf16.msra.mxu1 %v14265_v29  ;;  %v100_v28 = vlaneseq }
  0xd0   :  { %748 = vmatprep.subr.bf16.mxu0 %v14270_v30  ;;  %789 = vmatprep.subr.bf16.mxu1 %v14277_v31 }
  0xd1   :  { %v14733_v29 = vshrl.u32 %v100_v28, 7 }
  0xd3   :  { %749 = vmatpush1.bf16.msra.mxu0 %v14283_v36  ;;  %790 = vmatpush1.bf16.msra.mxu1 %v14290_v37  ;;  %v14736_v30 = vsub.s32 0, %v14733_v29  ;;  %v14739_v31 = vsub.s32 2, %v14733_v29  ;;  %v12316_v36 = vld [vmem:[%s18720_s3 + $0x50] sm:$0xff]   ;;  %v98_v37 = vld [vmem:[%s18721_s2] sm:$0xf] }
  0xd4   :  { %752 = vmatprep.subr.bf16.mxu0 %v14294_v40  ;;  %793 = vmatprep.subr.bf16.mxu1 %v14296_v41  ;;  %v12317_v40 = vld [vmem:[%s18720_s3 + $0x10] sm:$0xff]   ;;  %v12318_v41 = vld [vmem:[%s18720_s3 + $0x88] sm:$0xff]  }
  0xd7   :  { %753 = vmatpush2.bf16.msra.mxu0 %v14300_v42  ;;  %794 = vmatpush2.bf16.msra.mxu1 %v14302_v43  ;;  %v14754_v42 = vsub.s32 1, %v14733_v29  ;;  %v14757_v43 = vsub.s32 3, %v14733_v29 }
  0xd8   :  { %754 = vmatprep.subr.bf16.mxu0 %v14307_v44  ;;  %795 = vmatprep.subr.bf16.mxu1 %v14314_v45  ;;  %v14760_v44 = vrot.slane %v98_v37, %v14736_v30  ;;  %v14763_v45 = vrot.slane %v98_v37, %v14739_v31 }
  0xdb   :  { %755 = vmatpush2.bf16.msra.mxu0 %v14319_v46  ;;  %796 = vmatpush2.bf16.msra.mxu1 %v14326_v47  ;;  %v12319_v46 = vld [vmem:[%s18720_s3 + $0x48] sm:$0xff]  }
  0xdc   :  { %756 = vmatprep.subr.bf16.mxu0 %v14333_v48  ;;  %797 = vmatprep.subr.bf16.mxu1 %v14338_v49  ;;  %v12320_v47 = vld [vmem:[%s18720_s3 + $0x8] sm:$0xff]   ;;  %v12321_v48 = vld [vmem:[%s18720_s3 + $0x80] sm:$0xff]   ;;  %v14776_v49 = vrot.slane %v98_v37, %v14754_v42 }
  0xdf   :  { %757 = vmatpush2.bf16.msra.mxu0 %v14348_v52  ;;  %798 = vmatpush2.bf16.msra.mxu1 %v14353_v53  ;;  %v14779_v52 = vrot.slane %v98_v37, %v14757_v43 }
  0xe0   :  { %758 = vmatprep.subr.bf16.mxu0 %v14360_v54  ;;  %799 = vmatprep.subr.bf16.mxu1 %v14365_v55  ;;  %v12322_v55 = vld [vmem:[%s18720_s3 + $0x40] sm:$0xff]  }
  0xe3   :  { %759 = vmatpush2.bf16.msra.mxu0 %v14374_v56  ;;  %800 = vmatpush2.bf16.msra.mxu1 %v14379_v57  ;;  %v12323_v56 = vld [vmem:[%s18720_s3] sm:$0xff]  }
  0xe4   :  { %760 = vmatprep.subr.bf16.mxu0 %v14386_v58  ;;  %801 = vmatprep.subr.bf16.mxu1 %v14391_v59  ;;  %v12324_v57 = vld [vmem:[%s18720_s3 + $0xc0] sm:$0xff]  }
  0xe7   :  { %761 = vmatpush2.bf16.msra.mxu0 %v14398_v60  ;;  %802 = vmatpush2.bf16.msra.mxu1 %v14403_v61 }
  0xe8   :  { %762 = vmatprep.subr.bf16.mxu0 %v14410_v62  ;;  %803 = vmatprep.subr.bf16.mxu1 %v14415_v63 }
  0xeb   :  { %763 = vmatpush2.bf16.msra.mxu0 %v14422_v26  ;;  %804 = vmatpush2.bf16.msra.mxu1 %v14427_v27 }
  0xec   :  { %764 = vmatprep.subr.bf16.mxu0 %v14434_v32  ;;  %805 = vmatprep.subr.bf16.mxu1 %v14439_v33 }
  0xef   :  { %765 = vmatpush2.bf16.msra.mxu0 %v14446_v35  ;;  %806 = vmatpush2.bf16.msra.mxu1 %v14451_v38 }
  0xf0   :  { %1079 = vmatprep.subr.bf16.mxu1 %v18732_v1  ;;  %11993 = vmatprep.subr.bf16.mxu0 %v12301_v5 }
  0xf2   :  { %767 = vmatmul.mubr.bf16.vlgmr.msra.gmra.mxu0 %v10771_v0  ;;  %808 = vmatmul.mubr.bf16.vlgmr.msra.gmra.mxu1 %v10771_v0 }
  0xf3   :  { %1080 = vmatpush1.bf16.msra.mxu1 %v12300_v4  ;;  %11994 = vmatpush3.bf16.msra.mxu0 %v12302_v8 }
  0xf4   :  { %1081 = vmatprep.subr.bf16.mxu1 %v18732_v1  ;;  %11995 = vmatprep.subr.bf16.mxu0 %v12304_v12 }
  0xf7   :  { %1082 = vmatpush1.bf16.msra.mxu1 %v12303_v11  ;;  %11996 = vmatpush3.bf16.msra.mxu0 %v12305_v13 }
  0xf8   :  { %1083 = vmatprep.subr.bf16.mxu1 %v18732_v1  ;;  %11997 = vmatprep.subr.bf16.mxu0 %v12307_v17 }
  0xfb   :  { %1084 = vmatpush1.bf16.msra.mxu1 %v12306_v16  ;;  %11998 = vmatpush3.bf16.msra.mxu0 %v12308_v18 }
  0xfc   :  { %1085 = vmatprep.subr.bf16.mxu1 %v18732_v1  ;;  %11999 = vmatprep.subr.bf16.mxu0 %v12310_v20 }
  0xfe   :  { %v14671_v2 = vpop.f32.mrf.mxu0  ;;  %v14673_v3 = vpop.f32.mrf.mxu1 }
  0xff   :  { %1086 = vmatpush1.bf16.msra.mxu1 %v12309_v19  ;;  %12000 = vmatpush3.bf16.msra.mxu0 %v12311_v21  ;;  %v470_v53 = vadd.f32 %v14671_v2, %v14760_v44  ;;  %v511_v54 = vadd.f32 %v14673_v3, %v14763_v45 }
 0x100   :  { %v14681_v6 = vpop.f32.mrf.mxu0  ;;  %v14683_v7 = vpop.f32.mrf.mxu1  ;;  %1087 = vmatprep.subr.bf16.mxu1 %v18732_v1  ;;  %12001 = vmatprep.subr.bf16.mxu0 %v12313_v23 }
 0x101   :  { %v472_v58 = vadd.f32 %v14681_v6, %v14776_v49  ;;  %v513_v59 = vadd.f32 %v14683_v7, %v14779_v52  ;;  %v517_v26 = vmax.f32 %v470_v53, 0.0  ;;  %v519_v27 = vmax.f32 %v511_v54, 0.0 }
 0x102   :  { %v473_v9 = vpop.f32.mrf.mxu0  ;;  %v514_v10 = vpop.f32.mrf.mxu1 }
 0x103   :  { %1088 = vmatpush1.bf16.msra.mxu1 %v12312_v22  ;;  %12002 = vmatpush3.bf16.msra.mxu0 %v12314_v24  ;;  %v518_v34 = vmax.f32 %v472_v58, 0.0  ;;  %v520_v39 = vmax.f32 %v513_v59, 0.0 }
 0x104   :  { %v474_v14 = vpop.f32.mrf.mxu0  ;;  %v515_v15 = vpop.f32.mrf.mxu1  ;;  %1089 = vmatprep.subr.bf16.mxu1 %v18732_v1  ;;  %12003 = vmatprep.subr.bf16.mxu0 %v12316_v36 }
 0x107   :  { %1090 = vmatpush1.bf16.msra.mxu1 %v12315_v25  ;;  %12004 = vmatpush3.bf16.msra.mxu0 %v12317_v40 }
 0x108   :  { %1091 = vmatprep.subr.bf16.mxu1 %v18732_v1  ;;  %12005 = vmatprep.subr.bf16.mxu0 %v12319_v46 }
 0x10b   :  { %1092 = vmatpush1.bf16.msra.mxu1 %v12318_v41  ;;  %12006 = vmatpush3.bf16.msra.mxu0 %v12320_v47 }
 0x10c   :  { %1093 = vmatprep.subr.bf16.mxu1 %v18732_v1  ;;  %12007 = vmatprep.subr.bf16.mxu0 %v12322_v55 }
 0x10f   :  { %1094 = vmatpush1.bf16.msra.mxu1 %v12321_v48  ;;  %12008 = vmatpush3.bf16.msra.mxu0 %v12323_v56 }
 0x110   :  { %1109 = vmatprep.subr.bf16.mxu1 %v18732_v1 }
 0x113   :  { %1110 = vmatpush2.bf16.msra.mxu1 %v12324_v57 }
 0x13a   :  { %v566_v60 = vpop.f32.mrf.mxu0  ;;  %v607_v61 = vpop.f32.mrf.mxu1 }
 0x13b   :  { %v567_v62 = vadd.f32 %v566_v60, %v14760_v44  ;;  %v608_v63 = vadd.f32 %v607_v61, %v14763_v45 }
 0x13c   :  { %v568_v32 = vpop.f32.mrf.mxu0  ;;  %v609_v33 = vpop.f32.mrf.mxu1 }
 0x13d   :  { %v614_v35 = vmax.f32 %v567_v62, 0.0  ;;  %v616_v38 = vmax.f32 %v608_v63, 0.0  ;;  %v569_v50 = vadd.f32 %v568_v32, %v14776_v49  ;;  %v610_v51 = vadd.f32 %v609_v33, %v14779_v52 }
 0x13e   :  { %v570_v0 = vpop.f32.mrf.mxu0  ;;  %v611_v2 = vpop.f32.mrf.mxu1 }
 0x13f   :  { %v618_v3 = vmax.f32 %v517_v26, %v614_v35  ;;  %v620_v4 = vmax.f32 %v519_v27, %v616_v38  ;;  %v615_v5 = vmax.f32 %v569_v50, 0.0  ;;  %v617_v6 = vmax.f32 %v610_v51, 0.0 }
 0x140   :  { %v571_v7 = vpop.f32.mrf.mxu0  ;;  %v612_v8 = vpop.f32.mrf.mxu1 }
 0x141   :  { %v619_v9 = vmax.f32 %v518_v34, %v615_v5  ;;  %v621_v10 = vmax.f32 %v520_v39, %v617_v6  ;;  %v10775_v34 = vld [vmem:[%s18722_s4] ss:$0 sm:$0xff]  ;;  %v12328_v5 = vld [vmem:[%s18723_s5 + $0x28] ss:$16 sps:$4 sm:$0xff]   ;;  %v12330_v6 = vld [vmem:[%s18723_s5 + $0x2c] ss:$16 sps:$4 sm:$0xff]  }
 0x142   :  { %v12325_v39 = vld [vmem:[%s18723_s5 + $0x20] ss:$16 sps:$4 sm:$0xff]   ;;  %1258 = vmatprep.subr.bf16.mxu1 %v12330_v6  ;;  %s14033_s4 = smov 96  }
 0x143   :  { %v12394_v6 = vld [vmem:[%s18724_s7 + $0x4b0] ss:$60 sps:$4 sm:$0xff]  }
 0x176   :  { %v667_v11 = vpop.f32.mrf.mxu0  ;;  %v708_v12 = vpop.f32.mrf.mxu1 }
 0x177   :  { %v668_v19 = vadd.f32 %v667_v11, %v14760_v44  ;;  %v709_v20 = vadd.f32 %v708_v12, %v14763_v45 }
 0x178   :  { %v669_v13 = vpop.f32.mrf.mxu0  ;;  %v710_v14 = vpop.f32.mrf.mxu1 }
 0x179   :  { %v670_v21 = vadd.f32 %v669_v13, %v14776_v49  ;;  %v711_v22 = vadd.f32 %v710_v14, %v14779_v52  ;;  %v715_v23 = vmax.f32 %v668_v19, 0.0  ;;  %v717_v24 = vmax.f32 %v709_v20, 0.0  ;;  %v12333_v14 = vld [vmem:[%s18723_s5 + $0x4] ss:$16 sps:$4 sm:$0xff]  }
 0x17a   :  { %v671_v15 = vpop.f32.mrf.mxu0  ;;  %v712_v16 = vpop.f32.mrf.mxu1 }
 0x17b   :  { %v716_v36 = vmax.f32 %v670_v21, 0.0  ;;  %v718_v37 = vmax.f32 %v711_v22, 0.0  ;;  %v719_v56 = vmax.f32 %v618_v3, %v715_v23  ;;  %v721_v57 = vmax.f32 %v620_v4, %v717_v24  ;;  %v12327_v3 = vld [vmem:[%s18723_s5 + $0x24] ss:$16 sps:$4 sm:$0xff]   ;;  %v12336_v15 = vld [vmem:[%s18723_s5 + $0xc] ss:$16 sps:$4 sm:$0xff]  }
 0x17c   :  { %v672_v17 = vpop.f32.mrf.mxu0  ;;  %v713_v18 = vpop.f32.mrf.mxu1  ;;  %1217 = vmatprep.subr.bf16.mxu0 %v12327_v3  ;;  %v12331_v16 = vld [vmem:[%s18723_s5] ss:$16 sps:$4 sm:$0xff]   ;;  %v12363_v21 = vld [vmem:[%s18724_s7 + $0xacc] ss:$60 sps:$4 sm:$0xff]  }
 0x17d   :  { %v720_v60 = vmax.f32 %v619_v9, %v716_v36  ;;  %v722_v61 = vmax.f32 %v621_v10, %v718_v37  ;;  %v12334_v17 = vld [vmem:[%s18723_s5 + $0x8] ss:$16 sps:$4 sm:$0xff]   ;;  %v12369_v36 = vld [vmem:[%s18724_s7 + $0xa54] ss:$60 sps:$4 sm:$0xff]  }
 0x17e   :  { %v12339_v18 = vld [vmem:[%s18724_s7 + $0x34c] ss:$60 sps:$4 sm:$0xff]  }
 0x17f   :  { %v12337_v23 = vld [vmem:[%s18724_s7 + $0x348] ss:$60 sps:$4 sm:$0xff]  }
 0x180   :  { %v12361_v24 = vld [vmem:[%s18724_s7 + $0xac8] ss:$60 sps:$4 sm:$0xff]  }
 0x181   :  { %v12390_v3 = vld [vmem:[%s18724_s7 + $0x52c] ss:$60 sps:$4 sm:$0xff]  }
 0x1b2   :  { %v768_v25 = vpop.f32.mrf.mxu0  ;;  %v809_v28 = vpop.f32.mrf.mxu1 }
 0x1b3   :  { %v769_v40 = vadd.f32 %v768_v25, %v14760_v44  ;;  %v810_v41 = vadd.f32 %v809_v28, %v14763_v45  ;;  %v12342_v28 = vld [vmem:[%s18724_s7 + $0x2d4] ss:$60 sps:$4 sm:$0xff]  }
 0x1b4   :  { %v770_v46 = vpop.f32.mrf.mxu0  ;;  %v811_v47 = vpop.f32.mrf.mxu1 }
 0x1b5   :  { %v816_v48 = vmax.f32 %v769_v40, 0.0  ;;  %v818_v53 = vmax.f32 %v810_v41, 0.0  ;;  %v771_v54 = vadd.f32 %v770_v46, %v14776_v49  ;;  %v812_v55 = vadd.f32 %v811_v47, %v14779_v52  ;;  %v12340_v40 = vld [vmem:[%s18724_s7 + $0x2d0] ss:$60 sps:$4 sm:$0xff]   ;;  %v12345_v46 = vld [vmem:[%s18724_s7 + $0x25c] ss:$60 sps:$4 sm:$0xff]  }
 0x1b6   :  { %v772_v58 = vpop.f32.mrf.mxu0  ;;  %v813_v59 = vpop.f32.mrf.mxu1  ;;  %v12367_v41 = vld [vmem:[%s18724_s7 + $0xa50] ss:$60 sps:$4 sm:$0xff]   ;;  %v12375_v47 = vld [vmem:[%s18724_s7 + $0x9dc] ss:$60 sps:$4 sm:$0xff]  }
 0x1b7   :  { %v817_v62 = vmax.f32 %v771_v54, 0.0  ;;  %v819_v63 = vmax.f32 %v812_v55, 0.0  ;;  %v820_v26 = vmax.f32 %v719_v56, %v816_v48  ;;  %v822_v44 = vmax.f32 %v721_v57, %v818_v53  ;;  %v12343_v48 = vld [vmem:[%s18724_s7 + $0x258] ss:$60 sps:$4 sm:$0xff]   ;;  %v12348_v54 = vld [vmem:[%s18724_s7 + $0x1e4] ss:$60 sps:$4 sm:$0xff]  }
 0x1b8   :  { %v773_v27 = vpop.f32.mrf.mxu0  ;;  %v814_v45 = vpop.f32.mrf.mxu1  ;;  %v12373_v53 = vld [vmem:[%s18724_s7 + $0x9d8] ss:$60 sps:$4 sm:$0xff]   ;;  %v12381_v55 = vld [vmem:[%s18724_s7 + $0x964] ss:$60 sps:$4 sm:$0xff]   ;;  %v12351_v58 = vld [vmem:[%s18724_s7 + $0x16c] ss:$60 sps:$4 sm:$0xff]  }
 0x1b9   :  { %v821_v32 = vmax.f32 %v720_v60, %v817_v62  ;;  %v823_v33 = vmax.f32 %v722_v61, %v819_v63  ;;  %v824_v49 = vpack.c.bf16 %v820_v26, %v820_v26  ;;  %v826_v50 = vpack.c.bf16 %v822_v44, %v822_v44  ;;  %v12346_v56 = vld [vmem:[%s18724_s7 + $0x1e0] ss:$60 sps:$4 sm:$0xff]   ;;  %v12387_v59 = vld [vmem:[%s18724_s7 + $0x8ec] ss:$60 sps:$4 sm:$0xff]   ;;  %v12354_v62 = vld [vmem:[%s18724_s7 + $0xf4] ss:$60 sps:$4 sm:$0xff]  }
 0x1ba   :  { %v12379_v57 = vld [vmem:[%s18724_s7 + $0x960] ss:$60 sps:$4 sm:$0xff]   ;;  %v12349_v60 = vld [vmem:[%s18724_s7 + $0x168] ss:$60 sps:$4 sm:$0xff]   ;;  %v12393_v63 = vld [vmem:[%s18724_s7 + $0x874] ss:$60 sps:$4 sm:$0xff]  }
 0x1bb   :  { %v825_v35 = vpack.c.bf16 %v821_v32, %v821_v32  ;;  %v827_v38 = vpack.c.bf16 %v823_v33, %v823_v33  ;;  %v12385_v61 = vld [vmem:[%s18724_s7 + $0x8e8] ss:$60 sps:$4 sm:$0xff]   ;;  %v12352_v26 = vld [vmem:[%s18724_s7 + $0xf0] ss:$60 sps:$4 sm:$0xff]   ;;  %v12357_v27 = vld [vmem:[%s18724_s7 + $0x7c] ss:$60 sps:$4 sm:$0xff]  }
 0x1bc   :  { %v12391_v44 = vld [vmem:[%s18724_s7 + $0x870] ss:$60 sps:$4 sm:$0xff]   ;;  %v12399_v45 = vld [vmem:[%s18724_s7 + $0x7fc] ss:$60 sps:$4 sm:$0xff]  }
 0x1bd   :  { %1071 = vmatprep.mubr.bf16.mxu0 %v825_v35  ;;  %10801 = vmatprep.mubr.msk.bf16.mxu1 %vm1035_vm2, %v827_v38  ;;  %v12355_v32 = vld [vmem:[%s18724_s7 + $0x78] ss:$60 sps:$4 sm:$0xff]   ;;  %v12360_v35 = vld [vmem:[%s18724_s7 + $0x4] ss:$60 sps:$4 sm:$0xff]  }
 0x1be   :  { %1072 = vmatmul.mubr.bf16.vlgmr.msra.gmra.mxu0 %v824_v49  ;;  %1112 = vmatmul.mubr.bf16.vlgmr.msra.gmra.mxu1 %v826_v50  ;;  %v12397_v33 = vld [vmem:[%s18724_s7 + $0x7f8] ss:$60 sps:$4 sm:$0xff]   ;;  %v12358_v38 = vld [vmem:[%s18724_s7] ss:$60 sps:$4 sm:$0xff]   ;;  %v12366_v49 = vld [vmem:[%s18724_s7 + $0x70c] ss:$60 sps:$4 sm:$0xff]  }
 0x1bf   :  { %1237 = vmatprep.mubr.bf16.mxu0 %v18732_v1  ;;  %1278 = vmatprep.mubr.bf16.mxu1 %v18732_v1  ;;  %v12364_v50 = vld [vmem:[%s18724_s7 + $0x708] ss:$60 sps:$4 sm:$0xff]  }
 0x1c0   :  { %1218 = vmatpush1.bf16.msra.mxu0 %v12325_v39  ;;  %1259 = vmatpush1.bf16.msra.mxu1 %v12328_v5  ;;  %v12376_v39 = vld [vmem:[%s18724_s7 + $0x618] ss:$60 sps:$4 sm:$0xff]  }
 0x1c1   :  { %1219 = vmatprep.subr.bf16.mxu0 %v12333_v14  ;;  %1260 = vmatprep.subr.bf16.mxu1 %v12336_v15  ;;  %v12396_v5 = vld [vmem:[%s18724_s7 + $0x4b4] ss:$60 sps:$4 sm:$0xff]   ;;  %v12409_v14 = vld [vmem:[%s18724_s7 + $0xb40] ss:$60 sps:$4 sm:$0xff]  }
 0x1c2   :  { %v12414_v15 = vld [vmem:[%s18724_s7 + $0x354] ss:$60 sps:$4 sm:$0xff]  }
 0x1c4   :  { %1220 = vmatpush1.bf16.msra.mxu0 %v12331_v16  ;;  %1261 = vmatpush1.bf16.msra.mxu1 %v12334_v17  ;;  %v12417_v16 = vld [vmem:[%s18724_s7 + $0xad4] ss:$60 sps:$4 sm:$0xff]   ;;  %v1139_v17 = vld [vmem:[%s18725_s6] sm:$0xf] }
 0x1c5   :  { %3677 = vmatprep.subr.bf16.mxu0 %v12339_v18  ;;  %3718 = vmatprep.subr.bf16.mxu1 %v12363_v21  ;;  %v1144_v18 = vrot.slane %v1139_v17, %v14736_v30  ;;  %v1156_v21 = vrot.slane %v1139_v17, %v14757_v43 }
 0x27e   :  { %v12009_v52 = vpop.f32.mrf.mxu0  ;;  %v1113_v51 = vpop.f32.mrf.mxu1 }
 0x280   :  { %v12010_v0 = vpop.f32.mrf.mxu0  ;;  %v1115_v2 = vpop.f32.mrf.mxu1 }
 0x281   :  { %v12011_v4 = vadd.f32 %v12010_v0, %v12009_v52  ;;  %v12372_v52 = vld [vmem:[%s18724_s7 + $0x694] ss:$60 sps:$4 sm:$0xff]   ;;  %v12384_v0 = vld [vmem:[%s18724_s7 + $0x5a4] ss:$60 sps:$4 sm:$0xff]  }
 0x282   :  { %v12012_v7 = vpop.f32.mrf.mxu0  ;;  %v1116_v8 = vpop.f32.mrf.mxu1  ;;  %v12382_v2 = vld [vmem:[%s18724_s7 + $0x5a0] ss:$60 sps:$4 sm:$0xff]  }
 0x283   :  { %v1074_v9 = vadd.f32 %v12011_v4, %v10775_v34  ;;  %v12378_v34 = vld [vmem:[%s18724_s7 + $0x61c] ss:$60 sps:$4 sm:$0xff]   ;;  %v12388_v4 = vld [vmem:[%s18724_s7 + $0x528] ss:$60 sps:$4 sm:$0xff]  }
 0x284   :  { %v12013_v10 = vpop.f32.mrf.mxu0  ;;  %v1117_v11 = vpop.f32.mrf.mxu1  ;;  %v12402_v7 = vld [vmem:[%s18724_s7 + $0x43c] ss:$60 sps:$4 sm:$0xff]   ;;  %v12405_v8 = vld [vmem:[%s18724_s7 + $0x784] ss:$60 sps:$4 sm:$0xff]  }
 0x285   :  { %v1114_v12 = vadd.f32 %v1113_v51, %v1074_v9  ;;  %v12370_v51 = vld [vmem:[%s18724_s7 + $0x690] ss:$60 sps:$4 sm:$0xff]   ;;  %v12400_v9 = vld [vmem:[%s18724_s7 + $0x438] ss:$60 sps:$4 sm:$0xff]   ;;  %v12403_v10 = vld [vmem:[%s18724_s7 + $0x780] ss:$60 sps:$4 sm:$0xff]  }
 0x286   :  { %v12408_v11 = vld [vmem:[%s18724_s7 + $0x3c4] ss:$60 sps:$4 sm:$0xff]  }
 0x287   :  { %v1119_v13 = vmax.f32 %v1114_v12, 0.0  ;;  %v12411_v12 = vld [vmem:[%s18724_s7 + $0xb44] ss:$60 sps:$4 sm:$0xff]  }
 0x289   :  { %1121 = vrot.lane.b32.xlu0 %v1119_v13, %s14033_s4 }
 0x2fb   :  { %v1122_v19 = vpop.permute.xlu0 %1121 }
 0x2fc   :  { %v1124_v20 = vmax.f32 %v1119_v13, %v1122_v19  ;;  %v12406_v13 = vld [vmem:[%s18724_s7 + $0x3c0] ss:$60 sps:$4 sm:$0xff]   ;;  %v1152_v19 = vrot.slane %v1139_v17, %v14739_v31 }
 0x2fe   :  { %1126 = vrot.lane.b32.xlu0 %v1124_v20, %s14034_s12 }
 0x370   :  { %v1127_v22 = vpop.permute.xlu0 %1126 }
 0x371   :  { %v1129_v25 = vmax.f32 %v1124_v20, %v1127_v22  ;;  %v1148_v20 = vrot.slane %v1139_v17, %v14754_v42  ;;  %v12463_v17 = vld [vmem:[%s18724_s7 + $0xb48] ss:$60 sps:$4 sm:$0xff]  }
 0x373   :  { %v1130_v37 = vpack.c.bf16 %v1129_v25, %v1129_v25 }
 0x375   :  { %10810 = vmatmul.mubr.msk.bf16.vlgmr.msra.gmra.mxu0 %vm1201_vm3, %v1130_v37  ;;  %10811 = vmatmul.mubr.msk.bf16.vlgmr.msra.gmra.mxu1 %vm1201_vm3, %v1130_v37 }
 0x376   :  { %3678 = vmatpush1.bf16.msra.mxu0 %v12337_v23  ;;  %3719 = vmatpush1.bf16.msra.mxu1 %v12361_v24 }
 0x377   :  { %3679 = vmatprep.subr.bf16.mxu0 %v12342_v28  ;;  %3720 = vmatprep.subr.bf16.mxu1 %v12369_v36 }
 0x37a   :  { %3680 = vmatpush1.bf16.msra.mxu0 %v12340_v40  ;;  %3721 = vmatpush1.bf16.msra.mxu1 %v12367_v41 }
 0x37b   :  { %3681 = vmatprep.subr.bf16.mxu0 %v12345_v46  ;;  %3722 = vmatprep.subr.bf16.mxu1 %v12375_v47 }
 0x37e   :  { %3682 = vmatpush1.bf16.msra.mxu0 %v12343_v48  ;;  %3723 = vmatpush1.bf16.msra.mxu1 %v12373_v53 }
 0x37f   :  { %3683 = vmatprep.subr.bf16.mxu0 %v12348_v54  ;;  %3724 = vmatprep.subr.bf16.mxu1 %v12381_v55 }
 0x382   :  { %3684 = vmatpush1.bf16.msra.mxu0 %v12346_v56  ;;  %3725 = vmatpush1.bf16.msra.mxu1 %v12379_v57 }
 0x383   :  { %3685 = vmatprep.subr.bf16.mxu0 %v12351_v58  ;;  %3726 = vmatprep.subr.bf16.mxu1 %v12387_v59  ;;  %v12412_v59 = vld [vmem:[%s18724_s7 + $0x350] ss:$60 sps:$4 sm:$0xff]  }
 0x386   :  { %3686 = vmatpush1.bf16.msra.mxu0 %v12349_v60  ;;  %3727 = vmatpush1.bf16.msra.mxu1 %v12385_v61  ;;  %v12415_v60 = vld [vmem:[%s18724_s7 + $0xad0] ss:$60 sps:$4 sm:$0xff]  }
 0x387   :  { %3687 = vmatprep.subr.bf16.mxu0 %v12354_v62  ;;  %3728 = vmatprep.subr.bf16.mxu1 %v12393_v63  ;;  %v12420_v63 = vld [vmem:[%s18724_s7 + $0x2dc] ss:$60 sps:$4 sm:$0xff]  }
 0x38a   :  { %3688 = vmatpush1.bf16.msra.mxu0 %v12352_v26  ;;  %3729 = vmatpush1.bf16.msra.mxu1 %v12391_v44  ;;  %v12423_v26 = vld [vmem:[%s18724_s7 + $0xa5c] ss:$60 sps:$4 sm:$0xff]  }
 0x38b   :  { %3689 = vmatprep.subr.bf16.mxu0 %v12357_v27  ;;  %3730 = vmatprep.subr.bf16.mxu1 %v12399_v45  ;;  %v12418_v44 = vld [vmem:[%s18724_s7 + $0x2d8] ss:$60 sps:$4 sm:$0xff]   ;;  %v12426_v45 = vld [vmem:[%s18724_s7 + $0x264] ss:$60 sps:$4 sm:$0xff]  }
 0x38c   :  { %v12421_v27 = vld [vmem:[%s18724_s7 + $0xa58] ss:$60 sps:$4 sm:$0xff]  }
 0x38e   :  { %3690 = vmatpush1.bf16.msra.mxu0 %v12355_v32  ;;  %3731 = vmatpush1.bf16.msra.mxu1 %v12397_v33  ;;  %v12429_v32 = vld [vmem:[%s18724_s7 + $0x9e4] ss:$60 sps:$4 sm:$0xff]  }
 0x38f   :  { %3691 = vmatprep.subr.bf16.mxu0 %v12360_v35  ;;  %3732 = vmatprep.subr.bf16.mxu1 %v12405_v8  ;;  %v12424_v33 = vld [vmem:[%s18724_s7 + $0x260] ss:$60 sps:$4 sm:$0xff]  }
 0x390   :  { %v12427_v35 = vld [vmem:[%s18724_s7 + $0x9e0] ss:$60 sps:$4 sm:$0xff]  }
 0x391   :  { %v12448_v8 = vld [vmem:[%s18724_s7 + $0x80] ss:$60 sps:$4 sm:$0xff]  }
 0x392   :  { %3692 = vmatpush1.bf16.msra.mxu0 %v12358_v38  ;;  %3733 = vmatpush1.bf16.msra.mxu1 %v12403_v10  ;;  %v12432_v38 = vld [vmem:[%s18724_s7 + $0x1ec] ss:$60 sps:$4 sm:$0xff]  }
 0x393   :  { %3693 = vmatprep.subr.bf16.mxu0 %v12366_v49  ;;  %3748 = vmatprep.subr.bf16.mxu1 %v12411_v12  ;;  %v12435_v49 = vld [vmem:[%s18724_s7 + $0x96c] ss:$60 sps:$4 sm:$0xff]  }
 0x394   :  { %v12456_v10 = vld [vmem:[%s18724_s7 + $0xc] ss:$60 sps:$4 sm:$0xff]  }
 0x395   :  { %v12454_v12 = vld [vmem:[%s18724_s7 + $0x8] ss:$60 sps:$4 sm:$0xff]  }
 0x396   :  { %3694 = vmatpush2.bf16.msra.mxu0 %v12364_v50  ;;  %3749 = vmatpush2.bf16.msra.mxu1 %v12409_v14  ;;  %v12430_v50 = vld [vmem:[%s18724_s7 + $0x1e8] ss:$60 sps:$4 sm:$0xff]   ;;  %v12462_v14 = vld [vmem:[%s18724_s7 + $0x714] ss:$60 sps:$4 sm:$0xff]  }
 0x397   :  { %3695 = vmatprep.subr.bf16.mxu0 %v12372_v52  ;;  %3759 = vmatprep.subr.bf16.mxu1 %v12414_v15  ;;  %v12433_v52 = vld [vmem:[%s18724_s7 + $0x968] ss:$60 sps:$4 sm:$0xff]  }
 0x398   :  { %v12465_v15 = vld [vmem:[%s18724_s7 + $0xb4c] ss:$60 sps:$4 sm:$0xff]  }
 0x39a   :  { %3696 = vmatpush2.bf16.msra.mxu0 %v12370_v51  ;;  %v12438_v51 = vld [vmem:[%s18724_s7 + $0x174] ss:$60 sps:$4 sm:$0xff]  }
 0x39b   :  { %3697 = vmatprep.subr.bf16.mxu0 %v12378_v34  ;;  %v12441_v34 = vld [vmem:[%s18724_s7 + $0x8f4] ss:$60 sps:$4 sm:$0xff]  }
 0x39e   :  { %3698 = vmatpush2.bf16.msra.mxu0 %v12376_v39  ;;  %v12436_v39 = vld [vmem:[%s18724_s7 + $0x170] ss:$60 sps:$4 sm:$0xff]  }
 0x39f   :  { %3699 = vmatprep.subr.bf16.mxu0 %v12384_v0  ;;  %v12439_v0 = vld [vmem:[%s18724_s7 + $0x8f0] ss:$60 sps:$4 sm:$0xff]  }
 0x3a2   :  { %3700 = vmatpush2.bf16.msra.mxu0 %v12382_v2  ;;  %v12444_v2 = vld [vmem:[%s18724_s7 + $0xfc] ss:$60 sps:$4 sm:$0xff]  }
 0x3a3   :  { %3701 = vmatprep.subr.bf16.mxu0 %v12390_v3  ;;  %v12447_v3 = vld [vmem:[%s18724_s7 + $0x87c] ss:$60 sps:$4 sm:$0xff]  }
 0x3a6   :  { %3702 = vmatpush2.bf16.msra.mxu0 %v12388_v4  ;;  %v12442_v4 = vld [vmem:[%s18724_s7 + $0xf8] ss:$60 sps:$4 sm:$0xff]  }
 0x3a7   :  { %3703 = vmatprep.subr.bf16.mxu0 %v12396_v5  ;;  %v12445_v5 = vld [vmem:[%s18724_s7 + $0x878] ss:$60 sps:$4 sm:$0xff]  }
 0x3aa   :  { %3704 = vmatpush2.bf16.msra.mxu0 %v12394_v6  ;;  %v12450_v6 = vld [vmem:[%s18724_s7 + $0x84] ss:$60 sps:$4 sm:$0xff]  }
 0x3ab   :  { %3705 = vmatprep.subr.bf16.mxu0 %v12402_v7  ;;  %v12453_v7 = vld [vmem:[%s18724_s7 + $0x804] ss:$60 sps:$4 sm:$0xff]  }
 0x3ae   :  { %3706 = vmatpush2.bf16.msra.mxu0 %v12400_v9  ;;  %v12451_v9 = vld [vmem:[%s18724_s7 + $0x800] ss:$60 sps:$4 sm:$0xff]  }
 0x3af   :  { %3707 = vmatprep.subr.bf16.mxu0 %v12408_v11  ;;  %v12459_v11 = vld [vmem:[%s18724_s7 + $0x78c] ss:$60 sps:$4 sm:$0xff]  }
 0x3b2   :  { %3708 = vmatpush2.bf16.msra.mxu0 %v12406_v13  ;;  %v12457_v13 = vld [vmem:[%s18724_s7 + $0x788] ss:$60 sps:$4 sm:$0xff]  }
 0x3b3   :  { %3800 = vmatprep.subr.bf16.mxu0 %v12417_v16  ;;  %v12460_v16 = vld [vmem:[%s18724_s7 + $0x710] ss:$60 sps:$4 sm:$0xff]  }
 0x435   :  { %v1239_v22 = vpop.f32.mrf.mxu0  ;;  %v1280_v23 = vpop.f32.mrf.mxu1 }
 0x436   :  { %v1240_v24 = vadd.f32 %v1239_v22, %v1144_v18  ;;  %v1281_v25 = vadd.f32 %v1280_v23, %v1152_v19  ;;  %v12468_v18 = vld [vmem:[%s18724_s7 + $0x69c] ss:$60 sps:$4 sm:$0xff]   ;;  %v12474_v22 = vld [vmem:[%s18724_s7 + $0x624] ss:$60 sps:$4 sm:$0xff]  }
 0x437   :  { %v1241_v28 = vpop.f32.mrf.mxu0  ;;  %v1282_v36 = vpop.f32.mrf.mxu1  ;;  %v12471_v19 = vld [vmem:[%s18724_s7 + $0x35c] ss:$60 sps:$4 sm:$0xff]   ;;  %v12477_v23 = vld [vmem:[%s18724_s7 + $0x2e4] ss:$60 sps:$4 sm:$0xff]  }
 0x438   :  { %v1242_v37 = vadd.f32 %v1241_v28, %v1148_v20  ;;  %v1283_v40 = vadd.f32 %v1282_v36, %v1156_v21  ;;  %v1287_v41 = vmax.f32 %v1240_v24, 0.0  ;;  %v1289_v46 = vmax.f32 %v1281_v25, 0.0  ;;  %v12466_v20 = vld [vmem:[%s18724_s7 + $0x698] ss:$60 sps:$4 sm:$0xff]   ;;  %v12472_v24 = vld [vmem:[%s18724_s7 + $0x620] ss:$60 sps:$4 sm:$0xff]  }
 0x439   :  { %v1243_v47 = vpop.f32.mrf.mxu0  ;;  %v1284_v48 = vpop.f32.mrf.mxu1  ;;  %v12469_v21 = vld [vmem:[%s18724_s7 + $0x358] ss:$60 sps:$4 sm:$0xff]   ;;  %v12475_v25 = vld [vmem:[%s18724_s7 + $0x2e0] ss:$60 sps:$4 sm:$0xff]   ;;  %v12480_v28 = vld [vmem:[%s18724_s7 + $0x5ac] ss:$60 sps:$4 sm:$0xff]  }
 0x43a   :  { %v1288_v53 = vmax.f32 %v1242_v37, 0.0  ;;  %v1290_v54 = vmax.f32 %v1283_v40, 0.0  ;;  %v15014_v61 = vpack.c.bf16 %v1287_v41, %v1287_v41  ;;  %v15016_v62 = vpack.c.bf16 %v1289_v46, %v1289_v46  ;;  %v12483_v36 = vld [vmem:[%s18724_s7 + $0x26c] ss:$60 sps:$4 sm:$0xff]   ;;  %v12486_v41 = vld [vmem:[%s18724_s7 + $0x534] ss:$60 sps:$4 sm:$0xff]  }
 0x43b   :  { %v1244_v55 = vpop.f32.mrf.mxu0  ;;  %v1285_v56 = vpop.f32.mrf.mxu1  ;;  %v12478_v37 = vld [vmem:[%s18724_s7 + $0x5a8] ss:$60 sps:$4 sm:$0xff]   ;;  %v12489_v46 = vld [vmem:[%s18724_s7 + $0x1f4] ss:$60 sps:$4 sm:$0xff]  }
 0x43c   :  { %v15004_v57 = vpack.c.bf16 %v1288_v53, %v1288_v53  ;;  %v15006_v58 = vpack.c.bf16 %v1290_v54, %v1290_v54  ;;  %v12481_v40 = vld [vmem:[%s18724_s7 + $0x268] ss:$60 sps:$4 sm:$0xff]   ;;  %v12484_v47 = vld [vmem:[%s18724_s7 + $0x530] ss:$60 sps:$4 sm:$0xff]   ;;  %v12492_v53 = vld [vmem:[%s18724_s7 + $0x4bc] ss:$60 sps:$4 sm:$0xff]  }
 0x43d   :  { %v12487_v48 = vld [vmem:[%s18724_s7 + $0x1f0] ss:$60 sps:$4 sm:$0xff]   ;;  %v12495_v54 = vld [vmem:[%s18724_s7 + $0x17c] ss:$60 sps:$4 sm:$0xff]  }
 0x43e   :  { %3709 = vmatprep.mubr.bf16.mxu0 %v15004_v57  ;;  %11187 = vmatprep.mubr.msk.bf16.mxu1 %vm1035_vm2, %v15006_v58  ;;  %v12490_v55 = vld [vmem:[%s18724_s7 + $0x4b8] ss:$60 sps:$4 sm:$0xff]  }
 0x43f   :  { %3710 = vmatmul.mubr.bf16.vlgmr.msra.gmra.mxu0 %v15014_v61  ;;  %3751 = vmatmul.mubr.bf16.vlgmr.msra.gmra.mxu1 %v15016_v62  ;;  %v12493_v56 = vld [vmem:[%s18724_s7 + $0x178] ss:$60 sps:$4 sm:$0xff]  }
 0x440   :  { %3760 = vmatpush1.bf16.msra.mxu1 %v12412_v59  ;;  %3801 = vmatpush1.bf16.msra.mxu0 %v12415_v60  ;;  %v12498_v59 = vld [vmem:[%s18724_s7 + $0x444] ss:$60 sps:$4 sm:$0xff]  }
 0x441   :  { %3791 = vmatprep.mubr.bf16.mxu1 %v15004_v57  ;;  %11188 = vmatprep.mubr.msk.bf16.mxu0 %vm1035_vm2, %v15006_v58  ;;  %v12501_v60 = vld [vmem:[%s18724_s7 + $0x104] ss:$60 sps:$4 sm:$0xff]  }
 0x442   :  { %3761 = vmatprep.subr.bf16.mxu1 %v12420_v63  ;;  %3802 = vmatprep.subr.bf16.mxu0 %v12423_v26  ;;  %v12496_v63 = vld [vmem:[%s18724_s7 + $0x440] ss:$60 sps:$4 sm:$0xff]  }
 0x443   :  { %v12499_v26 = vld [vmem:[%s18724_s7 + $0x100] ss:$60 sps:$4 sm:$0xff]  }
 0x444   :  { %3762 = vmatpush1.bf16.msra.mxu1 %v12418_v44  ;;  %3803 = vmatpush1.bf16.msra.mxu0 %v12421_v27  ;;  %v12504_v44 = vld [vmem:[%s18724_s7 + $0x3cc] ss:$60 sps:$4 sm:$0xff]  }
 0x445   :  { %3763 = vmatprep.subr.bf16.mxu1 %v12426_v45  ;;  %3804 = vmatprep.subr.bf16.mxu0 %v12429_v32  ;;  %v12507_v27 = vld [vmem:[%s18724_s7 + $0x8c] ss:$60 sps:$4 sm:$0xff]  }
 0x446   :  { %v12502_v45 = vld [vmem:[%s18724_s7 + $0x3c8] ss:$60 sps:$4 sm:$0xff]  }
 0x447   :  { %v12505_v32 = vld [vmem:[%s18724_s7 + $0x88] ss:$60 sps:$4 sm:$0xff]  }
 0x448   :  { %3764 = vmatpush1.bf16.msra.mxu1 %v12424_v33  ;;  %3805 = vmatpush1.bf16.msra.mxu0 %v12427_v35  ;;  %v12510_v33 = vld [vmem:[%s18724_s7 + $0x14] ss:$60 sps:$4 sm:$0xff]   ;;  %v12513_v35 = vld [vmem:[%s18724_s7 + $0xadc] ss:$60 sps:$4 sm:$0xff]  }
 0x449   :  { %3765 = vmatprep.subr.bf16.mxu1 %v12432_v38  ;;  %3806 = vmatprep.subr.bf16.mxu0 %v12435_v49  ;;  %v12508_v38 = vld [vmem:[%s18724_s7 + $0x10] ss:$60 sps:$4 sm:$0xff]   ;;  %v12511_v49 = vld [vmem:[%s18724_s7 + $0xad8] ss:$60 sps:$4 sm:$0xff]  }
 0x44c   :  { %3766 = vmatpush1.bf16.msra.mxu1 %v12430_v50  ;;  %3807 = vmatpush1.bf16.msra.mxu0 %v12433_v52  ;;  %v12516_v50 = vld [vmem:[%s18724_s7 + $0x71c] ss:$60 sps:$4 sm:$0xff]   ;;  %v12519_v52 = vld [vmem:[%s18724_s7 + $0xa64] ss:$60 sps:$4 sm:$0xff]  }
 0x44d   :  { %3767 = vmatprep.subr.bf16.mxu1 %v12438_v51  ;;  %3808 = vmatprep.subr.bf16.mxu0 %v12441_v34  ;;  %v12514_v51 = vld [vmem:[%s18724_s7 + $0x718] ss:$60 sps:$4 sm:$0xff]   ;;  %v12517_v34 = vld [vmem:[%s18724_s7 + $0xa60] ss:$60 sps:$4 sm:$0xff]  }
 0x450   :  { %3768 = vmatpush1.bf16.msra.mxu1 %v12436_v39  ;;  %3809 = vmatpush1.bf16.msra.mxu0 %v12439_v0  ;;  %v12522_v39 = vld [vmem:[%s18724_s7 + $0x6a4] ss:$60 sps:$4 sm:$0xff]   ;;  %v12525_v0 = vld [vmem:[%s18724_s7 + $0x9ec] ss:$60 sps:$4 sm:$0xff]  }
 0x451   :  { %3769 = vmatprep.subr.bf16.mxu1 %v12444_v2  ;;  %3810 = vmatprep.subr.bf16.mxu0 %v12447_v3  ;;  %v12520_v2 = vld [vmem:[%s18724_s7 + $0x6a0] ss:$60 sps:$4 sm:$0xff]   ;;  %v12523_v3 = vld [vmem:[%s18724_s7 + $0x9e8] ss:$60 sps:$4 sm:$0xff]  }
 0x454   :  { %3770 = vmatpush1.bf16.msra.mxu1 %v12442_v4  ;;  %3811 = vmatpush1.bf16.msra.mxu0 %v12445_v5  ;;  %v12528_v4 = vld [vmem:[%s18724_s7 + $0x62c] ss:$60 sps:$4 sm:$0xff]   ;;  %v12531_v5 = vld [vmem:[%s18724_s7 + $0x974] ss:$60 sps:$4 sm:$0xff]  }
 0x455   :  { %3771 = vmatprep.subr.bf16.mxu1 %v12450_v6  ;;  %3812 = vmatprep.subr.bf16.mxu0 %v12453_v7  ;;  %v12526_v6 = vld [vmem:[%s18724_s7 + $0x628] ss:$60 sps:$4 sm:$0xff]   ;;  %v12529_v7 = vld [vmem:[%s18724_s7 + $0x970] ss:$60 sps:$4 sm:$0xff]  }
 0x458   :  { %3772 = vmatpush1.bf16.msra.mxu1 %v12448_v8  ;;  %3813 = vmatpush1.bf16.msra.mxu0 %v12451_v9  ;;  %v12534_v8 = vld [vmem:[%s18724_s7 + $0x5b4] ss:$60 sps:$4 sm:$0xff]   ;;  %v12537_v9 = vld [vmem:[%s18724_s7 + $0x8fc] ss:$60 sps:$4 sm:$0xff]  }
 0x459   :  { %3773 = vmatprep.subr.bf16.mxu1 %v12456_v10  ;;  %3814 = vmatprep.subr.bf16.mxu0 %v12459_v11  ;;  %v12532_v10 = vld [vmem:[%s18724_s7 + $0x5b0] ss:$60 sps:$4 sm:$0xff]   ;;  %v12535_v11 = vld [vmem:[%s18724_s7 + $0x8f8] ss:$60 sps:$4 sm:$0xff]  }
 0x45c   :  { %3774 = vmatpush1.bf16.msra.mxu1 %v12454_v12  ;;  %3815 = vmatpush1.bf16.msra.mxu0 %v12457_v13  ;;  %v12540_v12 = vld [vmem:[%s18724_s7 + $0x53c] ss:$60 sps:$4 sm:$0xff]   ;;  %v12543_v13 = vld [vmem:[%s18724_s7 + $0x884] ss:$60 sps:$4 sm:$0xff]  }
 0x45d   :  { %3775 = vmatprep.subr.bf16.mxu1 %v12462_v14  ;;  %3830 = vmatprep.subr.bf16.mxu0 %v12465_v15  ;;  %v12538_v14 = vld [vmem:[%s18724_s7 + $0x538] ss:$60 sps:$4 sm:$0xff]   ;;  %v12541_v15 = vld [vmem:[%s18724_s7 + $0x880] ss:$60 sps:$4 sm:$0xff]  }
 0x460   :  { %3776 = vmatpush2.bf16.msra.mxu1 %v12460_v16  ;;  %3831 = vmatpush2.bf16.msra.mxu0 %v12463_v17  ;;  %v12546_v16 = vld [vmem:[%s18724_s7 + $0x4c4] ss:$60 sps:$4 sm:$0xff]   ;;  %v12549_v17 = vld [vmem:[%s18724_s7 + $0x80c] ss:$60 sps:$4 sm:$0xff]  }
 0x461   :  { %3777 = vmatprep.subr.bf16.mxu1 %v12468_v18  ;;  %3841 = vmatprep.subr.bf16.mxu0 %v12471_v19  ;;  %v12544_v18 = vld [vmem:[%s18724_s7 + $0x4c0] ss:$60 sps:$4 sm:$0xff]   ;;  %v12547_v19 = vld [vmem:[%s18724_s7 + $0x808] ss:$60 sps:$4 sm:$0xff]  }
 0x463   :  { %3833 = vmatmul.mubr.bf16.vlgmr.msra.gmra.mxu0 %v15016_v62 }
 0x464   :  { %3778 = vmatpush2.bf16.msra.mxu1 %v12466_v20  ;;  %3842 = vmatpush1.bf16.msra.mxu0 %v12469_v21  ;;  %v12552_v20 = vld [vmem:[%s18724_s7 + $0x44c] ss:$60 sps:$4 sm:$0xff]   ;;  %v12555_v21 = vld [vmem:[%s18724_s7 + $0x794] ss:$60 sps:$4 sm:$0xff]  }
 0x465   :  { %3873 = vmatprep.mubr.bf16.mxu0 %v15004_v57  ;;  %3779 = vmatprep.subr.bf16.mxu1 %v12474_v22  ;;  %v12550_v22 = vld [vmem:[%s18724_s7 + $0x448] ss:$60 sps:$4 sm:$0xff]  }
 0x466   :  { %3843 = vmatprep.subr.bf16.mxu0 %v12477_v23  ;;  %v12553_v23 = vld [vmem:[%s18724_s7 + $0x790] ss:$60 sps:$4 sm:$0xff]  }
 0x468   :  { %3780 = vmatpush2.bf16.msra.mxu1 %v12472_v24  ;;  %3844 = vmatpush1.bf16.msra.mxu0 %v12475_v25  ;;  %v12558_v24 = vld [vmem:[%s18724_s7 + $0x3d4] ss:$60 sps:$4 sm:$0xff]  }
 0x469   :  { %3781 = vmatprep.subr.bf16.mxu1 %v12480_v28  ;;  %3845 = vmatprep.subr.bf16.mxu0 %v12483_v36  ;;  %v12561_v25 = vld [vmem:[%s18724_s7 + $0xb54] ss:$60 sps:$4 sm:$0xff]  }
 0x46a   :  { %v12556_v28 = vld [vmem:[%s18724_s7 + $0x3d0] ss:$60 sps:$4 sm:$0xff]  }
 0x46b   :  { %v12559_v36 = vld [vmem:[%s18724_s7 + $0xb50] ss:$60 sps:$4 sm:$0xff]  }
 0x46c   :  { %3782 = vmatpush2.bf16.msra.mxu1 %v12478_v37  ;;  %3846 = vmatpush1.bf16.msra.mxu0 %v12481_v40  ;;  %v12564_v37 = vld [vmem:[%s18724_s7 + $0x364] ss:$60 sps:$4 sm:$0xff]  }
 0x46d   :  { %3783 = vmatprep.subr.bf16.mxu1 %v12486_v41  ;;  %3847 = vmatprep.subr.bf16.mxu0 %v12489_v46  ;;  %v12567_v40 = vld [vmem:[%s18724_s7 + $0xae4] ss:$60 sps:$4 sm:$0xff]  }
 0x46e   :  { %v12562_v41 = vld [vmem:[%s18724_s7 + $0x360] ss:$60 sps:$4 sm:$0xff]  }
 0x46f   :  { %v12565_v46 = vld [vmem:[%s18724_s7 + $0xae0] ss:$60 sps:$4 sm:$0xff]  }
 0x470   :  { %3784 = vmatpush2.bf16.msra.mxu1 %v12484_v47  ;;  %3848 = vmatpush1.bf16.msra.mxu0 %v12487_v48  ;;  %v12570_v47 = vld [vmem:[%s18724_s7 + $0x2ec] ss:$60 sps:$4 sm:$0xff]  }
 0x471   :  { %3785 = vmatprep.subr.bf16.mxu1 %v12492_v53  ;;  %3849 = vmatprep.subr.bf16.mxu0 %v12495_v54  ;;  %v12573_v48 = vld [vmem:[%s18724_s7 + $0xa6c] ss:$60 sps:$4 sm:$0xff]  }
 0x472   :  { %v12568_v53 = vld [vmem:[%s18724_s7 + $0x2e8] ss:$60 sps:$4 sm:$0xff]  }
 0x473   :  { %v12571_v54 = vld [vmem:[%s18724_s7 + $0xa68] ss:$60 sps:$4 sm:$0xff]  }
 0x474   :  { %3786 = vmatpush2.bf16.msra.mxu1 %v12490_v55  ;;  %3850 = vmatpush1.bf16.msra.mxu0 %v12493_v56  ;;  %v12576_v55 = vld [vmem:[%s18724_s7 + $0x274] ss:$60 sps:$4 sm:$0xff]  }
 0x475   :  { %3787 = vmatprep.subr.bf16.mxu1 %v12498_v59  ;;  %3851 = vmatprep.subr.bf16.mxu0 %v12501_v60  ;;  %v12579_v56 = vld [vmem:[%s18724_s7 + $0x9f4] ss:$60 sps:$4 sm:$0xff]  }
 0x476   :  { %v12574_v59 = vld [vmem:[%s18724_s7 + $0x270] ss:$60 sps:$4 sm:$0xff]  }
 0x477   :  { %v12577_v60 = vld [vmem:[%s18724_s7 + $0x9f0] ss:$60 sps:$4 sm:$0xff]  }
 0x478   :  { %3788 = vmatpush2.bf16.msra.mxu1 %v12496_v63  ;;  %3852 = vmatpush1.bf16.msra.mxu0 %v12499_v26  ;;  %v12582_v63 = vld [vmem:[%s18724_s7 + $0x1fc] ss:$60 sps:$4 sm:$0xff]  }
 0x479   :  { %3789 = vmatprep.subr.bf16.mxu1 %v12504_v44  ;;  %3853 = vmatprep.subr.bf16.mxu0 %v12507_v27  ;;  %v12585_v26 = vld [vmem:[%s18724_s7 + $0x97c] ss:$60 sps:$4 sm:$0xff]  }
 0x47a   :  { %v12580_v44 = vld [vmem:[%s18724_s7 + $0x1f8] ss:$60 sps:$4 sm:$0xff]  }
 0x47b   :  { %v12583_v27 = vld [vmem:[%s18724_s7 + $0x978] ss:$60 sps:$4 sm:$0xff]  }
 0x47c   :  { %3790 = vmatpush2.bf16.msra.mxu1 %v12502_v45  ;;  %3854 = vmatpush1.bf16.msra.mxu0 %v12505_v32  ;;  %v12588_v45 = vld [vmem:[%s18724_s7 + $0x184] ss:$60 sps:$4 sm:$0xff]  }
 0x47d   :  { %3855 = vmatprep.subr.bf16.mxu0 %v12510_v33  ;;  %3882 = vmatprep.subr.bf16.mxu1 %v12513_v35  ;;  %v12591_v32 = vld [vmem:[%s18724_s7 + $0x904] ss:$60 sps:$4 sm:$0xff]  }
 0x47e   :  { %v12586_v33 = vld [vmem:[%s18724_s7 + $0x180] ss:$60 sps:$4 sm:$0xff]  }
 0x47f   :  { %3792 = vmatmul.mubr.bf16.vlgmr.msra.gmra.mxu1 %v15014_v61  ;;  %v12589_v35 = vld [vmem:[%s18724_s7 + $0x900] ss:$60 sps:$4 sm:$0xff]  }
 0x480   :  { %3856 = vmatpush1.bf16.msra.mxu0 %v12508_v38  ;;  %3883 = vmatpush1.bf16.msra.mxu1 %v12511_v49  ;;  %v12594_v38 = vld [vmem:[%s18724_s7 + $0x10c] ss:$60 sps:$4 sm:$0xff]  }
 0x481   :  { %11189 = vmatprep.mubr.msk.bf16.mxu1 %vm1035_vm2, %v15006_v58  ;;  %3857 = vmatprep.subr.bf16.mxu0 %v12516_v50  ;;  %v12597_v49 = vld [vmem:[%s18724_s7 + $0x88c] ss:$60 sps:$4 sm:$0xff]  }
 0x482   :  { %3884 = vmatprep.subr.bf16.mxu1 %v12519_v52  ;;  %v12592_v50 = vld [vmem:[%s18724_s7 + $0x108] ss:$60 sps:$4 sm:$0xff]  }
 0x483   :  { %v12595_v52 = vld [vmem:[%s18724_s7 + $0x888] ss:$60 sps:$4 sm:$0xff]  }
 0x484   :  { %3858 = vmatpush2.bf16.msra.mxu0 %v12514_v51  ;;  %3885 = vmatpush1.bf16.msra.mxu1 %v12517_v34  ;;  %v12600_v51 = vld [vmem:[%s18724_s7 + $0x94] ss:$60 sps:$4 sm:$0xff]  }
 0x485   :  { %3859 = vmatprep.subr.bf16.mxu0 %v12522_v39  ;;  %3886 = vmatprep.subr.bf16.mxu1 %v12525_v0  ;;  %v12603_v34 = vld [vmem:[%s18724_s7 + $0x814] ss:$60 sps:$4 sm:$0xff]  }
 0x486   :  { %v12598_v39 = vld [vmem:[%s18724_s7 + $0x90] ss:$60 sps:$4 sm:$0xff]  }
 0x487   :  { %v12601_v0 = vld [vmem:[%s18724_s7 + $0x810] ss:$60 sps:$4 sm:$0xff]  }
 0x488   :  { %3860 = vmatpush2.bf16.msra.mxu0 %v12520_v2  ;;  %3887 = vmatpush1.bf16.msra.mxu1 %v12523_v3  ;;  %v12606_v2 = vld [vmem:[%s18724_s7 + $0x1c] ss:$60 sps:$4 sm:$0xff]  }
 0x489   :  { %3861 = vmatprep.subr.bf16.mxu0 %v12528_v4  ;;  %3888 = vmatprep.subr.bf16.mxu1 %v12531_v5  ;;  %v12609_v3 = vld [vmem:[%s18724_s7 + $0x79c] ss:$60 sps:$4 sm:$0xff]  }
 0x48a   :  { %v12604_v4 = vld [vmem:[%s18724_s7 + $0x18] ss:$60 sps:$4 sm:$0xff]  }
 0x48b   :  { %v12607_v5 = vld [vmem:[%s18724_s7 + $0x798] ss:$60 sps:$4 sm:$0xff]  }
 0x48c   :  { %3862 = vmatpush2.bf16.msra.mxu0 %v12526_v6  ;;  %3889 = vmatpush1.bf16.msra.mxu1 %v12529_v7  ;;  %v12612_v6 = vld [vmem:[%s18724_s7 + $0x724] ss:$60 sps:$4 sm:$0xff]   ;;  %v12615_v7 = vld [vmem:[%s18724_s7 + $0xb5c] ss:$60 sps:$4 sm:$0xff]  }
 0x48d   :  { %3863 = vmatprep.subr.bf16.mxu0 %v12534_v8  ;;  %3890 = vmatprep.subr.bf16.mxu1 %v12537_v9  ;;  %v12610_v8 = vld [vmem:[%s18724_s7 + $0x720] ss:$60 sps:$4 sm:$0xff]   ;;  %v12613_v9 = vld [vmem:[%s18724_s7 + $0xb58] ss:$60 sps:$4 sm:$0xff]  }
 0x490   :  { %3864 = vmatpush2.bf16.msra.mxu0 %v12532_v10  ;;  %3891 = vmatpush1.bf16.msra.mxu1 %v12535_v11  ;;  %v12618_v10 = vld [vmem:[%s18724_s7 + $0x6ac] ss:$60 sps:$4 sm:$0xff]  }
 0x491   :  { %3865 = vmatprep.subr.bf16.mxu0 %v12540_v12  ;;  %3892 = vmatprep.subr.bf16.mxu1 %v12543_v13  ;;  %v12621_v11 = vld [vmem:[%s18724_s7 + $0x36c] ss:$60 sps:$4 sm:$0xff]  }
 0x492   :  { %v12616_v12 = vld [vmem:[%s18724_s7 + $0x6a8] ss:$60 sps:$4 sm:$0xff]  }
 0x493   :  { %v12619_v13 = vld [vmem:[%s18724_s7 + $0x368] ss:$60 sps:$4 sm:$0xff]  }
 0x494   :  { %3866 = vmatpush2.bf16.msra.mxu0 %v12538_v14  ;;  %3893 = vmatpush1.bf16.msra.mxu1 %v12541_v15  ;;  %v12624_v14 = vld [vmem:[%s18724_s7 + $0x634] ss:$60 sps:$4 sm:$0xff]  }
 0x495   :  { %3867 = vmatprep.subr.bf16.mxu0 %v12546_v16  ;;  %3894 = vmatprep.subr.bf16.mxu1 %v12549_v17  ;;  %v12627_v15 = vld [vmem:[%s18724_s7 + $0x2f4] ss:$60 sps:$4 sm:$0xff]  }
 0x496   :  { %v12622_v16 = vld [vmem:[%s18724_s7 + $0x630] ss:$60 sps:$4 sm:$0xff]  }
 0x497   :  { %v12625_v17 = vld [vmem:[%s18724_s7 + $0x2f0] ss:$60 sps:$4 sm:$0xff]  }
 0x498   :  { %3868 = vmatpush2.bf16.msra.mxu0 %v12544_v18  ;;  %3895 = vmatpush1.bf16.msra.mxu1 %v12547_v19  ;;  %v12630_v18 = vld [vmem:[%s18724_s7 + $0x5bc] ss:$60 sps:$4 sm:$0xff]  }
 0x499   :  { %3869 = vmatprep.subr.bf16.mxu0 %v12552_v20  ;;  %3896 = vmatprep.subr.bf16.mxu1 %v12555_v21  ;;  %v12633_v19 = vld [vmem:[%s18724_s7 + $0x27c] ss:$60 sps:$4 sm:$0xff]  }
 0x49a   :  { %v12628_v20 = vld [vmem:[%s18724_s7 + $0x5b8] ss:$60 sps:$4 sm:$0xff]  }
 0x49b   :  { %v12631_v21 = vld [vmem:[%s18724_s7 + $0x278] ss:$60 sps:$4 sm:$0xff]  }
 0x49c   :  { %3870 = vmatpush2.bf16.msra.mxu0 %v12550_v22  ;;  %3897 = vmatpush1.bf16.msra.mxu1 %v12553_v23  ;;  %v12636_v22 = vld [vmem:[%s18724_s7 + $0x544] ss:$60 sps:$4 sm:$0xff]  }
 0x49d   :  { %3871 = vmatprep.subr.bf16.mxu0 %v12558_v24  ;;  %3912 = vmatprep.subr.bf16.mxu1 %v12561_v25  ;;  %v12639_v23 = vld [vmem:[%s18724_s7 + $0x204] ss:$60 sps:$4 sm:$0xff]  }
 0x49e   :  { %v12634_v24 = vld [vmem:[%s18724_s7 + $0x540] ss:$60 sps:$4 sm:$0xff]  }
 0x49f   :  { %v12637_v25 = vld [vmem:[%s18724_s7 + $0x200] ss:$60 sps:$4 sm:$0xff]  }
 0x4a0   :  { %3872 = vmatpush2.bf16.msra.mxu0 %v12556_v28  ;;  %3913 = vmatpush2.bf16.msra.mxu1 %v12559_v36  ;;  %v12642_v28 = vld [vmem:[%s18724_s7 + $0x4cc] ss:$60 sps:$4 sm:$0xff]  }
 0x4a1   :  { %3923 = vmatprep.subr.bf16.mxu1 %v12564_v37  ;;  %3964 = vmatprep.subr.bf16.mxu0 %v12567_v40  ;;  %v12645_v36 = vld [vmem:[%s18724_s7 + $0x18c] ss:$60 sps:$4 sm:$0xff]  }
 0x4a2   :  { %v12640_v37 = vld [vmem:[%s18724_s7 + $0x4c8] ss:$60 sps:$4 sm:$0xff]  }
 0x4a3   :  { %3874 = vmatmul.mubr.bf16.vlgmr.msra.gmra.mxu0 %v15014_v61  ;;  %3915 = vmatmul.mubr.bf16.vlgmr.msra.gmra.mxu1 %v15016_v62  ;;  %v12643_v40 = vld [vmem:[%s18724_s7 + $0x188] ss:$60 sps:$4 sm:$0xff]  }
 0x4a4   :  { %3924 = vmatpush1.bf16.msra.mxu1 %v12562_v41  ;;  %3955 = vmatprep.mubr.bf16.mxu1 %v15004_v57  ;;  %v12648_v41 = vld [vmem:[%s18724_s7 + $0x454] ss:$60 sps:$4 sm:$0xff]  }
 0x4a5   :  { %3965 = vmatpush1.bf16.msra.mxu0 %v12565_v46  ;;  %11190 = vmatprep.mubr.msk.bf16.mxu0 %vm1035_vm2, %v15006_v58  ;;  %v12651_v46 = vld [vmem:[%s18724_s7 + $0x114] ss:$60 sps:$4 sm:$0xff]  }
 0x4a6   :  { %3925 = vmatprep.subr.bf16.mxu1 %v12570_v47  ;;  %3966 = vmatprep.subr.bf16.mxu0 %v12573_v48  ;;  %v12646_v47 = vld [vmem:[%s18724_s7 + $0x450] ss:$60 sps:$4 sm:$0xff]  }
 0x4a7   :  { %v12649_v48 = vld [vmem:[%s18724_s7 + $0x110] ss:$60 sps:$4 sm:$0xff]  }
 0x4a8   :  { %3926 = vmatpush1.bf16.msra.mxu1 %v12568_v53  ;;  %v12654_v53 = vld [vmem:[%s18724_s7 + $0x3dc] ss:$60 sps:$4 sm:$0xff]  }
 0x4a9   :  { %3967 = vmatpush1.bf16.msra.mxu0 %v12571_v54  ;;  %3927 = vmatprep.subr.bf16.mxu1 %v12576_v55  ;;  %v12657_v54 = vld [vmem:[%s18724_s7 + $0x9c] ss:$60 sps:$4 sm:$0xff]  }
 0x4aa   :  { %3968 = vmatprep.subr.bf16.mxu0 %v12579_v56  ;;  %v12652_v55 = vld [vmem:[%s18724_s7 + $0x3d8] ss:$60 sps:$4 sm:$0xff]  }
 0x4ab   :  { %v12655_v56 = vld [vmem:[%s18724_s7 + $0x98] ss:$60 sps:$4 sm:$0xff]  }
 0x4ac   :  { %3928 = vmatpush1.bf16.msra.mxu1 %v12574_v59  ;;  %v12663_v59 = vld [vmem:[%s18724_s7 + $0xaec] ss:$60 sps:$4 sm:$0xff]  }
 0x4ad   :  { %3969 = vmatpush1.bf16.msra.mxu0 %v12577_v60  ;;  %3929 = vmatprep.subr.bf16.mxu1 %v12582_v63  ;;  %v12660_v60 = vld [vmem:[%s18724_s7 + $0x24] ss:$60 sps:$4 sm:$0xff]  }
 0x4ae   :  { %3970 = vmatprep.subr.bf16.mxu0 %v12585_v26  ;;  %v12661_v63 = vld [vmem:[%s18724_s7 + $0xae8] ss:$60 sps:$4 sm:$0xff]   ;;  %v12658_v26 = vld [vmem:[%s18724_s7 + $0x20] ss:$60 sps:$4 sm:$0xff]  }
 0x4b0   :  { %3930 = vmatpush1.bf16.msra.mxu1 %v12580_v44  ;;  %v12669_v44 = vld [vmem:[%s18724_s7 + $0xa74] ss:$60 sps:$4 sm:$0xff]  }
 0x4b1   :  { %3971 = vmatpush1.bf16.msra.mxu0 %v12583_v27  ;;  %3931 = vmatprep.subr.bf16.mxu1 %v12588_v45  ;;  %v12666_v27 = vld [vmem:[%s18724_s7 + $0x72c] ss:$60 sps:$4 sm:$0xff]  }
 0x4b2   :  { %3972 = vmatprep.subr.bf16.mxu0 %v12591_v32  ;;  %v12667_v45 = vld [vmem:[%s18724_s7 + $0xa70] ss:$60 sps:$4 sm:$0xff]   ;;  %v12664_v32 = vld [vmem:[%s18724_s7 + $0x728] ss:$60 sps:$4 sm:$0xff]  }
 0x4b4   :  { %3932 = vmatpush1.bf16.msra.mxu1 %v12586_v33  ;;  %v12675_v33 = vld [vmem:[%s18724_s7 + $0x9fc] ss:$60 sps:$4 sm:$0xff]  }
 0x4b5   :  { %3973 = vmatpush1.bf16.msra.mxu0 %v12589_v35  ;;  %3933 = vmatprep.subr.bf16.mxu1 %v12594_v38  ;;  %v12672_v35 = vld [vmem:[%s18724_s7 + $0x6b4] ss:$60 sps:$4 sm:$0xff]  }
 0x4b6   :  { %3974 = vmatprep.subr.bf16.mxu0 %v12597_v49  ;;  %v12673_v38 = vld [vmem:[%s18724_s7 + $0x9f8] ss:$60 sps:$4 sm:$0xff]   ;;  %v12670_v49 = vld [vmem:[%s18724_s7 + $0x6b0] ss:$60 sps:$4 sm:$0xff]  }
 0x4b8   :  { %3934 = vmatpush1.bf16.msra.mxu1 %v12592_v50  ;;  %v12681_v50 = vld [vmem:[%s18724_s7 + $0x984] ss:$60 sps:$4 sm:$0xff]  }
 0x4b9   :  { %3975 = vmatpush1.bf16.msra.mxu0 %v12595_v52  ;;  %3935 = vmatprep.subr.bf16.mxu1 %v12600_v51  ;;  %v12678_v52 = vld [vmem:[%s18724_s7 + $0x63c] ss:$60 sps:$4 sm:$0xff]  }
 0x4ba   :  { %3976 = vmatprep.subr.bf16.mxu0 %v12603_v34  ;;  %v12679_v51 = vld [vmem:[%s18724_s7 + $0x980] ss:$60 sps:$4 sm:$0xff]   ;;  %v12676_v34 = vld [vmem:[%s18724_s7 + $0x638] ss:$60 sps:$4 sm:$0xff]  }
 0x4bc   :  { %3936 = vmatpush1.bf16.msra.mxu1 %v12598_v39  ;;  %v12687_v39 = vld [vmem:[%s18724_s7 + $0x90c] ss:$60 sps:$4 sm:$0xff]  }
 0x4bd   :  { %3977 = vmatpush1.bf16.msra.mxu0 %v12601_v0  ;;  %3937 = vmatprep.subr.bf16.mxu1 %v12606_v2  ;;  %v12684_v0 = vld [vmem:[%s18724_s7 + $0x5c4] ss:$60 sps:$4 sm:$0xff]  }
 0x4be   :  { %3978 = vmatprep.subr.bf16.mxu0 %v12609_v3  ;;  %v12685_v2 = vld [vmem:[%s18724_s7 + $0x908] ss:$60 sps:$4 sm:$0xff]   ;;  %v12682_v3 = vld [vmem:[%s18724_s7 + $0x5c0] ss:$60 sps:$4 sm:$0xff]  }
 0x4c0   :  { %3938 = vmatpush1.bf16.msra.mxu1 %v12604_v4  ;;  %v12693_v4 = vld [vmem:[%s18724_s7 + $0x894] ss:$60 sps:$4 sm:$0xff]  }
 0x4c1   :  { %3979 = vmatpush1.bf16.msra.mxu0 %v12607_v5  ;;  %3939 = vmatprep.subr.bf16.mxu1 %v12612_v6  ;;  %v12690_v5 = vld [vmem:[%s18724_s7 + $0x54c] ss:$60 sps:$4 sm:$0xff]  }
 0x4c2   :  { %3994 = vmatprep.subr.bf16.mxu0 %v12615_v7  ;;  %v12691_v6 = vld [vmem:[%s18724_s7 + $0x890] ss:$60 sps:$4 sm:$0xff]   ;;  %v12688_v7 = vld [vmem:[%s18724_s7 + $0x548] ss:$60 sps:$4 sm:$0xff]  }
 0x4c4   :  { %3940 = vmatpush2.bf16.msra.mxu1 %v12610_v8  ;;  %v12699_v8 = vld [vmem:[%s18724_s7 + $0x81c] ss:$60 sps:$4 sm:$0xff]  }
 0x4c5   :  { %3995 = vmatpush2.bf16.msra.mxu0 %v12613_v9  ;;  %3941 = vmatprep.subr.bf16.mxu1 %v12618_v10  ;;  %v12696_v9 = vld [vmem:[%s18724_s7 + $0x4d4] ss:$60 sps:$4 sm:$0xff]  }
 0x4c6   :  { %4005 = vmatprep.subr.bf16.mxu0 %v12621_v11  ;;  %v12697_v10 = vld [vmem:[%s18724_s7 + $0x818] ss:$60 sps:$4 sm:$0xff]   ;;  %v12694_v11 = vld [vmem:[%s18724_s7 + $0x4d0] ss:$60 sps:$4 sm:$0xff]  }
 0x4c8   :  { %3997 = vmatmul.mubr.bf16.vlgmr.msra.gmra.mxu0 %v15016_v62  ;;  %3942 = vmatpush2.bf16.msra.mxu1 %v12616_v12  ;;  %v12705_v12 = vld [vmem:[%s18724_s7 + $0x7a4] ss:$60 sps:$4 sm:$0xff]  }
 0x4c9   :  { %4006 = vmatpush1.bf16.msra.mxu0 %v12619_v13  ;;  %4037 = vmatprep.mubr.bf16.mxu0 %v15004_v57  ;;  %v15611_v13 = vld [vmem:[%s18726_s8] sm:$0xff] }
 0x4ca   :  { %3943 = vmatprep.subr.bf16.mxu1 %v12624_v14  ;;  %4007 = vmatprep.subr.bf16.mxu0 %v12627_v15  ;;  %v12702_v14 = vld [vmem:[%s18724_s7 + $0x45c] ss:$60 sps:$4 sm:$0xff]  }
 0x4cb   :  { %v12703_v15 = vld [vmem:[%s18724_s7 + $0x7a0] ss:$60 sps:$4 sm:$0xff]  }
 0x4cc   :  { %3944 = vmatpush2.bf16.msra.mxu1 %v12622_v16  ;;  %v1702_v16 = vrot.slane %v15611_v13, %v14736_v30 }
 0x4cd   :  { %4008 = vmatpush1.bf16.msra.mxu0 %v12625_v17  ;;  %3945 = vmatprep.subr.bf16.mxu1 %v12630_v18  ;;  %v12700_v17 = vld [vmem:[%s18724_s7 + $0x458] ss:$60 sps:$4 sm:$0xff]   ;;  %v12711_v18 = vld [vmem:[%s18724_s7 + $0xb64] ss:$60 sps:$4 sm:$0xff]  }
 0x4ce   :  { %4009 = vmatprep.subr.bf16.mxu0 %v12633_v19  ;;  %v1706_v19 = vrot.slane %v15611_v13, %v14754_v42 }
 0x4d0   :  { %3946 = vmatpush2.bf16.msra.mxu1 %v12628_v20  ;;  %v12708_v20 = vld [vmem:[%s18724_s7 + $0x3e4] ss:$60 sps:$4 sm:$0xff]  }
 0x4d1   :  { %4010 = vmatpush1.bf16.msra.mxu0 %v12631_v21  ;;  %3947 = vmatprep.subr.bf16.mxu1 %v12636_v22 }
 0x4d2   :  { %4011 = vmatprep.subr.bf16.mxu0 %v12639_v23 }
 0x4d4   :  { %3948 = vmatpush2.bf16.msra.mxu1 %v12634_v24  ;;  %v12709_v24 = vld [vmem:[%s18724_s7 + $0xb60] ss:$60 sps:$4 sm:$0xff]  }
 0x4d5   :  { %4012 = vmatpush1.bf16.msra.mxu0 %v12637_v25  ;;  %3949 = vmatprep.subr.bf16.mxu1 %v12642_v28 }
 0x4d6   :  { %4013 = vmatprep.subr.bf16.mxu0 %v12645_v36  ;;  %v12706_v36 = vld [vmem:[%s18724_s7 + $0x3e0] ss:$60 sps:$4 sm:$0xff]  }
 0x4d8   :  { %3950 = vmatpush2.bf16.msra.mxu1 %v12640_v37  ;;  %v12714_v37 = vld [vmem:[%s18724_s7 + $0x374] ss:$60 sps:$4 sm:$0xff]  }
 0x4d9   :  { %4014 = vmatpush1.bf16.msra.mxu0 %v12643_v40  ;;  %3951 = vmatprep.subr.bf16.mxu1 %v12648_v41 }
 0x4da   :  { %4015 = vmatprep.subr.bf16.mxu0 %v12651_v46  ;;  %v12717_v46 = vld [vmem:[%s18724_s7 + $0xaf4] ss:$60 sps:$4 sm:$0xff]  }
 0x4dc   :  { %3952 = vmatpush2.bf16.msra.mxu1 %v12646_v47 }
 0x4dd   :  { %4016 = vmatpush1.bf16.msra.mxu0 %v12649_v48  ;;  %3953 = vmatprep.subr.bf16.mxu1 %v12654_v53 }
 0x4de   :  { %4017 = vmatprep.subr.bf16.mxu0 %v12657_v54  ;;  %v12712_v54 = vld [vmem:[%s18724_s7 + $0x370] ss:$60 sps:$4 sm:$0xff]  }
 0x4e0   :  { %3954 = vmatpush2.bf16.msra.mxu1 %v12652_v55 }
 0x4e1   :  { %4018 = vmatpush1.bf16.msra.mxu0 %v12655_v56  ;;  %4046 = vmatprep.subr.bf16.mxu1 %v12663_v59  ;;  %v12715_v59 = vld [vmem:[%s18724_s7 + $0xaf0] ss:$60 sps:$4 sm:$0xff]  }
 0x4e2   :  { %4019 = vmatprep.subr.bf16.mxu0 %v12660_v60  ;;  %v12720_v60 = vld [vmem:[%s18724_s7 + $0x2fc] ss:$60 sps:$4 sm:$0xff]  }
 0x4e3   :  { %3956 = vmatmul.mubr.bf16.vlgmr.msra.gmra.mxu1 %v15014_v61 }
 0x4e4   :  { %4047 = vmatpush1.bf16.msra.mxu1 %v12661_v63  ;;  %11191 = vmatprep.mubr.msk.bf16.mxu1 %vm1035_vm2, %v15006_v58  ;;  %v12723_v63 = vld [vmem:[%s18724_s7 + $0xa7c] ss:$60 sps:$4 sm:$0xff]  }
 0x4e5   :  { %4020 = vmatpush1.bf16.msra.mxu0 %v12658_v26  ;;  %4048 = vmatprep.subr.bf16.mxu1 %v12669_v44  ;;  %v12718_v26 = vld [vmem:[%s18724_s7 + $0x2f8] ss:$60 sps:$4 sm:$0xff]  }
 0x4e6   :  { %4021 = vmatprep.subr.bf16.mxu0 %v12666_v27  ;;  %v12721_v44 = vld [vmem:[%s18724_s7 + $0xa78] ss:$60 sps:$4 sm:$0xff]   ;;  %v12726_v27 = vld [vmem:[%s18724_s7 + $0x284] ss:$60 sps:$4 sm:$0xff]  }
 0x4e8   :  { %4049 = vmatpush1.bf16.msra.mxu1 %v12667_v45  ;;  %v12724_v45 = vld [vmem:[%s18724_s7 + $0x280] ss:$60 sps:$4 sm:$0xff]  }
 0x4e9   :  { %4022 = vmatpush2.bf16.msra.mxu0 %v12664_v32  ;;  %4050 = vmatprep.subr.bf16.mxu1 %v12675_v33  ;;  %v12729_v32 = vld [vmem:[%s18724_s7 + $0xa04] ss:$60 sps:$4 sm:$0xff]  }
 0x4ea   :  { %4023 = vmatprep.subr.bf16.mxu0 %v12672_v35  ;;  %v12727_v33 = vld [vmem:[%s18724_s7 + $0xa00] ss:$60 sps:$4 sm:$0xff]   ;;  %v12732_v35 = vld [vmem:[%s18724_s7 + $0x20c] ss:$60 sps:$4 sm:$0xff]  }
 0x4ec   :  { %4051 = vmatpush1.bf16.msra.mxu1 %v12673_v38  ;;  %v12735_v38 = vld [vmem:[%s18724_s7 + $0x98c] ss:$60 sps:$4 sm:$0xff]  }
 0x4ed   :  { %4024 = vmatpush2.bf16.msra.mxu0 %v12670_v49  ;;  %4052 = vmatprep.subr.bf16.mxu1 %v12681_v50  ;;  %v12730_v49 = vld [vmem:[%s18724_s7 + $0x208] ss:$60 sps:$4 sm:$0xff]  }
 0x4ee   :  { %4025 = vmatprep.subr.bf16.mxu0 %v12678_v52  ;;  %v12733_v50 = vld [vmem:[%s18724_s7 + $0x988] ss:$60 sps:$4 sm:$0xff]   ;;  %v12738_v52 = vld [vmem:[%s18724_s7 + $0x194] ss:$60 sps:$4 sm:$0xff]  }
 0x4f0   :  { %4053 = vmatpush1.bf16.msra.mxu1 %v12679_v51  ;;  %v12736_v51 = vld [vmem:[%s18724_s7 + $0x190] ss:$60 sps:$4 sm:$0xff]  }
 0x4f1   :  { %4026 = vmatpush2.bf16.msra.mxu0 %v12676_v34  ;;  %4054 = vmatprep.subr.bf16.mxu1 %v12687_v39  ;;  %v12741_v34 = vld [vmem:[%s18724_s7 + $0x914] ss:$60 sps:$4 sm:$0xff]  }
 0x4f2   :  { %4027 = vmatprep.subr.bf16.mxu0 %v12684_v0  ;;  %v12739_v39 = vld [vmem:[%s18724_s7 + $0x910] ss:$60 sps:$4 sm:$0xff]   ;;  %v12744_v0 = vld [vmem:[%s18724_s7 + $0x11c] ss:$60 sps:$4 sm:$0xff]  }
 0x4f4   :  { %4055 = vmatpush1.bf16.msra.mxu1 %v12685_v2  ;;  %v12742_v2 = vld [vmem:[%s18724_s7 + $0x118] ss:$60 sps:$4 sm:$0xff]  }
 0x4f5   :  { %4028 = vmatpush2.bf16.msra.mxu0 %v12682_v3  ;;  %4056 = vmatprep.subr.bf16.mxu1 %v12693_v4  ;;  %v12747_v3 = vld [vmem:[%s18724_s7 + $0x89c] ss:$60 sps:$4 sm:$0xff]  }
 0x4f6   :  { %4029 = vmatprep.subr.bf16.mxu0 %v12690_v5  ;;  %v12745_v4 = vld [vmem:[%s18724_s7 + $0x898] ss:$60 sps:$4 sm:$0xff]   ;;  %v12750_v5 = vld [vmem:[%s18724_s7 + $0xa4] ss:$60 sps:$4 sm:$0xff]  }
 0x4f8   :  { %4057 = vmatpush1.bf16.msra.mxu1 %v12691_v6  ;;  %v12748_v6 = vld [vmem:[%s18724_s7 + $0xa0] ss:$60 sps:$4 sm:$0xff]  }
 0x4f9   :  { %4030 = vmatpush2.bf16.msra.mxu0 %v12688_v7  ;;  %4058 = vmatprep.subr.bf16.mxu1 %v12699_v8  ;;  %v12753_v7 = vld [vmem:[%s18724_s7 + $0x824] ss:$60 sps:$4 sm:$0xff]  }
 0x4fa   :  { %4031 = vmatprep.subr.bf16.mxu0 %v12696_v9  ;;  %v12751_v8 = vld [vmem:[%s18724_s7 + $0x820] ss:$60 sps:$4 sm:$0xff]   ;;  %v12756_v9 = vld [vmem:[%s18724_s7 + $0x2c] ss:$60 sps:$4 sm:$0xff]  }
 0x4fc   :  { %4059 = vmatpush1.bf16.msra.mxu1 %v12697_v10  ;;  %v12754_v10 = vld [vmem:[%s18724_s7 + $0x28] ss:$60 sps:$4 sm:$0xff]  }
 0x4fd   :  { %4032 = vmatpush2.bf16.msra.mxu0 %v12694_v11  ;;  %4060 = vmatprep.subr.bf16.mxu1 %v12705_v12  ;;  %v12759_v11 = vld [vmem:[%s18724_s7 + $0x7ac] ss:$60 sps:$4 sm:$0xff]  }
 0x4fe   :  { %4033 = vmatprep.subr.bf16.mxu0 %v12702_v14  ;;  %v12757_v12 = vld [vmem:[%s18724_s7 + $0x7a8] ss:$60 sps:$4 sm:$0xff]   ;;  %v12762_v14 = vld [vmem:[%s18724_s7 + $0x734] ss:$60 sps:$4 sm:$0xff]  }
 0x4ff   :  { %v3711_v21 = vpop.f32.mrf.mxu0  ;;  %v3752_v22 = vpop.f32.mrf.mxu1 }
 0x500   :  { %v3712_v23 = vadd.f32 %v3711_v21, %v1702_v16  ;;  %4061 = vmatpush1.bf16.msra.mxu1 %v12703_v15  ;;  %v12765_v15 = vld [vmem:[%s18724_s7 + $0xb6c] ss:$60 sps:$4 sm:$0xff]  }
 0x501   :  { %4034 = vmatpush2.bf16.msra.mxu0 %v12700_v17  ;;  %v3713_v25 = vpop.f32.mrf.mxu0  ;;  %v3754_v28 = vpop.f32.mrf.mxu1  ;;  %4076 = vmatprep.subr.bf16.mxu1 %v12711_v18  ;;  %v12760_v17 = vld [vmem:[%s18724_s7 + $0x730] ss:$60 sps:$4 sm:$0xff]   ;;  %v12763_v18 = vld [vmem:[%s18724_s7 + $0xb68] ss:$60 sps:$4 sm:$0xff]  }
 0x502   :  { %v15641_v40 = vadd.f32 %v3752_v22, %v3712_v23  ;;  %v3714_v41 = vadd.f32 %v3713_v25, %v1706_v19  ;;  %4035 = vmatprep.subr.bf16.mxu0 %v12708_v20  ;;  %v12768_v19 = vld [vmem:[%s18724_s7 + $0x6bc] ss:$60 sps:$4 sm:$0xff]   ;;  %v12774_v25 = vld [vmem:[%s18724_s7 + $0x644] ss:$60 sps:$4 sm:$0xff]  }
 0x503   :  { %v3715_v47 = vpop.f32.mrf.mxu0  ;;  %v3756_v48 = vpop.f32.mrf.mxu1  ;;  %v12771_v20 = vld [vmem:[%s18724_s7 + $0x37c] ss:$60 sps:$4 sm:$0xff]  }
 0x504   :  { %v15646_v53 = vadd.f32 %v3754_v28, %v3714_v41  ;;  %4077 = vmatpush2.bf16.msra.mxu1 %v12709_v24  ;;  %v12766_v23 = vld [vmem:[%s18724_s7 + $0x6b8] ss:$60 sps:$4 sm:$0xff]   ;;  %v12777_v28 = vld [vmem:[%s18724_s7 + $0x304] ss:$60 sps:$4 sm:$0xff]   ;;  %v12783_v48 = vld [vmem:[%s18724_s7 + $0x28c] ss:$60 sps:$4 sm:$0xff]  }
 0x505   :  { %4036 = vmatpush2.bf16.msra.mxu0 %v12706_v36  ;;  %v3716_v55 = vpop.f32.mrf.mxu0  ;;  %v3757_v56 = vpop.f32.mrf.mxu1  ;;  %4087 = vmatprep.subr.bf16.mxu1 %v12714_v37  ;;  %v12769_v24 = vld [vmem:[%s18724_s7 + $0x378] ss:$60 sps:$4 sm:$0xff]   ;;  %v12772_v37 = vld [vmem:[%s18724_s7 + $0x640] ss:$60 sps:$4 sm:$0xff]   ;;  %v12778_v47 = vld [vmem:[%s18724_s7 + $0x5c8] ss:$60 sps:$4 sm:$0xff]  }
 0x506   :  { %4128 = vmatprep.subr.bf16.mxu0 %v12717_v46  ;;  %v12775_v41 = vld [vmem:[%s18724_s7 + $0x300] ss:$60 sps:$4 sm:$0xff]   ;;  %v12780_v46 = vld [vmem:[%s18724_s7 + $0x5cc] ss:$60 sps:$4 sm:$0xff]   ;;  %v12786_v55 = vld [vmem:[%s18724_s7 + $0x554] ss:$60 sps:$4 sm:$0xff]  }
 0x507   :  { %4079 = vmatmul.mubr.bf16.vlgmr.msra.gmra.mxu1 %v15016_v62  ;;  %v12784_v56 = vld [vmem:[%s18724_s7 + $0x550] ss:$60 sps:$4 sm:$0xff]  }
 0x508   :  { %4038 = vmatmul.mubr.bf16.vlgmr.msra.gmra.mxu0 %v15014_v61  ;;  %4088 = vmatpush1.bf16.msra.mxu1 %v12712_v54  ;;  %v12781_v54 = vld [vmem:[%s18724_s7 + $0x288] ss:$60 sps:$4 sm:$0xff]  }
 0x509   :  { %4119 = vmatprep.mubr.bf16.mxu1 %v15004_v57  ;;  %4129 = vmatpush1.bf16.msra.mxu0 %v12715_v59  ;;  %v12789_v59 = vld [vmem:[%s18724_s7 + $0x214] ss:$60 sps:$4 sm:$0xff]  }
 0x50a   :  { %11192 = vmatprep.mubr.msk.bf16.mxu0 %vm1035_vm2, %v15006_v58  ;;  %4089 = vmatprep.subr.bf16.mxu1 %v12720_v60  ;;  %v12787_v60 = vld [vmem:[%s18724_s7 + $0x210] ss:$60 sps:$4 sm:$0xff]  }
 0x50b   :  { %4130 = vmatprep.subr.bf16.mxu0 %v12723_v63  ;;  %v12792_v63 = vld [vmem:[%s18724_s7 + $0x4dc] ss:$60 sps:$4 sm:$0xff]  }
 0x50c   :  { %4090 = vmatpush1.bf16.msra.mxu1 %v12718_v26  ;;  %v12790_v26 = vld [vmem:[%s18724_s7 + $0x4d8] ss:$60 sps:$4 sm:$0xff]  }
 0x50d   :  { %4131 = vmatpush1.bf16.msra.mxu0 %v12721_v44  ;;  %4091 = vmatprep.subr.bf16.mxu1 %v12726_v27  ;;  %v12795_v44 = vld [vmem:[%s18724_s7 + $0x19c] ss:$60 sps:$4 sm:$0xff]  }
 0x50e   :  { %4132 = vmatprep.subr.bf16.mxu0 %v12729_v32  ;;  %v12793_v27 = vld [vmem:[%s18724_s7 + $0x198] ss:$60 sps:$4 sm:$0xff]   ;;  %v12801_v32 = vld [vmem:[%s18724_s7 + $0x124] ss:$60 sps:$4 sm:$0xff]  }
 0x510   :  { %4092 = vmatpush1.bf16.msra.mxu1 %v12724_v45  ;;  %v12798_v45 = vld [vmem:[%s18724_s7 + $0x464] ss:$60 sps:$4 sm:$0xff]  }
 0x511   :  { %4133 = vmatpush1.bf16.msra.mxu0 %v12727_v33  ;;  %4093 = vmatprep.subr.bf16.mxu1 %v12732_v35  ;;  %v12796_v33 = vld [vmem:[%s18724_s7 + $0x460] ss:$60 sps:$4 sm:$0xff]   ;;  %v1710_v35 = vrot.slane %v15611_v13, %v14739_v31 }
 0x512   :  { %4134 = vmatprep.subr.bf16.mxu0 %v12735_v38  ;;  %v12799_v38 = vld [vmem:[%s18724_s7 + $0x120] ss:$60 sps:$4 sm:$0xff]  }
 0x514   :  { %4094 = vmatpush1.bf16.msra.mxu1 %v12730_v49  ;;  %v12804_v49 = vld [vmem:[%s18724_s7 + $0x3ec] ss:$60 sps:$4 sm:$0xff]  }
 0x515   :  { %4135 = vmatpush1.bf16.msra.mxu0 %v12733_v50  ;;  %4095 = vmatprep.subr.bf16.mxu1 %v12738_v52  ;;  %v12807_v50 = vld [vmem:[%s18724_s7 + $0xac] ss:$60 sps:$4 sm:$0xff]   ;;  %v1714_v52 = vrot.slane %v15611_v13, %v14757_v43 }
 0x516   :  { %4136 = vmatprep.subr.bf16.mxu0 %v12741_v34 }
 0x518   :  { %4096 = vmatpush1.bf16.msra.mxu1 %v12736_v51  ;;  %v12802_v51 = vld [vmem:[%s18724_s7 + $0x3e8] ss:$60 sps:$4 sm:$0xff]  }
 0x519   :  { %4137 = vmatpush1.bf16.msra.mxu0 %v12739_v39  ;;  %4097 = vmatprep.subr.bf16.mxu1 %v12744_v0 }
 0x51a   :  { %4138 = vmatprep.subr.bf16.mxu0 %v12747_v3  ;;  %v12810_v3 = vld [vmem:[%s18724_s7 + $0x34] ss:$60 sps:$4 sm:$0xff]  }
 0x51c   :  { %4098 = vmatpush1.bf16.msra.mxu1 %v12742_v2  ;;  %v12805_v2 = vld [vmem:[%s18724_s7 + $0xa8] ss:$60 sps:$4 sm:$0xff]  }
 0x51d   :  { %4139 = vmatpush1.bf16.msra.mxu0 %v12745_v4  ;;  %4099 = vmatprep.subr.bf16.mxu1 %v12750_v5  ;;  %v12813_v4 = vld [vmem:[%s18724_s7 + $0xafc] ss:$60 sps:$4 sm:$0xff]  }
 0x51e   :  { %4140 = vmatprep.subr.bf16.mxu0 %v12753_v7  ;;  %v12811_v7 = vld [vmem:[%s18724_s7 + $0xaf8] ss:$60 sps:$4 sm:$0xff]  }
 0x520   :  { %4100 = vmatpush1.bf16.msra.mxu1 %v12748_v6 }
 0x521   :  { %4141 = vmatpush1.bf16.msra.mxu0 %v12751_v8  ;;  %4101 = vmatprep.subr.bf16.mxu1 %v12756_v9  ;;  %v12808_v9 = vld [vmem:[%s18724_s7 + $0x30] ss:$60 sps:$4 sm:$0xff]  }
 0x522   :  { %4142 = vmatprep.subr.bf16.mxu0 %v12759_v11  ;;  %v12816_v11 = vld [vmem:[%s18724_s7 + $0x73c] ss:$60 sps:$4 sm:$0xff]  }
 0x523   :  { %v15749_v16 = vpop.f32.mrf.mxu0 }
 0x524   :  { %4102 = vmatpush1.bf16.msra.mxu1 %v12754_v10 }
 0x525   :  { %4143 = vmatpush1.bf16.msra.mxu0 %v12757_v12  ;;  %v15763_v21 = vpop.f32.mrf.mxu0  ;;  %4103 = vmatprep.subr.bf16.mxu1 %v12762_v14  ;;  %v12819_v14 = vld [vmem:[%s18724_s7 + $0xa84] ss:$60 sps:$4 sm:$0xff]  }
 0x526   :  { %4158 = vmatprep.subr.bf16.mxu0 %v12765_v15  ;;  %v12814_v15 = vld [vmem:[%s18724_s7 + $0x738] ss:$60 sps:$4 sm:$0xff]  }
 0x527   :  { %v3838_v22 = vpop.f32.mrf.mxu0 }
 0x528   :  { %4104 = vmatpush2.bf16.msra.mxu1 %v12760_v17  ;;  %v12822_v17 = vld [vmem:[%s18724_s7 + $0x6c4] ss:$60 sps:$4 sm:$0xff]   ;;  %v12831_v22 = vld [vmem:[%s18724_s7 + $0x994] ss:$60 sps:$4 sm:$0xff]  }
 0x529   :  { %4159 = vmatpush2.bf16.msra.mxu0 %v12763_v18  ;;  %v3839_v36 = vpop.f32.mrf.mxu0  ;;  %4105 = vmatprep.subr.bf16.mxu1 %v12768_v19  ;;  %v12825_v18 = vld [vmem:[%s18724_s7 + $0xa0c] ss:$60 sps:$4 sm:$0xff]   ;;  %v12820_v19 = vld [vmem:[%s18724_s7 + $0x6c0] ss:$60 sps:$4 sm:$0xff]  }
 0x52a   :  { %4169 = vmatprep.subr.bf16.mxu0 %v12771_v20  ;;  %v12823_v20 = vld [vmem:[%s18724_s7 + $0xa08] ss:$60 sps:$4 sm:$0xff]   ;;  %v12835_v36 = vld [vmem:[%s18724_s7 + $0x918] ss:$60 sps:$4 sm:$0xff]  }
 0x52c   :  { %4161 = vmatmul.mubr.bf16.vlgmr.msra.gmra.mxu0 %v15016_v62  ;;  %4106 = vmatpush2.bf16.msra.mxu1 %v12766_v23  ;;  %v12829_v23 = vld [vmem:[%s18724_s7 + $0x990] ss:$60 sps:$4 sm:$0xff]  }
 0x52d   :  { %4170 = vmatpush1.bf16.msra.mxu0 %v12769_v24  ;;  %4201 = vmatprep.mubr.bf16.mxu0 %v15004_v57  ;;  %v12826_v24 = vld [vmem:[%s18724_s7 + $0x648] ss:$60 sps:$4 sm:$0xff]  }
 0x52e   :  { %4107 = vmatprep.subr.bf16.mxu1 %v12774_v25  ;;  %4171 = vmatprep.subr.bf16.mxu0 %v12777_v28  ;;  %v12837_v25 = vld [vmem:[%s18724_s7 + $0x91c] ss:$60 sps:$4 sm:$0xff]   ;;  %v12834_v28 = vld [vmem:[%s18724_s7 + $0x5d4] ss:$60 sps:$4 sm:$0xff]  }
 0x530   :  { %4108 = vmatpush2.bf16.msra.mxu1 %v12772_v37  ;;  %v12832_v37 = vld [vmem:[%s18724_s7 + $0x5d0] ss:$60 sps:$4 sm:$0xff]  }
 0x531   :  { %4172 = vmatpush1.bf16.msra.mxu0 %v12775_v41  ;;  %4109 = vmatprep.subr.bf16.mxu1 %v12780_v46  ;;  %v12840_v41 = vld [vmem:[%s18724_s7 + $0x55c] ss:$60 sps:$4 sm:$0xff]   ;;  %v12843_v46 = vld [vmem:[%s18724_s7 + $0x8a4] ss:$60 sps:$4 sm:$0xff]  }
 0x532   :  { %4173 = vmatprep.subr.bf16.mxu0 %v12783_v48  ;;  %v12838_v48 = vld [vmem:[%s18724_s7 + $0x558] ss:$60 sps:$4 sm:$0xff]  }
 0x534   :  { %4110 = vmatpush2.bf16.msra.mxu1 %v12778_v47  ;;  %v12841_v47 = vld [vmem:[%s18724_s7 + $0x8a0] ss:$60 sps:$4 sm:$0xff]  }
 0x535   :  { %4174 = vmatpush1.bf16.msra.mxu0 %v12781_v54  ;;  %4111 = vmatprep.subr.bf16.mxu1 %v12786_v55  ;;  %v12846_v54 = vld [vmem:[%s18724_s7 + $0x4e4] ss:$60 sps:$4 sm:$0xff]   ;;  %v12849_v55 = vld [vmem:[%s18724_s7 + $0x82c] ss:$60 sps:$4 sm:$0xff]  }
 0x536   :  { %4175 = vmatprep.subr.bf16.mxu0 %v12789_v59  ;;  %v15940_v59 = vsub.s32 4, %v14733_v29 }
 0x538   :  { %4112 = vmatpush2.bf16.msra.mxu1 %v12784_v56  ;;  %v12847_v56 = vld [vmem:[%s18724_s7 + $0x828] ss:$60 sps:$4 sm:$0xff]  }
 0x539   :  { %4176 = vmatpush1.bf16.msra.mxu0 %v12787_v60  ;;  %4113 = vmatprep.subr.bf16.mxu1 %v12792_v63  ;;  %v12844_v60 = vld [vmem:[%s18724_s7 + $0x4e0] ss:$60 sps:$4 sm:$0xff]   ;;  %v12852_v63 = vld [vmem:[%s18724_s7 + $0x46c] ss:$60 sps:$4 sm:$0xff]  }
 0x53a   :  { %4177 = vmatprep.subr.bf16.mxu0 %v12795_v44  ;;  %v12853_v44 = vld [vmem:[%s18724_s7 + $0x7b0] ss:$60 sps:$4 sm:$0xff]  }
 0x53c   :  { %4114 = vmatpush2.bf16.msra.mxu1 %v12790_v26  ;;  %v12855_v26 = vld [vmem:[%s18724_s7 + $0x7b4] ss:$60 sps:$4 sm:$0xff]  }
 0x53d   :  { %4178 = vmatpush1.bf16.msra.mxu0 %v12793_v27  ;;  %4115 = vmatprep.subr.bf16.mxu1 %v12798_v45  ;;  %v15955_v27 = vsub.s32 5, %v14733_v29  ;;  %v1718_v45 = vrot.slane %v15611_v13, %v15940_v59 }
 0x53e   :  { %4179 = vmatprep.subr.bf16.mxu0 %v12801_v32  ;;  %v12850_v32 = vld [vmem:[%s18724_s7 + $0x468] ss:$60 sps:$4 sm:$0xff]  }
 0x53f   :  { %v3793_v34 = vpop.f32.mrf.mxu1 }
 0x540   :  { %v3794_v39 = vadd.f32 %v3793_v34, %v1710_v35  ;;  %4116 = vmatpush2.bf16.msra.mxu1 %v12796_v33  ;;  %v12858_v33 = vld [vmem:[%s18724_s7 + $0x3f4] ss:$60 sps:$4 sm:$0xff]  }
 0x541   :  { %4180 = vmatpush1.bf16.msra.mxu0 %v12799_v38  ;;  %v3795_v0 = vpop.f32.mrf.mxu1  ;;  %4117 = vmatprep.subr.bf16.mxu1 %v12804_v49  ;;  %v12861_v35 = vld [vmem:[%s18724_s7 + $0xb74] ss:$60 sps:$4 sm:$0xff]   ;;  %v1722_v38 = vrot.slane %v15611_v13, %v15955_v27  ;;  %v12862_v13 = vld [vmem:[%s18724_s7 + $0x740] ss:$60 sps:$4 sm:$0xff]  }
 0x542   :  { %v15856_v5 = vadd.f32 %v15749_v16, %v3794_v39  ;;  %v3796_v6 = vadd.f32 %v3795_v0, %v1714_v52  ;;  %4181 = vmatprep.subr.bf16.mxu0 %v12807_v50  ;;  %v12817_v16 = vld [vmem:[%s18724_s7 + $0xa80] ss:$60 sps:$4 sm:$0xff]   ;;  %v12859_v49 = vld [vmem:[%s18724_s7 + $0xb70] ss:$60 sps:$4 sm:$0xff]  }
 0x543   :  { %v3797_v8 = vpop.f32.mrf.mxu1  ;;  %v12856_v0 = vld [vmem:[%s18724_s7 + $0x3f0] ss:$60 sps:$4 sm:$0xff]  }
 0x544   :  { %v15865_v10 = vadd.f32 %v15763_v21, %v3796_v6  ;;  %4118 = vmatpush2.bf16.msra.mxu1 %v12802_v51  ;;  %v12828_v21 = vld [vmem:[%s18724_s7 + $0x64c] ss:$60 sps:$4 sm:$0xff]   ;;  %v12864_v8 = vld [vmem:[%s18724_s7 + $0xb00] ss:$60 sps:$4 sm:$0xff]  }
 0x545   :  { %4182 = vmatpush1.bf16.msra.mxu0 %v12805_v2  ;;  %v3798_v12 = vpop.f32.mrf.mxu1  ;;  %4210 = vmatprep.subr.bf16.mxu1 %v12813_v4  ;;  %v12863_v4 = vld [vmem:[%s18724_s7 + $0x380] ss:$60 sps:$4 sm:$0xff]  }
 0x546   :  { %4183 = vmatprep.subr.bf16.mxu0 %v12810_v3 }
 0x547   :  { %4120 = vmatmul.mubr.bf16.vlgmr.msra.gmra.mxu1 %v15014_v61 }
 0x548   :  { %4211 = vmatpush1.bf16.msra.mxu1 %v12811_v7  ;;  %11193 = vmatprep.mubr.msk.bf16.mxu1 %vm1035_vm2, %v15006_v58 }
 0x549   :  { %4184 = vmatpush1.bf16.msra.mxu0 %v12808_v9  ;;  %4212 = vmatprep.subr.bf16.mxu1 %v12819_v14 }
 0x54a   :  { %4185 = vmatprep.subr.bf16.mxu0 %v12816_v11  ;;  %v12865_v11 = vld [vmem:[%s18724_s7 + $0x6c8] ss:$60 sps:$4 sm:$0xff]  }
 0x54c   :  { %4213 = vmatpush1.bf16.msra.mxu1 %v12817_v16  ;;  %v12867_v16 = vld [vmem:[%s18724_s7 + $0xa88] ss:$60 sps:$4 sm:$0xff]  }
 0x54d   :  { %4186 = vmatpush2.bf16.msra.mxu0 %v12814_v15  ;;  %4214 = vmatprep.subr.bf16.mxu1 %v12825_v18  ;;  %v12866_v15 = vld [vmem:[%s18724_s7 + $0x308] ss:$60 sps:$4 sm:$0xff]   ;;  %v12869_v18 = vld [vmem:[%s18724_s7 + $0x290] ss:$60 sps:$4 sm:$0xff]  }
 0x54e   :  { %4187 = vmatprep.subr.bf16.mxu0 %v12822_v17  ;;  %v12868_v17 = vld [vmem:[%s18724_s7 + $0x650] ss:$60 sps:$4 sm:$0xff]  }
 0x550   :  { %4215 = vmatpush1.bf16.msra.mxu1 %v12823_v20  ;;  %v12873_v20 = vld [vmem:[%s18724_s7 + $0x998] ss:$60 sps:$4 sm:$0xff]  }
 0x551   :  { %4188 = vmatpush2.bf16.msra.mxu0 %v12820_v19  ;;  %4216 = vmatprep.subr.bf16.mxu1 %v12831_v22  ;;  %v12870_v19 = vld [vmem:[%s18724_s7 + $0xa10] ss:$60 sps:$4 sm:$0xff]   ;;  %v12875_v22 = vld [vmem:[%s18724_s7 + $0x1a0] ss:$60 sps:$4 sm:$0xff]  }
 0x552   :  { %4189 = vmatprep.subr.bf16.mxu0 %v12828_v21  ;;  %v12874_v21 = vld [vmem:[%s18724_s7 + $0x560] ss:$60 sps:$4 sm:$0xff]  }
 0x554   :  { %4217 = vmatpush1.bf16.msra.mxu1 %v12829_v23  ;;  %v12876_v23 = vld [vmem:[%s18724_s7 + $0x920] ss:$60 sps:$4 sm:$0xff]  }
 0x555   :  { %4190 = vmatpush2.bf16.msra.mxu0 %v12826_v24  ;;  %4218 = vmatprep.subr.bf16.mxu1 %v12837_v25  ;;  %v12877_v24 = vld [vmem:[%s18724_s7 + $0x4e8] ss:$60 sps:$4 sm:$0xff]  }
 0x556   :  { %4191 = vmatprep.subr.bf16.mxu0 %v12834_v28  ;;  %v12878_v25 = vld [vmem:[%s18724_s7 + $0x128] ss:$60 sps:$4 sm:$0xff]  }
 0x557   :  { %v12879_v28 = vld [vmem:[%s18724_s7 + $0x8a8] ss:$60 sps:$4 sm:$0xff]  }
 0x558   :  { %4219 = vmatpush1.bf16.msra.mxu1 %v12835_v36  ;;  %v12880_v36 = vld [vmem:[%s18724_s7 + $0x470] ss:$60 sps:$4 sm:$0xff]  }
 0x559   :  { %4192 = vmatpush2.bf16.msra.mxu0 %v12832_v37  ;;  %4220 = vmatprep.subr.bf16.mxu1 %v12843_v46  ;;  %v12881_v37 = vld [vmem:[%s18724_s7 + $0xb0] ss:$60 sps:$4 sm:$0xff]   ;;  %v12883_v46 = vld [vmem:[%s18724_s7 + $0x3f8] ss:$60 sps:$4 sm:$0xff]  }
 0x55a   :  { %4193 = vmatprep.subr.bf16.mxu0 %v12840_v41  ;;  %v12882_v41 = vld [vmem:[%s18724_s7 + $0x830] ss:$60 sps:$4 sm:$0xff]  }
 0x55c   :  { %4221 = vmatpush1.bf16.msra.mxu1 %v12841_v47  ;;  %v12884_v47 = vld [vmem:[%s18724_s7 + $0x38] ss:$60 sps:$4 sm:$0xff]  }
 0x55d   :  { %4194 = vmatpush2.bf16.msra.mxu0 %v12838_v48  ;;  %4222 = vmatprep.subr.bf16.mxu1 %v12849_v55  ;;  %v12885_v48 = vld [vmem:[%s18724_s7 + $0x7b8] ss:$60 sps:$4 sm:$0xff]   ;;  %v4332_v55 = vmax.f32 %v15646_v53, 0.0  ;;  %v12895_v53 = vld [vmem:[%s18727_s9 + $0x50c] ss:$28 sps:$4 sm:$0xff]  }
 0x55e   :  { %4195 = vmatprep.subr.bf16.mxu0 %v12846_v54  ;;  %v12888_v54 = vld [vmem:[%s18727_s9 + $0x18c] ss:$28 sps:$4 sm:$0xff]  }
 0x560   :  { %4223 = vmatpush1.bf16.msra.mxu1 %v12847_v56  ;;  %v12886_v56 = vld [vmem:[%s18727_s9 + $0x188] ss:$28 sps:$4 sm:$0xff]  }
 0x561   :  { %4196 = vmatpush2.bf16.msra.mxu0 %v12844_v60  ;;  %4224 = vmatprep.subr.bf16.mxu1 %v12855_v26  ;;  %v12889_v60 = vld [vmem:[%s18724_s7 + $0xb78] ss:$60 sps:$4 sm:$0xff]  }
 0x562   :  { %4197 = vmatprep.subr.bf16.mxu0 %v12852_v63  ;;  %v12892_v26 = vld [vmem:[%s18727_s9 + $0x154] ss:$28 sps:$4 sm:$0xff]  }
 0x563   :  { %v3875_v50 = vpop.f32.mrf.mxu0  ;;  %v3916_v52 = vpop.f32.mrf.mxu1 }
 0x564   :  { %v3876_v51 = vadd.f32 %v3875_v50, %v1718_v45  ;;  %4225 = vmatpush1.bf16.msra.mxu1 %v12853_v44  ;;  %v16083_v44 = vpack.c.bf16 %v4332_v55, %v4332_v55 }
 0x565   :  { %4198 = vmatpush2.bf16.msra.mxu0 %v12850_v32  ;;  %v3877_v34 = vpop.f32.mrf.mxu0  ;;  %v3918_v39 = vpop.f32.mrf.mxu1  ;;  %4240 = vmatprep.subr.bf16.mxu1 %v12861_v35  ;;  %v4334_v32 = vmax.f32 %v15865_v10, 0.0  ;;  %v12893_v35 = vld [vmem:[%s18727_s9 + $0x508] ss:$28 sps:$4 sm:$0xff]  }
 0x566   :  { %v15979_v2 = vadd.f32 %v3916_v52, %v3876_v51  ;;  %v3878_v3 = vadd.f32 %v3877_v34, %v1722_v38  ;;  %4199 = vmatprep.subr.bf16.mxu0 %v12858_v33  ;;  %v12890_v33 = vld [vmem:[%s18727_s9 + $0x150] ss:$28 sps:$4 sm:$0xff]   ;;  %v12896_v52 = vld [vmem:[%s18727_s9 + $0x118] ss:$28 sps:$4 sm:$0xff]   ;;  %v12904_v34 = vld [vmem:[%s18727_s9 + $0xe4] ss:$28 sps:$4 sm:$0xff]  }
 0x567   :  { %v3879_v6 = vpop.f32.mrf.mxu0  ;;  %v3920_v7 = vpop.f32.mrf.mxu1  ;;  %v16103_v50 = vpack.c.bf16 %v4334_v32, %v4334_v32  ;;  %v12899_v51 = vld [vmem:[%s18727_s9 + $0x4d0] ss:$28 sps:$4 sm:$0xff]  }
 0x568   :  { %v15987_v9 = vadd.f32 %v3918_v39, %v3878_v3  ;;  %4241 = vmatpush2.bf16.msra.mxu1 %v12859_v49  ;;  %v12898_v49 = vld [vmem:[%s18727_s9 + $0x11c] ss:$28 sps:$4 sm:$0xff]   ;;  %v12908_v3 = vld [vmem:[%s18727_s9 + $0xa8] ss:$28 sps:$4 sm:$0xff]   ;;  %v12916_v7 = vld [vmem:[%s18727_s9 + $0x74] ss:$28 sps:$4 sm:$0xff]  }
 0x569   :  { %4200 = vmatpush2.bf16.msra.mxu0 %v12856_v0  ;;  %v3880_v12 = vpop.f32.mrf.mxu0  ;;  %v3921_v14 = vpop.f32.mrf.mxu1  ;;  %12015 = vmatprep.subr.bf16.mxu1 %v12862_v13  ;;  %v12907_v39 = vld [vmem:[%s18727_s9 + $0x49c] ss:$28 sps:$4 sm:$0xff]   ;;  %v12910_v13 = vld [vmem:[%s18727_s9 + $0xac] ss:$28 sps:$4 sm:$0xff]  }
 0x56a   :  { %4291 = vmatprep.subr.bf16.mxu0 %v18732_v1  ;;  %v12905_v0 = vld [vmem:[%s18727_s9 + $0x498] ss:$28 sps:$4 sm:$0xff]   ;;  %v12911_v6 = vld [vmem:[%s18727_s9 + $0x460] ss:$28 sps:$4 sm:$0xff]   ;;  %v16147_v12 = vsub.s32 6, %v14733_v29 }
 0x56b   :  { %4243 = vmatmul.mubr.bf16.vlgmr.msra.gmra.mxu1 %v15016_v62  ;;  %v12917_v14 = vld [vmem:[%s18727_s9 + $0x428] ss:$28 sps:$4 sm:$0xff]   ;;  %v12947_v32 = vld [vmem:[%s18727_s9 + $0x690] ss:$28 sps:$4 sm:$0xff]  }
 0x56c   :  { %4202 = vmatmul.mubr.bf16.vlgmr.msra.gmra.mxu0 %v15014_v61  ;;  %12016 = vmatpush3.bf16.msra.mxu1 %v12863_v4  ;;  %v12913_v4 = vld [vmem:[%s18727_s9 + $0x464] ss:$28 sps:$4 sm:$0xff]  }
 0x56d   :  { %4283 = vmatprep.mubr.bf16.mxu1 %v15004_v57  ;;  %4292 = vmatpush1.bf16.msra.mxu0 %v12864_v8  ;;  %v12871_v57 = vld [vmem:[%s18724_s7 + $0x5d8] ss:$60 sps:$4 sm:$0xff]   ;;  %v12914_v8 = vld [vmem:[%s18727_s9 + $0x70] ss:$28 sps:$4 sm:$0xff]  }
 0x56e   :  { %11194 = vmatprep.mubr.msk.bf16.mxu0 %vm1035_vm2, %v15006_v58  ;;  %12017 = vmatprep.subr.bf16.mxu1 %v12865_v11  ;;  %v12872_v58 = vld [vmem:[%s18724_s7 + $0x218] ss:$60 sps:$4 sm:$0xff]   ;;  %v12919_v11 = vld [vmem:[%s18727_s9 + $0x42c] ss:$28 sps:$4 sm:$0xff]  }
 0x56f   :  { %4293 = vmatprep.subr.bf16.mxu0 %v18732_v1 }
 0x570   :  { %12018 = vmatpush3.bf16.msra.mxu1 %v12866_v15  ;;  %v12922_v15 = vld [vmem:[%s18727_s9 + $0x3c] ss:$28 sps:$4 sm:$0xff]  }
 0x571   :  { %4294 = vmatpush1.bf16.msra.mxu0 %v12867_v16  ;;  %12019 = vmatprep.subr.bf16.mxu1 %v12868_v17  ;;  %v12925_v16 = vld [vmem:[%s18727_s9 + $0x3f4] ss:$28 sps:$4 sm:$0xff]  }
 0x572   :  { %4295 = vmatprep.subr.bf16.mxu0 %v18732_v1  ;;  %v12920_v17 = vld [vmem:[%s18727_s9 + $0x38] ss:$28 sps:$4 sm:$0xff]  }
 0x574   :  { %12020 = vmatpush3.bf16.msra.mxu1 %v12869_v18  ;;  %v16164_v18 = vld [vmem:[%s18726_s8] sm:$0xff] }
 0x575   :  { %4296 = vmatpush1.bf16.msra.mxu0 %v12870_v19  ;;  %12021 = vmatprep.subr.bf16.mxu1 %v12871_v57  ;;  %v1726_v19 = vrot.slane %v16164_v18, %v16147_v12  ;;  %v12923_v57 = vld [vmem:[%s18727_s9 + $0x3f0] ss:$28 sps:$4 sm:$0xff]  }
 0x576   :  { %4297 = vmatprep.subr.bf16.mxu0 %v18732_v1 }
 0x578   :  { %12022 = vmatpush3.bf16.msra.mxu1 %v12872_v58  ;;  %v12928_v58 = vld [vmem:[%s18727_s9 + $0x4] ss:$28 sps:$4 sm:$0xff]  }
 0x579   :  { %4298 = vmatpush1.bf16.msra.mxu0 %v12873_v20  ;;  %12023 = vmatprep.subr.bf16.mxu1 %v12874_v21  ;;  %v12931_v20 = vld [vmem:[%s18727_s9 + $0x3bc] ss:$28 sps:$4 sm:$0xff]  }
 0x57a   :  { %4299 = vmatprep.subr.bf16.mxu0 %v18732_v1  ;;  %v12926_v21 = vld [vmem:[%s18727_s9] ss:$28 sps:$4 sm:$0xff]  }
 0x57c   :  { %12024 = vmatpush3.bf16.msra.mxu1 %v12875_v22 }
 0x57d   :  { %4300 = vmatpush1.bf16.msra.mxu0 %v12876_v23  ;;  %12025 = vmatprep.subr.bf16.mxu1 %v12877_v24 }
 0x57e   :  { %4301 = vmatprep.subr.bf16.mxu0 %v18732_v1 }
 0x580   :  { %12026 = vmatpush3.bf16.msra.mxu1 %v12878_v25  ;;  %v12929_v25 = vld [vmem:[%s18727_s9 + $0x3b8] ss:$28 sps:$4 sm:$0xff]  }
 0x581   :  { %4302 = vmatpush1.bf16.msra.mxu0 %v12879_v28  ;;  %12027 = vmatprep.subr.bf16.mxu1 %v12880_v36  ;;  %v12934_v28 = vld [vmem:[%s18727_s9 + $0x34c] ss:$28 sps:$4 sm:$0xff]   ;;  %v12937_v36 = vld [vmem:[%s18727_s9 + $0x384] ss:$28 sps:$4 sm:$0xff]  }
 0x582   :  { %4303 = vmatprep.subr.bf16.mxu0 %v18732_v1 }
 0x584   :  { %12028 = vmatpush3.bf16.msra.mxu1 %v12881_v37 }
 0x585   :  { %4304 = vmatpush1.bf16.msra.mxu0 %v12882_v41  ;;  %12029 = vmatprep.subr.bf16.mxu1 %v12883_v46  ;;  %v12932_v41 = vld [vmem:[%s18727_s9 + $0x348] ss:$28 sps:$4 sm:$0xff]  }
 0x586   :  { %4305 = vmatprep.subr.bf16.mxu0 %v18732_v1 }
 0x588   :  { %v16075_v63 = vpop.f32.mrf.mxu0  ;;  %12030 = vmatpush3.bf16.msra.mxu1 %v12884_v47  ;;  %v12935_v47 = vld [vmem:[%s18727_s9 + $0x380] ss:$28 sps:$4 sm:$0xff]  }
 0x589   :  { %4306 = vmatpush1.bf16.msra.mxu0 %v12885_v48  ;;  %9374 = vmatprep.subr.bf16.mxu1 %v12888_v54  ;;  %v12940_v48 = vld [vmem:[%s18727_s9 + $0x314] ss:$28 sps:$4 sm:$0xff]   ;;  %v12943_v54 = vld [vmem:[%s18727_s9 + $0x6cc] ss:$28 sps:$4 sm:$0xff]  }
 0x58a   :  { %v16085_v45 = vpop.f32.mrf.mxu0  ;;  %4321 = vmatprep.subr.bf16.mxu0 %v18732_v1 }
 0x58b   :  { %4284 = vmatmul.mubr.bf16.vlgmr.msra.gmra.mxu1 %v15014_v61  ;;  %v12901_v61 = vld [vmem:[%s18727_s9 + $0x4d4] ss:$28 sps:$4 sm:$0xff]  }
 0x58c   :  { %v4002_v38 = vpop.f32.mrf.mxu0  ;;  %9375 = vmatpush1.bf16.msra.mxu1 %v12886_v56  ;;  %9406 = vmatprep.mubr.bf16.mxu1 %v16083_v44  ;;  %v12938_v56 = vld [vmem:[%s18727_s9 + $0x310] ss:$28 sps:$4 sm:$0xff]  }
 0x58d   :  { %4322 = vmatpush2.bf16.msra.mxu0 %v12889_v60  ;;  %9376 = vmatprep.subr.bf16.mxu1 %v12892_v26  ;;  %v12941_v60 = vld [vmem:[%s18727_s9 + $0x6c8] ss:$28 sps:$4 sm:$0xff]   ;;  %v12949_v26 = vld [vmem:[%s18727_s9 + $0x694] ss:$28 sps:$4 sm:$0xff]   ;;  %v12950_v38 = vld [vmem:[%s18727_s9 + $0x2a0] ss:$28 sps:$4 sm:$0xff]  }
 0x58e   :  { %v4003_v10 = vpop.f32.mrf.mxu0  ;;  %9415 = vmatprep.subr.bf16.mxu0 %v12895_v53  ;;  %v12944_v53 = vld [vmem:[%s18727_s9 + $0x2d8] ss:$28 sps:$4 sm:$0xff]  }
 0x58f   :  { %v12956_v10 = vld [vmem:[%s18727_s9 + $0x268] ss:$28 sps:$4 sm:$0xff]  }
 0x590   :  { %4324 = vmatmul.mubr.bf16.vlgmr.msra.gmra.mxu0 %v15016_v62  ;;  %9377 = vmatpush1.bf16.msra.mxu1 %v12890_v33  ;;  %v12902_v62 = vld [vmem:[%s18727_s9 + $0xe0] ss:$28 sps:$4 sm:$0xff]  }
 0x591   :  { %9416 = vmatpush1.bf16.msra.mxu0 %v12893_v35  ;;  %9447 = vmatprep.mubr.bf16.mxu0 %v16103_v50  ;;  %v12952_v33 = vld [vmem:[%s18727_s9 + $0x2a4] ss:$28 sps:$4 sm:$0xff]   ;;  %v12955_v35 = vld [vmem:[%s18727_s9 + $0x65c] ss:$28 sps:$4 sm:$0xff]  }
 0x592   :  { %9378 = vmatprep.subr.bf16.mxu1 %v12898_v49  ;;  %9417 = vmatprep.subr.bf16.mxu0 %v12901_v61  ;;  %v12953_v49 = vld [vmem:[%s18727_s9 + $0x658] ss:$28 sps:$4 sm:$0xff]   ;;  %v12958_v61 = vld [vmem:[%s18727_s9 + $0x26c] ss:$28 sps:$4 sm:$0xff]  }
 0x594   :  { %9379 = vmatpush1.bf16.msra.mxu1 %v12896_v52  ;;  %v12961_v52 = vld [vmem:[%s18727_s9 + $0x624] ss:$28 sps:$4 sm:$0xff]  }
 0x595   :  { %9418 = vmatpush1.bf16.msra.mxu0 %v12899_v51  ;;  %9380 = vmatprep.subr.bf16.mxu1 %v12904_v34  ;;  %v12959_v51 = vld [vmem:[%s18727_s9 + $0x620] ss:$28 sps:$4 sm:$0xff]   ;;  %v12964_v34 = vld [vmem:[%s18727_s9 + $0x234] ss:$28 sps:$4 sm:$0xff]  }
 0x596   :  { %9419 = vmatprep.subr.bf16.mxu0 %v12907_v39  ;;  %v12962_v39 = vld [vmem:[%s18727_s9 + $0x230] ss:$28 sps:$4 sm:$0xff]  }
 0x598   :  { %9381 = vmatpush1.bf16.msra.mxu1 %v12902_v62  ;;  %v12967_v62 = vld [vmem:[%s18727_s9 + $0x5ec] ss:$28 sps:$4 sm:$0xff]  }
 0x599   :  { %9420 = vmatpush1.bf16.msra.mxu0 %v12905_v0  ;;  %9382 = vmatprep.subr.bf16.mxu1 %v12910_v13  ;;  %v1729_v0 = vsub.s32 7, %v14733_v29  ;;  %v12965_v13 = vld [vmem:[%s18727_s9 + $0x5e8] ss:$28 sps:$4 sm:$0xff]   ;;  %v12973_v29 = vld [vmem:[%s18727_s9 + $0x5b4] ss:$28 sps:$4 sm:$0xff]  }
 0x59a   :  { %9421 = vmatprep.subr.bf16.mxu0 %v12913_v4  ;;  %v12968_v4 = vld [vmem:[%s18727_s9 + $0x1f8] ss:$28 sps:$4 sm:$0xff]  }
 0x59c   :  { %9383 = vmatpush1.bf16.msra.mxu1 %v12908_v3  ;;  %v12970_v3 = vld [vmem:[%s18727_s9 + $0x1fc] ss:$28 sps:$4 sm:$0xff]  }
 0x59d   :  { %9422 = vmatpush1.bf16.msra.mxu0 %v12911_v6  ;;  %9384 = vmatprep.subr.bf16.mxu1 %v12916_v7  ;;  %v1730_v6 = vrot.slane %v16164_v18, %v1729_v0  ;;  %v12971_v7 = vld [vmem:[%s18727_s9 + $0x5b0] ss:$28 sps:$4 sm:$0xff]   ;;  %v13007_v0 = vld [vmem:[%s18727_s9 + $0xb60] ss:$28 sps:$4 sm:$0xff]  }
 0x59e   :  { %9423 = vmatprep.subr.bf16.mxu0 %v12919_v11  ;;  %v12976_v11 = vld [vmem:[%s18727_s9 + $0x1c4] ss:$28 sps:$4 sm:$0xff]  }
 0x5a0   :  { %9385 = vmatpush1.bf16.msra.mxu1 %v12914_v8  ;;  %v16277_v8 = vld [vmem:[%s18726_s8 + $0x8] sm:$0x7f] }
 0x5a1   :  { %9424 = vmatpush1.bf16.msra.mxu0 %v12917_v14  ;;  %9386 = vmatprep.subr.bf16.mxu1 %v12922_v15  ;;  %v12979_v14 = vld [vmem:[%s18727_s9 + $0x57c] ss:$28 sps:$4 sm:$0xff]   ;;  %v1734_v18 = vrot.slane %v16277_v8, %v14736_v30 }
 0x5a2   :  { %9425 = vmatprep.subr.bf16.mxu0 %v12925_v16  ;;  %v12974_v15 = vld [vmem:[%s18727_s9 + $0x1c0] ss:$28 sps:$4 sm:$0xff]  }
 0x5a3   :  { %v3957_v22 = vpop.f32.mrf.mxu1 }
 0x5a4   :  { %v3958_v23 = vadd.f32 %v3957_v22, %v1726_v19  ;;  %9387 = vmatpush1.bf16.msra.mxu1 %v12920_v17  ;;  %v4331_v17 = vmax.f32 %v15641_v40, 0.0  ;;  %v12977_v19 = vld [vmem:[%s18727_s9 + $0x578] ss:$28 sps:$4 sm:$0xff]   ;;  %v4336_v40 = vmax.f32 %v15987_v9, 0.0  ;;  %v12991_v9 = vld [vmem:[%s18727_s9 + $0xc0c] ss:$28 sps:$4 sm:$0xff]  }
 0x5a5   :  { %9426 = vmatpush1.bf16.msra.mxu0 %v12923_v57  ;;  %v16180_v24 = vpop.f32.mrf.mxu1  ;;  %9388 = vmatprep.subr.bf16.mxu1 %v12928_v58  ;;  %v12982_v57 = vld [vmem:[%s18727_s9 + $0x544] ss:$28 sps:$4 sm:$0xff]   ;;  %v12985_v58 = vld [vmem:[%s18727_s9 + $0x88c] ss:$28 sps:$4 sm:$0xff]  }
 0x5a6   :  { %v16192_v37 = vadd.f32 %v16075_v63, %v3958_v23  ;;  %9427 = vmatprep.subr.bf16.mxu0 %v12931_v20  ;;  %v12946_v63 = vld [vmem:[%s18727_s9 + $0x2dc] ss:$28 sps:$4 sm:$0xff]   ;;  %v3960_v16 = vadd.f32 %v16180_v24, %v1730_v6  ;;  %v12983_v20 = vld [vmem:[%s18727_s9 + $0x888] ss:$28 sps:$4 sm:$0xff]   ;;  %v12988_v24 = vld [vmem:[%s18727_s9 + $0x854] ss:$28 sps:$4 sm:$0xff]  }
 0x5a7   :  { %v3961_v46 = vpop.f32.mrf.mxu1  ;;  %v12980_v23 = vld [vmem:[%s18727_s9 + $0x540] ss:$28 sps:$4 sm:$0xff]  }
 0x5a8   :  { %9389 = vmatpush1.bf16.msra.mxu1 %v12926_v21  ;;  %v4001_v21 = vadd.f32 %v16085_v45, %v3960_v16  ;;  %v16320_v46 = vpack.c.bf16 %v4336_v40, %v4336_v40  ;;  %v13018_v6 = vld [vmem:[%s18727_s9 + $0x73c] ss:$28 sps:$4 sm:$0xff]  }
 0x5a9   :  { %9428 = vmatpush1.bf16.msra.mxu0 %v12929_v25  ;;  %v3962_v55 = vpop.f32.mrf.mxu1  ;;  %9390 = vmatprep.subr.bf16.mxu1 %v12934_v28  ;;  %v16315_v28 = vpack.c.bf16 %v4331_v17, %v4331_v17  ;;  %v13022_v16 = vld [vmem:[%s18727_s9 + $0x700] ss:$28 sps:$4 sm:$0xff]  }
 0x5aa   :  { %9429 = vmatprep.subr.bf16.mxu0 %v12937_v36  ;;  %v13027_v17 = vld [vmem:[%s18727_s9 + $0xabc] ss:$28 sps:$4 sm:$0xff]  }
 0x5ab   :  { %v13031_v40 = vld [vmem:[%s18727_s9 + $0xa80] ss:$28 sps:$4 sm:$0xff]  }
 0x5ac   :  { %9391 = vmatpush2.bf16.msra.mxu1 %v12932_v41  ;;  %v4333_v41 = vmax.f32 %v15856_v5, 0.0 }
 0x5ad   :  { %9430 = vmatpush1.bf16.msra.mxu0 %v12935_v47  ;;  %9392 = vmatprep.subr.bf16.mxu1 %v12940_v48  ;;  %v4338_v48 = vmax.f32 %v4001_v21, 0.0  ;;  %v13039_v21 = vld [vmem:[%s18727_s9 + $0xdcc] ss:$28 sps:$4 sm:$0xff]  }
 0x5ae   :  { %9431 = vmatprep.subr.bf16.mxu0 %v12943_v54 }
 0x5b0   :  { %9393 = vmatpush2.bf16.msra.mxu1 %v12938_v56  ;;  %v12986_v56 = vld [vmem:[%s18727_s9 + $0x850] ss:$28 sps:$4 sm:$0xff]  }
 0x5b1   :  { %9432 = vmatpush2.bf16.msra.mxu0 %v12941_v60  ;;  %9394 = vmatprep.subr.bf16.mxu1 %v12946_v63  ;;  %v12989_v60 = vld [vmem:[%s18727_s9 + $0xc08] ss:$28 sps:$4 sm:$0xff]   ;;  %v12994_v63 = vld [vmem:[%s18727_s9 + $0x81c] ss:$28 sps:$4 sm:$0xff]  }
 0x5b2   :  { %9433 = vmatprep.subr.bf16.mxu0 %v12949_v26  ;;  %v12997_v26 = vld [vmem:[%s18727_s9 + $0xbd4] ss:$28 sps:$4 sm:$0xff]  }
 0x5b4   :  { %9395 = vmatpush2.bf16.msra.mxu1 %v12944_v53 }
 0x5b5   :  { %9434 = vmatpush2.bf16.msra.mxu0 %v12947_v32  ;;  %9396 = vmatprep.subr.bf16.mxu1 %v12952_v33  ;;  %v16340_v32 = vpack.c.bf16 %v4333_v41, %v4333_v41  ;;  %v13045_v41 = vld [vmem:[%s18727_s9 + $0xd94] ss:$28 sps:$4 sm:$0xff]  }
 0x5b6   :  { %9435 = vmatprep.subr.bf16.mxu0 %v12955_v35  ;;  %v12992_v35 = vld [vmem:[%s18727_s9 + $0x818] ss:$28 sps:$4 sm:$0xff]  }
 0x5b8   :  { %9397 = vmatpush2.bf16.msra.mxu1 %v12950_v38  ;;  %v16345_v38 = vpack.c.bf16 %v4338_v48, %v4338_v48 }
 0x5b9   :  { %9436 = vmatpush2.bf16.msra.mxu0 %v12953_v49  ;;  %9398 = vmatprep.subr.bf16.mxu1 %v12958_v61  ;;  %v12995_v49 = vld [vmem:[%s18727_s9 + $0xbd0] ss:$28 sps:$4 sm:$0xff]   ;;  %v13000_v61 = vld [vmem:[%s18727_s9 + $0x7e4] ss:$28 sps:$4 sm:$0xff]  }
 0x5ba   :  { %9437 = vmatprep.subr.bf16.mxu0 %v12961_v52  ;;  %v13003_v52 = vld [vmem:[%s18727_s9 + $0xb9c] ss:$28 sps:$4 sm:$0xff]  }
 0x5bc   :  { %9399 = vmatpush2.bf16.msra.mxu1 %v12956_v10  ;;  %v12998_v10 = vld [vmem:[%s18727_s9 + $0x7e0] ss:$28 sps:$4 sm:$0xff]  }
 0x5bd   :  { %9438 = vmatpush2.bf16.msra.mxu0 %v12959_v51  ;;  %9400 = vmatprep.subr.bf16.mxu1 %v12964_v34  ;;  %v13001_v51 = vld [vmem:[%s18727_s9 + $0xb98] ss:$28 sps:$4 sm:$0xff]   ;;  %v13006_v34 = vld [vmem:[%s18727_s9 + $0x7ac] ss:$28 sps:$4 sm:$0xff]  }
 0x5be   :  { %9439 = vmatprep.subr.bf16.mxu0 %v12967_v62  ;;  %v13004_v62 = vld [vmem:[%s18727_s9 + $0x7a8] ss:$28 sps:$4 sm:$0xff]  }
 0x5c0   :  { %9401 = vmatpush2.bf16.msra.mxu1 %v12962_v39  ;;  %v13009_v39 = vld [vmem:[%s18727_s9 + $0xb64] ss:$28 sps:$4 sm:$0xff]  }
 0x5c1   :  { %9440 = vmatpush2.bf16.msra.mxu0 %v12965_v13  ;;  %9402 = vmatprep.subr.bf16.mxu1 %v12970_v3  ;;  %v13012_v13 = vld [vmem:[%s18727_s9 + $0x774] ss:$28 sps:$4 sm:$0xff]  }
 0x5c2   :  { %9441 = vmatprep.subr.bf16.mxu0 %v12973_v29  ;;  %v13010_v3 = vld [vmem:[%s18727_s9 + $0x770] ss:$28 sps:$4 sm:$0xff]   ;;  %v13013_v29 = vld [vmem:[%s18727_s9 + $0xb28] ss:$28 sps:$4 sm:$0xff]  }
 0x5c4   :  { %9403 = vmatpush2.bf16.msra.mxu1 %v12968_v4  ;;  %v13015_v4 = vld [vmem:[%s18727_s9 + $0xb2c] ss:$28 sps:$4 sm:$0xff]  }
 0x5c5   :  { %9442 = vmatpush2.bf16.msra.mxu0 %v12971_v7  ;;  %9404 = vmatprep.subr.bf16.mxu1 %v12976_v11  ;;  %v13016_v7 = vld [vmem:[%s18727_s9 + $0x738] ss:$28 sps:$4 sm:$0xff]  }
 0x5c6   :  { %9443 = vmatprep.subr.bf16.mxu0 %v12979_v14  ;;  %v13021_v11 = vld [vmem:[%s18727_s9 + $0xaf4] ss:$28 sps:$4 sm:$0xff]  }
 0x5c7   :  { %v4080_v22 = vpop.f32.mrf.mxu1  ;;  %v13019_v14 = vld [vmem:[%s18727_s9 + $0xaf0] ss:$28 sps:$4 sm:$0xff]  }
 0x5c8   :  { %v4039_v25 = vpop.f32.mrf.mxu0  ;;  %9405 = vmatpush2.bf16.msra.mxu1 %v12974_v15  ;;  %v13024_v15 = vld [vmem:[%s18727_s9 + $0x704] ss:$28 sps:$4 sm:$0xff]  }
 0x5c9   :  { %v4040_v36 = vadd.f32 %v4039_v25, %v1734_v18  ;;  %9444 = vmatpush2.bf16.msra.mxu0 %v12977_v19  ;;  %v16317_v45 = vpop.f32.mrf.mxu1  ;;  %9456 = vmatprep.subr.bf16.mxu1 %v12985_v58  ;;  %v13025_v18 = vld [vmem:[%s18727_s9 + $0xab8] ss:$28 sps:$4 sm:$0xff]   ;;  %v13030_v19 = vld [vmem:[%s18727_s9 + $0xa4c] ss:$28 sps:$4 sm:$0xff]  }
 0x5ca   :  { %v16322_v47 = vpop.f32.mrf.mxu0  ;;  %9445 = vmatprep.subr.bf16.mxu0 %v12982_v57  ;;  %v13033_v57 = vld [vmem:[%s18727_s9 + $0xa84] ss:$28 sps:$4 sm:$0xff]   ;;  %v13042_v25 = vld [vmem:[%s18727_s9 + $0x9dc] ss:$28 sps:$4 sm:$0xff]  }
 0x5cb   :  { %v16324_v54 = vadd.f32 %v4080_v22, %v4040_v36  ;;  %v4084_v55 = vpop.f32.mrf.mxu1  ;;  %9407 = vmatmul.mubr.bf16.vlgmr.msra.gmra.mxu1 %v16315_v28  ;;  %v13028_v58 = vld [vmem:[%s18727_s9 + $0xa48] ss:$28 sps:$4 sm:$0xff]   ;;  %v13034_v22 = vld [vmem:[%s18727_s9 + $0xa10] ss:$28 sps:$4 sm:$0xff]   ;;  %v13040_v36 = vld [vmem:[%s18727_s9 + $0x9d8] ss:$28 sps:$4 sm:$0xff]  }
 0x5cc   :  { %v4043_v5 = vpop.f32.mrf.mxu0  ;;  %9457 = vmatpush1.bf16.msra.mxu1 %v12983_v20  ;;  %9488 = vmatprep.mubr.bf16.mxu1 %v16320_v46  ;;  %v13036_v20 = vld [vmem:[%s18727_s9 + $0xa14] ss:$28 sps:$4 sm:$0xff]  }
 0x5cd   :  { %9446 = vmatpush2.bf16.msra.mxu0 %v12980_v23  ;;  %v4085_v53 = vpop.f32.mrf.mxu1  ;;  %9458 = vmatprep.subr.bf16.mxu1 %v12988_v24  ;;  %v13037_v24 = vld [vmem:[%s18727_s9 + $0xdc8] ss:$28 sps:$4 sm:$0xff]   ;;  %v13043_v55 = vld [vmem:[%s18727_s9 + $0xd90] ss:$28 sps:$4 sm:$0xff]   ;;  %v13046_v5 = vld [vmem:[%s18727_s9 + $0x9a0] ss:$28 sps:$4 sm:$0xff]  }
 0x5ce   :  { %v4044_v33 = vpop.f32.mrf.mxu0  ;;  %9497 = vmatprep.subr.bf16.mxu0 %v12991_v9  ;;  %v13054_v53 = vld [vmem:[%s18727_s9 + $0x96c] ss:$28 sps:$4 sm:$0xff]  }
 0x5cf   :  { %v13052_v33 = vld [vmem:[%s18727_s9 + $0x968] ss:$28 sps:$4 sm:$0xff]  }
 0x5d0   :  { %9448 = vmatmul.mubr.bf16.vlgmr.msra.gmra.mxu0 %v16340_v32  ;;  %9459 = vmatpush1.bf16.msra.mxu1 %v12986_v56  ;;  %v13048_v56 = vld [vmem:[%s18727_s9 + $0x9a4] ss:$28 sps:$4 sm:$0xff]  }
 0x5d1   :  { %9498 = vmatpush1.bf16.msra.mxu0 %v12989_v60  ;;  %9529 = vmatprep.mubr.bf16.mxu0 %v16345_v38 }
 0x5d2   :  { %9460 = vmatprep.subr.bf16.mxu1 %v12994_v63  ;;  %9499 = vmatprep.subr.bf16.mxu0 %v12997_v26  ;;  %v13051_v63 = vld [vmem:[%s18727_s9 + $0xd5c] ss:$28 sps:$4 sm:$0xff]  }
 0x5d3   :  { %v13049_v26 = vld [vmem:[%s18727_s9 + $0xd58] ss:$28 sps:$4 sm:$0xff]  }
 0x5d4   :  { %9461 = vmatpush1.bf16.msra.mxu1 %v12992_v35  ;;  %v13057_v35 = vld [vmem:[%s18727_s9 + $0xd24] ss:$28 sps:$4 sm:$0xff]  }
 0x5d5   :  { %9500 = vmatpush1.bf16.msra.mxu0 %v12995_v49  ;;  %9462 = vmatprep.subr.bf16.mxu1 %v13000_v61  ;;  %v13055_v49 = vld [vmem:[%s18727_s9 + $0xd20] ss:$28 sps:$4 sm:$0xff]   ;;  %v13060_v61 = vld [vmem:[%s18727_s9 + $0x934] ss:$28 sps:$4 sm:$0xff]  }
 0x5d6   :  { %9501 = vmatprep.subr.bf16.mxu0 %v13003_v52  ;;  %v13058_v52 = vld [vmem:[%s18727_s9 + $0x930] ss:$28 sps:$4 sm:$0xff]  }
 0x5d8   :  { %9463 = vmatpush1.bf16.msra.mxu1 %v12998_v10  ;;  %v1738_v10 = vrot.slane %v16277_v8, %v14754_v42 }
 0x5d9   :  { %9502 = vmatpush1.bf16.msra.mxu0 %v13001_v51  ;;  %9464 = vmatprep.subr.bf16.mxu1 %v13006_v34  ;;  %v13063_v51 = vld [vmem:[%s18727_s9 + $0xcec] ss:$28 sps:$4 sm:$0xff]  }
 0x5da   :  { %9503 = vmatprep.subr.bf16.mxu0 %v13009_v39  ;;  %v13061_v34 = vld [vmem:[%s18727_s9 + $0xce8] ss:$28 sps:$4 sm:$0xff]   ;;  %v13066_v39 = vld [vmem:[%s18727_s9 + $0x8fc] ss:$28 sps:$4 sm:$0xff]  }
 0x5dc   :  { %9465 = vmatpush1.bf16.msra.mxu1 %v13004_v62  ;;  %v4042_v62 = vadd.f32 %v16322_v47, %v1738_v10  ;;  %v13072_v47 = vld [vmem:[%s18727_s9 + $0x8c4] ss:$28 sps:$4 sm:$0xff]   ;;  %v13102_v10 = vld [vmem:[%s18727_s9 + $0xeac] ss:$28 sps:$4 sm:$0xff]  }
 0x5dd   :  { %9504 = vmatpush1.bf16.msra.mxu0 %v13007_v0  ;;  %9466 = vmatprep.subr.bf16.mxu1 %v13012_v13  ;;  %v13064_v0 = vld [vmem:[%s18727_s9 + $0x8f8] ss:$28 sps:$4 sm:$0xff]  }
 0x5de   :  { %9505 = vmatprep.subr.bf16.mxu0 %v13015_v4  ;;  %v13069_v13 = vld [vmem:[%s18727_s9 + $0xcb4] ss:$28 sps:$4 sm:$0xff]   ;;  %v13075_v4 = vld [vmem:[%s18727_s9 + $0xc7c] ss:$28 sps:$4 sm:$0xff]  }
 0x5e0   :  { %9467 = vmatpush1.bf16.msra.mxu1 %v13010_v3  ;;  %v13067_v3 = vld [vmem:[%s18727_s9 + $0xcb0] ss:$28 sps:$4 sm:$0xff]  }
 0x5e1   :  { %9506 = vmatpush1.bf16.msra.mxu0 %v13013_v29  ;;  %9468 = vmatprep.subr.bf16.mxu1 %v13018_v6  ;;  %v4083_v29 = vadd.f32 %v16317_v45, %v4042_v62  ;;  %v13070_v6 = vld [vmem:[%s18727_s9 + $0x8c0] ss:$28 sps:$4 sm:$0xff]   ;;  %v13106_v62 = vld [vmem:[%s18727_s9 + $0xe70] ss:$28 sps:$4 sm:$0xff]  }
 0x5e2   :  { %9507 = vmatprep.subr.bf16.mxu0 %v13021_v11  ;;  %v1742_v11 = vrot.slane %v16277_v8, %v14739_v31  ;;  %v13078_v45 = vld [vmem:[%s18727_s9 + $0xc44] ss:$28 sps:$4 sm:$0xff]  }
 0x5e4   :  { %9469 = vmatpush1.bf16.msra.mxu1 %v13016_v7  ;;  %v4335_v7 = vmax.f32 %v15979_v2, 0.0  ;;  %v1746_v2 = vrot.slane %v16277_v8, %v14757_v43 }
 0x5e5   :  { %9508 = vmatpush1.bf16.msra.mxu0 %v13019_v14  ;;  %9470 = vmatprep.subr.bf16.mxu1 %v13024_v15  ;;  %v13073_v14 = vld [vmem:[%s18727_s9 + $0xc78] ss:$28 sps:$4 sm:$0xff]   ;;  %v13081_v15 = vld [vmem:[%s18727_s9 + $0xf8c] ss:$28 sps:$4 sm:$0xff]  }
 0x5e6   :  { %9509 = vmatprep.subr.bf16.mxu0 %v13027_v17  ;;  %v13079_v17 = vld [vmem:[%s18727_s9 + $0xf88] ss:$28 sps:$4 sm:$0xff]  }
 0x5e8   :  { %9471 = vmatpush1.bf16.msra.mxu1 %v13022_v16  ;;  %v4340_v16 = vmax.f32 %v4083_v29, 0.0  ;;  %v13115_v29 = vld [vmem:[%s18727_s9 + $0x11f0] ss:$28 sps:$4 sm:$0xff]  }
 0x5e9   :  { %9510 = vmatpush1.bf16.msra.mxu0 %v13025_v18  ;;  %9472 = vmatprep.subr.bf16.mxu1 %v13030_v19  ;;  %v13076_v19 = vld [vmem:[%s18727_s9 + $0xc40] ss:$28 sps:$4 sm:$0xff]  }
 0x5ea   :  { %9511 = vmatprep.subr.bf16.mxu0 %v13033_v57  ;;  %v13084_v57 = vld [vmem:[%s18727_s9 + $0xf54] ss:$28 sps:$4 sm:$0xff]  }
 0x5ec   :  { %v16433_v23 = vpop.f32.mrf.mxu0  ;;  %9473 = vmatpush2.bf16.msra.mxu1 %v13028_v58 }
 0x5ed   :  { %9512 = vmatpush1.bf16.msra.mxu0 %v13031_v40  ;;  %9474 = vmatprep.subr.bf16.mxu1 %v13036_v20  ;;  %v16536_v40 = vpack.c.bf16 %v4335_v7, %v4335_v7  ;;  %v13118_v7 = vld [vmem:[%s18727_s9 + $0xe00] ss:$28 sps:$4 sm:$0xff]  }
 0x5ee   :  { %v16441_v9 = vpop.f32.mrf.mxu0  ;;  %9513 = vmatprep.subr.bf16.mxu0 %v13039_v21  ;;  %v4337_v21 = vmax.f32 %v16192_v37, 0.0  ;;  %v13085_v37 = vld [vmem:[%s18727_s9 + $0x1308] ss:$28 sps:$4 sm:$0xff]  }
 0x5f0   :  { %v4166_v48 = vpop.f32.mrf.mxu0  ;;  %9475 = vmatpush2.bf16.msra.mxu1 %v13034_v22  ;;  %v16539_v22 = vpack.c.bf16 %v4340_v16, %v4340_v16  ;;  %v13124_v16 = vld [vmem:[%s18727_s9 + $0x1148] ss:$28 sps:$4 sm:$0xff]  }
 0x5f1   :  { %9514 = vmatpush2.bf16.msra.mxu0 %v13037_v24  ;;  %9476 = vmatprep.subr.bf16.mxu1 %v13042_v25  ;;  %v13082_v48 = vld [vmem:[%s18727_s9 + $0xf50] ss:$28 sps:$4 sm:$0xff]  }
 0x5f2   :  { %v4167_v60 = vpop.f32.mrf.mxu0  ;;  %9515 = vmatprep.subr.bf16.mxu0 %v13045_v41 }
 0x5f4   :  { %9477 = vmatpush2.bf16.msra.mxu1 %v13040_v36  ;;  %v13087_v36 = vld [vmem:[%s18727_s9 + $0x130c] ss:$28 sps:$4 sm:$0xff]  }
 0x5f5   :  { %9516 = vmatpush2.bf16.msra.mxu0 %v13043_v55  ;;  %9478 = vmatprep.subr.bf16.mxu1 %v13048_v56  ;;  %v13090_v55 = vld [vmem:[%s18727_s9 + $0xf1c] ss:$28 sps:$4 sm:$0xff]   ;;  %v13093_v56 = vld [vmem:[%s18727_s9 + $0x12d4] ss:$28 sps:$4 sm:$0xff]  }
 0x5f6   :  { %9517 = vmatprep.subr.bf16.mxu0 %v13051_v63 }
 0x5f8   :  { %9479 = vmatpush2.bf16.msra.mxu1 %v13046_v5  ;;  %v16562_v5 = vpack.c.bf16 %v4337_v21, %v4337_v21 }
 0x5f9   :  { %9518 = vmatpush2.bf16.msra.mxu0 %v13049_v26  ;;  %9480 = vmatprep.subr.bf16.mxu1 %v13054_v53  ;;  %v13091_v26 = vld [vmem:[%s18727_s9 + $0x12d0] ss:$28 sps:$4 sm:$0xff]  }
 0x5fa   :  { %9519 = vmatprep.subr.bf16.mxu0 %v13057_v35  ;;  %v13099_v35 = vld [vmem:[%s18727_s9 + $0x129c] ss:$28 sps:$4 sm:$0xff]  }
 0x5fc   :  { %9481 = vmatpush2.bf16.msra.mxu1 %v13052_v33  ;;  %v13096_v33 = vld [vmem:[%s18727_s9 + $0xee4] ss:$28 sps:$4 sm:$0xff]  }
 0x5fd   :  { %9520 = vmatpush2.bf16.msra.mxu0 %v13055_v49  ;;  %9482 = vmatprep.subr.bf16.mxu1 %v13060_v61  ;;  %v13094_v49 = vld [vmem:[%s18727_s9 + $0xee0] ss:$28 sps:$4 sm:$0xff]   ;;  %v13097_v61 = vld [vmem:[%s18727_s9 + $0x1298] ss:$28 sps:$4 sm:$0xff]  }
 0x5fe   :  { %9521 = vmatprep.subr.bf16.mxu0 %v13063_v51  ;;  %v13100_v51 = vld [vmem:[%s18727_s9 + $0xea8] ss:$28 sps:$4 sm:$0xff]  }
 0x600   :  { %9483 = vmatpush2.bf16.msra.mxu1 %v13058_v52  ;;  %v13105_v52 = vld [vmem:[%s18727_s9 + $0x1264] ss:$28 sps:$4 sm:$0xff]  }
 0x601   :  { %9522 = vmatpush2.bf16.msra.mxu0 %v13061_v34  ;;  %9484 = vmatprep.subr.bf16.mxu1 %v13066_v39  ;;  %v13103_v34 = vld [vmem:[%s18727_s9 + $0x1260] ss:$28 sps:$4 sm:$0xff]   ;;  %v13108_v39 = vld [vmem:[%s18727_s9 + $0xe74] ss:$28 sps:$4 sm:$0xff]  }
 0x602   :  { %9523 = vmatprep.subr.bf16.mxu0 %v13069_v13  ;;  %v13109_v13 = vld [vmem:[%s18727_s9 + $0x1228] ss:$28 sps:$4 sm:$0xff]  }
 0x604   :  { %9485 = vmatpush2.bf16.msra.mxu1 %v13064_v0  ;;  %v13111_v0 = vld [vmem:[%s18727_s9 + $0x122c] ss:$28 sps:$4 sm:$0xff]  }
 0x605   :  { %9524 = vmatpush2.bf16.msra.mxu0 %v13067_v3  ;;  %9486 = vmatprep.subr.bf16.mxu1 %v13072_v47  ;;  %v13114_v3 = vld [vmem:[%s18727_s9 + $0xe3c] ss:$28 sps:$4 sm:$0xff]  }
 0x606   :  { %9525 = vmatprep.subr.bf16.mxu0 %v13075_v4  ;;  %v13112_v47 = vld [vmem:[%s18727_s9 + $0xe38] ss:$28 sps:$4 sm:$0xff]  }
 0x607   :  { %v4121_v18 = vpop.f32.mrf.mxu1  ;;  %v13117_v4 = vld [vmem:[%s18727_s9 + $0x11f4] ss:$28 sps:$4 sm:$0xff]  }
 0x608   :  { %v4122_v58 = vadd.f32 %v4121_v18, %v1742_v11  ;;  %9487 = vmatpush2.bf16.msra.mxu1 %v13070_v6  ;;  %v13120_v6 = vld [vmem:[%s18727_s9 + $0xe04] ss:$28 sps:$4 sm:$0xff]   ;;  %v13123_v11 = vld [vmem:[%s18727_s9 + $0x11bc] ss:$28 sps:$4 sm:$0xff]   ;;  %v13132_v18 = vld [vmem:[%s18727_s9 + $0x1114] ss:$28 sps:$4 sm:$0xff]  }
 0x609   :  { %9526 = vmatpush2.bf16.msra.mxu0 %v13073_v14  ;;  %v4123_v20 = vpop.f32.mrf.mxu1  ;;  %9538 = vmatprep.subr.bf16.mxu1 %v13081_v15  ;;  %v13121_v14 = vld [vmem:[%s18727_s9 + $0x11b8] ss:$28 sps:$4 sm:$0xff]   ;;  %v13129_v15 = vld [vmem:[%s18727_s9 + $0x1184] ss:$28 sps:$4 sm:$0xff]  }
 0x60a   :  { %v16542_v24 = vadd.f32 %v16433_v23, %v4122_v58  ;;  %v4124_v25 = vadd.f32 %v4123_v20, %v1746_v2  ;;  %9527 = vmatprep.subr.bf16.mxu0 %v13078_v45  ;;  %v13126_v45 = vld [vmem:[%s18727_s9 + $0x114c] ss:$28 sps:$4 sm:$0xff]   ;;  %v1750_v2 = vrot.slane %v16277_v8, %v15940_v59 }
 0x60b   :  { %v4125_v41 = vpop.f32.mrf.mxu1  ;;  %9489 = vmatmul.mubr.bf16.vlgmr.msra.gmra.mxu1 %v16536_v40 }
 0x60c   :  { %v4165_v23 = vadd.f32 %v16441_v9, %v4124_v25  ;;  %9539 = vmatpush1.bf16.msra.mxu1 %v13079_v17  ;;  %9570 = vmatprep.mubr.bf16.mxu1 %v16539_v22  ;;  %v13088_v9 = vld [vmem:[%s18727_s9 + $0xf18] ss:$28 sps:$4 sm:$0xff]   ;;  %v13127_v17 = vld [vmem:[%s18727_s9 + $0x1180] ss:$28 sps:$4 sm:$0xff]   ;;  %v13133_v25 = vld [vmem:[%s18727_s9 + $0x14c8] ss:$28 sps:$4 sm:$0xff]  }
 0x60d   :  { %9528 = vmatpush2.bf16.msra.mxu0 %v13076_v19  ;;  %v4126_v60 = vpop.f32.mrf.mxu1  ;;  %9540 = vmatprep.subr.bf16.mxu1 %v13084_v57  ;;  %v13135_v19 = vld [vmem:[%s18727_s9 + $0x14cc] ss:$28 sps:$4 sm:$0xff]   ;;  %v13141_v41 = vld [vmem:[%s18727_s9 + $0x1494] ss:$28 sps:$4 sm:$0xff]  }
 0x60e   :  { %v4342_v63 = vmax.f32 %v4165_v23, 0.0  ;;  %9579 = vmatprep.subr.bf16.mxu0 %v13087_v36  ;;  %v13130_v57 = vld [vmem:[%s18727_s9 + $0x1110] ss:$28 sps:$4 sm:$0xff]   ;;  %v13138_v36 = vld [vmem:[%s18727_s9 + $0x10dc] ss:$28 sps:$4 sm:$0xff]  }
 0x610   :  { %v16570_v53 = vpack.c.bf16 %v4342_v63, %v4342_v63  ;;  %9530 = vmatmul.mubr.bf16.vlgmr.msra.gmra.mxu0 %v16562_v5  ;;  %9541 = vmatpush1.bf16.msra.mxu1 %v13082_v48  ;;  %v13139_v63 = vld [vmem:[%s18727_s9 + $0x1490] ss:$28 sps:$4 sm:$0xff]  }
 0x611   :  { %9580 = vmatpush1.bf16.msra.mxu0 %v13085_v37  ;;  %9542 = vmatprep.subr.bf16.mxu1 %v13090_v55  ;;  %v13136_v37 = vld [vmem:[%s18727_s9 + $0x10d8] ss:$28 sps:$4 sm:$0xff]  }
 0x612   :  { %9611 = vmatprep.mubr.bf16.mxu0 %v16570_v53  ;;  %9581 = vmatprep.subr.bf16.mxu0 %v13093_v56 }
 0x614   :  { %9543 = vmatpush1.bf16.msra.mxu1 %v13088_v9  ;;  %v13144_v9 = vld [vmem:[%s18727_s9 + $0x10a4] ss:$28 sps:$4 sm:$0xff]  }
 0x615   :  { %9582 = vmatpush1.bf16.msra.mxu0 %v13091_v26  ;;  %9544 = vmatprep.subr.bf16.mxu1 %v13096_v33  ;;  %v13142_v33 = vld [vmem:[%s18727_s9 + $0x10a0] ss:$28 sps:$4 sm:$0xff]  }
 0x616   :  { %9583 = vmatprep.subr.bf16.mxu0 %v13099_v35  ;;  %v13147_v35 = vld [vmem:[%s18727_s9 + $0x145c] ss:$28 sps:$4 sm:$0xff]  }
 0x618   :  { %9545 = vmatpush1.bf16.msra.mxu1 %v13094_v49  ;;  %v13145_v49 = vld [vmem:[%s18727_s9 + $0x1458] ss:$28 sps:$4 sm:$0xff]  }
 0x619   :  { %9584 = vmatpush1.bf16.msra.mxu0 %v13097_v61  ;;  %9546 = vmatprep.subr.bf16.mxu1 %v13102_v10  ;;  %v13150_v61 = vld [vmem:[%s18727_s9 + $0x106c] ss:$28 sps:$4 sm:$0xff]  }
 0x61a   :  { %9585 = vmatprep.subr.bf16.mxu0 %v13105_v52  ;;  %v13148_v10 = vld [vmem:[%s18727_s9 + $0x1068] ss:$28 sps:$4 sm:$0xff]  }
 0x61b   :  { %v13153_v52 = vld [vmem:[%s18727_s9 + $0x1424] ss:$28 sps:$4 sm:$0xff]  }
 0x61c   :  { %9547 = vmatpush1.bf16.msra.mxu1 %v13100_v51  ;;  %v13151_v51 = vld [vmem:[%s18727_s9 + $0x1420] ss:$28 sps:$4 sm:$0xff]  }
 0x61d   :  { %9586 = vmatpush1.bf16.msra.mxu0 %v13103_v34  ;;  %9548 = vmatprep.subr.bf16.mxu1 %v13108_v39  ;;  %v13156_v34 = vld [vmem:[%s18727_s9 + $0x1034] ss:$28 sps:$4 sm:$0xff]   ;;  %v16704_v39 = vld [vmem:[%s18726_s8 + $0x8] sm:$0x7f] }
 0x61e   :  { %9587 = vmatprep.subr.bf16.mxu0 %v13111_v0  ;;  %v13154_v0 = vld [vmem:[%s18727_s9 + $0x1030] ss:$28 sps:$4 sm:$0xff]  }
 0x620   :  { %9549 = vmatpush1.bf16.msra.mxu1 %v13106_v62  ;;  %v1754_v62 = vrot.slane %v16704_v39, %v15955_v27 }
 0x621   :  { %9588 = vmatpush1.bf16.msra.mxu0 %v13109_v13  ;;  %9550 = vmatprep.subr.bf16.mxu1 %v13114_v3  ;;  %v13159_v13 = vld [vmem:[%s18727_s9 + $0x13ec] ss:$28 sps:$4 sm:$0xff]  }
 0x622   :  { %9589 = vmatprep.subr.bf16.mxu0 %v13117_v4  ;;  %v13157_v3 = vld [vmem:[%s18727_s9 + $0x13e8] ss:$28 sps:$4 sm:$0xff]  }
 0x624   :  { %9551 = vmatpush1.bf16.msra.mxu1 %v13112_v47  ;;  %v13162_v47 = vld [vmem:[%s18727_s9 + $0xffc] ss:$28 sps:$4 sm:$0xff]  }
 0x625   :  { %9590 = vmatpush1.bf16.msra.mxu0 %v13115_v29  ;;  %9552 = vmatprep.subr.bf16.mxu1 %v13120_v6  ;;  %v13160_v29 = vld [vmem:[%s18727_s9 + $0xff8] ss:$28 sps:$4 sm:$0xff]  }
 0x626   :  { %9591 = vmatprep.subr.bf16.mxu0 %v13123_v11  ;;  %v13165_v6 = vld [vmem:[%s18727_s9 + $0x13b4] ss:$28 sps:$4 sm:$0xff]   ;;  %v13168_v11 = vld [vmem:[%s18727_s9 + $0xfc4] ss:$28 sps:$4 sm:$0xff]  }
 0x628   :  { %9553 = vmatpush1.bf16.msra.mxu1 %v13118_v7  ;;  %v13163_v7 = vld [vmem:[%s18727_s9 + $0x13b0] ss:$28 sps:$4 sm:$0xff]  }
 0x629   :  { %9592 = vmatpush1.bf16.msra.mxu0 %v13121_v14  ;;  %9554 = vmatprep.subr.bf16.mxu1 %v13126_v45  ;;  %v13166_v45 = vld [vmem:[%s18727_s9 + $0xfc0] ss:$28 sps:$4 sm:$0xff]  }
 0x62a   :  { %9593 = vmatprep.subr.bf16.mxu0 %v13129_v15  ;;  %v13171_v15 = vld [vmem:[%s18727_s9 + $0x137c] ss:$28 sps:$4 sm:$0xff]  }
 0x62b   :  { %v4244_v58 = vpop.f32.mrf.mxu1 }
 0x62c   :  { %v4203_v8 = vpop.f32.mrf.mxu0  ;;  %9555 = vmatpush2.bf16.msra.mxu1 %v13124_v16  ;;  %v13169_v16 = vld [vmem:[%s18727_s9 + $0x1378] ss:$28 sps:$4 sm:$0xff]  }
 0x62d   :  { %v4204_v20 = vadd.f32 %v4203_v8, %v1750_v2  ;;  %9594 = vmatpush1.bf16.msra.mxu0 %v13127_v17  ;;  %v4246_v21 = vpop.f32.mrf.mxu1  ;;  %9556 = vmatprep.subr.bf16.mxu1 %v13132_v18  ;;  %v4339_v2 = vmax.f32 %v16324_v54, 0.0  ;;  %v13174_v17 = vld [vmem:[%s18727_s9 + $0x1344] ss:$28 sps:$4 sm:$0xff]   ;;  %v13177_v18 = vld [vmem:[%s18727_s9 + $0x168c] ss:$28 sps:$4 sm:$0xff]  }
 0x62e   :  { %v4205_v48 = vpop.f32.mrf.mxu0  ;;  %9595 = vmatprep.subr.bf16.mxu0 %v13135_v19  ;;  %v5257_v54 = vld [vmem:[%s18727_s9 + $0x1880] sm:$0xff]  ;;  %v13180_v8 = vld [vmem:[%s18727_s9 + $0x1654] ss:$28 sps:$4 sm:$0xff]  }
 0x62f   :  { %v16669_v23 = vadd.f32 %v4244_v58, %v4204_v20  ;;  %v4248_v55 = vpop.f32.mrf.mxu1  ;;  %v4206_v4 = vadd.f32 %v4205_v48, %v1754_v62  ;;  %v13172_v58 = vld [vmem:[%s18727_s9 + $0x1340] ss:$28 sps:$4 sm:$0xff]   ;;  %v16760_v20 = vpack.c.bf16 %v4339_v2, %v4339_v2  ;;  %v13189_v62 = vld [vmem:[%s18727_s9 + $0x190] ss:$28 sps:$4 sm:$0xff]   ;;  %v13204_v2 = vld [vmem:[%s18727_s9 + $0x1538] ss:$28 sps:$4 sm:$0xff]  }
 0x630   :  { %v4207_v56 = vpop.f32.mrf.mxu0  ;;  %9557 = vmatpush2.bf16.msra.mxu1 %v13130_v57  ;;  %v13175_v57 = vld [vmem:[%s18727_s9 + $0x1688] ss:$28 sps:$4 sm:$0xff]   ;;  %v1758_v55 = vrot.slane %v16704_v39, %v16147_v12  ;;  %v13186_v39 = vld [vmem:[%s18727_s9 + $0x15e0] ss:$28 sps:$4 sm:$0xff]  }
 0x631   :  { %9596 = vmatpush2.bf16.msra.mxu0 %v13133_v25  ;;  %v4249_v60 = vpop.f32.mrf.mxu1  ;;  %9558 = vmatprep.subr.bf16.mxu1 %v13138_v36  ;;  %v4247_v14 = vadd.f32 %v4246_v21, %v4206_v4  ;;  %v4341_v21 = vmax.f32 %v16542_v24, 0.0  ;;  %v11980_v36 = vcombine.high %v5257_v54, %v5257_v54  ;;  %v13183_v24 = vld [vmem:[%s18727_s9 + $0x161c] ss:$28 sps:$4 sm:$0xff]   ;;  %v13191_v56 = vld [vmem:[%s18727_s9 + $0x194] ss:$28 sps:$4 sm:$0xff]  }
 0x632   :  { %v4208_v26 = vpop.f32.mrf.mxu0  ;;  %9597 = vmatprep.subr.bf16.mxu0 %v13141_v41  ;;  %v11979_v41 = vcombine.low %v5257_v54, %v5257_v54  ;;  %v13215_v54 = vld [vmem:[%s18727_s9 + $0xb4] ss:$28 sps:$4 sm:$0xff]  }
 0x633   :  { %v4344_v19 = vmax.f32 %v4247_v14, 0.0  ;;  %v13198_v14 = vld [vmem:[%s18727_s9 + $0x1570] ss:$28 sps:$4 sm:$0xff]  }
 0x634   :  { %9559 = vmatpush2.bf16.msra.mxu1 %v13136_v37  ;;  %v13178_v37 = vld [vmem:[%s18727_s9 + $0x1650] ss:$28 sps:$4 sm:$0xff]   ;;  %v9354_v26 = vsel %vm9352_vm4, %v11979_v41, 0  ;;  %v13219_v41 = vld [vmem:[%s18727_s9 + $0x78] ss:$28 sps:$4 sm:$0xff]  }
 0x635   :  { %9598 = vmatpush2.bf16.msra.mxu0 %v13139_v63  ;;  %9560 = vmatprep.subr.bf16.mxu1 %v13144_v9  ;;  %v16763_v25 = vpack.c.bf16 %v4344_v19, %v4344_v19  ;;  %v16778_v63 = vpack.c.bf16 %v4341_v21, %v4341_v21  ;;  %v13212_v19 = vld [vmem:[%s18727_s9 + $0x1504] ss:$28 sps:$4 sm:$0xff]  }
 0x636   :  { %9599 = vmatprep.subr.bf16.mxu0 %v13147_v35  ;;  %v13216_v21 = vld [vmem:[%s18727_s9 + $0x1848] ss:$28 sps:$4 sm:$0xff]  }
 0x638   :  { %9561 = vmatpush2.bf16.msra.mxu1 %v13142_v33 }
 0x639   :  { %9600 = vmatpush2.bf16.msra.mxu0 %v13145_v49  ;;  %9562 = vmatprep.subr.bf16.mxu1 %v13150_v61  ;;  %v13181_v61 = vld [vmem:[%s18727_s9 + $0x1618] ss:$28 sps:$4 sm:$0xff]  }
 0x63a   :  { %9601 = vmatprep.subr.bf16.mxu0 %v13153_v52 }
 0x63c   :  { %9563 = vmatpush2.bf16.msra.mxu1 %v13148_v10  ;;  %v13188_v10 = vld [vmem:[%s18727_s9 + $0x15e4] ss:$28 sps:$4 sm:$0xff]  }
 0x63d   :  { %9602 = vmatpush2.bf16.msra.mxu0 %v13151_v51  ;;  %9564 = vmatprep.subr.bf16.mxu1 %v13156_v34 }
 0x63e   :  { %9603 = vmatprep.subr.bf16.mxu0 %v13159_v13 }
 0x640   :  { %9565 = vmatpush2.bf16.msra.mxu1 %v13154_v0 }
 0x641   :  { %9604 = vmatpush2.bf16.msra.mxu0 %v13157_v3  ;;  %9566 = vmatprep.subr.bf16.mxu1 %v13162_v47  ;;  %v13194_v3 = vld [vmem:[%s18727_s9 + $0x15ac] ss:$28 sps:$4 sm:$0xff]   ;;  %v13197_v47 = vld [vmem:[%s18727_s9 + $0x15c] ss:$28 sps:$4 sm:$0xff]  }
 0x642   :  { %9605 = vmatprep.subr.bf16.mxu0 %v13165_v6  ;;  %v13192_v6 = vld [vmem:[%s18727_s9 + $0x15a8] ss:$28 sps:$4 sm:$0xff]  }
 0x644   :  { %9567 = vmatpush2.bf16.msra.mxu1 %v13160_v29 }
 0x645   :  { %9606 = vmatpush2.bf16.msra.mxu0 %v13163_v7  ;;  %9568 = vmatprep.subr.bf16.mxu1 %v13168_v11  ;;  %v13195_v7 = vld [vmem:[%s18727_s9 + $0x158] ss:$28 sps:$4 sm:$0xff]  }
 0x646   :  { %9607 = vmatprep.subr.bf16.mxu0 %v13171_v15  ;;  %v13200_v11 = vld [vmem:[%s18727_s9 + $0x1574] ss:$28 sps:$4 sm:$0xff]   ;;  %v13201_v15 = vld [vmem:[%s18727_s9 + $0x120] ss:$28 sps:$4 sm:$0xff]  }
 0x648   :  { %9569 = vmatpush2.bf16.msra.mxu1 %v13166_v45  ;;  %v13203_v45 = vld [vmem:[%s18727_s9 + $0x124] ss:$28 sps:$4 sm:$0xff]  }
 0x649   :  { %9608 = vmatpush2.bf16.msra.mxu0 %v13169_v16  ;;  %9620 = vmatprep.subr.bf16.mxu1 %v13177_v18  ;;  %v13206_v16 = vld [vmem:[%s18727_s9 + $0x153c] ss:$28 sps:$4 sm:$0xff]   ;;  %v13207_v18 = vld [vmem:[%s18727_s9 + $0xe8] ss:$28 sps:$4 sm:$0xff]  }
 0x64a   :  { %9609 = vmatprep.subr.bf16.mxu0 %v13174_v17  ;;  %v13209_v17 = vld [vmem:[%s18727_s9 + $0xec] ss:$28 sps:$4 sm:$0xff]  }
 0x64b   :  { %v12031_v48 = vpop.f32.mrf.mxu1  ;;  %9571 = vmatmul.mubr.bf16.vlgmr.msra.gmra.mxu1 %v16760_v20 }
 0x64c   :  { %9621 = vmatpush1.bf16.msra.mxu1 %v13175_v57  ;;  %9652 = vmatprep.mubr.bf16.mxu1 %v16763_v25  ;;  %v13210_v57 = vld [vmem:[%s18727_s9 + $0x1500] ss:$28 sps:$4 sm:$0xff]  }
 0x64d   :  { %9610 = vmatpush2.bf16.msra.mxu0 %v13172_v58  ;;  %v12032_v60 = vpop.f32.mrf.mxu1  ;;  %9622 = vmatprep.subr.bf16.mxu1 %v13180_v8  ;;  %v13213_v58 = vld [vmem:[%s18727_s9 + $0xb0] ss:$28 sps:$4 sm:$0xff]  }
 0x64e   :  { %v12033_v9 = vadd.f32 %v12032_v60, %v12031_v48  ;;  %11986 = vmatprep.subr.msk.bf16.mxu0 %vm9352_vm4, %v11980_v36  ;;  %v13218_v8 = vld [vmem:[%s18727_s9 + $0x184c] ss:$28 sps:$4 sm:$0xff]   ;;  %v13221_v36 = vld [vmem:[%s18727_s9 + $0x7c] ss:$28 sps:$4 sm:$0xff]   ;;  %v13224_v48 = vld [vmem:[%s18727_s9 + $0x1814] ss:$28 sps:$4 sm:$0xff]  }
 0x64f   :  { %v12034_v33 = vpop.f32.mrf.mxu1  ;;  %v13228_v60 = vld [vmem:[%s18727_s9 + $0x17d8] ss:$28 sps:$4 sm:$0xff]  }
 0x650   :  { %v4286_v35 = vadd.f32 %v12033_v9, %v1758_v55  ;;  %v4325_v49 = vpop.f32.mrf.mxu0  ;;  %9612 = vmatmul.mubr.bf16.vlgmr.msra.gmra.mxu0 %v16778_v63  ;;  %9623 = vmatpush1.bf16.msra.mxu1 %v13178_v37  ;;  %v13222_v37 = vld [vmem:[%s18727_s9 + $0x1810] ss:$28 sps:$4 sm:$0xff]   ;;  %v13227_v55 = vld [vmem:[%s18727_s9 + $0x44] ss:$28 sps:$4 sm:$0xff]  }
 0x651   :  { %v12035_v52 = vpop.f32.mrf.mxu1  ;;  %9624 = vmatprep.subr.bf16.mxu1 %v13183_v24  ;;  %9676 = vmatpush1.bf16.msra.mxu0 %v9354_v26  ;;  %v13225_v24 = vld [vmem:[%s18727_s9 + $0x40] ss:$28 sps:$4 sm:$0xff]   ;;  %v13233_v9 = vld [vmem:[%s18727_s9 + $0xc] ss:$28 sps:$4 sm:$0xff]  }
 0x652   :  { %v4326_v51 = vadd.f32 %v4325_v49, %v4286_v35  ;;  %v4327_v34 = vpop.f32.mrf.mxu0  ;;  %9693 = vmatprep.mubr.bf16.mxu0 %v18732_v1  ;;  %9702 = vmatprep.subr.bf16.mxu0 %v13191_v56  ;;  %v13230_v56 = vld [vmem:[%s18727_s9 + $0x17dc] ss:$28 sps:$4 sm:$0xff]   ;;  %v13231_v26 = vld [vmem:[%s18727_s9 + $0x8] ss:$28 sps:$4 sm:$0xff]   ;;  %v13239_v49 = vld [vmem:[%s18727_s9 + $0x354] ss:$28 sps:$4 sm:$0xff]  }
 0x653   :  { %v13236_v33 = vld [vmem:[%s18727_s9 + $0x17a4] ss:$28 sps:$4 sm:$0xff]   ;;  %v13243_v34 = vld [vmem:[%s18727_s9 + $0x318] ss:$28 sps:$4 sm:$0xff]  }
 0x654   :  { %v4345_v0 = vmax.f32 %v4326_v51, 0.0  ;;  %v4328_v13 = vpop.f32.mrf.mxu0  ;;  %9625 = vmatpush1.bf16.msra.mxu1 %v13181_v61  ;;  %v13234_v35 = vld [vmem:[%s18727_s9 + $0x17a0] ss:$28 sps:$4 sm:$0xff]   ;;  %v13237_v61 = vld [vmem:[%s18727_s9 + $0x350] ss:$28 sps:$4 sm:$0xff]  }
 0x655   :  { %9626 = vmatprep.subr.bf16.mxu1 %v13188_v10  ;;  %v13242_v10 = vld [vmem:[%s18727_s9 + $0x176c] ss:$28 sps:$4 sm:$0xff]   ;;  %v13245_v51 = vld [vmem:[%s18727_s9 + $0x31c] ss:$28 sps:$4 sm:$0xff]  }
 0x656   :  { %v16802_v4 = vpack.c.bf16 %v4345_v0, %v4345_v0  ;;  %v4329_v29 = vpop.f32.mrf.mxu0  ;;  %v13240_v52 = vld [vmem:[%s18727_s9 + $0x1768] ss:$28 sps:$4 sm:$0xff]   ;;  %v13249_v13 = vld [vmem:[%s18727_s9 + $0x2e0] ss:$28 sps:$4 sm:$0xff]  }
 0x657   :  { %v13251_v0 = vld [vmem:[%s18727_s9 + $0x2e4] ss:$28 sps:$4 sm:$0xff]   ;;  %v13257_v29 = vld [vmem:[%s18727_s9 + $0x2ac] ss:$28 sps:$4 sm:$0xff]  }
 0x658   :  { %9627 = vmatpush1.bf16.msra.mxu1 %v13186_v39  ;;  %11987 = vmatmul.mubr.msk.bf16.vlgmr.msra.gmra.mxu0 %vm9348_vm5, %v16802_v4  ;;  %v13248_v39 = vld [vmem:[%s18727_s9 + $0x1734] ss:$28 sps:$4 sm:$0xff]  }
 0x659   :  { %9703 = vmatpush1.bf16.msra.mxu0 %v13189_v62  ;;  %9734 = vmatprep.mubr.bf16.mxu0 %v16083_v44  ;;  %v13246_v62 = vld [vmem:[%s18727_s9 + $0x1730] ss:$28 sps:$4 sm:$0xff]  }
 0x65a   :  { %9628 = vmatprep.subr.bf16.mxu1 %v13194_v3  ;;  %9704 = vmatprep.subr.bf16.mxu0 %v13197_v47  ;;  %v13254_v3 = vld [vmem:[%s18727_s9 + $0x16fc] ss:$28 sps:$4 sm:$0xff]  }
 0x65b   :  { %v13252_v47 = vld [vmem:[%s18727_s9 + $0x16f8] ss:$28 sps:$4 sm:$0xff]  }
 0x65c   :  { %9629 = vmatpush1.bf16.msra.mxu1 %v13192_v6  ;;  %v13255_v6 = vld [vmem:[%s18727_s9 + $0x2a8] ss:$28 sps:$4 sm:$0xff]  }
 0x65d   :  { %9705 = vmatpush1.bf16.msra.mxu0 %v13195_v7  ;;  %9630 = vmatprep.subr.bf16.mxu1 %v13200_v11  ;;  %v13260_v7 = vld [vmem:[%s18727_s9 + $0x16c4] ss:$28 sps:$4 sm:$0xff]  }
 0x65e   :  { %9706 = vmatprep.subr.bf16.mxu0 %v13203_v45  ;;  %v13258_v11 = vld [vmem:[%s18727_s9 + $0x16c0] ss:$28 sps:$4 sm:$0xff]   ;;  %v13261_v45 = vld [vmem:[%s18727_s9 + $0x270] ss:$28 sps:$4 sm:$0xff]  }
 0x660   :  { %9631 = vmatpush1.bf16.msra.mxu1 %v13198_v14  ;;  %v13263_v14 = vld [vmem:[%s18727_s9 + $0x274] ss:$28 sps:$4 sm:$0xff]  }
 0x661   :  { %9707 = vmatpush1.bf16.msra.mxu0 %v13201_v15  ;;  %9632 = vmatprep.subr.bf16.mxu1 %v13206_v16  ;;  %v4343_v15 = vmax.f32 %v16669_v23, 0.0  ;;  %v13266_v16 = vld [vmem:[%s18727_s9 + $0x23c] ss:$28 sps:$4 sm:$0xff]  }
 0x662   :  { %9708 = vmatprep.subr.bf16.mxu0 %v13209_v17  ;;  %v5261_v17 = vld [vmem:[%s18728_s10] sm:$0x7f]  ;;  %v13264_v23 = vld [vmem:[%s18727_s9 + $0x238] ss:$28 sps:$4 sm:$0xff]  }
 0x664   :  { %9633 = vmatpush1.bf16.msra.mxu1 %v13204_v2  ;;  %v13269_v2 = vld [vmem:[%s18727_s9 + $0x514] ss:$28 sps:$4 sm:$0xff]  }
 0x665   :  { %9709 = vmatpush1.bf16.msra.mxu0 %v13207_v18  ;;  %9634 = vmatprep.subr.bf16.mxu1 %v13212_v19  ;;  %v13267_v18 = vld [vmem:[%s18727_s9 + $0x510] ss:$28 sps:$4 sm:$0xff]   ;;  %v13275_v19 = vld [vmem:[%s18727_s9 + $0x4dc] ss:$28 sps:$4 sm:$0xff]  }
 0x666   :  { %9710 = vmatprep.subr.bf16.mxu0 %v13215_v54  ;;  %v16967_v54 = vpack.c.bf16 %v4343_v15, %v4343_v15  ;;  %v13303_v15 = vld [vmem:[%s18727_s9 + $0x7e8] ss:$28 sps:$4 sm:$0xff]  }
 0x668   :  { %9635 = vmatpush1.bf16.msra.mxu1 %v13210_v57  ;;  %v13272_v57 = vld [vmem:[%s18727_s9 + $0x204] ss:$28 sps:$4 sm:$0xff]  }
 0x669   :  { %9711 = vmatpush1.bf16.msra.mxu0 %v13213_v58  ;;  %9636 = vmatprep.subr.bf16.mxu1 %v13218_v8  ;;  %v5266_v58 = vrot.slane %v5261_v17, %v14736_v30  ;;  %v13281_v30 = vld [vmem:[%s18727_s9 + $0x4a4] ss:$28 sps:$4 sm:$0xff]  }
 0x66a   :  { %9712 = vmatprep.subr.bf16.mxu0 %v13221_v36  ;;  %v13273_v36 = vld [vmem:[%s18727_s9 + $0x4d8] ss:$28 sps:$4 sm:$0xff]  }
 0x66c   :  { %9637 = vmatpush2.bf16.msra.mxu1 %v13216_v21  ;;  %v13270_v21 = vld [vmem:[%s18727_s9 + $0x200] ss:$28 sps:$4 sm:$0xff]  }
 0x66d   :  { %9713 = vmatpush1.bf16.msra.mxu0 %v13219_v41  ;;  %9638 = vmatprep.subr.bf16.mxu1 %v13224_v48  ;;  %v13278_v41 = vld [vmem:[%s18727_s9 + $0x1cc] ss:$28 sps:$4 sm:$0xff]   ;;  %v5270_v48 = vrot.slane %v5261_v17, %v14754_v42  ;;  %v13287_v42 = vld [vmem:[%s18727_s9 + $0x894] ss:$28 sps:$4 sm:$0xff]  }
 0x66e   :  { %9714 = vmatprep.subr.bf16.mxu0 %v13227_v55  ;;  %v13311_v17 = vld [vmem:[%s18727_s9 + $0x7b4] ss:$28 sps:$4 sm:$0xff]  }
 0x670   :  { %9639 = vmatpush2.bf16.msra.mxu1 %v13222_v37 }
 0x671   :  { %9715 = vmatpush1.bf16.msra.mxu0 %v13225_v24  ;;  %9640 = vmatprep.subr.bf16.mxu1 %v13230_v56  ;;  %v13276_v56 = vld [vmem:[%s18727_s9 + $0x1c8] ss:$28 sps:$4 sm:$0xff]  }
 0x672   :  { %9716 = vmatprep.subr.bf16.mxu0 %v13233_v9 }
 0x674   :  { %9641 = vmatpush2.bf16.msra.mxu1 %v13228_v60  ;;  %v13279_v60 = vld [vmem:[%s18727_s9 + $0x4a0] ss:$28 sps:$4 sm:$0xff]  }
 0x675   :  { %9717 = vmatpush1.bf16.msra.mxu0 %v13231_v26  ;;  %9642 = vmatprep.subr.bf16.mxu1 %v13236_v33  ;;  %v13284_v26 = vld [vmem:[%s18727_s9 + $0x46c] ss:$28 sps:$4 sm:$0xff]  }
 0x676   :  { %9718 = vmatprep.subr.bf16.mxu0 %v13239_v49 }
 0x678   :  { %9643 = vmatpush2.bf16.msra.mxu1 %v13234_v35 }
 0x679   :  { %9719 = vmatpush2.bf16.msra.mxu0 %v13237_v61  ;;  %9644 = vmatprep.subr.bf16.mxu1 %v13242_v10 }
 0x67a   :  { %9720 = vmatprep.subr.bf16.mxu0 %v13245_v51  ;;  %v13285_v51 = vld [vmem:[%s18727_s9 + $0x890] ss:$28 sps:$4 sm:$0xff]  }
 0x67c   :  { %9645 = vmatpush2.bf16.msra.mxu1 %v13240_v52  ;;  %v13282_v52 = vld [vmem:[%s18727_s9 + $0x468] ss:$28 sps:$4 sm:$0xff]  }
 0x67d   :  { %9721 = vmatpush2.bf16.msra.mxu0 %v13243_v34  ;;  %9646 = vmatprep.subr.bf16.mxu1 %v13248_v39  ;;  %v13290_v39 = vld [vmem:[%s18727_s9 + $0x434] ss:$28 sps:$4 sm:$0xff]  }
 0x67e   :  { %9722 = vmatprep.subr.bf16.mxu0 %v13251_v0 }
 0x680   :  { %9647 = vmatpush2.bf16.msra.mxu1 %v13246_v62  ;;  %v13293_v62 = vld [vmem:[%s18727_s9 + $0x85c] ss:$28 sps:$4 sm:$0xff]  }
 0x681   :  { %9723 = vmatpush2.bf16.msra.mxu0 %v13249_v13  ;;  %9648 = vmatprep.subr.bf16.mxu1 %v13254_v3  ;;  %v13288_v13 = vld [vmem:[%s18727_s9 + $0x430] ss:$28 sps:$4 sm:$0xff]   ;;  %v13291_v3 = vld [vmem:[%s18727_s9 + $0x858] ss:$28 sps:$4 sm:$0xff]  }
 0x682   :  { %9724 = vmatprep.subr.bf16.mxu0 %v13257_v29  ;;  %v13294_v29 = vld [vmem:[%s18727_s9 + $0x3f8] ss:$28 sps:$4 sm:$0xff]  }
 0x684   :  { %9649 = vmatpush2.bf16.msra.mxu1 %v13252_v47  ;;  %v13296_v47 = vld [vmem:[%s18727_s9 + $0x3fc] ss:$28 sps:$4 sm:$0xff]  }
 0x685   :  { %9725 = vmatpush2.bf16.msra.mxu0 %v13255_v6  ;;  %9650 = vmatprep.subr.bf16.mxu1 %v13260_v7  ;;  %v13299_v6 = vld [vmem:[%s18727_s9 + $0x824] ss:$28 sps:$4 sm:$0xff]  }
 0x686   :  { %9726 = vmatprep.subr.bf16.mxu0 %v13263_v14  ;;  %v13297_v7 = vld [vmem:[%s18727_s9 + $0x820] ss:$28 sps:$4 sm:$0xff]   ;;  %v13305_v14 = vld [vmem:[%s18727_s9 + $0x7ec] ss:$28 sps:$4 sm:$0xff]  }
 0x688   :  { %9651 = vmatpush2.bf16.msra.mxu1 %v13258_v11  ;;  %v13302_v11 = vld [vmem:[%s18727_s9 + $0x3c4] ss:$28 sps:$4 sm:$0xff]  }
 0x689   :  { %9727 = vmatpush2.bf16.msra.mxu0 %v13261_v45  ;;  %9743 = vmatprep.subr.bf16.mxu1 %v13269_v2  ;;  %v13300_v45 = vld [vmem:[%s18727_s9 + $0x3c0] ss:$28 sps:$4 sm:$0xff]   ;;  %v13306_v2 = vld [vmem:[%s18727_s9 + $0x388] ss:$28 sps:$4 sm:$0xff]  }
 0x68a   :  { %9728 = vmatprep.subr.bf16.mxu0 %v13266_v16  ;;  %v13308_v16 = vld [vmem:[%s18727_s9 + $0x38c] ss:$28 sps:$4 sm:$0xff]  }
 0x68b   :  { %v9408_v8 = vpop.f32.mrf.mxu1  ;;  %9653 = vmatmul.mubr.bf16.vlgmr.msra.gmra.mxu1 %v16967_v54 }
 0x68c   :  { %9744 = vmatpush1.bf16.msra.mxu1 %v13267_v18  ;;  %9775 = vmatprep.mubr.bf16.mxu1 %v16103_v50  ;;  %v9409_v55 = vadd.f32 %v9408_v8, %v5266_v58  ;;  %v13309_v18 = vld [vmem:[%s18727_s9 + $0x7b0] ss:$28 sps:$4 sm:$0xff]   ;;  %v13315_v58 = vld [vmem:[%s18727_s9 + $0x778] ss:$28 sps:$4 sm:$0xff]  }
 0x68d   :  { %9729 = vmatpush2.bf16.msra.mxu0 %v13264_v23  ;;  %v9410_v37 = vpop.f32.mrf.mxu1  ;;  %9745 = vmatprep.subr.bf16.mxu1 %v13275_v19  ;;  %v13314_v23 = vld [vmem:[%s18727_s9 + $0x6d4] ss:$28 sps:$4 sm:$0xff]   ;;  %v13320_v8 = vld [vmem:[%s18727_s9 + $0x69c] ss:$28 sps:$4 sm:$0xff]  }
 0x68e   :  { %9730 = vmatprep.subr.bf16.mxu0 %v13272_v57  ;;  %v9411_v33 = vadd.f32 %v9410_v37, %v5270_v48  ;;  %v13312_v19 = vld [vmem:[%s18727_s9 + $0x6d0] ss:$28 sps:$4 sm:$0xff]   ;;  %v13317_v57 = vld [vmem:[%s18727_s9 + $0x77c] ss:$28 sps:$4 sm:$0xff]  }
 0x68f   :  { %v9412_v24 = vpop.f32.mrf.mxu1  ;;  %v13324_v48 = vld [vmem:[%s18727_s9 + $0x660] ss:$28 sps:$4 sm:$0xff]   ;;  %v13329_v37 = vld [vmem:[%s18727_s9 + $0x70c] ss:$28 sps:$4 sm:$0xff]  }
 0x690   :  { %v9449_v9 = vpop.f32.mrf.mxu0  ;;  %9746 = vmatpush1.bf16.msra.mxu1 %v13273_v36  ;;  %v13323_v36 = vld [vmem:[%s18727_s9 + $0x744] ss:$28 sps:$4 sm:$0xff]   ;;  %v13332_v24 = vld [vmem:[%s18727_s9 + $0x62c] ss:$28 sps:$4 sm:$0xff]  }
 0x691   :  { %v16997_v35 = vadd.f32 %v9449_v9, %v9409_v55  ;;  %9731 = vmatpush2.bf16.msra.mxu0 %v13270_v21  ;;  %v9413_v49 = vpop.f32.mrf.mxu1  ;;  %9747 = vmatprep.subr.bf16.mxu1 %v13281_v30  ;;  %v13318_v21 = vld [vmem:[%s18727_s9 + $0x698] ss:$28 sps:$4 sm:$0xff]   ;;  %v13326_v30 = vld [vmem:[%s18727_s9 + $0x664] ss:$28 sps:$4 sm:$0xff]   ;;  %v13333_v9 = vld [vmem:[%s18727_s9 + $0xa50] ss:$28 sps:$4 sm:$0xff]  }
 0x692   :  { %v9451_v61 = vpop.f32.mrf.mxu0  ;;  %9732 = vmatprep.subr.bf16.mxu0 %v13278_v41  ;;  %v13321_v41 = vld [vmem:[%s18727_s9 + $0x740] ss:$28 sps:$4 sm:$0xff]   ;;  %v13327_v55 = vld [vmem:[%s18727_s9 + $0x708] ss:$28 sps:$4 sm:$0xff]   ;;  %v13339_v49 = vld [vmem:[%s18727_s9 + $0xa18] ss:$28 sps:$4 sm:$0xff]  }
 0x693   :  { %v16999_v10 = vadd.f32 %v9451_v61, %v9411_v33  ;;  %v13341_v33 = vld [vmem:[%s18727_s9 + $0xa1c] ss:$28 sps:$4 sm:$0xff]  }
 0x694   :  { %v9453_v34 = vpop.f32.mrf.mxu0  ;;  %9748 = vmatpush1.bf16.msra.mxu1 %v13279_v60  ;;  %v13335_v60 = vld [vmem:[%s18727_s9 + $0xa54] ss:$28 sps:$4 sm:$0xff]   ;;  %v13344_v61 = vld [vmem:[%s18727_s9 + $0x5bc] ss:$28 sps:$4 sm:$0xff]  }
 0x695   :  { %9733 = vmatpush2.bf16.msra.mxu0 %v13276_v56  ;;  %9749 = vmatprep.subr.bf16.mxu1 %v13284_v26  ;;  %v13330_v56 = vld [vmem:[%s18727_s9 + $0x628] ss:$28 sps:$4 sm:$0xff]   ;;  %v13338_v26 = vld [vmem:[%s18727_s9 + $0x5f4] ss:$28 sps:$4 sm:$0xff]   ;;  %v13345_v34 = vld [vmem:[%s18727_s9 + $0x9e0] ss:$28 sps:$4 sm:$0xff]  }
 0x696   :  { %v9454_v0 = vpop.f32.mrf.mxu0  ;;  %9784 = vmatprep.subr.bf16.mxu0 %v13287_v42  ;;  %v13336_v42 = vld [vmem:[%s18727_s9 + $0x5f0] ss:$28 sps:$4 sm:$0xff]  }
 0x697   :  { %v13353_v0 = vld [vmem:[%s18727_s9 + $0x9ac] ss:$28 sps:$4 sm:$0xff]  }
 0x698   :  { %9735 = vmatmul.mubr.bf16.vlgmr.msra.gmra.mxu0 %v16315_v28  ;;  %9750 = vmatpush1.bf16.msra.mxu1 %v13282_v52  ;;  %v13342_v52 = vld [vmem:[%s18727_s9 + $0x5b8] ss:$28 sps:$4 sm:$0xff]  }
 0x699   :  { %9785 = vmatpush1.bf16.msra.mxu0 %v13285_v51  ;;  %9816 = vmatprep.mubr.bf16.mxu0 %v16320_v46  ;;  %v13347_v51 = vld [vmem:[%s18727_s9 + $0x9e4] ss:$28 sps:$4 sm:$0xff]  }
 0x69a   :  { %9751 = vmatprep.subr.bf16.mxu1 %v13290_v39  ;;  %9786 = vmatprep.subr.bf16.mxu0 %v13293_v62  ;;  %v13350_v39 = vld [vmem:[%s18727_s9 + $0x584] ss:$28 sps:$4 sm:$0xff]  }
 0x69b   :  { %v13348_v62 = vld [vmem:[%s18727_s9 + $0x580] ss:$28 sps:$4 sm:$0xff]  }
 0x69c   :  { %9752 = vmatpush1.bf16.msra.mxu1 %v13288_v13  ;;  %v13351_v13 = vld [vmem:[%s18727_s9 + $0x9a8] ss:$28 sps:$4 sm:$0xff]  }
 0x69d   :  { %9787 = vmatpush1.bf16.msra.mxu0 %v13291_v3  ;;  %9753 = vmatprep.subr.bf16.mxu1 %v13296_v47  ;;  %v13356_v3 = vld [vmem:[%s18727_s9 + $0x54c] ss:$28 sps:$4 sm:$0xff]  }
 0x69e   :  { %9788 = vmatprep.subr.bf16.mxu0 %v13299_v6  ;;  %v13354_v47 = vld [vmem:[%s18727_s9 + $0x548] ss:$28 sps:$4 sm:$0xff]   ;;  %v13357_v6 = vld [vmem:[%s18727_s9 + $0x970] ss:$28 sps:$4 sm:$0xff]  }
 0x6a0   :  { %9754 = vmatpush1.bf16.msra.mxu1 %v13294_v29  ;;  %v13359_v29 = vld [vmem:[%s18727_s9 + $0x974] ss:$28 sps:$4 sm:$0xff]  }
 0x6a1   :  { %9789 = vmatpush1.bf16.msra.mxu0 %v13297_v7  ;;  %9755 = vmatprep.subr.bf16.mxu1 %v13302_v11  ;;  %v13362_v7 = vld [vmem:[%s18727_s9 + $0x93c] ss:$28 sps:$4 sm:$0xff]   ;;  %v13365_v11 = vld [vmem:[%s18727_s9 + $0xc14] ss:$28 sps:$4 sm:$0xff]  }
 0x6a2   :  { %9790 = vmatprep.subr.bf16.mxu0 %v13305_v14  ;;  %v13363_v14 = vld [vmem:[%s18727_s9 + $0xc10] ss:$28 sps:$4 sm:$0xff]  }
 0x6a4   :  { %9756 = vmatpush1.bf16.msra.mxu1 %v13300_v45  ;;  %v13360_v45 = vld [vmem:[%s18727_s9 + $0x938] ss:$28 sps:$4 sm:$0xff]  }
 0x6a5   :  { %9791 = vmatpush1.bf16.msra.mxu0 %v13303_v15  ;;  %9757 = vmatprep.subr.bf16.mxu1 %v13308_v16  ;;  %v13371_v15 = vld [vmem:[%s18727_s9 + $0xbdc] ss:$28 sps:$4 sm:$0xff]   ;;  %v13368_v16 = vld [vmem:[%s18727_s9 + $0x904] ss:$28 sps:$4 sm:$0xff]  }
 0x6a6   :  { %9792 = vmatprep.subr.bf16.mxu0 %v13311_v17 }
 0x6a8   :  { %9758 = vmatpush1.bf16.msra.mxu1 %v13306_v2 }
 0x6a9   :  { %9793 = vmatpush1.bf16.msra.mxu0 %v13309_v18  ;;  %9759 = vmatprep.subr.bf16.mxu1 %v13314_v23  ;;  %v13369_v18 = vld [vmem:[%s18727_s9 + $0xbd8] ss:$28 sps:$4 sm:$0xff]  }
 0x6aa   :  { %9794 = vmatprep.subr.bf16.mxu0 %v13317_v57  ;;  %v13377_v57 = vld [vmem:[%s18727_s9 + $0xba4] ss:$28 sps:$4 sm:$0xff]  }
 0x6ac   :  { %9760 = vmatpush2.bf16.msra.mxu1 %v13312_v19  ;;  %v13366_v19 = vld [vmem:[%s18727_s9 + $0x900] ss:$28 sps:$4 sm:$0xff]  }
 0x6ad   :  { %9795 = vmatpush1.bf16.msra.mxu0 %v13315_v58  ;;  %9761 = vmatprep.subr.bf16.mxu1 %v13320_v8  ;;  %v13374_v58 = vld [vmem:[%s18727_s9 + $0x8cc] ss:$28 sps:$4 sm:$0xff]  }
 0x6ae   :  { %9796 = vmatprep.subr.bf16.mxu0 %v13323_v36  ;;  %v13375_v36 = vld [vmem:[%s18727_s9 + $0xba0] ss:$28 sps:$4 sm:$0xff]  }
 0x6b0   :  { %9762 = vmatpush2.bf16.msra.mxu1 %v13318_v21 }
 0x6b1   :  { %9797 = vmatpush1.bf16.msra.mxu0 %v13321_v41  ;;  %9763 = vmatprep.subr.bf16.mxu1 %v13326_v30 }
 0x6b2   :  { %9798 = vmatprep.subr.bf16.mxu0 %v13329_v37 }
 0x6b4   :  { %9764 = vmatpush2.bf16.msra.mxu1 %v13324_v48  ;;  %v13380_v48 = vld [vmem:[%s18727_s9 + $0xb6c] ss:$28 sps:$4 sm:$0xff]  }
 0x6b5   :  { %9799 = vmatpush1.bf16.msra.mxu0 %v13327_v55  ;;  %9765 = vmatprep.subr.bf16.mxu1 %v13332_v24  ;;  %v13383_v55 = vld [vmem:[%s18727_s9 + $0xf94] ss:$28 sps:$4 sm:$0xff]  }
 0x6b6   :  { %9800 = vmatprep.subr.bf16.mxu0 %v13335_v60  ;;  %v13378_v60 = vld [vmem:[%s18727_s9 + $0xb68] ss:$28 sps:$4 sm:$0xff]  }
 0x6b8   :  { %9766 = vmatpush2.bf16.msra.mxu1 %v13330_v56 }
 0x6b9   :  { %9801 = vmatpush2.bf16.msra.mxu0 %v13333_v9  ;;  %9767 = vmatprep.subr.bf16.mxu1 %v13338_v26  ;;  %v13381_v9 = vld [vmem:[%s18727_s9 + $0xf90] ss:$28 sps:$4 sm:$0xff]  }
 0x6ba   :  { %9802 = vmatprep.subr.bf16.mxu0 %v13341_v33  ;;  %v13389_v33 = vld [vmem:[%s18727_s9 + $0xf5c] ss:$28 sps:$4 sm:$0xff]  }
 0x6bc   :  { %9768 = vmatpush2.bf16.msra.mxu1 %v13336_v42  ;;  %v13386_v42 = vld [vmem:[%s18727_s9 + $0xb34] ss:$28 sps:$4 sm:$0xff]  }
 0x6bd   :  { %9803 = vmatpush2.bf16.msra.mxu0 %v13339_v49  ;;  %9769 = vmatprep.subr.bf16.mxu1 %v13344_v61  ;;  %v13384_v49 = vld [vmem:[%s18727_s9 + $0xb30] ss:$28 sps:$4 sm:$0xff]   ;;  %v13387_v61 = vld [vmem:[%s18727_s9 + $0xf58] ss:$28 sps:$4 sm:$0xff]  }
 0x6be   :  { %9804 = vmatprep.subr.bf16.mxu0 %v13347_v51  ;;  %v13395_v51 = vld [vmem:[%s18727_s9 + $0xf24] ss:$28 sps:$4 sm:$0xff]  }
 0x6c0   :  { %9770 = vmatpush2.bf16.msra.mxu1 %v13342_v52  ;;  %v13392_v52 = vld [vmem:[%s18727_s9 + $0xafc] ss:$28 sps:$4 sm:$0xff]  }
 0x6c1   :  { %9805 = vmatpush2.bf16.msra.mxu0 %v13345_v34  ;;  %9771 = vmatprep.subr.bf16.mxu1 %v13350_v39  ;;  %v13390_v34 = vld [vmem:[%s18727_s9 + $0xaf8] ss:$28 sps:$4 sm:$0xff]   ;;  %v13393_v39 = vld [vmem:[%s18727_s9 + $0xf20] ss:$28 sps:$4 sm:$0xff]  }
 0x6c2   :  { %9806 = vmatprep.subr.bf16.mxu0 %v13353_v0  ;;  %v13401_v0 = vld [vmem:[%s18727_s9 + $0xeec] ss:$28 sps:$4 sm:$0xff]  }
 0x6c4   :  { %9772 = vmatpush2.bf16.msra.mxu1 %v13348_v62  ;;  %v13398_v62 = vld [vmem:[%s18727_s9 + $0xac4] ss:$28 sps:$4 sm:$0xff]  }
 0x6c5   :  { %9807 = vmatpush2.bf16.msra.mxu0 %v13351_v13  ;;  %9773 = vmatprep.subr.bf16.mxu1 %v13356_v3  ;;  %v13396_v13 = vld [vmem:[%s18727_s9 + $0xac0] ss:$28 sps:$4 sm:$0xff]   ;;  %v13399_v3 = vld [vmem:[%s18727_s9 + $0xee8] ss:$28 sps:$4 sm:$0xff]  }
 0x6c6   :  { %9808 = vmatprep.subr.bf16.mxu0 %v13359_v29  ;;  %v13407_v29 = vld [vmem:[%s18727_s9 + $0xeb4] ss:$28 sps:$4 sm:$0xff]  }
 0x6c8   :  { %9774 = vmatpush2.bf16.msra.mxu1 %v13354_v47  ;;  %v13404_v47 = vld [vmem:[%s18727_s9 + $0xa8c] ss:$28 sps:$4 sm:$0xff]  }
 0x6c9   :  { %9809 = vmatpush2.bf16.msra.mxu0 %v13357_v6  ;;  %9825 = vmatprep.subr.bf16.mxu1 %v13365_v11  ;;  %v13402_v6 = vld [vmem:[%s18727_s9 + $0xa88] ss:$28 sps:$4 sm:$0xff]   ;;  %v13410_v11 = vld [vmem:[%s18727_s9 + $0xdd4] ss:$28 sps:$4 sm:$0xff]  }
 0x6ca   :  { %9810 = vmatprep.subr.bf16.mxu0 %v13362_v7  ;;  %v13405_v7 = vld [vmem:[%s18727_s9 + $0xeb0] ss:$28 sps:$4 sm:$0xff]  }
 0x6cb   :  { %v9490_v2 = vpop.f32.mrf.mxu1  ;;  %9776 = vmatmul.mubr.bf16.vlgmr.msra.gmra.mxu1 %v16340_v32 }
 0x6cc   :  { %v9491_v17 = vadd.f32 %v9490_v2, %v16997_v35  ;;  %9826 = vmatpush1.bf16.msra.mxu1 %v13363_v14  ;;  %9857 = vmatprep.mubr.bf16.mxu1 %v16345_v38  ;;  %v13413_v14 = vld [vmem:[%s18727_s9 + $0xe7c] ss:$28 sps:$4 sm:$0xff]   ;;  %v13419_v2 = vld [vmem:[%s18727_s9 + $0xe44] ss:$28 sps:$4 sm:$0xff]  }
 0x6cd   :  { %9811 = vmatpush2.bf16.msra.mxu0 %v13360_v45  ;;  %v9492_v23 = vpop.f32.mrf.mxu1  ;;  %9827 = vmatprep.subr.bf16.mxu1 %v13371_v15  ;;  %v13408_v45 = vld [vmem:[%s18727_s9 + $0xdd0] ss:$28 sps:$4 sm:$0xff]   ;;  %v13411_v15 = vld [vmem:[%s18727_s9 + $0xe78] ss:$28 sps:$4 sm:$0xff]  }
 0x6ce   :  { %v9493_v35 = vadd.f32 %v9492_v23, %v16999_v10  ;;  %9812 = vmatprep.subr.bf16.mxu0 %v13368_v16  ;;  %v13372_v10 = vld [vmem:[%s18727_s9 + $0x8c8] ss:$28 sps:$4 sm:$0xff]   ;;  %v13416_v16 = vld [vmem:[%s18727_s9 + $0xd9c] ss:$28 sps:$4 sm:$0xff]  }
 0x6cf   :  { %v9494_v8 = vpop.f32.mrf.mxu1  ;;  %v13422_v23 = vld [vmem:[%s18727_s9 + $0xd64] ss:$28 sps:$4 sm:$0xff]  }
 0x6d0   :  { %v9531_v21 = vpop.f32.mrf.mxu0  ;;  %9828 = vmatpush1.bf16.msra.mxu1 %v13369_v18  ;;  %v13417_v18 = vld [vmem:[%s18727_s9 + $0xe40] ss:$28 sps:$4 sm:$0xff]   ;;  %v13431_v8 = vld [vmem:[%s18727_s9 + $0x1154] ss:$28 sps:$4 sm:$0xff]  }
 0x6d1   :  { %v17190_v41 = vadd.f32 %v9531_v21, %v9491_v17  ;;  %9813 = vmatpush2.bf16.msra.mxu0 %v13366_v19  ;;  %v9495_v30 = vpop.f32.mrf.mxu1  ;;  %9829 = vmatprep.subr.bf16.mxu1 %v13377_v57  ;;  %v13414_v17 = vld [vmem:[%s18727_s9 + $0xd98] ss:$28 sps:$4 sm:$0xff]   ;;  %v13425_v19 = vld [vmem:[%s18727_s9 + $0xe0c] ss:$28 sps:$4 sm:$0xff]   ;;  %v13420_v57 = vld [vmem:[%s18727_s9 + $0xd60] ss:$28 sps:$4 sm:$0xff]  }
 0x6d2   :  { %v9533_v37 = vpop.f32.mrf.mxu0  ;;  %9814 = vmatprep.subr.bf16.mxu0 %v13374_v58  ;;  %v13428_v58 = vld [vmem:[%s18727_s9 + $0xd2c] ss:$28 sps:$4 sm:$0xff]   ;;  %v13434_v30 = vld [vmem:[%s18727_s9 + $0xcf4] ss:$28 sps:$4 sm:$0xff]  }
 0x6d3   :  { %v17201_v24 = vadd.f32 %v9533_v37, %v9493_v35  ;;  %v13423_v35 = vld [vmem:[%s18727_s9 + $0xe08] ss:$28 sps:$4 sm:$0xff]   ;;  %v13435_v37 = vld [vmem:[%s18727_s9 + $0x1118] ss:$28 sps:$4 sm:$0xff]  }
 0x6d4   :  { %v9535_v56 = vpop.f32.mrf.mxu0  ;;  %9830 = vmatpush1.bf16.msra.mxu1 %v13375_v36  ;;  %v13426_v21 = vld [vmem:[%s18727_s9 + $0xd28] ss:$28 sps:$4 sm:$0xff]   ;;  %v13429_v36 = vld [vmem:[%s18727_s9 + $0x1150] ss:$28 sps:$4 sm:$0xff]  }
 0x6d5   :  { %9815 = vmatpush2.bf16.msra.mxu0 %v13372_v10  ;;  %9831 = vmatprep.subr.bf16.mxu1 %v13380_v48  ;;  %v13437_v10 = vld [vmem:[%s18727_s9 + $0x111c] ss:$28 sps:$4 sm:$0xff]   ;;  %v13432_v48 = vld [vmem:[%s18727_s9 + $0xcf0] ss:$28 sps:$4 sm:$0xff]   ;;  %v13443_v56 = vld [vmem:[%s18727_s9 + $0x10e4] ss:$28 sps:$4 sm:$0xff]  }
 0x6d6   :  { %v9536_v26 = vpop.f32.mrf.mxu0  ;;  %9866 = vmatprep.subr.bf16.mxu0 %v13383_v55  ;;  %v13440_v55 = vld [vmem:[%s18727_s9 + $0xcbc] ss:$28 sps:$4 sm:$0xff]  }
 0x6d7   :  { %v13446_v26 = vld [vmem:[%s18727_s9 + $0xc84] ss:$28 sps:$4 sm:$0xff]  }
 0x6d8   :  { %9817 = vmatmul.mubr.bf16.vlgmr.msra.gmra.mxu0 %v16536_v40  ;;  %9832 = vmatpush1.bf16.msra.mxu1 %v13378_v60  ;;  %v13438_v60 = vld [vmem:[%s18727_s9 + $0xcb8] ss:$28 sps:$4 sm:$0xff]  }
 0x6d9   :  { %9867 = vmatpush1.bf16.msra.mxu0 %v13381_v9  ;;  %9898 = vmatprep.mubr.bf16.mxu0 %v16539_v22  ;;  %v13441_v9 = vld [vmem:[%s18727_s9 + $0x10e0] ss:$28 sps:$4 sm:$0xff]  }
 0x6da   :  { %9833 = vmatprep.subr.bf16.mxu1 %v13386_v42  ;;  %9868 = vmatprep.subr.bf16.mxu0 %v13389_v33  ;;  %v13449_v42 = vld [vmem:[%s18727_s9 + $0x10ac] ss:$28 sps:$4 sm:$0xff]   ;;  %v13444_v33 = vld [vmem:[%s18727_s9 + $0xc80] ss:$28 sps:$4 sm:$0xff]  }
 0x6dc   :  { %9834 = vmatpush1.bf16.msra.mxu1 %v13384_v49  ;;  %v13447_v49 = vld [vmem:[%s18727_s9 + $0x10a8] ss:$28 sps:$4 sm:$0xff]  }
 0x6dd   :  { %9869 = vmatpush1.bf16.msra.mxu0 %v13387_v61  ;;  %9835 = vmatprep.subr.bf16.mxu1 %v13392_v52  ;;  %v13452_v61 = vld [vmem:[%s18727_s9 + $0xc4c] ss:$28 sps:$4 sm:$0xff]   ;;  %v13455_v52 = vld [vmem:[%s18727_s9 + $0x1074] ss:$28 sps:$4 sm:$0xff]  }
 0x6de   :  { %9870 = vmatprep.subr.bf16.mxu0 %v13395_v51  ;;  %v13450_v51 = vld [vmem:[%s18727_s9 + $0xc48] ss:$28 sps:$4 sm:$0xff]  }
 0x6e0   :  { %9836 = vmatpush1.bf16.msra.mxu1 %v13390_v34  ;;  %v13453_v34 = vld [vmem:[%s18727_s9 + $0x1070] ss:$28 sps:$4 sm:$0xff]  }
 0x6e1   :  { %9871 = vmatpush1.bf16.msra.mxu0 %v13393_v39  ;;  %9837 = vmatprep.subr.bf16.mxu1 %v13398_v62  ;;  %v13461_v39 = vld [vmem:[%s18727_s9 + $0x1314] ss:$28 sps:$4 sm:$0xff]   ;;  %v13458_v62 = vld [vmem:[%s18727_s9 + $0x103c] ss:$28 sps:$4 sm:$0xff]  }
 0x6e2   :  { %9872 = vmatprep.subr.bf16.mxu0 %v13401_v0  ;;  %v13459_v0 = vld [vmem:[%s18727_s9 + $0x1310] ss:$28 sps:$4 sm:$0xff]  }
 0x6e4   :  { %9838 = vmatpush1.bf16.msra.mxu1 %v13396_v13  ;;  %v13456_v13 = vld [vmem:[%s18727_s9 + $0x1038] ss:$28 sps:$4 sm:$0xff]  }
 0x6e5   :  { %9873 = vmatpush1.bf16.msra.mxu0 %v13399_v3  ;;  %9839 = vmatprep.subr.bf16.mxu1 %v13404_v47  ;;  %v13467_v3 = vld [vmem:[%s18727_s9 + $0x12dc] ss:$28 sps:$4 sm:$0xff]   ;;  %v13464_v47 = vld [vmem:[%s18727_s9 + $0x1004] ss:$28 sps:$4 sm:$0xff]  }
 0x6e6   :  { %9874 = vmatprep.subr.bf16.mxu0 %v13407_v29 }
 0x6e8   :  { %9840 = vmatpush1.bf16.msra.mxu1 %v13402_v6  ;;  %v13465_v6 = vld [vmem:[%s18727_s9 + $0x12d8] ss:$28 sps:$4 sm:$0xff]  }
 0x6e9   :  { %9875 = vmatpush1.bf16.msra.mxu0 %v13405_v7  ;;  %9841 = vmatprep.subr.bf16.mxu1 %v13410_v11  ;;  %v13462_v11 = vld [vmem:[%s18727_s9 + $0x1000] ss:$28 sps:$4 sm:$0xff]  }
 0x6ea   :  { %9876 = vmatprep.subr.bf16.mxu0 %v13413_v14  ;;  %v13473_v14 = vld [vmem:[%s18727_s9 + $0x12a4] ss:$28 sps:$4 sm:$0xff]  }
 0x6ec   :  { %9842 = vmatpush2.bf16.msra.mxu1 %v13408_v45  ;;  %v13470_v45 = vld [vmem:[%s18727_s9 + $0xfcc] ss:$28 sps:$4 sm:$0xff]  }
 0x6ed   :  { %9877 = vmatpush1.bf16.msra.mxu0 %v13411_v15  ;;  %9843 = vmatprep.subr.bf16.mxu1 %v13416_v16 }
 0x6ee   :  { %9878 = vmatprep.subr.bf16.mxu0 %v13419_v2  ;;  %v13471_v2 = vld [vmem:[%s18727_s9 + $0x12a0] ss:$28 sps:$4 sm:$0xff]  }
 0x6f0   :  { %9844 = vmatpush2.bf16.msra.mxu1 %v13414_v17 }
 0x6f1   :  { %9879 = vmatpush1.bf16.msra.mxu0 %v13417_v18  ;;  %9845 = vmatprep.subr.bf16.mxu1 %v13422_v23  ;;  %v13468_v18 = vld [vmem:[%s18727_s9 + $0xfc8] ss:$28 sps:$4 sm:$0xff]  }
 0x6f2   :  { %9880 = vmatprep.subr.bf16.mxu0 %v13425_v19  ;;  %v13476_v23 = vld [vmem:[%s18727_s9 + $0x126c] ss:$28 sps:$4 sm:$0xff]  }
 0x6f4   :  { %9846 = vmatpush2.bf16.msra.mxu1 %v13420_v57  ;;  %v13479_v57 = vld [vmem:[%s18727_s9 + $0x1694] ss:$28 sps:$4 sm:$0xff]  }
 0x6f5   :  { %9881 = vmatpush1.bf16.msra.mxu0 %v13423_v35  ;;  %9847 = vmatprep.subr.bf16.mxu1 %v13428_v58  ;;  %v13474_v58 = vld [vmem:[%s18727_s9 + $0x1268] ss:$28 sps:$4 sm:$0xff]  }
 0x6f6   :  { %9882 = vmatprep.subr.bf16.mxu0 %v13431_v8  ;;  %v13477_v8 = vld [vmem:[%s18727_s9 + $0x1690] ss:$28 sps:$4 sm:$0xff]  }
 0x6f8   :  { %9848 = vmatpush2.bf16.msra.mxu1 %v13426_v21 }
 0x6f9   :  { %9883 = vmatpush2.bf16.msra.mxu0 %v13429_v36  ;;  %9849 = vmatprep.subr.bf16.mxu1 %v13434_v30  ;;  %v13482_v36 = vld [vmem:[%s18727_s9 + $0x1234] ss:$28 sps:$4 sm:$0xff]   ;;  %v13485_v30 = vld [vmem:[%s18727_s9 + $0x165c] ss:$28 sps:$4 sm:$0xff]  }
 0x6fa   :  { %9884 = vmatprep.subr.bf16.mxu0 %v13437_v10 }
 0x6fc   :  { %9850 = vmatpush2.bf16.msra.mxu1 %v13432_v48  ;;  %v13480_v48 = vld [vmem:[%s18727_s9 + $0x1230] ss:$28 sps:$4 sm:$0xff]  }
 0x6fd   :  { %9885 = vmatpush2.bf16.msra.mxu0 %v13435_v37  ;;  %9851 = vmatprep.subr.bf16.mxu1 %v13440_v55  ;;  %v13483_v37 = vld [vmem:[%s18727_s9 + $0x1658] ss:$28 sps:$4 sm:$0xff]  }
 0x6fe   :  { %9886 = vmatprep.subr.bf16.mxu0 %v13443_v56  ;;  %v13488_v55 = vld [vmem:[%s18727_s9 + $0x11fc] ss:$28 sps:$4 sm:$0xff]  }
 0x700   :  { %9852 = vmatpush2.bf16.msra.mxu1 %v13438_v60  ;;  %v13491_v60 = vld [vmem:[%s18727_s9 + $0x1624] ss:$28 sps:$4 sm:$0xff]  }
 0x701   :  { %9887 = vmatpush2.bf16.msra.mxu0 %v13441_v9  ;;  %9853 = vmatprep.subr.bf16.mxu1 %v13446_v26  ;;  %v13486_v26 = vld [vmem:[%s18727_s9 + $0x11f8] ss:$28 sps:$4 sm:$0xff]  }
 0x702   :  { %9888 = vmatprep.subr.bf16.mxu0 %v13449_v42  ;;  %v13489_v42 = vld [vmem:[%s18727_s9 + $0x1620] ss:$28 sps:$4 sm:$0xff]  }
 0x704   :  { %9854 = vmatpush2.bf16.msra.mxu1 %v13444_v33  ;;  %v13494_v33 = vld [vmem:[%s18727_s9 + $0x11c4] ss:$28 sps:$4 sm:$0xff]  }
 0x705   :  { %9889 = vmatpush2.bf16.msra.mxu0 %v13447_v49  ;;  %9855 = vmatprep.subr.bf16.mxu1 %v13452_v61  ;;  %v13497_v61 = vld [vmem:[%s18727_s9 + $0x15ec] ss:$28 sps:$4 sm:$0xff]  }
 0x706   :  { %9890 = vmatprep.subr.bf16.mxu0 %v13455_v52  ;;  %v13492_v52 = vld [vmem:[%s18727_s9 + $0x11c0] ss:$28 sps:$4 sm:$0xff]  }
 0x708   :  { %9856 = vmatpush2.bf16.msra.mxu1 %v13450_v51  ;;  %v13495_v51 = vld [vmem:[%s18727_s9 + $0x15e8] ss:$28 sps:$4 sm:$0xff]  }
 0x709   :  { %9891 = vmatpush2.bf16.msra.mxu0 %v13453_v34  ;;  %9907 = vmatprep.subr.bf16.mxu1 %v13461_v39  ;;  %v13500_v34 = vld [vmem:[%s18727_s9 + $0x118c] ss:$28 sps:$4 sm:$0xff]   ;;  %v13503_v39 = vld [vmem:[%s18727_s9 + $0x15b4] ss:$28 sps:$4 sm:$0xff]  }
 0x70a   :  { %9892 = vmatprep.subr.bf16.mxu0 %v13458_v62  ;;  %v13498_v62 = vld [vmem:[%s18727_s9 + $0x1188] ss:$28 sps:$4 sm:$0xff]  }
 0x70b   :  { %v17373_v29 = vpop.f32.mrf.mxu1  ;;  %9858 = vmatmul.mubr.bf16.vlgmr.msra.gmra.mxu1 %v16562_v5 }
 0x70c   :  { %9908 = vmatpush1.bf16.msra.mxu1 %v13459_v0  ;;  %9939 = vmatprep.mubr.bf16.mxu1 %v16570_v53  ;;  %v13501_v0 = vld [vmem:[%s18727_s9 + $0x15b0] ss:$28 sps:$4 sm:$0xff]  }
 0x70d   :  { %9893 = vmatpush2.bf16.msra.mxu0 %v13456_v13  ;;  %v17380_v7 = vpop.f32.mrf.mxu1  ;;  %9909 = vmatprep.subr.bf16.mxu1 %v13467_v3  ;;  %v13506_v13 = vld [vmem:[%s18727_s9 + $0x14d4] ss:$28 sps:$4 sm:$0xff]   ;;  %v13509_v3 = vld [vmem:[%s18727_s9 + $0x157c] ss:$28 sps:$4 sm:$0xff]  }
 0x70e   :  { %9894 = vmatprep.subr.bf16.mxu0 %v13464_v47  ;;  %v13504_v47 = vld [vmem:[%s18727_s9 + $0x14d0] ss:$28 sps:$4 sm:$0xff]  }
 0x70f   :  { %v9576_v15 = vpop.f32.mrf.mxu1 }
 0x710   :  { %v17391_v16 = vpop.f32.mrf.mxu0  ;;  %9910 = vmatpush1.bf16.msra.mxu1 %v13465_v6  ;;  %v13507_v6 = vld [vmem:[%s18727_s9 + $0x1578] ss:$28 sps:$4 sm:$0xff]   ;;  %v13513_v15 = vld [vmem:[%s18727_s9 + $0x1540] ss:$28 sps:$4 sm:$0xff]  }
 0x711   :  { %9895 = vmatpush2.bf16.msra.mxu0 %v13462_v11  ;;  %v9577_v17 = vpop.f32.mrf.mxu1  ;;  %9911 = vmatprep.subr.bf16.mxu1 %v13473_v14  ;;  %v13512_v11 = vld [vmem:[%s18727_s9 + $0x149c] ss:$28 sps:$4 sm:$0xff]   ;;  %v13515_v14 = vld [vmem:[%s18727_s9 + $0x1544] ss:$28 sps:$4 sm:$0xff]  }
 0x712   :  { %v17402_v19 = vpop.f32.mrf.mxu0  ;;  %9896 = vmatprep.subr.bf16.mxu0 %v13470_v45  ;;  %v13510_v45 = vld [vmem:[%s18727_s9 + $0x1498] ss:$28 sps:$4 sm:$0xff]   ;;  %v13521_v17 = vld [vmem:[%s18727_s9 + $0x150c] ss:$28 sps:$4 sm:$0xff]  }
 0x714   :  { %v9617_v35 = vpop.f32.mrf.mxu0  ;;  %9912 = vmatpush1.bf16.msra.mxu1 %v13471_v2  ;;  %v13518_v2 = vld [vmem:[%s18727_s9 + $0x1464] ss:$28 sps:$4 sm:$0xff]  }
 0x715   :  { %9897 = vmatpush2.bf16.msra.mxu0 %v13468_v18  ;;  %9913 = vmatprep.subr.bf16.mxu1 %v13476_v23  ;;  %v13516_v18 = vld [vmem:[%s18727_s9 + $0x1460] ss:$28 sps:$4 sm:$0xff]   ;;  %v13519_v23 = vld [vmem:[%s18727_s9 + $0x1508] ss:$28 sps:$4 sm:$0xff]   ;;  %v13527_v35 = vld [vmem:[%s18727_s9 + $0x1854] ss:$28 sps:$4 sm:$0xff]  }
 0x716   :  { %v9618_v21 = vpop.f32.mrf.mxu0  ;;  %9948 = vmatprep.subr.bf16.mxu0 %v13479_v57  ;;  %v13524_v57 = vld [vmem:[%s18727_s9 + $0x142c] ss:$28 sps:$4 sm:$0xff]  }
 0x717   :  { %v13530_v21 = vld [vmem:[%s18727_s9 + $0x13f4] ss:$28 sps:$4 sm:$0xff]  }
 0x718   :  { %9899 = vmatmul.mubr.bf16.vlgmr.msra.gmra.mxu0 %v16760_v20  ;;  %v17420_v10 = vpop.f32.mrf.mxu0  ;;  %9914 = vmatpush1.bf16.msra.mxu1 %v13474_v58  ;;  %v13522_v58 = vld [vmem:[%s18727_s9 + $0x1428] ss:$28 sps:$4 sm:$0xff]  }
 0x719   :  { %9949 = vmatpush1.bf16.msra.mxu0 %v13477_v8  ;;  %9980 = vmatprep.mubr.bf16.mxu0 %v16763_v25  ;;  %v13525_v8 = vld [vmem:[%s18727_s9 + $0x1850] ss:$28 sps:$4 sm:$0xff]  }
 0x71a   :  { %v17432_v56 = vpop.f32.mrf.mxu0  ;;  %9915 = vmatprep.subr.bf16.mxu1 %v13482_v36  ;;  %9950 = vmatprep.subr.bf16.mxu0 %v13485_v30  ;;  %v13533_v36 = vld [vmem:[%s18727_s9 + $0x181c] ss:$28 sps:$4 sm:$0xff]   ;;  %v13528_v30 = vld [vmem:[%s18727_s9 + $0x13f0] ss:$28 sps:$4 sm:$0xff]  }
 0x71c   :  { %v9699_v9 = vpop.f32.mrf.mxu0  ;;  %9916 = vmatpush1.bf16.msra.mxu1 %v13480_v48  ;;  %v13531_v48 = vld [vmem:[%s18727_s9 + $0x1818] ss:$28 sps:$4 sm:$0xff]  }
 0x71d   :  { %9951 = vmatpush1.bf16.msra.mxu0 %v13483_v37  ;;  %9917 = vmatprep.subr.bf16.mxu1 %v13488_v55  ;;  %v13536_v37 = vld [vmem:[%s18727_s9 + $0x13bc] ss:$28 sps:$4 sm:$0xff]   ;;  %v13539_v55 = vld [vmem:[%s18727_s9 + $0x17e4] ss:$28 sps:$4 sm:$0xff]  }
 0x71e   :  { %v9700_v49 = vpop.f32.mrf.mxu0  ;;  %9952 = vmatprep.subr.bf16.mxu0 %v13491_v60  ;;  %v13534_v60 = vld [vmem:[%s18727_s9 + $0x13b8] ss:$28 sps:$4 sm:$0xff]   ;;  %v13537_v9 = vld [vmem:[%s18727_s9 + $0x17e0] ss:$28 sps:$4 sm:$0xff]  }
 0x71f   :  { %v13543_v49 = vld [vmem:[%s18727_s9 + $0x17a8] ss:$28 sps:$4 sm:$0xff]  }
 0x720   :  { %9918 = vmatpush1.bf16.msra.mxu1 %v13486_v26  ;;  %v13542_v26 = vld [vmem:[%s18727_s9 + $0x1384] ss:$28 sps:$4 sm:$0xff]  }
 0x721   :  { %9953 = vmatpush1.bf16.msra.mxu0 %v13489_v42  ;;  %9919 = vmatprep.subr.bf16.mxu1 %v13494_v33  ;;  %v13545_v42 = vld [vmem:[%s18727_s9 + $0x17ac] ss:$28 sps:$4 sm:$0xff]   ;;  %v13540_v33 = vld [vmem:[%s18727_s9 + $0x1380] ss:$28 sps:$4 sm:$0xff]  }
 0x722   :  { %9954 = vmatprep.subr.bf16.mxu0 %v13497_v61  ;;  %v13548_v61 = vld [vmem:[%s18727_s9 + $0x134c] ss:$28 sps:$4 sm:$0xff]  }
 0x724   :  { %9920 = vmatpush1.bf16.msra.mxu1 %v13492_v52  ;;  %v13551_v52 = vld [vmem:[%s18727_s9 + $0x1774] ss:$28 sps:$4 sm:$0xff]  }
 0x725   :  { %9955 = vmatpush1.bf16.msra.mxu0 %v13495_v51  ;;  %9921 = vmatprep.subr.bf16.mxu1 %v13500_v34  ;;  %v5258_v51 = vld [vmem:[%s18727_s9 + $0x1888] sm:$0xff] }
 0x726   :  { %9956 = vmatprep.subr.bf16.mxu0 %v13503_v39  ;;  %v13546_v34 = vld [vmem:[%s18727_s9 + $0x1348] ss:$28 sps:$4 sm:$0xff]   ;;  %v13549_v39 = vld [vmem:[%s18727_s9 + $0x1770] ss:$28 sps:$4 sm:$0xff]  }
 0x728   :  { %9922 = vmatpush1.bf16.msra.mxu1 %v13498_v62  ;;  %v11982_v62 = vcombine.high %v5258_v51, %v5258_v51 }
 0x729   :  { %9957 = vmatpush1.bf16.msra.mxu0 %v13501_v0  ;;  %9923 = vmatprep.subr.bf16.mxu1 %v13506_v13  ;;  %v11981_v0 = vcombine.low %v5258_v51, %v5258_v51  ;;  %v13554_v13 = vld [vmem:[%s18727_s9 + $0x173c] ss:$28 sps:$4 sm:$0xff]  }
 0x72a   :  { %9958 = vmatprep.subr.bf16.mxu0 %v13509_v3  ;;  %v9573_v3 = vadd.f32 %v17373_v29, %v17190_v41  ;;  %v13559_v41 = vld [vmem:[%s18727_s9 + $0x1704] ss:$28 sps:$4 sm:$0xff]  }
 0x72c   :  { %9924 = vmatpush2.bf16.msra.mxu1 %v13504_v47  ;;  %v13552_v47 = vld [vmem:[%s18727_s9 + $0x1738] ss:$28 sps:$4 sm:$0xff]  }
 0x72d   :  { %9959 = vmatpush1.bf16.msra.mxu0 %v13507_v6  ;;  %9925 = vmatprep.subr.bf16.mxu1 %v13512_v11  ;;  %v9360_v6 = vsel %vm9352_vm4, %v11981_v0, 0  ;;  %v13562_v11 = vld [vmem:[%s18727_s9 + $0x19c] ss:$28 sps:$4 sm:$0xff]   ;;  %v13587_v0 = vld [vmem:[%s18727_s9 + $0x470] ss:$28 sps:$4 sm:$0xff]  }
 0x72e   :  { %9960 = vmatprep.subr.bf16.mxu0 %v13515_v14  ;;  %v9575_v14 = vadd.f32 %v17380_v7, %v17201_v24  ;;  %v13557_v24 = vld [vmem:[%s18727_s9 + $0x1700] ss:$28 sps:$4 sm:$0xff]  }
 0x730   :  { %9926 = vmatpush2.bf16.msra.mxu1 %v13510_v45  ;;  %v9614_v45 = vadd.f32 %v17391_v16, %v9573_v3  ;;  %v13595_v3 = vld [vmem:[%s18727_s9 + $0x43c] ss:$28 sps:$4 sm:$0xff]  }
 0x731   :  { %9961 = vmatpush1.bf16.msra.mxu0 %v13513_v15  ;;  %9927 = vmatprep.subr.bf16.mxu1 %v13518_v2  ;;  %v9616_v15 = vadd.f32 %v17402_v19, %v9575_v14  ;;  %v13601_v14 = vld [vmem:[%s18727_s9 + $0x404] ss:$28 sps:$4 sm:$0xff]  }
 0x732   :  { %9962 = vmatprep.subr.bf16.mxu0 %v13521_v17 }
 0x734   :  { %9928 = vmatpush2.bf16.msra.mxu1 %v13516_v18  ;;  %v13565_v18 = vld [vmem:[%s18727_s9 + $0x16cc] ss:$28 sps:$4 sm:$0xff]  }
 0x735   :  { %9963 = vmatpush1.bf16.msra.mxu0 %v13519_v23  ;;  %9929 = vmatprep.subr.bf16.mxu1 %v13524_v57  ;;  %v13560_v57 = vld [vmem:[%s18727_s9 + $0x198] ss:$28 sps:$4 sm:$0xff]  }
 0x736   :  { %9964 = vmatprep.subr.bf16.mxu0 %v13527_v35 }
 0x738   :  { %9930 = vmatpush2.bf16.msra.mxu1 %v13522_v58  ;;  %v13568_v58 = vld [vmem:[%s18727_s9 + $0x164] ss:$28 sps:$4 sm:$0xff]  }
 0x739   :  { %9965 = vmatpush2.bf16.msra.mxu0 %v13525_v8  ;;  %9931 = vmatprep.subr.bf16.mxu1 %v13530_v21  ;;  %v13566_v8 = vld [vmem:[%s18727_s9 + $0x160] ss:$28 sps:$4 sm:$0xff]   ;;  %v13569_v21 = vld [vmem:[%s18727_s9 + $0x518] ss:$28 sps:$4 sm:$0xff]  }
 0x73a   :  { %9966 = vmatprep.subr.bf16.mxu0 %v13533_v36  ;;  %v13574_v36 = vld [vmem:[%s18727_s9 + $0x12c] ss:$28 sps:$4 sm:$0xff]  }
 0x73c   :  { %9932 = vmatpush2.bf16.msra.mxu1 %v13528_v30  ;;  %v13577_v30 = vld [vmem:[%s18727_s9 + $0x4e4] ss:$28 sps:$4 sm:$0xff]  }
 0x73d   :  { %9967 = vmatpush2.bf16.msra.mxu0 %v13531_v48  ;;  %9933 = vmatprep.subr.bf16.mxu1 %v13536_v37  ;;  %v13572_v37 = vld [vmem:[%s18727_s9 + $0x128] ss:$28 sps:$4 sm:$0xff]  }
 0x73e   :  { %9968 = vmatprep.subr.bf16.mxu0 %v13539_v55  ;;  %v13575_v55 = vld [vmem:[%s18727_s9 + $0x4e0] ss:$28 sps:$4 sm:$0xff]  }
 0x740   :  { %9934 = vmatpush2.bf16.msra.mxu1 %v13534_v60  ;;  %v13580_v60 = vld [vmem:[%s18727_s9 + $0xf4] ss:$28 sps:$4 sm:$0xff]  }
 0x741   :  { %9969 = vmatpush2.bf16.msra.mxu0 %v13537_v9  ;;  %9935 = vmatprep.subr.bf16.mxu1 %v13542_v26  ;;  %v13583_v26 = vld [vmem:[%s18727_s9 + $0x4ac] ss:$28 sps:$4 sm:$0xff]  }
 0x742   :  { %9970 = vmatprep.subr.bf16.mxu0 %v13545_v42 }
 0x744   :  { %9936 = vmatpush2.bf16.msra.mxu1 %v13540_v33  ;;  %v13578_v33 = vld [vmem:[%s18727_s9 + $0xf0] ss:$28 sps:$4 sm:$0xff]  }
 0x745   :  { %9971 = vmatpush2.bf16.msra.mxu0 %v13543_v49  ;;  %9937 = vmatprep.subr.bf16.mxu1 %v13548_v61  ;;  %v13581_v61 = vld [vmem:[%s18727_s9 + $0x4a8] ss:$28 sps:$4 sm:$0xff]  }
 0x746   :  { %9972 = vmatprep.subr.bf16.mxu0 %v13551_v52  ;;  %v13586_v52 = vld [vmem:[%s18727_s9 + $0xbc] ss:$28 sps:$4 sm:$0xff]  }
 0x748   :  { %9938 = vmatpush2.bf16.msra.mxu1 %v13546_v34  ;;  %v13589_v34 = vld [vmem:[%s18727_s9 + $0x474] ss:$28 sps:$4 sm:$0xff]  }
 0x749   :  { %9973 = vmatpush2.bf16.msra.mxu0 %v13549_v39  ;;  %11988 = vmatprep.subr.msk.bf16.mxu1 %vm9352_vm4, %v11982_v62  ;;  %v13584_v62 = vld [vmem:[%s18727_s9 + $0xb8] ss:$28 sps:$4 sm:$0xff]  }
 0x74a   :  { %9974 = vmatprep.subr.bf16.mxu0 %v13554_v13  ;;  %v13592_v13 = vld [vmem:[%s18727_s9 + $0x84] ss:$28 sps:$4 sm:$0xff]  }
 0x74b   :  { %v9654_v29 = vpop.f32.mrf.mxu1  ;;  %9940 = vmatmul.mubr.bf16.vlgmr.msra.gmra.mxu1 %v16778_v63 }
 0x74c   :  { %v9655_v2 = vadd.f32 %v9654_v29, %v9614_v45  ;;  %10004 = vmatpush1.bf16.msra.mxu1 %v9360_v6  ;;  %10021 = vmatprep.mubr.bf16.mxu1 %v18732_v1  ;;  %v13593_v6 = vld [vmem:[%s18727_s9 + $0x438] ss:$28 sps:$4 sm:$0xff]   ;;  %v13596_v45 = vld [vmem:[%s18727_s9 + $0x48] ss:$28 sps:$4 sm:$0xff]  }
 0x74d   :  { %9975 = vmatpush2.bf16.msra.mxu0 %v13552_v47  ;;  %v9656_v17 = vpop.f32.mrf.mxu1  ;;  %10030 = vmatprep.subr.bf16.mxu1 %v13562_v11  ;;  %v13590_v47 = vld [vmem:[%s18727_s9 + $0x80] ss:$28 sps:$4 sm:$0xff]   ;;  %v13598_v11 = vld [vmem:[%s18727_s9 + $0x4c] ss:$28 sps:$4 sm:$0xff]   ;;  %v13604_v29 = vld [vmem:[%s18727_s9 + $0x14] ss:$28 sps:$4 sm:$0xff]  }
 0x74e   :  { %v9696_v7 = vadd.f32 %v17420_v10, %v9655_v2  ;;  %v9657_v16 = vadd.f32 %v9656_v17, %v9616_v15  ;;  %9976 = vmatprep.subr.bf16.mxu0 %v13559_v41  ;;  %v13563_v10 = vld [vmem:[%s18727_s9 + $0x16c8] ss:$28 sps:$4 sm:$0xff]   ;;  %v13599_v41 = vld [vmem:[%s18727_s9 + $0x400] ss:$28 sps:$4 sm:$0xff]   ;;  %v13602_v2 = vld [vmem:[%s18727_s9 + $0x10] ss:$28 sps:$4 sm:$0xff]  }
 0x74f   :  { %v9658_v19 = vpop.f32.mrf.mxu1  ;;  %v13607_v15 = vld [vmem:[%s18727_s9 + $0x3cc] ss:$28 sps:$4 sm:$0xff]  }
 0x750   :  { %14014 = vtanh.f32 %v9696_v7  ;;  %v9698_v23 = vadd.f32 %v17432_v56, %v9657_v16  ;;  %v13571_v56 = vld [vmem:[%s18727_s9 + $0x51c] ss:$28 sps:$4 sm:$0xff]   ;;  %v13605_v17 = vld [vmem:[%s18727_s9 + $0x3c8] ss:$28 sps:$4 sm:$0xff]   ;;  %v13613_v7 = vld [vmem:[%s18727_s9 + $0x394] ss:$28 sps:$4 sm:$0xff]  }
 0x751   :  { %9977 = vmatpush2.bf16.msra.mxu0 %v13557_v24  ;;  %v9659_v35 = vpop.f32.mrf.mxu1  ;;  %v13610_v24 = vld [vmem:[%s18727_s9 + $0x35c] ss:$28 sps:$4 sm:$0xff]   ;;  %v13616_v19 = vld [vmem:[%s18727_s9 + $0x324] ss:$28 sps:$4 sm:$0xff]  }
 0x752   :  { %14016 = vtanh.f32 %v9698_v23  ;;  %9978 = vmatprep.subr.bf16.mxu0 %v13565_v18  ;;  %v13608_v16 = vld [vmem:[%s18727_s9 + $0x358] ss:$28 sps:$4 sm:$0xff]   ;;  %v13611_v18 = vld [vmem:[%s18727_s9 + $0x390] ss:$28 sps:$4 sm:$0xff]  }
 0x753   :  { %11989 = vmatmul.mubr.msk.bf16.vlgmr.msra.gmra.mxu1 %vm9348_vm5, %v16802_v4  ;;  %v13619_v23 = vld [vmem:[%s18727_s9 + $0x6dc] ss:$28 sps:$4 sm:$0xff]  }
 0x754   :  { %10031 = vmatpush1.bf16.msra.mxu1 %v13560_v57  ;;  %10062 = vmatprep.mubr.bf16.mxu1 %v16083_v44  ;;  %v13614_v57 = vld [vmem:[%s18727_s9 + $0x320] ss:$28 sps:$4 sm:$0xff]   ;;  %v13617_v35 = vld [vmem:[%s18727_s9 + $0x6d8] ss:$28 sps:$4 sm:$0xff]  }
 0x755   :  { %9979 = vmatpush2.bf16.msra.mxu0 %v13563_v10  ;;  %10032 = vmatprep.subr.bf16.mxu1 %v13568_v58  ;;  %v13622_v10 = vld [vmem:[%s18727_s9 + $0x2ec] ss:$28 sps:$4 sm:$0xff]   ;;  %v13625_v58 = vld [vmem:[%s18727_s9 + $0x6a4] ss:$28 sps:$4 sm:$0xff]  }
 0x756   :  { %10071 = vmatprep.subr.bf16.mxu0 %v13571_v56  ;;  %v13620_v56 = vld [vmem:[%s18727_s9 + $0x2e8] ss:$28 sps:$4 sm:$0xff]  }
 0x758   :  { %v17623_v48 = vpop.f32.mrf.mxu0  ;;  %9981 = vmatmul.mubr.bf16.vlgmr.msra.gmra.mxu0 %v16967_v54  ;;  %10033 = vmatpush1.bf16.msra.mxu1 %v13566_v8  ;;  %v13623_v8 = vld [vmem:[%s18727_s9 + $0x6a0] ss:$28 sps:$4 sm:$0xff]  }
 0x759   :  { %10072 = vmatpush1.bf16.msra.mxu0 %v13569_v21  ;;  %10103 = vmatprep.mubr.bf16.mxu0 %v16103_v50  ;;  %v13628_v21 = vld [vmem:[%s18727_s9 + $0x2b4] ss:$28 sps:$4 sm:$0xff]  }
 0x75a   :  { %v17636_v9 = vpop.f32.mrf.mxu0  ;;  %10034 = vmatprep.subr.bf16.mxu1 %v13574_v36  ;;  %10073 = vmatprep.subr.bf16.mxu0 %v13577_v30  ;;  %v13631_v36 = vld [vmem:[%s18727_s9 + $0x66c] ss:$28 sps:$4 sm:$0xff]  }
 0x75b   :  { %v13626_v30 = vld [vmem:[%s18727_s9 + $0x2b0] ss:$28 sps:$4 sm:$0xff]  }
 0x75c   :  { %v9740_v42 = vpop.f32.mrf.mxu0  ;;  %10035 = vmatpush1.bf16.msra.mxu1 %v13572_v37  ;;  %v13629_v37 = vld [vmem:[%s18727_s9 + $0x668] ss:$28 sps:$4 sm:$0xff]  }
 0x75d   :  { %v14015_v49 = vpop.eup %14014  ;;  %10074 = vmatpush1.bf16.msra.mxu0 %v13575_v55  ;;  %10036 = vmatprep.subr.bf16.mxu1 %v13580_v60  ;;  %v13634_v55 = vld [vmem:[%s18727_s9 + $0x27c] ss:$28 sps:$4 sm:$0xff]   ;;  %v13637_v60 = vld [vmem:[%s18727_s9 + $0x634] ss:$28 sps:$4 sm:$0xff]  }
 0x75e   :  { %10685 = vst [vmem:[%s18729_s11] sm:$0xff] %v14015_v49  ;;  %v9741_v51 = vpop.f32.mrf.mxu0  ;;  %10075 = vmatprep.subr.bf16.mxu0 %v13583_v26  ;;  %v13632_v26 = vld [vmem:[%s18727_s9 + $0x278] ss:$28 sps:$4 sm:$0xff]   ;;  %v13635_v42 = vld [vmem:[%s18727_s9 + $0x630] ss:$28 sps:$4 sm:$0xff]  }
 0x75f   :  { %v14017_v39 = vpop.eup %14016  ;;  %v13643_v49 = vld [vmem:[%s18727_s9 + $0x5fc] ss:$28 sps:$4 sm:$0xff]   ;;  %v13646_v51 = vld [vmem:[%s18727_s9 + $0x20c] ss:$28 sps:$4 sm:$0xff]  }
 0x760   :  { %10686 = vst [vmem:[%s18729_s11 + $0x8] sm:$0xff] %v14017_v39  ;;  %10037 = vmatpush1.bf16.msra.mxu1 %v13578_v33  ;;  %v13640_v33 = vld [vmem:[%s18727_s9 + $0x244] ss:$28 sps:$4 sm:$0xff]  }
 0x761   :  { %10076 = vmatpush1.bf16.msra.mxu0 %v13581_v61  ;;  %10038 = vmatprep.subr.bf16.mxu1 %v13586_v52  ;;  %v13638_v61 = vld [vmem:[%s18727_s9 + $0x240] ss:$28 sps:$4 sm:$0xff]   ;;  %v13641_v52 = vld [vmem:[%s18727_s9 + $0x5f8] ss:$28 sps:$4 sm:$0xff]  }
 0x762   :  { %10077 = vmatprep.subr.bf16.mxu0 %v13589_v34  ;;  %v17779_v34 = vld [vmem:[%s18728_s10] sm:$0x7f] }
 0x763   :  { %v5274_v39 = vrot.slane %v17779_v34, %v14739_v31  ;;  %v13652_v31 = vld [vmem:[%s18727_s9 + $0x1d4] ss:$28 sps:$4 sm:$0xff]  }
 0x764   :  { %10039 = vmatpush1.bf16.msra.mxu1 %v13584_v62  ;;  %v13649_v62 = vld [vmem:[%s18727_s9 + $0x5c4] ss:$28 sps:$4 sm:$0xff]  }
 0x765   :  { %10078 = vmatpush1.bf16.msra.mxu0 %v13587_v0  ;;  %10040 = vmatprep.subr.bf16.mxu1 %v13592_v13  ;;  %v5278_v0 = vrot.slane %v17779_v34, %v14757_v43  ;;  %v13644_v13 = vld [vmem:[%s18727_s9 + $0x208] ss:$28 sps:$4 sm:$0xff]  }
 0x766   :  { %10079 = vmatprep.subr.bf16.mxu0 %v13595_v3  ;;  %v13647_v3 = vld [vmem:[%s18727_s9 + $0x5c0] ss:$28 sps:$4 sm:$0xff]   ;;  %v13655_v43 = vld [vmem:[%s18727_s9 + $0x58c] ss:$28 sps:$4 sm:$0xff]  }
 0x768   :  { %10041 = vmatpush1.bf16.msra.mxu1 %v13590_v47  ;;  %v9737_v47 = vadd.f32 %v17623_v48, %v5274_v39  ;;  %v13653_v48 = vld [vmem:[%s18727_s9 + $0x588] ss:$28 sps:$4 sm:$0xff]   ;;  %v13691_v39 = vld [vmem:[%s18727_s9 + $0xb3c] ss:$28 sps:$4 sm:$0xff]  }
 0x769   :  { %10080 = vmatpush1.bf16.msra.mxu0 %v13593_v6  ;;  %10042 = vmatprep.subr.bf16.mxu1 %v13598_v11  ;;  %v9739_v11 = vadd.f32 %v17636_v9, %v5278_v0  ;;  %v13661_v9 = vld [vmem:[%s18727_s9 + $0x554] ss:$28 sps:$4 sm:$0xff]  }
 0x76a   :  { %10081 = vmatprep.subr.bf16.mxu0 %v13601_v14  ;;  %v13689_v0 = vld [vmem:[%s18727_s9 + $0xb38] ss:$28 sps:$4 sm:$0xff]  }
 0x76c   :  { %10043 = vmatpush1.bf16.msra.mxu1 %v13596_v45  ;;  %v13650_v45 = vld [vmem:[%s18727_s9 + $0x1d0] ss:$28 sps:$4 sm:$0xff]  }
 0x76d   :  { %10082 = vmatpush1.bf16.msra.mxu0 %v13599_v41  ;;  %10044 = vmatprep.subr.bf16.mxu1 %v13604_v29  ;;  %v13658_v29 = vld [vmem:[%s18727_s9 + $0x89c] ss:$28 sps:$4 sm:$0xff]  }
 0x76e   :  { %10083 = vmatprep.subr.bf16.mxu0 %v13607_v15 }
 0x770   :  { %10045 = vmatpush1.bf16.msra.mxu1 %v13602_v2 }
 0x771   :  { %10084 = vmatpush1.bf16.msra.mxu0 %v13605_v17  ;;  %10046 = vmatprep.subr.bf16.mxu1 %v13610_v24  ;;  %v13656_v17 = vld [vmem:[%s18727_s9 + $0x898] ss:$28 sps:$4 sm:$0xff]  }
 0x772   :  { %10085 = vmatprep.subr.bf16.mxu0 %v13613_v7  ;;  %v13659_v7 = vld [vmem:[%s18727_s9 + $0x550] ss:$28 sps:$4 sm:$0xff]  }
 0x774   :  { %10047 = vmatpush2.bf16.msra.mxu1 %v13608_v16  ;;  %v13664_v16 = vld [vmem:[%s18727_s9 + $0x864] ss:$28 sps:$4 sm:$0xff]  }
 0x775   :  { %10086 = vmatpush1.bf16.msra.mxu0 %v13611_v18  ;;  %10048 = vmatprep.subr.bf16.mxu1 %v13616_v19  ;;  %v13667_v18 = vld [vmem:[%s18727_s9 + $0xc1c] ss:$28 sps:$4 sm:$0xff]  }
 0x776   :  { %10087 = vmatprep.subr.bf16.mxu0 %v13619_v23  ;;  %v13662_v19 = vld [vmem:[%s18727_s9 + $0x860] ss:$28 sps:$4 sm:$0xff]   ;;  %v13665_v23 = vld [vmem:[%s18727_s9 + $0xc18] ss:$28 sps:$4 sm:$0xff]  }
 0x778   :  { %10049 = vmatpush2.bf16.msra.mxu1 %v13614_v57  ;;  %v13670_v57 = vld [vmem:[%s18727_s9 + $0x82c] ss:$28 sps:$4 sm:$0xff]  }
 0x779   :  { %10088 = vmatpush2.bf16.msra.mxu0 %v13617_v35  ;;  %10050 = vmatprep.subr.bf16.mxu1 %v13622_v10  ;;  %v13673_v35 = vld [vmem:[%s18727_s9 + $0xbe4] ss:$28 sps:$4 sm:$0xff]  }
 0x77a   :  { %10089 = vmatprep.subr.bf16.mxu0 %v13625_v58  ;;  %v13668_v58 = vld [vmem:[%s18727_s9 + $0x828] ss:$28 sps:$4 sm:$0xff]  }
 0x77c   :  { %10051 = vmatpush2.bf16.msra.mxu1 %v13620_v56 }
 0x77d   :  { %10090 = vmatpush2.bf16.msra.mxu0 %v13623_v8  ;;  %10052 = vmatprep.subr.bf16.mxu1 %v13628_v21  ;;  %v13671_v8 = vld [vmem:[%s18727_s9 + $0xbe0] ss:$28 sps:$4 sm:$0xff]   ;;  %v13676_v21 = vld [vmem:[%s18727_s9 + $0x7f4] ss:$28 sps:$4 sm:$0xff]  }
 0x77e   :  { %10091 = vmatprep.subr.bf16.mxu0 %v13631_v36 }
 0x780   :  { %10053 = vmatpush2.bf16.msra.mxu1 %v13626_v30  ;;  %v13679_v30 = vld [vmem:[%s18727_s9 + $0xbac] ss:$28 sps:$4 sm:$0xff]  }
 0x781   :  { %10092 = vmatpush2.bf16.msra.mxu0 %v13629_v37  ;;  %10054 = vmatprep.subr.bf16.mxu1 %v13634_v55 }
 0x782   :  { %10093 = vmatprep.subr.bf16.mxu0 %v13637_v60  ;;  %v13674_v60 = vld [vmem:[%s18727_s9 + $0x7f0] ss:$28 sps:$4 sm:$0xff]  }
 0x784   :  { %10055 = vmatpush2.bf16.msra.mxu1 %v13632_v26  ;;  %v13677_v26 = vld [vmem:[%s18727_s9 + $0xba8] ss:$28 sps:$4 sm:$0xff]  }
 0x785   :  { %10094 = vmatpush2.bf16.msra.mxu0 %v13635_v42  ;;  %10056 = vmatprep.subr.bf16.mxu1 %v13640_v33  ;;  %v13682_v42 = vld [vmem:[%s18727_s9 + $0x7bc] ss:$28 sps:$4 sm:$0xff]  }
 0x786   :  { %10095 = vmatprep.subr.bf16.mxu0 %v13643_v49  ;;  %v13685_v49 = vld [vmem:[%s18727_s9 + $0xb74] ss:$28 sps:$4 sm:$0xff]  }
 0x788   :  { %10057 = vmatpush2.bf16.msra.mxu1 %v13638_v61  ;;  %v13680_v61 = vld [vmem:[%s18727_s9 + $0x7b8] ss:$28 sps:$4 sm:$0xff]  }
 0x789   :  { %10096 = vmatpush2.bf16.msra.mxu0 %v13641_v52  ;;  %10058 = vmatprep.subr.bf16.mxu1 %v13646_v51  ;;  %v13683_v52 = vld [vmem:[%s18727_s9 + $0xb70] ss:$28 sps:$4 sm:$0xff]   ;;  %v13688_v51 = vld [vmem:[%s18727_s9 + $0x784] ss:$28 sps:$4 sm:$0xff]  }
 0x78a   :  { %10097 = vmatprep.subr.bf16.mxu0 %v13649_v62  ;;  %v13686_v62 = vld [vmem:[%s18727_s9 + $0x780] ss:$28 sps:$4 sm:$0xff]  }
 0x78b   :  { %v9777_v6 = vpop.f32.mrf.mxu1 }
 0x78c   :  { %v9778_v14 = vadd.f32 %v9777_v6, %v9737_v47  ;;  %10059 = vmatpush2.bf16.msra.mxu1 %v13644_v13  ;;  %v13694_v13 = vld [vmem:[%s18727_s9 + $0x74c] ss:$28 sps:$4 sm:$0xff]   ;;  %v13695_v47 = vld [vmem:[%s18727_s9 + $0xb00] ss:$28 sps:$4 sm:$0xff]  }
 0x78d   :  { %10098 = vmatpush2.bf16.msra.mxu0 %v13647_v3  ;;  %v9779_v41 = vpop.f32.mrf.mxu1  ;;  %10060 = vmatprep.subr.bf16.mxu1 %v13652_v31  ;;  %v13697_v3 = vld [vmem:[%s18727_s9 + $0xb04] ss:$28 sps:$4 sm:$0xff]   ;;  %v13703_v6 = vld [vmem:[%s18727_s9 + $0xacc] ss:$28 sps:$4 sm:$0xff]  }
 0x78e   :  { %v9780_v15 = vadd.f32 %v9779_v41, %v9739_v11  ;;  %10099 = vmatprep.subr.bf16.mxu0 %v13655_v43  ;;  %v13692_v31 = vld [vmem:[%s18727_s9 + $0x748] ss:$28 sps:$4 sm:$0xff]   ;;  %v13700_v43 = vld [vmem:[%s18727_s9 + $0x714] ss:$28 sps:$4 sm:$0xff]  }
 0x78f   :  { %v9781_v2 = vpop.f32.mrf.mxu1  ;;  %v13698_v11 = vld [vmem:[%s18727_s9 + $0x710] ss:$28 sps:$4 sm:$0xff]  }
 0x790   :  { %10061 = vmatpush2.bf16.msra.mxu1 %v13650_v45  ;;  %v13706_v45 = vld [vmem:[%s18727_s9 + $0xa5c] ss:$28 sps:$4 sm:$0xff]   ;;  %v13709_v41 = vld [vmem:[%s18727_s9 + $0xa94] ss:$28 sps:$4 sm:$0xff]  }
 0x791   :  { %10100 = vmatpush2.bf16.msra.mxu0 %v13653_v48  ;;  %v9782_v24 = vpop.f32.mrf.mxu1  ;;  %10112 = vmatprep.subr.bf16.mxu1 %v13658_v29  ;;  %v13704_v48 = vld [vmem:[%s18727_s9 + $0xa58] ss:$28 sps:$4 sm:$0xff]   ;;  %v13707_v29 = vld [vmem:[%s18727_s9 + $0xa90] ss:$28 sps:$4 sm:$0xff]   ;;  %v13710_v2 = vld [vmem:[%s18727_s9 + $0xa20] ss:$28 sps:$4 sm:$0xff]  }
 0x792   :  { %10101 = vmatprep.subr.bf16.mxu0 %v13661_v9  ;;  %v13715_v9 = vld [vmem:[%s18727_s9 + $0xddc] ss:$28 sps:$4 sm:$0xff]   ;;  %v13718_v24 = vld [vmem:[%s18727_s9 + $0x9ec] ss:$28 sps:$4 sm:$0xff]  }
 0x793   :  { %10063 = vmatmul.mubr.bf16.vlgmr.msra.gmra.mxu1 %v16315_v28 }
 0x794   :  { %10113 = vmatpush1.bf16.msra.mxu1 %v13656_v17  ;;  %10144 = vmatprep.mubr.bf16.mxu1 %v16320_v46  ;;  %v13713_v17 = vld [vmem:[%s18727_s9 + $0xdd8] ss:$28 sps:$4 sm:$0xff]  }
 0x795   :  { %10102 = vmatpush2.bf16.msra.mxu0 %v13659_v7  ;;  %10114 = vmatprep.subr.bf16.mxu1 %v13664_v16  ;;  %v13721_v7 = vld [vmem:[%s18727_s9 + $0xda4] ss:$28 sps:$4 sm:$0xff]  }
 0x796   :  { %10153 = vmatprep.subr.bf16.mxu0 %v13667_v18  ;;  %v13716_v16 = vld [vmem:[%s18727_s9 + $0x9e8] ss:$28 sps:$4 sm:$0xff]   ;;  %v13719_v18 = vld [vmem:[%s18727_s9 + $0xda0] ss:$28 sps:$4 sm:$0xff]  }
 0x798   :  { %v9818_v10 = vpop.f32.mrf.mxu0  ;;  %10104 = vmatmul.mubr.bf16.vlgmr.msra.gmra.mxu0 %v16340_v32  ;;  %10115 = vmatpush1.bf16.msra.mxu1 %v13662_v19  ;;  %v13724_v19 = vld [vmem:[%s18727_s9 + $0x9b4] ss:$28 sps:$4 sm:$0xff]  }
 0x799   :  { %v17844_v56 = vadd.f32 %v9818_v10, %v9778_v14  ;;  %10154 = vmatpush1.bf16.msra.mxu0 %v13665_v23  ;;  %10185 = vmatprep.mubr.bf16.mxu0 %v16345_v38  ;;  %v13701_v14 = vld [vmem:[%s18727_s9 + $0xac8] ss:$28 sps:$4 sm:$0xff]   ;;  %v13730_v10 = vld [vmem:[%s18727_s9 + $0x97c] ss:$28 sps:$4 sm:$0xff]  }
 0x79a   :  { %v9820_v36 = vpop.f32.mrf.mxu0  ;;  %10116 = vmatprep.subr.bf16.mxu1 %v13670_v57  ;;  %10155 = vmatprep.subr.bf16.mxu0 %v13673_v35  ;;  %v13727_v23 = vld [vmem:[%s18727_s9 + $0xd6c] ss:$28 sps:$4 sm:$0xff]  }
 0x79b   :  { %v17856_v37 = vadd.f32 %v9820_v36, %v9780_v15  ;;  %v13712_v15 = vld [vmem:[%s18727_s9 + $0xa24] ss:$28 sps:$4 sm:$0xff]   ;;  %v13722_v57 = vld [vmem:[%s18727_s9 + $0x9b0] ss:$28 sps:$4 sm:$0xff]  }
 0x79c   :  { %v9822_v55 = vpop.f32.mrf.mxu0  ;;  %10117 = vmatpush1.bf16.msra.mxu1 %v13668_v58  ;;  %v13725_v35 = vld [vmem:[%s18727_s9 + $0xd68] ss:$28 sps:$4 sm:$0xff]   ;;  %v13733_v58 = vld [vmem:[%s18727_s9 + $0xd34] ss:$28 sps:$4 sm:$0xff]  }
 0x79d   :  { %10156 = vmatpush1.bf16.msra.mxu0 %v13671_v8  ;;  %10118 = vmatprep.subr.bf16.mxu1 %v13676_v21  ;;  %v13728_v8 = vld [vmem:[%s18727_s9 + $0x978] ss:$28 sps:$4 sm:$0xff]   ;;  %v13731_v21 = vld [vmem:[%s18727_s9 + $0xd30] ss:$28 sps:$4 sm:$0xff]   ;;  %v13736_v36 = vld [vmem:[%s18727_s9 + $0x944] ss:$28 sps:$4 sm:$0xff]  }
 0x79e   :  { %v9823_v33 = vpop.f32.mrf.mxu0  ;;  %10157 = vmatprep.subr.bf16.mxu0 %v13679_v30  ;;  %v13739_v30 = vld [vmem:[%s18727_s9 + $0xcfc] ss:$28 sps:$4 sm:$0xff]  }
 0x79f   :  { %v13734_v55 = vld [vmem:[%s18727_s9 + $0x940] ss:$28 sps:$4 sm:$0xff]   ;;  %v13740_v33 = vld [vmem:[%s18727_s9 + $0x908] ss:$28 sps:$4 sm:$0xff]  }
 0x7a0   :  { %10119 = vmatpush1.bf16.msra.mxu1 %v13674_v60  ;;  %v13737_v60 = vld [vmem:[%s18727_s9 + $0xcf8] ss:$28 sps:$4 sm:$0xff]  }
 0x7a1   :  { %10158 = vmatpush1.bf16.msra.mxu0 %v13677_v26  ;;  %10120 = vmatprep.subr.bf16.mxu1 %v13682_v42  ;;  %v13742_v26 = vld [vmem:[%s18727_s9 + $0x90c] ss:$28 sps:$4 sm:$0xff]   ;;  %v13745_v42 = vld [vmem:[%s18727_s9 + $0xcc4] ss:$28 sps:$4 sm:$0xff]  }
 0x7a2   :  { %10159 = vmatprep.subr.bf16.mxu0 %v13685_v49  ;;  %v13743_v49 = vld [vmem:[%s18727_s9 + $0xcc0] ss:$28 sps:$4 sm:$0xff]  }
 0x7a4   :  { %10121 = vmatpush1.bf16.msra.mxu1 %v13680_v61  ;;  %v13748_v61 = vld [vmem:[%s18727_s9 + $0x8d4] ss:$28 sps:$4 sm:$0xff]  }
 0x7a5   :  { %10160 = vmatpush1.bf16.msra.mxu0 %v13683_v52  ;;  %10122 = vmatprep.subr.bf16.mxu1 %v13688_v51  ;;  %v13751_v52 = vld [vmem:[%s18727_s9 + $0xc8c] ss:$28 sps:$4 sm:$0xff]  }
 0x7a6   :  { %10161 = vmatprep.subr.bf16.mxu0 %v13691_v39 }
 0x7a8   :  { %10123 = vmatpush1.bf16.msra.mxu1 %v13686_v62  ;;  %v13746_v62 = vld [vmem:[%s18727_s9 + $0x8d0] ss:$28 sps:$4 sm:$0xff]  }
 0x7a9   :  { %10162 = vmatpush1.bf16.msra.mxu0 %v13689_v0  ;;  %10124 = vmatprep.subr.bf16.mxu1 %v13694_v13  ;;  %v13749_v13 = vld [vmem:[%s18727_s9 + $0xc88] ss:$28 sps:$4 sm:$0xff]  }
 0x7aa   :  { %10163 = vmatprep.subr.bf16.mxu0 %v13697_v3  ;;  %v13754_v3 = vld [vmem:[%s18727_s9 + $0xf9c] ss:$28 sps:$4 sm:$0xff]  }
 0x7ac   :  { %10125 = vmatpush1.bf16.msra.mxu1 %v13692_v31 }
 0x7ad   :  { %10164 = vmatpush1.bf16.msra.mxu0 %v13695_v47  ;;  %10126 = vmatprep.subr.bf16.mxu1 %v13700_v43  ;;  %v13752_v43 = vld [vmem:[%s18727_s9 + $0xf98] ss:$28 sps:$4 sm:$0xff]  }
 0x7ae   :  { %10165 = vmatprep.subr.bf16.mxu0 %v13703_v6 }
 0x7b0   :  { %10127 = vmatpush1.bf16.msra.mxu1 %v13698_v11  ;;  %v13755_v11 = vld [vmem:[%s18727_s9 + $0xc50] ss:$28 sps:$4 sm:$0xff]  }
 0x7b1   :  { %10166 = vmatpush1.bf16.msra.mxu0 %v13701_v14  ;;  %10128 = vmatprep.subr.bf16.mxu1 %v13706_v45  ;;  %v13763_v14 = vld [vmem:[%s18727_s9 + $0x131c] ss:$28 sps:$4 sm:$0xff]  }
 0x7b2   :  { %10167 = vmatprep.subr.bf16.mxu0 %v13709_v41  ;;  %v13758_v45 = vld [vmem:[%s18727_s9 + $0xf60] ss:$28 sps:$4 sm:$0xff]   ;;  %v13761_v41 = vld [vmem:[%s18727_s9 + $0x1318] ss:$28 sps:$4 sm:$0xff]  }
 0x7b4   :  { %10129 = vmatpush2.bf16.msra.mxu1 %v13704_v48  ;;  %v13766_v48 = vld [vmem:[%s18727_s9 + $0xf2c] ss:$28 sps:$4 sm:$0xff]  }
 0x7b5   :  { %10168 = vmatpush1.bf16.msra.mxu0 %v13707_v29  ;;  %10130 = vmatprep.subr.bf16.mxu1 %v13712_v15  ;;  %v13769_v29 = vld [vmem:[%s18727_s9 + $0x12e4] ss:$28 sps:$4 sm:$0xff]  }
 0x7b6   :  { %10169 = vmatprep.subr.bf16.mxu0 %v13715_v9  ;;  %v13764_v9 = vld [vmem:[%s18727_s9 + $0xf28] ss:$28 sps:$4 sm:$0xff]  }
 0x7b8   :  { %10131 = vmatpush2.bf16.msra.mxu1 %v13710_v2  ;;  %v13767_v2 = vld [vmem:[%s18727_s9 + $0x12e0] ss:$28 sps:$4 sm:$0xff]  }
 0x7b9   :  { %10170 = vmatpush2.bf16.msra.mxu0 %v13713_v17  ;;  %10132 = vmatprep.subr.bf16.mxu1 %v13718_v24  ;;  %v13772_v17 = vld [vmem:[%s18727_s9 + $0xef4] ss:$28 sps:$4 sm:$0xff]  }
 0x7ba   :  { %10171 = vmatprep.subr.bf16.mxu0 %v13721_v7  ;;  %v13775_v7 = vld [vmem:[%s18727_s9 + $0x12ac] ss:$28 sps:$4 sm:$0xff]  }
 0x7bc   :  { %10133 = vmatpush2.bf16.msra.mxu1 %v13716_v16 }
 0x7bd   :  { %10172 = vmatpush2.bf16.msra.mxu0 %v13719_v18  ;;  %10134 = vmatprep.subr.bf16.mxu1 %v13724_v19  ;;  %v13770_v18 = vld [vmem:[%s18727_s9 + $0xef0] ss:$28 sps:$4 sm:$0xff]   ;;  %v13773_v19 = vld [vmem:[%s18727_s9 + $0x12a8] ss:$28 sps:$4 sm:$0xff]  }
 0x7be   :  { %10173 = vmatprep.subr.bf16.mxu0 %v13727_v23  ;;  %v13778_v23 = vld [vmem:[%s18727_s9 + $0xebc] ss:$28 sps:$4 sm:$0xff]  }
 0x7c0   :  { %10135 = vmatpush2.bf16.msra.mxu1 %v13722_v57 }
 0x7c1   :  { %10174 = vmatpush2.bf16.msra.mxu0 %v13725_v35  ;;  %10136 = vmatprep.subr.bf16.mxu1 %v13730_v10  ;;  %v13781_v35 = vld [vmem:[%s18727_s9 + $0x1274] ss:$28 sps:$4 sm:$0xff]  }
 0x7c2   :  { %10175 = vmatprep.subr.bf16.mxu0 %v13733_v58  ;;  %v13776_v10 = vld [vmem:[%s18727_s9 + $0xeb8] ss:$28 sps:$4 sm:$0xff]   ;;  %v13779_v58 = vld [vmem:[%s18727_s9 + $0x1270] ss:$28 sps:$4 sm:$0xff]  }
 0x7c4   :  { %10137 = vmatpush2.bf16.msra.mxu1 %v13728_v8  ;;  %v13784_v8 = vld [vmem:[%s18727_s9 + $0xe84] ss:$28 sps:$4 sm:$0xff]  }
 0x7c5   :  { %10176 = vmatpush2.bf16.msra.mxu0 %v13731_v21  ;;  %10138 = vmatprep.subr.bf16.mxu1 %v13736_v36  ;;  %v13787_v21 = vld [vmem:[%s18727_s9 + $0x123c] ss:$28 sps:$4 sm:$0xff]  }
 0x7c6   :  { %10177 = vmatprep.subr.bf16.mxu0 %v13739_v30  ;;  %v13782_v36 = vld [vmem:[%s18727_s9 + $0xe80] ss:$28 sps:$4 sm:$0xff]   ;;  %v13785_v30 = vld [vmem:[%s18727_s9 + $0x1238] ss:$28 sps:$4 sm:$0xff]  }
 0x7c8   :  { %10139 = vmatpush2.bf16.msra.mxu1 %v13734_v55  ;;  %v13790_v55 = vld [vmem:[%s18727_s9 + $0xe4c] ss:$28 sps:$4 sm:$0xff]  }
 0x7c9   :  { %10178 = vmatpush2.bf16.msra.mxu0 %v13737_v60  ;;  %10140 = vmatprep.subr.bf16.mxu1 %v13742_v26  ;;  %v13793_v60 = vld [vmem:[%s18727_s9 + $0x1204] ss:$28 sps:$4 sm:$0xff]  }
 0x7ca   :  { %10179 = vmatprep.subr.bf16.mxu0 %v13745_v42  ;;  %v13788_v26 = vld [vmem:[%s18727_s9 + $0xe48] ss:$28 sps:$4 sm:$0xff]   ;;  %v13791_v42 = vld [vmem:[%s18727_s9 + $0x1200] ss:$28 sps:$4 sm:$0xff]  }
 0x7cb   :  { %v9859_v51 = vpop.f32.mrf.mxu1 }
 0x7cc   :  { %v18003_v39 = vadd.f32 %v9859_v51, %v17844_v56  ;;  %10141 = vmatpush2.bf16.msra.mxu1 %v13740_v33  ;;  %v13757_v56 = vld [vmem:[%s18727_s9 + $0xc54] ss:$28 sps:$4 sm:$0xff]   ;;  %v13802_v51 = vld [vmem:[%s18727_s9 + $0x115c] ss:$28 sps:$4 sm:$0xff]  }
 0x7cd   :  { %10180 = vmatpush2.bf16.msra.mxu0 %v13743_v49  ;;  %v9861_v0 = vpop.f32.mrf.mxu1  ;;  %10142 = vmatprep.subr.bf16.mxu1 %v13748_v61  ;;  %v13796_v33 = vld [vmem:[%s18727_s9 + $0xe14] ss:$28 sps:$4 sm:$0xff]   ;;  %v13799_v49 = vld [vmem:[%s18727_s9 + $0x11cc] ss:$28 sps:$4 sm:$0xff]  }
 0x7ce   :  { %v18015_v31 = vadd.f32 %v9861_v0, %v17856_v37  ;;  %10181 = vmatprep.subr.bf16.mxu0 %v13751_v52  ;;  %v13760_v37 = vld [vmem:[%s18727_s9 + $0xf64] ss:$28 sps:$4 sm:$0xff]   ;;  %v13794_v61 = vld [vmem:[%s18727_s9 + $0xe10] ss:$28 sps:$4 sm:$0xff]   ;;  %v13800_v0 = vld [vmem:[%s18727_s9 + $0x1158] ss:$28 sps:$4 sm:$0xff]  }
 0x7cf   :  { %v9863_v47 = vpop.f32.mrf.mxu1  ;;  %v13797_v52 = vld [vmem:[%s18727_s9 + $0x11c8] ss:$28 sps:$4 sm:$0xff]  }
 0x7d0   :  { %10143 = vmatpush2.bf16.msra.mxu1 %v13746_v62  ;;  %v13805_v62 = vld [vmem:[%s18727_s9 + $0x1194] ss:$28 sps:$4 sm:$0xff]   ;;  %v13806_v47 = vld [vmem:[%s18727_s9 + $0x1120] ss:$28 sps:$4 sm:$0xff]  }
 0x7d1   :  { %10182 = vmatpush2.bf16.msra.mxu0 %v13749_v13  ;;  %v9864_v6 = vpop.f32.mrf.mxu1  ;;  %10194 = vmatprep.subr.bf16.mxu1 %v13754_v3  ;;  %v13803_v13 = vld [vmem:[%s18727_s9 + $0x1190] ss:$28 sps:$4 sm:$0xff]   ;;  %v13808_v3 = vld [vmem:[%s18727_s9 + $0x1124] ss:$28 sps:$4 sm:$0xff]  }
 0x7d2   :  { %10183 = vmatprep.subr.bf16.mxu0 %v13757_v56  ;;  %v13811_v56 = vld [vmem:[%s18727_s9 + $0x14dc] ss:$28 sps:$4 sm:$0xff]   ;;  %v13814_v6 = vld [vmem:[%s18727_s9 + $0x10ec] ss:$28 sps:$4 sm:$0xff]  }
 0x7d3   :  { %10145 = vmatmul.mubr.bf16.vlgmr.msra.gmra.mxu1 %v16536_v40 }
 0x7d4   :  { %10195 = vmatpush1.bf16.msra.mxu1 %v13752_v43  ;;  %10226 = vmatprep.mubr.bf16.mxu1 %v16539_v22  ;;  %v13809_v43 = vld [vmem:[%s18727_s9 + $0x14d8] ss:$28 sps:$4 sm:$0xff]  }
 0x7d5   :  { %10184 = vmatpush2.bf16.msra.mxu0 %v13755_v11  ;;  %10196 = vmatprep.subr.bf16.mxu1 %v13760_v37  ;;  %v13817_v11 = vld [vmem:[%s18727_s9 + $0x14a4] ss:$28 sps:$4 sm:$0xff]  }
 0x7d6   :  { %10235 = vmatprep.subr.bf16.mxu0 %v13763_v14  ;;  %v13812_v37 = vld [vmem:[%s18727_s9 + $0x10e8] ss:$28 sps:$4 sm:$0xff]   ;;  %v13815_v14 = vld [vmem:[%s18727_s9 + $0x14a0] ss:$28 sps:$4 sm:$0xff]  }
 0x7d8   :  { %v18046_v15 = vpop.f32.mrf.mxu0  ;;  %10186 = vmatmul.mubr.bf16.vlgmr.msra.gmra.mxu0 %v16562_v5  ;;  %10197 = vmatpush1.bf16.msra.mxu1 %v13758_v45  ;;  %v13820_v45 = vld [vmem:[%s18727_s9 + $0x10b4] ss:$28 sps:$4 sm:$0xff]  }
 0x7d9   :  { %10236 = vmatpush1.bf16.msra.mxu0 %v13761_v41  ;;  %10267 = vmatprep.mubr.bf16.mxu0 %v16570_v53  ;;  %v13823_v41 = vld [vmem:[%s18727_s9 + $0x146c] ss:$28 sps:$4 sm:$0xff]  }
 0x7da   :  { %v18059_v24 = vpop.f32.mrf.mxu0  ;;  %10198 = vmatprep.subr.bf16.mxu1 %v13766_v48  ;;  %10237 = vmatprep.subr.bf16.mxu0 %v13769_v29  ;;  %v13818_v48 = vld [vmem:[%s18727_s9 + $0x10b0] ss:$28 sps:$4 sm:$0xff]   ;;  %v13821_v29 = vld [vmem:[%s18727_s9 + $0x1468] ss:$28 sps:$4 sm:$0xff]  }
 0x7dc   :  { %v9904_v16 = vpop.f32.mrf.mxu0  ;;  %10199 = vmatpush1.bf16.msra.mxu1 %v13764_v9  ;;  %v13826_v9 = vld [vmem:[%s18727_s9 + $0x107c] ss:$28 sps:$4 sm:$0xff]  }
 0x7dd   :  { %10238 = vmatpush1.bf16.msra.mxu0 %v13767_v2  ;;  %10200 = vmatprep.subr.bf16.mxu1 %v13772_v17  ;;  %v13829_v2 = vld [vmem:[%s18727_s9 + $0x1434] ss:$28 sps:$4 sm:$0xff]   ;;  %v13832_v16 = vld [vmem:[%s18727_s9 + $0x1044] ss:$28 sps:$4 sm:$0xff]  }
 0x7de   :  { %v9905_v57 = vpop.f32.mrf.mxu0  ;;  %10239 = vmatprep.subr.bf16.mxu0 %v13775_v7  ;;  %v13824_v17 = vld [vmem:[%s18727_s9 + $0x1078] ss:$28 sps:$4 sm:$0xff]   ;;  %v13827_v7 = vld [vmem:[%s18727_s9 + $0x1430] ss:$28 sps:$4 sm:$0xff]  }
 0x7df   :  { %v13838_v57 = vld [vmem:[%s18727_s9 + $0x100c] ss:$28 sps:$4 sm:$0xff]  }
 0x7e0   :  { %10201 = vmatpush1.bf16.msra.mxu1 %v13770_v18  ;;  %v13835_v18 = vld [vmem:[%s18727_s9 + $0x13fc] ss:$28 sps:$4 sm:$0xff]  }
 0x7e1   :  { %10240 = vmatpush1.bf16.msra.mxu0 %v13773_v19  ;;  %10202 = vmatprep.subr.bf16.mxu1 %v13778_v23  ;;  %v13830_v19 = vld [vmem:[%s18727_s9 + $0x1040] ss:$28 sps:$4 sm:$0xff]   ;;  %v13833_v23 = vld [vmem:[%s18727_s9 + $0x13f8] ss:$28 sps:$4 sm:$0xff]  }
 0x7e2   :  { %10241 = vmatprep.subr.bf16.mxu0 %v13781_v35  ;;  %v13841_v35 = vld [vmem:[%s18727_s9 + $0x13c4] ss:$28 sps:$4 sm:$0xff]  }
 0x7e4   :  { %10203 = vmatpush1.bf16.msra.mxu1 %v13776_v10  ;;  %v13836_v10 = vld [vmem:[%s18727_s9 + $0x1008] ss:$28 sps:$4 sm:$0xff]  }
 0x7e5   :  { %10242 = vmatpush1.bf16.msra.mxu0 %v13779_v58  ;;  %10204 = vmatprep.subr.bf16.mxu1 %v13784_v8  ;;  %v13839_v58 = vld [vmem:[%s18727_s9 + $0x13c0] ss:$28 sps:$4 sm:$0xff]   ;;  %v13844_v8 = vld [vmem:[%s18727_s9 + $0xfd4] ss:$28 sps:$4 sm:$0xff]  }
 0x7e6   :  { %10243 = vmatprep.subr.bf16.mxu0 %v13787_v21  ;;  %v13847_v21 = vld [vmem:[%s18727_s9 + $0x138c] ss:$28 sps:$4 sm:$0xff]  }
 0x7e8   :  { %10205 = vmatpush1.bf16.msra.mxu1 %v13782_v36 }
 0x7e9   :  { %10244 = vmatpush1.bf16.msra.mxu0 %v13785_v30  ;;  %10206 = vmatprep.subr.bf16.mxu1 %v13790_v55  ;;  %v13842_v30 = vld [vmem:[%s18727_s9 + $0xfd0] ss:$28 sps:$4 sm:$0xff]  }
 0x7ea   :  { %10245 = vmatprep.subr.bf16.mxu0 %v13793_v60  ;;  %v13845_v60 = vld [vmem:[%s18727_s9 + $0x1388] ss:$28 sps:$4 sm:$0xff]  }
 0x7ec   :  { %10207 = vmatpush1.bf16.msra.mxu1 %v13788_v26  ;;  %v13850_v26 = vld [vmem:[%s18727_s9 + $0x169c] ss:$28 sps:$4 sm:$0xff]  }
 0x7ed   :  { %10246 = vmatpush1.bf16.msra.mxu0 %v13791_v42  ;;  %10208 = vmatprep.subr.bf16.mxu1 %v13796_v33  ;;  %v13853_v42 = vld [vmem:[%s18727_s9 + $0x1354] ss:$28 sps:$4 sm:$0xff]  }
 0x7ee   :  { %10247 = vmatprep.subr.bf16.mxu0 %v13799_v49  ;;  %v5259_v49 = vld [vmem:[%s18727_s9 + $0x1890] sm:$0xff] }
 0x7f0   :  { %10209 = vmatpush1.bf16.msra.mxu1 %v13794_v61  ;;  %v13848_v61 = vld [vmem:[%s18727_s9 + $0x1698] ss:$28 sps:$4 sm:$0xff]  }
 0x7f1   :  { %10248 = vmatpush1.bf16.msra.mxu0 %v13797_v52  ;;  %10210 = vmatprep.subr.bf16.mxu1 %v13802_v51  ;;  %v13851_v51 = vld [vmem:[%s18727_s9 + $0x1350] ss:$28 sps:$4 sm:$0xff]  }
 0x7f2   :  { %10249 = vmatprep.subr.bf16.mxu0 %v13805_v62  ;;  %v13856_v62 = vld [vmem:[%s18727_s9 + $0x1664] ss:$28 sps:$4 sm:$0xff]  }
 0x7f4   :  { %10211 = vmatpush2.bf16.msra.mxu1 %v13800_v0  ;;  %v11984_v0 = vcombine.high %v5259_v49, %v5259_v49 }
 0x7f5   :  { %10250 = vmatpush1.bf16.msra.mxu0 %v13803_v13  ;;  %10212 = vmatprep.subr.bf16.mxu1 %v13808_v3  ;;  %v11983_v13 = vcombine.low %v5259_v49, %v5259_v49 }
 0x7f6   :  { %10251 = vmatprep.subr.bf16.mxu0 %v13811_v56  ;;  %v13854_v56 = vld [vmem:[%s18727_s9 + $0x1660] ss:$28 sps:$4 sm:$0xff]  }
 0x7f8   :  { %10213 = vmatpush2.bf16.msra.mxu1 %v13806_v47  ;;  %v9901_v47 = vadd.f32 %v18046_v15, %v18003_v39 }
 0x7f9   :  { %10252 = vmatpush2.bf16.msra.mxu0 %v13809_v43  ;;  %10214 = vmatprep.subr.bf16.mxu1 %v13814_v6  ;;  %v13859_v6 = vld [vmem:[%s18727_s9 + $0x162c] ss:$28 sps:$4 sm:$0xff]  }
 0x7fa   :  { %10253 = vmatprep.subr.bf16.mxu0 %v13817_v11  ;;  %v9366_v11 = vsel %vm9352_vm4, %v11983_v13, 0  ;;  %v13891_v13 = vld [vmem:[%s18727_s9 + $0x88] ss:$28 sps:$4 sm:$0xff]  }
 0x7fc   :  { %10215 = vmatpush2.bf16.msra.mxu1 %v13812_v37  ;;  %v13865_v37 = vld [vmem:[%s18727_s9 + $0x360] ss:$28 sps:$4 sm:$0xff]  }
 0x7fd   :  { %10254 = vmatpush2.bf16.msra.mxu0 %v13815_v14  ;;  %10216 = vmatprep.subr.bf16.mxu1 %v13820_v45  ;;  %v9903_v14 = vadd.f32 %v18059_v24, %v18015_v31 }
 0x7fe   :  { %10255 = vmatprep.subr.bf16.mxu0 %v13823_v41  ;;  %v13857_v41 = vld [vmem:[%s18727_s9 + $0x1628] ss:$28 sps:$4 sm:$0xff]  }
 0x800   :  { %10217 = vmatpush2.bf16.msra.mxu1 %v13818_v48 }
 0x801   :  { %10256 = vmatpush2.bf16.msra.mxu0 %v13821_v29  ;;  %10218 = vmatprep.subr.bf16.mxu1 %v13826_v9 }
 0x802   :  { %10257 = vmatprep.subr.bf16.mxu0 %v13829_v2  ;;  %v13864_v2 = vld [vmem:[%s18727_s9 + $0x15f4] ss:$28 sps:$4 sm:$0xff]  }
 0x804   :  { %10219 = vmatpush2.bf16.msra.mxu1 %v13824_v17 }
 0x805   :  { %10258 = vmatpush2.bf16.msra.mxu0 %v13827_v7  ;;  %10220 = vmatprep.subr.bf16.mxu1 %v13832_v16  ;;  %v13862_v16 = vld [vmem:[%s18727_s9 + $0x15f0] ss:$28 sps:$4 sm:$0xff]  }
 0x806   :  { %10259 = vmatprep.subr.bf16.mxu0 %v13835_v18 }
 0x808   :  { %10221 = vmatpush2.bf16.msra.mxu1 %v13830_v19  ;;  %v13866_v19 = vld [vmem:[%s18727_s9 + $0x1a0] ss:$28 sps:$4 sm:$0xff]  }
 0x809   :  { %10260 = vmatpush2.bf16.msra.mxu0 %v13833_v23  ;;  %10222 = vmatprep.subr.bf16.mxu1 %v13838_v57  ;;  %v13870_v57 = vld [vmem:[%s18727_s9 + $0x328] ss:$28 sps:$4 sm:$0xff]  }
 0x80a   :  { %10261 = vmatprep.subr.bf16.mxu0 %v13841_v35  ;;  %v13867_v35 = vld [vmem:[%s18727_s9 + $0x15b8] ss:$28 sps:$4 sm:$0xff]  }
 0x80b   :  { %v9941_v36 = vpop.f32.mrf.mxu1 }
 0x80c   :  { %10223 = vmatpush2.bf16.msra.mxu1 %v13836_v10  ;;  %v9942_v45 = vadd.f32 %v9941_v36, %v9901_v47  ;;  %v13871_v10 = vld [vmem:[%s18727_s9 + $0x168] ss:$28 sps:$4 sm:$0xff]   ;;  %v13892_v47 = vld [vmem:[%s18727_s9 + $0x1820] ss:$28 sps:$4 sm:$0xff]  }
 0x80d   :  { %10262 = vmatpush2.bf16.msra.mxu0 %v13839_v58  ;;  %v9943_v55 = vpop.f32.mrf.mxu1  ;;  %10224 = vmatprep.subr.bf16.mxu1 %v13844_v8  ;;  %v13874_v58 = vld [vmem:[%s18727_s9 + $0x1584] ss:$28 sps:$4 sm:$0xff]   ;;  %v13875_v8 = vld [vmem:[%s18727_s9 + $0x2f0] ss:$28 sps:$4 sm:$0xff]  }
 0x80e   :  { %10263 = vmatprep.subr.bf16.mxu0 %v13847_v21  ;;  %v9944_v48 = vadd.f32 %v9943_v55, %v9903_v14  ;;  %v13872_v21 = vld [vmem:[%s18727_s9 + $0x1580] ss:$28 sps:$4 sm:$0xff]   ;;  %v13879_v36 = vld [vmem:[%s18727_s9 + $0x154c] ss:$28 sps:$4 sm:$0xff]   ;;  %v13901_v14 = vld [vmem:[%s18727_s9 + $0x18] ss:$28 sps:$4 sm:$0xff]  }
 0x80f   :  { %v9945_v33 = vpop.f32.mrf.mxu1  ;;  %v13877_v55 = vld [vmem:[%s18727_s9 + $0x1548] ss:$28 sps:$4 sm:$0xff]  }
 0x810   :  { %10225 = vmatpush2.bf16.msra.mxu1 %v13842_v30  ;;  %v13880_v30 = vld [vmem:[%s18727_s9 + $0x2b8] ss:$28 sps:$4 sm:$0xff]   ;;  %v13885_v33 = vld [vmem:[%s18727_s9 + $0x280] ss:$28 sps:$4 sm:$0xff]  }
 0x811   :  { %10264 = vmatpush2.bf16.msra.mxu0 %v13845_v60  ;;  %v9946_v52 = vpop.f32.mrf.mxu1  ;;  %10276 = vmatprep.subr.bf16.mxu1 %v13850_v26  ;;  %v13881_v60 = vld [vmem:[%s18727_s9 + $0xf8] ss:$28 sps:$4 sm:$0xff]  }
 0x812   :  { %10265 = vmatprep.subr.bf16.mxu0 %v13853_v42  ;;  %v13884_v26 = vld [vmem:[%s18727_s9 + $0x1514] ss:$28 sps:$4 sm:$0xff]   ;;  %v13886_v52 = vld [vmem:[%s18727_s9 + $0xc0] ss:$28 sps:$4 sm:$0xff]  }
 0x813   :  { %10227 = vmatmul.mubr.bf16.vlgmr.msra.gmra.mxu1 %v16760_v20  ;;  %v10023_v3 = vpop.f32.mrf.mxu1 }
 0x814   :  { %10277 = vmatpush1.bf16.msra.mxu1 %v13848_v61  ;;  %10308 = vmatprep.mubr.bf16.mxu1 %v16763_v25  ;;  %v13882_v61 = vld [vmem:[%s18727_s9 + $0x1510] ss:$28 sps:$4 sm:$0xff]  }
 0x815   :  { %10266 = vmatpush2.bf16.msra.mxu0 %v13851_v51  ;;  %v10025_v43 = vpop.f32.mrf.mxu1  ;;  %10278 = vmatprep.subr.bf16.mxu1 %v13856_v62  ;;  %v13889_v51 = vld [vmem:[%s18727_s9 + $0x185c] ss:$28 sps:$4 sm:$0xff]   ;;  %v13890_v62 = vld [vmem:[%s18727_s9 + $0x248] ss:$28 sps:$4 sm:$0xff]  }
 0x816   :  { %11990 = vmatprep.subr.msk.bf16.mxu0 %vm9352_vm4, %v11984_v0  ;;  %v13887_v0 = vld [vmem:[%s18727_s9 + $0x1858] ss:$28 sps:$4 sm:$0xff]  }
 0x817   :  { %v10027_v39 = vpop.f32.mrf.mxu1 }
 0x818   :  { %v9982_v15 = vpop.f32.mrf.mxu0  ;;  %10268 = vmatmul.mubr.bf16.vlgmr.msra.gmra.mxu0 %v16778_v63  ;;  %10279 = vmatpush1.bf16.msra.mxu1 %v13854_v56  ;;  %v13895_v56 = vld [vmem:[%s18727_s9 + $0x210] ss:$28 sps:$4 sm:$0xff]   ;;  %v13905_v39 = vld [vmem:[%s18727_s9 + $0xa60] ss:$28 sps:$4 sm:$0xff]  }
 0x819   :  { %v9983_v29 = vadd.f32 %v9982_v15, %v9942_v45  ;;  %v10028_v9 = vpop.f32.mrf.mxu1  ;;  %10280 = vmatprep.subr.bf16.mxu1 %v13859_v6  ;;  %10332 = vmatpush1.bf16.msra.mxu0 %v9366_v11  ;;  %v13899_v6 = vld [vmem:[%s18727_s9 + $0x17ec] ss:$28 sps:$4 sm:$0xff]   ;;  %v13900_v11 = vld [vmem:[%s18727_s9 + $0x1d8] ss:$28 sps:$4 sm:$0xff]  }
 0x81a   :  { %v9984_v31 = vpop.f32.mrf.mxu0  ;;  %10349 = vmatprep.mubr.bf16.mxu0 %v18732_v1  ;;  %12037 = vmatprep.subr.bf16.mxu0 %v13865_v37  ;;  %v13869_v1 = vld [vmem:[%s18727_s9 + $0x15bc] ss:$28 sps:$4 sm:$0xff]   ;;  %v13897_v37 = vld [vmem:[%s18727_s9 + $0x17e8] ss:$28 sps:$4 sm:$0xff]   ;;  %v13904_v45 = vld [vmem:[%s18727_s9 + $0x17b4] ss:$28 sps:$4 sm:$0xff]  }
 0x81b   :  { %v10024_v24 = vadd.f32 %v10023_v3, %v9983_v29  ;;  %v9985_v17 = vadd.f32 %v9984_v31, %v9944_v48  ;;  %v13894_v3 = vld [vmem:[%s18727_s9 + $0x1824] ss:$28 sps:$4 sm:$0xff]   ;;  %v13902_v15 = vld [vmem:[%s18727_s9 + $0x17b0] ss:$28 sps:$4 sm:$0xff]   ;;  %v13909_v48 = vld [vmem:[%s18727_s9 + $0x177c] ss:$28 sps:$4 sm:$0xff]  }
 0x81c   :  { %v9986_v7 = vpop.f32.mrf.mxu0  ;;  %10281 = vmatpush1.bf16.msra.mxu1 %v13857_v41  ;;  %v13906_v41 = vld [vmem:[%s18727_s9 + $0x8a0] ss:$28 sps:$4 sm:$0xff]   ;;  %v13910_v29 = vld [vmem:[%s18727_s9 + $0xa28] ss:$28 sps:$4 sm:$0xff]   ;;  %v13907_v9 = vld [vmem:[%s18727_s9 + $0x1778] ss:$28 sps:$4 sm:$0xff]  }
 0x81d   :  { %14018 = vtanh.f32 %v10024_v24  ;;  %v10026_v18 = vadd.f32 %v10025_v43, %v9985_v17  ;;  %10282 = vmatprep.subr.bf16.mxu1 %v13864_v2  ;;  %v13896_v43 = vld [vmem:[%s18727_s9 + $0x50] ss:$28 sps:$4 sm:$0xff]   ;;  %v13911_v2 = vld [vmem:[%s18727_s9 + $0x868] ss:$28 sps:$4 sm:$0xff]   ;;  %v13912_v24 = vld [vmem:[%s18727_s9 + $0x1740] ss:$28 sps:$4 sm:$0xff]  }
 0x81e   :  { %v9987_v23 = vpop.f32.mrf.mxu0  ;;  %v13914_v31 = vld [vmem:[%s18727_s9 + $0x1744] ss:$28 sps:$4 sm:$0xff]   ;;  %v13919_v17 = vld [vmem:[%s18727_s9 + $0x170c] ss:$28 sps:$4 sm:$0xff]   ;;  %v13920_v7 = vld [vmem:[%s18727_s9 + $0x9b8] ss:$28 sps:$4 sm:$0xff]  }
 0x81f   :  { %14020 = vtanh.f32 %v10026_v18  ;;  %v13921_v18 = vld [vmem:[%s18727_s9 + $0x7f8] ss:$28 sps:$4 sm:$0xff]   ;;  %v13925_v23 = vld [vmem:[%s18727_s9 + $0x980] ss:$28 sps:$4 sm:$0xff]  }
 0x820   :  { %10283 = vmatpush1.bf16.msra.mxu1 %v13862_v16  ;;  %11991 = vmatmul.mubr.msk.bf16.vlgmr.msra.gmra.mxu0 %vm9348_vm5, %v16802_v4  ;;  %v13917_v16 = vld [vmem:[%s18727_s9 + $0x1708] ss:$28 sps:$4 sm:$0xff]  }
 0x821   :  { %12038 = vmatpush3.bf16.msra.mxu0 %v13866_v19  ;;  %10390 = vmatprep.mubr.bf16.mxu0 %v16083_v44  ;;  %v13876_v44 = vld [vmem:[%s18727_s9 + $0x130] ss:$28 sps:$4 sm:$0xff]  }
 0x822   :  { %10284 = vmatprep.subr.bf16.mxu1 %v13869_v1  ;;  %12039 = vmatprep.subr.bf16.mxu0 %v13870_v57  ;;  %v13924_v19 = vld [vmem:[%s18727_s9 + $0x16d4] ss:$28 sps:$4 sm:$0xff]   ;;  %v13926_v57 = vld [vmem:[%s18727_s9 + $0x7c0] ss:$28 sps:$4 sm:$0xff]  }
 0x823   :  { %v13922_v1 = vld [vmem:[%s18727_s9 + $0x16d0] ss:$28 sps:$4 sm:$0xff]  }
 0x824   :  { %10285 = vmatpush1.bf16.msra.mxu1 %v13867_v35  ;;  %v13927_v35 = vld [vmem:[%s18727_s9 + $0x6e0] ss:$28 sps:$4 sm:$0xff]  }
 0x825   :  { %12040 = vmatpush3.bf16.msra.mxu0 %v13871_v10  ;;  %10286 = vmatprep.subr.bf16.mxu1 %v13874_v58  ;;  %v13928_v10 = vld [vmem:[%s18727_s9 + $0x948] ss:$28 sps:$4 sm:$0xff]   ;;  %v13929_v58 = vld [vmem:[%s18727_s9 + $0x520] ss:$28 sps:$4 sm:$0xff]  }
 0x826   :  { %12041 = vmatprep.subr.bf16.mxu0 %v13875_v8  ;;  %v13930_v8 = vld [vmem:[%s18727_s9 + $0x788] ss:$28 sps:$4 sm:$0xff]  }
 0x828   :  { %10287 = vmatpush1.bf16.msra.mxu1 %v13872_v21  ;;  %v13931_v21 = vld [vmem:[%s18727_s9 + $0x6a8] ss:$28 sps:$4 sm:$0xff]  }
 0x829   :  { %12042 = vmatpush3.bf16.msra.mxu0 %v13876_v44  ;;  %10288 = vmatprep.subr.bf16.mxu1 %v13879_v36  ;;  %v13932_v44 = vld [vmem:[%s18727_s9 + $0x910] ss:$28 sps:$4 sm:$0xff]   ;;  %v5282_v36 = vrot.slane %v17779_v34, %v15940_v59 }
 0x82a   :  { %v14019_v42 = vpop.eup %14018  ;;  %12043 = vmatprep.subr.bf16.mxu0 %v13880_v30  ;;  %v13934_v59 = vld [vmem:[%s18727_s9 + $0x750] ss:$28 sps:$4 sm:$0xff]  }
 0x82b   :  { %10687 = vst [vmem:[%s18729_s11 + $0x10] sm:$0xff] %v14019_v42  ;;  %v13935_v42 = vld [vmem:[%s18727_s9 + $0x670] ss:$28 sps:$4 sm:$0xff]  }
 0x82c   :  { %v14021_v49 = vpop.eup %14020  ;;  %10289 = vmatpush1.bf16.msra.mxu1 %v13877_v55  ;;  %v13933_v55 = vld [vmem:[%s18727_s9 + $0x4e8] ss:$28 sps:$4 sm:$0xff]  }
 0x82d   :  { %10688 = vst [vmem:[%s18729_s11 + $0x18] sm:$0xff] %v14021_v49  ;;  %12044 = vmatpush3.bf16.msra.mxu0 %v13881_v60  ;;  %10290 = vmatprep.subr.bf16.mxu1 %v13884_v26  ;;  %v5286_v60 = vrot.slane %v17779_v34, %v15955_v27  ;;  %v13937_v27 = vld [vmem:[%s18727_s9 + $0x4b0] ss:$28 sps:$4 sm:$0xff]  }
 0x82e   :  { %12045 = vmatprep.subr.bf16.mxu0 %v13885_v33 }
 0x830   :  { %10291 = vmatpush1.bf16.msra.mxu1 %v13882_v61 }
 0x831   :  { %12046 = vmatpush3.bf16.msra.mxu0 %v13886_v52  ;;  %10292 = vmatprep.subr.bf16.mxu1 %v13889_v51 }
 0x832   :  { %12047 = vmatprep.subr.bf16.mxu0 %v13890_v62  ;;  %v13938_v62 = vld [vmem:[%s18727_s9 + $0x718] ss:$28 sps:$4 sm:$0xff]  }
 0x834   :  { %10293 = vmatpush2.bf16.msra.mxu1 %v13887_v0  ;;  %v13939_v0 = vld [vmem:[%s18727_s9 + $0x638] ss:$28 sps:$4 sm:$0xff]  }
 0x835   :  { %12048 = vmatpush3.bf16.msra.mxu0 %v13891_v13  ;;  %10294 = vmatprep.subr.bf16.mxu1 %v13894_v3  ;;  %v13940_v3 = vld [vmem:[%s18727_s9 + $0x1160] ss:$28 sps:$4 sm:$0xff]  }
 0x836   :  { %12049 = vmatprep.subr.bf16.mxu0 %v13895_v56 }
 0x838   :  { %10295 = vmatpush2.bf16.msra.mxu1 %v13892_v47 }
 0x839   :  { %12050 = vmatpush3.bf16.msra.mxu0 %v13896_v43  ;;  %10296 = vmatprep.subr.bf16.mxu1 %v13899_v6  ;;  %v13941_v43 = vld [vmem:[%s18727_s9 + $0x478] ss:$28 sps:$4 sm:$0xff]   ;;  %v13942_v6 = vld [vmem:[%s18727_s9 + $0xfa0] ss:$28 sps:$4 sm:$0xff]  }
 0x83a   :  { %12051 = vmatprep.subr.bf16.mxu0 %v13900_v11 }
 0x83c   :  { %10297 = vmatpush2.bf16.msra.mxu1 %v13897_v37  ;;  %v13943_v37 = vld [vmem:[%s18727_s9 + $0x600] ss:$28 sps:$4 sm:$0xff]  }
 0x83d   :  { %12052 = vmatpush3.bf16.msra.mxu0 %v13901_v14  ;;  %10298 = vmatprep.subr.bf16.mxu1 %v13904_v45  ;;  %v13944_v14 = vld [vmem:[%s18727_s9 + $0x1128] ss:$28 sps:$4 sm:$0xff]   ;;  %v13945_v45 = vld [vmem:[%s18727_s9 + $0x440] ss:$28 sps:$4 sm:$0xff]  }
 0x83e   :  { %12081 = vmatprep.subr.bf16.mxu0 %v13905_v39  ;;  %v13946_v39 = vld [vmem:[%s18727_s9 + $0xf68] ss:$28 sps:$4 sm:$0xff]  }
 0x840   :  { %10391 = vmatmul.mubr.bf16.vlgmr.msra.gmra.mxu0 %v16315_v28  ;;  %10299 = vmatpush2.bf16.msra.mxu1 %v13902_v15  ;;  %v13915_v28 = vld [vmem:[%s18727_s9 + $0x9f0] ss:$28 sps:$4 sm:$0xff]   ;;  %v13947_v15 = vld [vmem:[%s18727_s9 + $0x5c8] ss:$28 sps:$4 sm:$0xff]  }
 0x841   :  { %12082 = vmatpush3.bf16.msra.mxu0 %v13906_v41  ;;  %10470 = vmatprep.mubr.bf16.mxu0 %v16320_v46  ;;  %v13916_v46 = vld [vmem:[%s18727_s9 + $0x830] ss:$28 sps:$4 sm:$0xff]   ;;  %v13949_v41 = vld [vmem:[%s18727_s9 + $0x408] ss:$28 sps:$4 sm:$0xff]  }
 0x842   :  { %10300 = vmatprep.subr.bf16.mxu1 %v13909_v48  ;;  %12083 = vmatprep.subr.bf16.mxu0 %v13910_v29  ;;  %v13951_v48 = vld [vmem:[%s18727_s9 + $0x590] ss:$28 sps:$4 sm:$0xff]   ;;  %v13952_v29 = vld [vmem:[%s18727_s9 + $0x10b8] ss:$28 sps:$4 sm:$0xff]  }
 0x844   :  { %10301 = vmatpush2.bf16.msra.mxu1 %v13907_v9  ;;  %v13953_v9 = vld [vmem:[%s18727_s9 + $0x3d0] ss:$28 sps:$4 sm:$0xff]  }
 0x845   :  { %12084 = vmatpush3.bf16.msra.mxu0 %v13911_v2  ;;  %10302 = vmatprep.subr.bf16.mxu1 %v13914_v31  ;;  %v13954_v2 = vld [vmem:[%s18727_s9 + $0xef8] ss:$28 sps:$4 sm:$0xff]  }
 0x846   :  { %12085 = vmatprep.subr.bf16.mxu0 %v13915_v28  ;;  %v13955_v31 = vld [vmem:[%s18727_s9 + $0x558] ss:$28 sps:$4 sm:$0xff]   ;;  %v13956_v28 = vld [vmem:[%s18727_s9 + $0x1080] ss:$28 sps:$4 sm:$0xff]  }
 0x848   :  { %10303 = vmatpush2.bf16.msra.mxu1 %v13912_v24  ;;  %v13957_v24 = vld [vmem:[%s18727_s9 + $0x398] ss:$28 sps:$4 sm:$0xff]  }
 0x849   :  { %12086 = vmatpush3.bf16.msra.mxu0 %v13916_v46  ;;  %10304 = vmatprep.subr.bf16.mxu1 %v13919_v17  ;;  %v13958_v46 = vld [vmem:[%s18727_s9 + $0xec0] ss:$28 sps:$4 sm:$0xff]  }
 0x84a   :  { %12087 = vmatprep.subr.bf16.mxu0 %v13920_v7  ;;  %v13959_v17 = vld [vmem:[%s18727_s9 + $0xde0] ss:$28 sps:$4 sm:$0xff]   ;;  %v13960_v7 = vld [vmem:[%s18727_s9 + $0x1048] ss:$28 sps:$4 sm:$0xff]  }
 0x84c   :  { %10305 = vmatpush2.bf16.msra.mxu1 %v13917_v16  ;;  %v13961_v16 = vld [vmem:[%s18727_s9 + $0xc20] ss:$28 sps:$4 sm:$0xff]  }
 0x84d   :  { %12088 = vmatpush3.bf16.msra.mxu0 %v13921_v18  ;;  %10306 = vmatprep.subr.bf16.mxu1 %v13924_v19  ;;  %v13962_v18 = vld [vmem:[%s18727_s9 + $0xe88] ss:$28 sps:$4 sm:$0xff]  }
 0x84e   :  { %12089 = vmatprep.subr.bf16.mxu0 %v13925_v23  ;;  %v13963_v19 = vld [vmem:[%s18727_s9 + $0xda8] ss:$28 sps:$4 sm:$0xff]   ;;  %v13964_v23 = vld [vmem:[%s18727_s9 + $0x1010] ss:$28 sps:$4 sm:$0xff]  }
 0x850   :  { %10307 = vmatpush2.bf16.msra.mxu1 %v13922_v1  ;;  %v13965_v1 = vld [vmem:[%s18727_s9 + $0xbe8] ss:$28 sps:$4 sm:$0xff]  }
 0x851   :  { %12090 = vmatpush3.bf16.msra.mxu0 %v13926_v57  ;;  %12059 = vmatprep.subr.bf16.mxu1 %v13927_v35  ;;  %v13966_v57 = vld [vmem:[%s18727_s9 + $0xe50] ss:$28 sps:$4 sm:$0xff]  }
 0x852   :  { %12091 = vmatprep.subr.bf16.mxu0 %v13928_v10  ;;  %v13967_v35 = vld [vmem:[%s18727_s9 + $0xd70] ss:$28 sps:$4 sm:$0xff]   ;;  %v13970_v10 = vld [vmem:[%s18727_s9 + $0xe18] ss:$28 sps:$4 sm:$0xff]  }
 0x853   :  { %v10064_v30 = vpop.f32.mrf.mxu1  ;;  %10309 = vmatmul.mubr.bf16.vlgmr.msra.gmra.mxu1 %v16967_v54 }
 0x854   :  { %12060 = vmatpush3.bf16.msra.mxu1 %v13929_v58  ;;  %10430 = vmatprep.mubr.bf16.mxu1 %v16103_v50  ;;  %v13936_v50 = vld [vmem:[%s18727_s9 + $0x8d8] ss:$28 sps:$4 sm:$0xff]   ;;  %v10065_v33 = vadd.f32 %v10064_v30, %v5282_v36  ;;  %v13975_v36 = vld [vmem:[%s18727_s9 + $0xd00] ss:$28 sps:$4 sm:$0xff]   ;;  %v13976_v30 = vld [vmem:[%s18727_s9 + $0x1828] ss:$28 sps:$4 sm:$0xff]  }
 0x855   :  { %12092 = vmatpush3.bf16.msra.mxu0 %v13930_v8  ;;  %v10066_v26 = vpop.f32.mrf.mxu1  ;;  %12061 = vmatprep.subr.bf16.mxu1 %v13931_v21  ;;  %v13971_v58 = vld [vmem:[%s18727_s9 + $0xd38] ss:$28 sps:$4 sm:$0xff]   ;;  %v13972_v8 = vld [vmem:[%s18727_s9 + $0x1860] ss:$28 sps:$4 sm:$0xff]  }
 0x856   :  { %12093 = vmatprep.subr.bf16.mxu0 %v13932_v44  ;;  %v10067_v34 = vadd.f32 %v10066_v26, %v5286_v60  ;;  %v13973_v21 = vld [vmem:[%s18727_s9 + $0xb78] ss:$28 sps:$4 sm:$0xff]   ;;  %v13974_v44 = vld [vmem:[%s18727_s9 + $0x16a0] ss:$28 sps:$4 sm:$0xff]   ;;  %v13978_v60 = vld [vmem:[%s18727_s9 + $0x1668] ss:$28 sps:$4 sm:$0xff]  }
 0x857   :  { %v10068_v49 = vpop.f32.mrf.mxu1  ;;  %v13979_v26 = vld [vmem:[%s18727_s9 + $0xcc8] ss:$28 sps:$4 sm:$0xff]  }
 0x858   :  { %v10105_v61 = vpop.f32.mrf.mxu0  ;;  %12062 = vmatpush3.bf16.msra.mxu1 %v13933_v55  ;;  %v13977_v55 = vld [vmem:[%s18727_s9 + $0xb40] ss:$28 sps:$4 sm:$0xff]   ;;  %v13986_v49 = vld [vmem:[%s18727_s9 + $0x15f8] ss:$28 sps:$4 sm:$0xff]  }
 0x859   :  { %v18457_v52 = vadd.f32 %v10105_v61, %v10065_v33  ;;  %12094 = vmatpush3.bf16.msra.mxu0 %v13934_v59  ;;  %v10069_v51 = vpop.f32.mrf.mxu1  ;;  %12063 = vmatprep.subr.bf16.mxu1 %v13935_v42  ;;  %v13981_v59 = vld [vmem:[%s18727_s9 + $0xb08] ss:$28 sps:$4 sm:$0xff]   ;;  %v13983_v42 = vld [vmem:[%s18727_s9 + $0xc90] ss:$28 sps:$4 sm:$0xff]   ;;  %v13987_v61 = vld [vmem:[%s18727_s9 + $0xc58] ss:$28 sps:$4 sm:$0xff]  }
 0x85a   :  { %v10107_v13 = vpop.f32.mrf.mxu0  ;;  %12095 = vmatprep.subr.bf16.mxu0 %v13936_v50  ;;  %v13984_v50 = vld [vmem:[%s18727_s9 + $0x17b8] ss:$28 sps:$4 sm:$0xff]   ;;  %v13985_v33 = vld [vmem:[%s18727_s9 + $0xad0] ss:$28 sps:$4 sm:$0xff]   ;;  %v13990_v51 = vld [vmem:[%s18727_s9 + $0x15c0] ss:$28 sps:$4 sm:$0xff]  }
 0x85b   :  { %v18468_v56 = vadd.f32 %v10107_v13, %v10067_v34  ;;  %v13989_v34 = vld [vmem:[%s18727_s9 + $0xa98] ss:$28 sps:$4 sm:$0xff]   ;;  %v13993_v13 = vld [vmem:[%s18727_s9 + $0x1320] ss:$28 sps:$4 sm:$0xff]  }
 0x85c   :  { %v10109_v47 = vpop.f32.mrf.mxu0  ;;  %12064 = vmatpush3.bf16.msra.mxu1 %v13937_v27  ;;  %v13988_v27 = vld [vmem:[%s18727_s9 + $0x1780] ss:$28 sps:$4 sm:$0xff]  }
 0x85d   :  { %12096 = vmatpush3.bf16.msra.mxu0 %v13938_v62  ;;  %12065 = vmatprep.subr.bf16.mxu1 %v13939_v0  ;;  %v13991_v62 = vld [vmem:[%s18727_s9 + $0x14e0] ss:$28 sps:$4 sm:$0xff]   ;;  %v13992_v0 = vld [vmem:[%s18727_s9 + $0x1748] ss:$28 sps:$4 sm:$0xff]  }
 0x85e   :  { %v10110_v11 = vpop.f32.mrf.mxu0  ;;  %12125 = vmatprep.subr.bf16.mxu0 %v13940_v3  ;;  %v13994_v3 = vld [vmem:[%s18727_s9 + $0x1588] ss:$28 sps:$4 sm:$0xff]  }
 0x85f   :  { %v13995_v47 = vld [vmem:[%s18727_s9 + $0x14a8] ss:$28 sps:$4 sm:$0xff]  }
 0x860   :  { %10471 = vmatmul.mubr.bf16.vlgmr.msra.gmra.mxu0 %v16536_v40  ;;  %12066 = vmatpush3.bf16.msra.mxu1 %v13941_v43  ;;  %v13948_v40 = vld [vmem:[%s18727_s9 + $0x10f0] ss:$28 sps:$4 sm:$0xff]  }
 0x861   :  { %12126 = vmatpush3.bf16.msra.mxu0 %v13942_v6  ;;  %10550 = vmatprep.mubr.bf16.mxu0 %v16539_v22  ;;  %v13950_v22 = vld [vmem:[%s18727_s9 + $0xf30] ss:$28 sps:$4 sm:$0xff]  }
 0x862   :  { %12067 = vmatprep.subr.bf16.mxu1 %v13943_v37  ;;  %12127 = vmatprep.subr.bf16.mxu0 %v13944_v14  ;;  %v13996_v43 = vld [vmem:[%s18727_s9 + $0x1710] ss:$28 sps:$4 sm:$0xff]   ;;  %v13997_v37 = vld [vmem:[%s18727_s9 + $0x12e8] ss:$28 sps:$4 sm:$0xff]  }
 0x864   :  { %12068 = vmatpush3.bf16.msra.mxu1 %v13945_v45  ;;  %v13998_v45 = vld [vmem:[%s18727_s9 + $0x1550] ss:$28 sps:$4 sm:$0xff]  }
 0x865   :  { %12128 = vmatpush3.bf16.msra.mxu0 %v13946_v39  ;;  %12069 = vmatprep.subr.bf16.mxu1 %v13947_v15 }
 0x866   :  { %12129 = vmatprep.subr.bf16.mxu0 %v13948_v40  ;;  %v14001_v40 = vld [vmem:[%s18727_s9 + $0x12b0] ss:$28 sps:$4 sm:$0xff]  }
 0x868   :  { %12070 = vmatpush3.bf16.msra.mxu1 %v13949_v41 }
 0x869   :  { %12130 = vmatpush3.bf16.msra.mxu0 %v13950_v22  ;;  %12071 = vmatprep.subr.bf16.mxu1 %v13951_v48  ;;  %v14003_v48 = vld [vmem:[%s18727_s9 + $0x1438] ss:$28 sps:$4 sm:$0xff]  }
 0x86a   :  { %12131 = vmatprep.subr.bf16.mxu0 %v13952_v29 }
 0x86c   :  { %12072 = vmatpush3.bf16.msra.mxu1 %v13953_v9 }
 0x86d   :  { %12132 = vmatpush3.bf16.msra.mxu0 %v13954_v2  ;;  %12073 = vmatprep.subr.bf16.mxu1 %v13955_v31  ;;  %v14004_v31 = vld [vmem:[%s18727_s9 + $0x1278] ss:$28 sps:$4 sm:$0xff]  }
 0x86e   :  { %12133 = vmatprep.subr.bf16.mxu0 %v13956_v28  ;;  %v14005_v28 = vld [vmem:[%s18727_s9 + $0x1400] ss:$28 sps:$4 sm:$0xff]  }
 0x870   :  { %12074 = vmatpush3.bf16.msra.mxu1 %v13957_v24 }
 0x871   :  { %12134 = vmatpush3.bf16.msra.mxu0 %v13958_v46  ;;  %12103 = vmatprep.subr.bf16.mxu1 %v13959_v17  ;;  %v14006_v46 = vld [vmem:[%s18727_s9 + $0x1240] ss:$28 sps:$4 sm:$0xff]   ;;  %v14007_v17 = vld [vmem:[%s18727_s9 + $0x13c8] ss:$28 sps:$4 sm:$0xff]  }
 0x872   :  { %12135 = vmatprep.subr.bf16.mxu0 %v13960_v7  ;;  %v14008_v7 = vld [vmem:[%s18727_s9 + $0x1208] ss:$28 sps:$4 sm:$0xff]  }
 0x873   :  { %10431 = vmatmul.mubr.bf16.vlgmr.msra.gmra.mxu1 %v16340_v32  ;;  %v13968_v32 = vld [vmem:[%s18727_s9 + $0xfd8] ss:$28 sps:$4 sm:$0xff]  }
 0x874   :  { %12104 = vmatpush3.bf16.msra.mxu1 %v13961_v16  ;;  %10510 = vmatprep.mubr.bf16.mxu1 %v16345_v38  ;;  %v13969_v38 = vld [vmem:[%s18727_s9 + $0xbb0] ss:$28 sps:$4 sm:$0xff]  }
 0x875   :  { %12136 = vmatpush3.bf16.msra.mxu0 %v13962_v18  ;;  %12105 = vmatprep.subr.bf16.mxu1 %v13963_v19  ;;  %v14010_v16 = vld [vmem:[%s18727_s9 + $0x11d0] ss:$28 sps:$4 sm:$0xff]   ;;  %v14011_v18 = vld [vmem:[%s18727_s9 + $0x1358] ss:$28 sps:$4 sm:$0xff]  }
 0x876   :  { %12137 = vmatprep.subr.bf16.mxu0 %v13964_v23  ;;  %v14012_v19 = vld [vmem:[%s18727_s9 + $0x1198] ss:$28 sps:$4 sm:$0xff]  }
 0x877   :  { %v14013_v23 = vld [vmem:[%s18727_s9 + $0x1898] ss:$0 sps:$4 sm:$0xff]  }
 0x878   :  { %12106 = vmatpush3.bf16.msra.mxu1 %v13965_v1  ;;  %v14035_v1 = vmov 0.0  }
 0x879   :  { %12138 = vmatpush3.bf16.msra.mxu0 %v13966_v57  ;;  %12107 = vmatprep.subr.bf16.mxu1 %v13967_v35  ;;  %v9372_v57 = vsel %vm9352_vm4, %v14013_v23, 0 }
 0x87a   :  { %12139 = vmatprep.subr.bf16.mxu0 %v13968_v32 }
 0x87c   :  { %12108 = vmatpush3.bf16.msra.mxu1 %v13969_v38 }
 0x87d   :  { %12140 = vmatpush3.bf16.msra.mxu0 %v13970_v10  ;;  %12109 = vmatprep.subr.bf16.mxu1 %v13971_v58 }
 0x87e   :  { %12169 = vmatprep.subr.bf16.mxu0 %v13972_v8 }
 0x880   :  { %10551 = vmatmul.mubr.bf16.vlgmr.msra.gmra.mxu0 %v16760_v20  ;;  %12110 = vmatpush3.bf16.msra.mxu1 %v13973_v21  ;;  %v13980_v20 = vld [vmem:[%s18727_s9 + $0x17f0] ss:$28 sps:$4 sm:$0xff]  }
 0x881   :  { %12170 = vmatpush3.bf16.msra.mxu0 %v13974_v44  ;;  %10630 = vmatprep.mubr.bf16.mxu0 %v16763_v25  ;;  %v13982_v25 = vld [vmem:[%s18727_s9 + $0x1630] ss:$28 sps:$4 sm:$0xff]  }
 0x882   :  { %12111 = vmatprep.subr.bf16.mxu1 %v13975_v36  ;;  %12171 = vmatprep.subr.bf16.mxu0 %v13976_v30 }
 0x884   :  { %12112 = vmatpush3.bf16.msra.mxu1 %v13977_v55 }
 0x885   :  { %12172 = vmatpush3.bf16.msra.mxu0 %v13978_v60  ;;  %12113 = vmatprep.subr.bf16.mxu1 %v13979_v26 }
 0x886   :  { %12173 = vmatprep.subr.bf16.mxu0 %v13980_v20 }
 0x888   :  { %12114 = vmatpush3.bf16.msra.mxu1 %v13981_v59 }
 0x889   :  { %12174 = vmatpush3.bf16.msra.mxu0 %v13982_v25  ;;  %12115 = vmatprep.subr.bf16.mxu1 %v13983_v42 }
 0x88a   :  { %12175 = vmatprep.subr.bf16.mxu0 %v13984_v50 }
 0x88c   :  { %12116 = vmatpush3.bf16.msra.mxu1 %v13985_v33 }
 0x88d   :  { %12176 = vmatpush3.bf16.msra.mxu0 %v13986_v49  ;;  %12117 = vmatprep.subr.bf16.mxu1 %v13987_v61 }
 0x88e   :  { %12177 = vmatprep.subr.bf16.mxu0 %v13988_v27 }
 0x890   :  { %12118 = vmatpush3.bf16.msra.mxu1 %v13989_v34 }
 0x891   :  { %12178 = vmatpush3.bf16.msra.mxu0 %v13990_v51  ;;  %12147 = vmatprep.subr.bf16.mxu1 %v13991_v62 }
 0x892   :  { %12179 = vmatprep.subr.bf16.mxu0 %v13992_v0 }
 0x893   :  { %v10146_v6 = vpop.f32.mrf.mxu1  ;;  %10511 = vmatmul.mubr.bf16.vlgmr.msra.gmra.mxu1 %v16562_v5  ;;  %v13999_v5 = vld [vmem:[%s18727_s9 + $0x1470] ss:$28 sps:$4 sm:$0xff]  }
 0x894   :  { %v10147_v11 = vadd.f32 %v10146_v6, %v18457_v52  ;;  %12148 = vmatpush3.bf16.msra.mxu1 %v13993_v13  ;;  %10590 = vmatprep.mubr.bf16.mxu1 %v16570_v53  ;;  %v14000_v53 = vld [vmem:[%s18727_s9 + $0x16d8] ss:$28 sps:$4 sm:$0xff]  }
 0x895   :  { %12180 = vmatpush3.bf16.msra.mxu0 %v13994_v3  ;;  %v10148_v14 = vpop.f32.mrf.mxu1  ;;  %12149 = vmatprep.subr.bf16.mxu1 %v13995_v47 }
 0x896   :  { %v10149_v52 = vadd.f32 %v10148_v14, %v18468_v56  ;;  %12181 = vmatprep.subr.bf16.mxu0 %v13996_v43  ;;  %v14002_v56 = vld [vmem:[%s18727_s9 + $0x1518] ss:$28 sps:$4 sm:$0xff]  }
 0x897   :  { %v10150_v39 = vpop.f32.mrf.mxu1 }
 0x898   :  { %v10187_v15 = vpop.f32.mrf.mxu0  ;;  %12150 = vmatpush3.bf16.msra.mxu1 %v13997_v37 }
 0x899   :  { %v10188_v41 = vadd.f32 %v10187_v15, %v10147_v11  ;;  %12182 = vmatpush3.bf16.msra.mxu0 %v13998_v45  ;;  %v10151_v22 = vpop.f32.mrf.mxu1  ;;  %12151 = vmatprep.subr.bf16.mxu1 %v13999_v5  ;;  %v14031_v45 = vld [vmem:[%s18728_s10] sm:$0x7f] }
 0x89a   :  { %v10189_v29 = vpop.f32.mrf.mxu0  ;;  %12183 = vmatprep.subr.bf16.mxu0 %v14000_v53  ;;  %v5290_v5 = vrot.slane %v14031_v45, %v16147_v12 }
 0x89b   :  { %v10190_v9 = vadd.f32 %v10189_v29, %v10149_v52 }
 0x89c   :  { %v10191_v2 = vpop.f32.mrf.mxu0  ;;  %12152 = vmatpush3.bf16.msra.mxu1 %v14001_v40 }
 0x89d   :  { %12184 = vmatpush3.bf16.msra.mxu0 %v14002_v56  ;;  %12153 = vmatprep.subr.bf16.mxu1 %v14003_v48 }
 0x89e   :  { %v10192_v24 = vpop.f32.mrf.mxu0 }
 0x8a0   :  { %10631 = vmatmul.mubr.bf16.vlgmr.msra.gmra.mxu0 %v16967_v54  ;;  %12154 = vmatpush3.bf16.msra.mxu1 %v14004_v31  ;;  %v14009_v54 = vld [vmem:[%s18727_s9 + $0x1390] ss:$28 sps:$4 sm:$0xff]  }
 0x8a1   :  { %12155 = vmatprep.subr.bf16.mxu1 %v14005_v28 }
 0x8a4   :  { %12156 = vmatpush3.bf16.msra.mxu1 %v14006_v46 }
 0x8a5   :  { %12157 = vmatprep.subr.bf16.mxu1 %v14007_v17 }
 0x8a8   :  { %12158 = vmatpush3.bf16.msra.mxu1 %v14008_v7 }
 0x8a9   :  { %12159 = vmatprep.subr.bf16.mxu1 %v14009_v54 }
 0x8ac   :  { %12160 = vmatpush3.bf16.msra.mxu1 %v14010_v16 }
 0x8ad   :  { %12161 = vmatprep.subr.bf16.mxu1 %v14011_v18 }
 0x8b0   :  { %12162 = vmatpush3.bf16.msra.mxu1 %v14012_v19 }
 0x8b1   :  { %12193 = vmatprep.subr.bf16.mxu1 %v14035_v1 }
 0x8b3   :  { %10591 = vmatmul.mubr.bf16.vlgmr.msra.gmra.mxu1 %v16778_v63 }
 0x8b4   :  { %12194 = vmatpush3.bf16.msra.mxu1 %v9372_v57  ;;  %12195 = vmatprep.mubr.msk.bf16.mxu1 %vm14036_vm6, %v14035_v1 }
 0x8bb   :  { %12196 = vmatmul.mubr.msk.bf16.vlgmr.msra.gmra.mxu1 %vm9348_vm5, %v16802_v4 }
 0x8d3   :  { %v10228_v35 = vpop.f32.mrf.mxu1 }
 0x8d4   :  { %v10229_v42 = vadd.f32 %v10228_v35, %v10188_v41 }
 0x8d5   :  { %v10230_v32 = vpop.f32.mrf.mxu1 }
 0x8d6   :  { %v10231_v50 = vadd.f32 %v10230_v32, %v10190_v9 }
 0x8d7   :  { %v10232_v38 = vpop.f32.mrf.mxu1 }
 0x8d8   :  { %v10269_v10 = vpop.f32.mrf.mxu0 }
 0x8d9   :  { %v10233_v58 = vpop.f32.mrf.mxu1  ;;  %v10270_v4 = vadd.f32 %v10269_v10, %v10229_v42 }
 0x8da   :  { %v10271_v8 = vpop.f32.mrf.mxu0 }
 0x8db   :  { %v10272_v49 = vadd.f32 %v10271_v8, %v10231_v50 }
 0x8dc   :  { %v10273_v21 = vpop.f32.mrf.mxu0 }
 0x8de   :  { %v10274_v44 = vpop.f32.mrf.mxu0 }
 0x8e0   :  { %v10351_v36 = vpop.f32.mrf.mxu0 }
 0x8e2   :  { %v10353_v30 = vpop.f32.mrf.mxu0 }
 0x8e4   :  { %v10355_v55 = vpop.f32.mrf.mxu0 }
 0x8e6   :  { %v10356_v60 = vpop.f32.mrf.mxu0 }
 0x900   :  { %v12053_v26 = vpop.f32.mrf.mxu0 }
 0x902   :  { %v12054_v63 = vpop.f32.mrf.mxu0 }
 0x903   :  { %v12055_v20 = vadd.f32 %v12054_v63, %v12053_v26 }
 0x904   :  { %v12056_v59 = vpop.f32.mrf.mxu0 }
 0x905   :  { %v10393_v39 = vadd.f32 %v12055_v20, %v5290_v5 }
 0x906   :  { %v12057_v25 = vpop.f32.mrf.mxu0 }
 0x913   :  { %v10310_v33 = vpop.f32.mrf.mxu1 }
 0x914   :  { %v10311_v61 = vadd.f32 %v10310_v33, %v10270_v4 }
 0x915   :  { %v10312_v27 = vpop.f32.mrf.mxu1 }
 0x916   :  { %v10352_v34 = vadd.f32 %v10351_v36, %v10311_v61  ;;  %v10313_v51 = vadd.f32 %v10312_v27, %v10272_v49 }
 0x917   :  { %v10314_v62 = vpop.f32.mrf.mxu1 }
 0x918   :  { %14022 = vtanh.f32 %v10352_v34  ;;  %v10354_v0 = vadd.f32 %v10353_v30, %v10313_v51 }
 0x919   :  { %v10315_v13 = vpop.f32.mrf.mxu1 }
 0x91a   :  { %14024 = vtanh.f32 %v10354_v0 }
 0x920   :  { %v12097_v3 = vpop.f32.mrf.mxu0 }
 0x922   :  { %v12098_v47 = vpop.f32.mrf.mxu0 }
 0x923   :  { %v12099_v43 = vadd.f32 %v12098_v47, %v12097_v3 }
 0x924   :  { %v12100_v6 = vpop.f32.mrf.mxu0 }
 0x925   :  { %v14023_v11 = vpop.eup %14022 }
 0x926   :  { %10689 = vst [vmem:[%s18729_s11 + $0x20] sm:$0xff] %v14023_v11  ;;  %v12101_v37 = vpop.f32.mrf.mxu0 }
 0x927   :  { %v14025_v14 = vpop.eup %14024 }
 0x928   :  { %10690 = vst [vmem:[%s18729_s11 + $0x28] sm:$0xff] %v14025_v14 }
 0x933   :  { %v12075_v52 = vpop.f32.mrf.mxu1 }
 0x935   :  { %v12076_v53 = vpop.f32.mrf.mxu1 }
 0x936   :  { %v12077_v15 = vadd.f32 %v12076_v53, %v12075_v52 }
 0x937   :  { %v12078_v40 = vpop.f32.mrf.mxu1 }
 0x938   :  { %v10433_v41 = vadd.f32 %v12077_v15, %v10393_v39 }
 0x939   :  { %v12079_v22 = vpop.f32.mrf.mxu1 }
 0x93a   :  { %v10473_v56 = vadd.f32 %v12099_v43, %v10433_v41 }
 0x940   :  { %v12141_v48 = vpop.f32.mrf.mxu0 }
 0x942   :  { %v12142_v29 = vpop.f32.mrf.mxu0 }
 0x943   :  { %v12143_v23 = vadd.f32 %v12142_v29, %v12141_v48 }
 0x944   :  { %v12144_v9 = vpop.f32.mrf.mxu0 }
 0x946   :  { %v12145_v2 = vpop.f32.mrf.mxu0 }
 0x953   :  { %v12119_v31 = vpop.f32.mrf.mxu1 }
 0x955   :  { %v12120_v28 = vpop.f32.mrf.mxu1 }
 0x956   :  { %v12121_v16 = vadd.f32 %v12120_v28, %v12119_v31 }
 0x957   :  { %v12122_v24 = vpop.f32.mrf.mxu1 }
 0x958   :  { %v10513_v18 = vadd.f32 %v12121_v16, %v10473_v56 }
 0x959   :  { %v12123_v46 = vpop.f32.mrf.mxu1 }
 0x95a   :  { %v10553_v57 = vadd.f32 %v12143_v23, %v10513_v18 }
 0x960   :  { %v12185_v17 = vpop.f32.mrf.mxu0 }
 0x962   :  { %v12186_v7 = vpop.f32.mrf.mxu0 }
 0x963   :  { %v12187_v38 = vadd.f32 %v12186_v7, %v12185_v17 }
 0x964   :  { %v12188_v54 = vpop.f32.mrf.mxu0 }
 0x966   :  { %v12189_v12 = vpop.f32.mrf.mxu0 }
 0x973   :  { %v12163_v19 = vpop.f32.mrf.mxu1 }
 0x975   :  { %v12164_v1 = vpop.f32.mrf.mxu1 }
 0x976   :  { %v12165_v35 = vadd.f32 %v12164_v1, %v12163_v19 }
 0x977   :  { %v12166_v32 = vpop.f32.mrf.mxu1 }
 0x978   :  { %v10593_v10 = vadd.f32 %v12165_v35, %v10553_v57 }
 0x979   :  { %v12167_v58 = vpop.f32.mrf.mxu1 }
 0x97a   :  { %v10633_v8 = vadd.f32 %v12187_v38, %v10593_v10 }
 0x97b   :  { %v10672_v21 = vpop.f32.mrf.mxu1 }
 0x97c   :  { %v10673_v44 = vadd.f32 %v10672_v21, %v10633_v8 }
 0x97d   :  { %v12197_v36 = vpop.f32.mrf.mxu1 }
 0x97e   :  { %14026 = vtanh.f32 %v10673_v44 }
 0x97f   :  { %v10675_v30 = vpop.f32.mrf.mxu1 }
 0x981   :  { %v12198_v55 = vpop.f32.mrf.mxu1 }
 0x98b   :  { %v14027_v60 = vpop.eup %14026 }
 0x98c   :  { %10691 = vst.msk [vmem:[%s18729_s11 + $0x30] sm:$0xff] %vm1035_vm2, %v14027_v60 }

</bundles_post_ra>
